<compile_context>
chip_gen: v7x
topology: tpu7x:2x2x1
jax: 0.10.0
libtpu: 0.0.40
codegen_flags: <defaults>
</compile_context>

<pallas_src>
import math

import jax
import jax.numpy as jnp
from jax.experimental import pallas as pl
from jax.experimental.pallas import tpu as pltpu

# ---------------- problem sizes (small, consistent with the module) ----------------
B = 2          # batch
CIN = 2        # stereo input audio
T = 441        # input samples @ 44100 Hz  (-> exactly 160 samples @ 16000 Hz)
SOURCES = 4    # demucs sources; index 3 = vocals
C_SRC = 2      # stereo per source
HD = 16        # demucs stand-in hidden width
ORIG_SR, NEW_SR = 44100, 16000
WIN, STRIDE = 10, 5                                   # wav2vec feature-extractor framing
HID = 32                                              # wav2vec hidden
VOCAB = 32                                            # CTC vocab size
T_OUT = int(math.ceil(T * NEW_SR / ORIG_SR))          # 160
NFRAMES = (T_OUT - WIN) // STRIDE + 1                 # 31
NF_PAD = 32                                           # pad 31 -> 32 frames (lane-dense 1024)
LD = NF_PAD * HID                                     # 1024   (HID == VOCAB)
WE_OFF = T_OUT                                        # row offsets in packed bf16 slab
WL_OFF = T_OUT + LD
ST_OFF = 8                                            # row offset of S^T inside p_misc


def _gelu(x):
    c = jnp.float32(0.7978845608028654)  # sqrt(2/pi); tanh approximation of GELU
    return 0.5 * x * (1.0 + jnp.tanh(c * (x + 0.044715 * x * x * x)))


# ================================ fused kernel =========================================
def fused_kernel(x_ref, ps_ref, pm_ref, s_ref, rt_ref, wbig_ref, o_ref):
    # x:    (CIN*B, T) f32, channel-major rows [c0b0, c0b1, c1b0, c1b1]
    # ps:   (HD, 8)   f32, cols: w1[:,0], w1[:,1], b1, wvoc, bvoc(bcast), 0...
    # pm:   (8+NF_PAD, LD) f32, rows 0/1/2 = tiled bf/be/bl, rows 8.. = S^T (NF_PAD, LD)
    # s:    (LD, NF_PAD) f32 segment-sum matrix S
    # rt:   (T, T_OUT) bf16 windowed-sinc resample matrix
    # wbig: (T_OUT + 2*LD, LD) bf16 = [Wframe ; We_blockdiag ; Wl_blockdiag]
    # o:    (B, LD) f32   (B, NF_PAD*VOCAB) lane-dense log-probs
    f32 = jnp.float32

    # ---- demucs stand-in + folded vocals -> mono (B, T); no per-batch loop ----
    x_c0 = x_ref[0:B, :][:, None, :]                       # (B, 1, T)
    x_c1 = x_ref[B:2 * B, :][:, None, :]                   # (B, 1, T)
    w1_0 = ps_ref[:, 0:1][None, :, :]                      # (1, HD, 1)
    w1_1 = ps_ref[:, 1:2][None, :, :]
    b1 = ps_ref[:, 2:3][None, :, :]
    wvoc = ps_ref[:, 3:4][None, :, :]
    bvoc = ps_ref[0:1, 4:5]                                # (1, 1)
    h = jnp.maximum(x_c0 * w1_0 + x_c1 * w1_1 + b1, 0.0)   # (B, HD, T) on the VPU
    mono = jnp.sum(h * wvoc, axis=1) + bvoc                # (B, T) sublane reduce

    # ---- resample 44100 -> 16000 (MXU, bf16 operands, f32 accumulation) ----
    mono_sr = jnp.dot(mono.astype(jnp.bfloat16), rt_ref[...],
                      preferred_element_type=f32)          # (B, T_OUT) f32

    # ---- per-utterance normalization (f32, unbiased variance like torch.var) ----
    mean = jnp.mean(mono_sr, axis=1, keepdims=True)
    d = mono_sr - mean
    var = jnp.sum(d * d, axis=1, keepdims=True) * f32(1.0 / (T_OUT - 1))
    norm = d * jax.lax.rsqrt(var + f32(1e-5))              # (B, T_OUT)

    # ---- framing + MLP, fully lane-dense (B, LD); weights are bf16, acc f32 ----
    wframe = wbig_ref[0:T_OUT, :]                          # (T_OUT, LD)
    we_bd = wbig_ref[WE_OFF:WE_OFF + LD, :]                # (LD, LD) block-diag(we)
    wl_bd = wbig_ref[WL_OFF:WL_OFF + LD, :]                # (LD, LD) block-diag(wl)
    bf_t = pm_ref[0:1, :]
    be_t = pm_ref[1:2, :]
    bl_t = pm_ref[2:3, :]
    st = pm_ref[ST_OFF:ST_OFF + NF_PAD, :]                 # (NF_PAD, LD) = S^T

    h1 = _gelu(jnp.dot(norm.astype(jnp.bfloat16), wframe,
                       preferred_element_type=f32) + bf_t)                 # (B, LD)
    h2 = _gelu(jnp.dot(h1.astype(jnp.bfloat16), we_bd,
                       preferred_element_type=f32) + be_t)                 # (B, LD)
    logits = jnp.dot(h2.astype(jnp.bfloat16), wl_bd,
                     preferred_element_type=f32) + bl_t                    # (B, LD)

    # ---- per-frame (32-lane segment) log_softmax, still lane-dense ----
    # Row-global max is a valid (shift-invariant) stabilizer for every segment.
    m = jnp.max(logits, axis=-1, keepdims=True)            # (B, 1)
    ls = logits - m
    e = jnp.exp(ls)                                        # EUP
    hp = jax.lax.Precision.HIGHEST
    seg = jnp.dot(e, s_ref[...], preferred_element_type=f32, precision=hp)   # (B, NF_PAD)
    seg_b = jnp.dot(seg, st, preferred_element_type=f32, precision=hp)       # (B, LD)
    o_ref[...] = ls - jnp.log(seg_b)                       # dense (B, 1024) store


# ================================ wrapper: weight folding & packing ======================
def make_resample_matrix(t_in, orig_sr, new_sr, width=16):
    t_out = int(math.ceil(t_in * new_sr / orig_sr))
    ratio = new_sr / orig_sr
    j = jnp.arange(t_in, dtype=jnp.float32)[None, :]
    ti = (jnp.arange(t_out, dtype=jnp.float32) / jnp.float32(ratio))[:, None]
    dd = (j - ti) * jnp.float32(ratio)
    sinc = jnp.sinc(dd)
    hann = jnp.where(jnp.abs(dd) < width, 0.5 * (1.0 + jnp.cos(jnp.pi * dd / width)), 0.0)
    r = (sinc * hann * jnp.float32(ratio)).astype(jnp.float32)   # (t_out, t_in)
    return r.T                                                   # (t_in, t_out)


def fold_vocals(dw2, db2):
    # mean over the 2 stereo channels of source 3 (rows 6, 7), folded into the weights
    r0, r1 = 3 * C_SRC, 3 * C_SRC + 1
    w_voc = (0.5 * (dw2[r0:r0 + 1, :] + dw2[r1:r1 + 1, :])).T        # (HD, 1)
    b_voc = 0.5 * (db2[r0:r0 + 1, :] + db2[r1:r1 + 1, :])            # (1, 1)
    return w_voc, b_voc


def build_frame_matrix(wf):
    # Wframe[t, f*HID + k] = wf[t - f*STRIDE, k] for 0 <= t - f*STRIDE < WIN, else 0
    m = jnp.zeros((T_OUT, LD), jnp.float32)
    for f in range(NFRAMES):                                          # frame 31 stays zero (pad)
        m = m.at[f * STRIDE:f * STRIDE + WIN, f * HID:(f + 1) * HID].set(wf)
    return m


def init_params(key):
    ks = jax.random.split(key, 8)
    scale = 0.2
    return {
        "dw1": scale * jax.random.normal(ks[0], (HD, CIN), jnp.float32),
        "db1": scale * jax.random.normal(ks[1], (HD, 1), jnp.float32),
        "dw2": scale * jax.random.normal(ks[2], (SOURCES * C_SRC, HD), jnp.float32),
        "db2": scale * jax.random.normal(ks[3], (SOURCES * C_SRC, 1), jnp.float32),
        "wf": scale * jax.random.normal(ks[4], (WIN, HID), jnp.float32),
        "bf": jnp.zeros((1, HID), jnp.float32),
        "we": scale * jax.random.normal(ks[5], (HID, HID), jnp.float32),
        "be": jnp.zeros((1, HID), jnp.float32),
        "wl": scale * jax.random.normal(ks[6], (HID, VOCAB), jnp.float32),
        "bl": scale * jax.random.normal(ks[7], (1, VOCAB), jnp.float32),
    }


def pack_params(params, rt):
    # small f32 slab: per-hidden-unit demucs columns + folded vocals weights
    w_voc, b_voc = fold_vocals(params["dw2"], params["db2"])
    ps = jnp.zeros((HD, 8), jnp.float32)
    ps = ps.at[:, 0].set(params["dw1"][:, 0])
    ps = ps.at[:, 1].set(params["dw1"][:, 1])
    ps = ps.at[:, 2].set(params["db1"][:, 0])
    ps = ps.at[:, 3].set(w_voc[:, 0])
    ps = ps.at[:, 4].set(b_voc[0, 0])

    # misc f32 slab: per-frame-tiled biases + S^T (segment-sum broadcast-back matrix)
    bf_t = jnp.tile(params["bf"], (1, NF_PAD))
    be_t = jnp.tile(params["be"], (1, NF_PAD))
    bl_t = jnp.tile(params["bl"], (1, NF_PAD))
    s_t = jnp.kron(jnp.eye(NF_PAD, dtype=jnp.float32),
                   jnp.ones((1, VOCAB), jnp.float32))                # (NF_PAD, LD)
    pm = jnp.zeros((ST_OFF + NF_PAD, LD), jnp.float32)
    pm = pm.at[0:1, :].set(bf_t)
    pm = pm.at[1:2, :].set(be_t)
    pm = pm.at[2:3, :].set(bl_t)
    pm = pm.at[ST_OFF:ST_OFF + NF_PAD, :].set(s_t)
    s_mat = s_t.T                                                    # (LD, NF_PAD)

    # big bf16 slab: frame-fused wf + block-diagonal we / wl (lane-dense MLP)
    wframe = build_frame_matrix(params["wf"])
    we_bd = jnp.kron(jnp.eye(NF_PAD, dtype=jnp.float32), params["we"])
    wl_bd = jnp.kron(jnp.eye(NF_PAD, dtype=jnp.float32), params["wl"])
    wbig = jnp.concatenate([wframe, we_bd, wl_bd], axis=0).astype(jnp.bfloat16)

    rt_bf = rt.astype(jnp.bfloat16)
    return ps, pm, s_mat, rt_bf, wbig


@jax.jit
def demucs_wav2vec_forward(x, ps, pm, s_mat, rt_bf, wbig):
    # channel-major audio slab (CIN*B, T): rows [c0b0, c0b1, c1b0, c1b1]
    x_cm = jnp.transpose(x, (1, 0, 2)).reshape(CIN * B, T)
    vmem = lambda: pl.BlockSpec(memory_space=pltpu.MemorySpace.VMEM)
    out = pl.pallas_call(
        fused_kernel,
        out_shape=jax.ShapeDtypeStruct((B, LD), jnp.float32),
        in_specs=[vmem() for _ in range(6)],
        out_specs=vmem(),
    )(x_cm, ps, pm, s_mat, rt_bf, wbig)
    # (B, NF_PAD*VOCAB) -> (B, NFRAMES, VOCAB); drop the zero-weight pad frame
    return out.reshape(B, NF_PAD, VOCAB)[:, :NFRAMES, :]


if __name__ == "__main__":
    key = jax.random.PRNGKey(0)
    k_in, k_par = jax.random.split(key)
    x = jax.random.normal(k_in, (B, CIN, T), jnp.float32)            # input_tensor
    params = init_params(k_par)
    rt = make_resample_matrix(T, ORIG_SR, NEW_SR)
    ps, pm, s_mat, rt_bf, wbig = pack_params(params, rt)

    log_prob = demucs_wav2vec_forward(x, ps, pm, s_mat, rt_bf, wbig)
    log_prob = jax.block_until_ready(log_prob)

    assert log_prob.shape == (B, NFRAMES, VOCAB), log_prob.shape
    assert bool(jnp.all(jnp.isfinite(log_prob)))
    # log_softmax rows must sum to 1 in probability space
    s = jnp.sum(jnp.exp(log_prob), axis=-1)
    assert bool(jnp.all(jnp.abs(s - 1.0) < 1e-3))
    print("KERNEL_OK")
</pallas_src>

<mosaic_0001>
module attributes {stable_mosaic.version = 11 : i64} {
  func.func @fused_kernel(%arg0: memref<4x441xf32, #tpu.memory_space<vmem>>, %arg1: memref<16x8xf32, #tpu.memory_space<vmem>>, %arg2: memref<40x1024xf32, #tpu.memory_space<vmem>>, %arg3: memref<1024x32xf32, #tpu.memory_space<vmem>>, %arg4: memref<441x160xbf16, #tpu.memory_space<vmem>>, %arg5: memref<2208x1024xbf16, #tpu.memory_space<vmem>>, %arg6: memref<2x1024xf32, #tpu.memory_space<vmem>>) attributes {dimension_semantics = [], scalar_prefetch = 0 : i64, scratch_operands = 0 : i64, tpu.core_type = #tpu.core_type<tc>} {
    %c0 = arith.constant 0 : index
    %c0_0 = arith.constant 0 : index
    %0 = vector.load %arg0[%c0, %c0_0] : memref<4x441xf32, #tpu.memory_space<vmem>>, vector<2x441xf32>
    %1 = vector.shape_cast %0 : vector<2x441xf32> to vector<2x1x441xf32>
    %c2 = arith.constant 2 : index
    %c0_1 = arith.constant 0 : index
    %2 = vector.load %arg0[%c2, %c0_1] : memref<4x441xf32, #tpu.memory_space<vmem>>, vector<2x441xf32>
    %3 = vector.shape_cast %2 : vector<2x441xf32> to vector<2x1x441xf32>
    %c0_2 = arith.constant 0 : index
    %c0_3 = arith.constant 0 : index
    %4 = vector.load %arg1[%c0_2, %c0_3] : memref<16x8xf32, #tpu.memory_space<vmem>>, vector<16x1xf32>
    %5 = vector.shape_cast %4 : vector<16x1xf32> to vector<1x16x1xf32>
    %c0_4 = arith.constant 0 : index
    %c1 = arith.constant 1 : index
    %6 = vector.load %arg1[%c0_4, %c1] : memref<16x8xf32, #tpu.memory_space<vmem>>, vector<16x1xf32>
    %7 = vector.shape_cast %6 : vector<16x1xf32> to vector<1x16x1xf32>
    %c0_5 = arith.constant 0 : index
    %c2_6 = arith.constant 2 : index
    %8 = vector.load %arg1[%c0_5, %c2_6] : memref<16x8xf32, #tpu.memory_space<vmem>>, vector<16x1xf32>
    %9 = vector.shape_cast %8 : vector<16x1xf32> to vector<1x16x1xf32>
    %c0_7 = arith.constant 0 : index
    %c3 = arith.constant 3 : index
    %10 = vector.load %arg1[%c0_7, %c3] : memref<16x8xf32, #tpu.memory_space<vmem>>, vector<16x1xf32>
    %11 = vector.shape_cast %10 : vector<16x1xf32> to vector<1x16x1xf32>
    %c0_8 = arith.constant 0 : index
    %c4 = arith.constant 4 : index
    %12 = vector.load %arg1[%c0_8, %c4] : memref<16x8xf32, #tpu.memory_space<vmem>>, vector<1x1xf32>
    %13 = vector.broadcast %1 : vector<2x1x441xf32> to vector<2x16x441xf32>
    %14 = vector.broadcast %5 : vector<1x16x1xf32> to vector<2x16x441xf32>
    %15 = arith.mulf %13, %14 : vector<2x16x441xf32>
    %16 = vector.broadcast %3 : vector<2x1x441xf32> to vector<2x16x441xf32>
    %17 = vector.broadcast %7 : vector<1x16x1xf32> to vector<2x16x441xf32>
    %18 = arith.mulf %16, %17 : vector<2x16x441xf32>
    %19 = arith.addf %15, %18 : vector<2x16x441xf32>
    %20 = vector.broadcast %9 : vector<1x16x1xf32> to vector<2x16x441xf32>
    %21 = arith.addf %19, %20 : vector<2x16x441xf32>
    %cst = arith.constant 0.000000e+00 : f32
    %22 = vector.broadcast %cst : f32 to vector<2x16x441xf32>
    %23 = arith.maximumf %21, %22 : vector<2x16x441xf32>
    %24 = vector.broadcast %11 : vector<1x16x1xf32> to vector<2x16x441xf32>
    %25 = arith.mulf %23, %24 : vector<2x16x441xf32>
    %cst_9 = arith.constant dense<0.000000e+00> : vector<2x441xf32>
    %26 = vector.multi_reduction <add>, %25, %cst_9 [1] : vector<2x16x441xf32> to vector<2x441xf32>
    %27 = vector.broadcast %12 : vector<1x1xf32> to vector<2x441xf32>
    %28 = arith.addf %26, %27 : vector<2x441xf32>
    %29 = arith.truncf %28 : vector<2x441xf32> to vector<2x441xbf16>
    %c0_10 = arith.constant 0 : index
    %c0_11 = arith.constant 0 : index
    %30 = vector.load %arg4[%c0_10, %c0_11] : memref<441x160xbf16, #tpu.memory_space<vmem>>, vector<441x160xbf16>
    %cst_12 = arith.constant dense<0.000000e+00> : vector<2x160xf32>
    %31 = tpu.matmul %29, %30, %cst_12 {dimension_numbers = #tpu.dot_dimension_numbers<[1], [0], [0], [1], [0, 0, 1, 1], [], []>} : vector<2x441xbf16>, vector<441x160xbf16>, vector<2x160xf32> -> vector<2x160xf32>
    %cst_13 = arith.constant dense<0.000000e+00> : vector<2xf32>
    %32 = vector.multi_reduction <add>, %31, %cst_13 [1] : vector<2x160xf32> to vector<2xf32>
    %33 = vector.shape_cast %32 : vector<2xf32> to vector<2x1xf32>
    %cst_14 = arith.constant 1.600000e+02 : f32
    %34 = vector.broadcast %cst_14 : f32 to vector<2x1xf32>
    %35 = arith.divf %33, %34 : vector<2x1xf32>
    %36 = vector.broadcast %35 : vector<2x1xf32> to vector<2x160xf32>
    %37 = arith.subf %31, %36 : vector<2x160xf32>
    %38 = arith.mulf %37, %37 : vector<2x160xf32>
    %cst_15 = arith.constant dense<0.000000e+00> : vector<2xf32>
    %39 = vector.multi_reduction <add>, %38, %cst_15 [1] : vector<2x160xf32> to vector<2xf32>
    %40 = vector.shape_cast %39 : vector<2xf32> to vector<2x1xf32>
    %cst_16 = arith.constant 0.00628930796 : f32
    %41 = vector.broadcast %cst_16 : f32 to vector<2x1xf32>
    %42 = arith.mulf %40, %41 : vector<2x1xf32>
    %cst_17 = arith.constant 9.99999974E-6 : f32
    %43 = vector.broadcast %cst_17 : f32 to vector<2x1xf32>
    %44 = arith.addf %42, %43 : vector<2x1xf32>
    %45 = math.rsqrt %44 : vector<2x1xf32>
    %46 = vector.broadcast %45 : vector<2x1xf32> to vector<2x160xf32>
    %47 = arith.mulf %37, %46 : vector<2x160xf32>
    %c0_18 = arith.constant 0 : index
    %c0_19 = arith.constant 0 : index
    %48 = vector.load %arg5[%c0_18, %c0_19] : memref<2208x1024xbf16, #tpu.memory_space<vmem>>, vector<160x1024xbf16>
    %c160 = arith.constant 160 : index
    %c0_20 = arith.constant 0 : index
    %49 = vector.load %arg5[%c160, %c0_20] : memref<2208x1024xbf16, #tpu.memory_space<vmem>>, vector<1024x1024xbf16>
    %c1184 = arith.constant 1184 : index
    %c0_21 = arith.constant 0 : index
    %50 = vector.load %arg5[%c1184, %c0_21] : memref<2208x1024xbf16, #tpu.memory_space<vmem>>, vector<1024x1024xbf16>
    %c0_22 = arith.constant 0 : index
    %c0_23 = arith.constant 0 : index
    %51 = vector.load %arg2[%c0_22, %c0_23] : memref<40x1024xf32, #tpu.memory_space<vmem>>, vector<1x1024xf32>
    %c1_24 = arith.constant 1 : index
    %c0_25 = arith.constant 0 : index
    %52 = vector.load %arg2[%c1_24, %c0_25] : memref<40x1024xf32, #tpu.memory_space<vmem>>, vector<1x1024xf32>
    %c2_26 = arith.constant 2 : index
    %c0_27 = arith.constant 0 : index
    %53 = vector.load %arg2[%c2_26, %c0_27] : memref<40x1024xf32, #tpu.memory_space<vmem>>, vector<1x1024xf32>
    %c8 = arith.constant 8 : index
    %c0_28 = arith.constant 0 : index
    %54 = vector.load %arg2[%c8, %c0_28] : memref<40x1024xf32, #tpu.memory_space<vmem>>, vector<32x1024xf32>
    %55 = arith.truncf %47 : vector<2x160xf32> to vector<2x160xbf16>
    %cst_29 = arith.constant dense<0.000000e+00> : vector<2x1024xf32>
    %56 = tpu.matmul %55, %48, %cst_29 {dimension_numbers = #tpu.dot_dimension_numbers<[1], [0], [0], [1], [0, 0, 1, 1], [], []>} : vector<2x160xbf16>, vector<160x1024xbf16>, vector<2x1024xf32> -> vector<2x1024xf32>
    %57 = vector.broadcast %51 : vector<1x1024xf32> to vector<2x1024xf32>
    %58 = arith.addf %56, %57 : vector<2x1024xf32>
    %cst_30 = arith.constant 5.000000e-01 : f32
    %59 = vector.broadcast %cst_30 : f32 to vector<2x1024xf32>
    %60 = arith.mulf %59, %58 : vector<2x1024xf32>
    %cst_31 = arith.constant 4.471500e-02 : f32
    %61 = vector.broadcast %cst_31 : f32 to vector<2x1024xf32>
    %62 = arith.mulf %61, %58 : vector<2x1024xf32>
    %63 = arith.mulf %62, %58 : vector<2x1024xf32>
    %64 = arith.mulf %63, %58 : vector<2x1024xf32>
    %65 = arith.addf %58, %64 : vector<2x1024xf32>
    %cst_32 = arith.constant 0.797884583 : f32
    %66 = vector.broadcast %cst_32 : f32 to vector<2x1024xf32>
    %67 = arith.mulf %66, %65 : vector<2x1024xf32>
    %68 = math.tanh %67 : vector<2x1024xf32>
    %cst_33 = arith.constant 1.000000e+00 : f32
    %69 = vector.broadcast %cst_33 : f32 to vector<2x1024xf32>
    %70 = arith.addf %69, %68 : vector<2x1024xf32>
    %71 = arith.mulf %60, %70 : vector<2x1024xf32>
    %72 = arith.truncf %71 : vector<2x1024xf32> to vector<2x1024xbf16>
    %cst_34 = arith.constant dense<0.000000e+00> : vector<2x1024xf32>
    %73 = tpu.matmul %72, %49, %cst_34 {dimension_numbers = #tpu.dot_dimension_numbers<[1], [0], [0], [1], [0, 0, 1, 1], [], []>} : vector<2x1024xbf16>, vector<1024x1024xbf16>, vector<2x1024xf32> -> vector<2x1024xf32>
    %74 = vector.broadcast %52 : vector<1x1024xf32> to vector<2x1024xf32>
    %75 = arith.addf %73, %74 : vector<2x1024xf32>
    %cst_35 = arith.constant 5.000000e-01 : f32
    %76 = vector.broadcast %cst_35 : f32 to vector<2x1024xf32>
    %77 = arith.mulf %76, %75 : vector<2x1024xf32>
    %cst_36 = arith.constant 4.471500e-02 : f32
    %78 = vector.broadcast %cst_36 : f32 to vector<2x1024xf32>
    %79 = arith.mulf %78, %75 : vector<2x1024xf32>
    %80 = arith.mulf %79, %75 : vector<2x1024xf32>
    %81 = arith.mulf %80, %75 : vector<2x1024xf32>
    %82 = arith.addf %75, %81 : vector<2x1024xf32>
    %cst_37 = arith.constant 0.797884583 : f32
    %83 = vector.broadcast %cst_37 : f32 to vector<2x1024xf32>
    %84 = arith.mulf %83, %82 : vector<2x1024xf32>
    %85 = math.tanh %84 : vector<2x1024xf32>
    %cst_38 = arith.constant 1.000000e+00 : f32
    %86 = vector.broadcast %cst_38 : f32 to vector<2x1024xf32>
    %87 = arith.addf %86, %85 : vector<2x1024xf32>
    %88 = arith.mulf %77, %87 : vector<2x1024xf32>
    %89 = arith.truncf %88 : vector<2x1024xf32> to vector<2x1024xbf16>
    %cst_39 = arith.constant dense<0.000000e+00> : vector<2x1024xf32>
    %90 = tpu.matmul %89, %50, %cst_39 {dimension_numbers = #tpu.dot_dimension_numbers<[1], [0], [0], [1], [0, 0, 1, 1], [], []>} : vector<2x1024xbf16>, vector<1024x1024xbf16>, vector<2x1024xf32> -> vector<2x1024xf32>
    %91 = vector.broadcast %53 : vector<1x1024xf32> to vector<2x1024xf32>
    %92 = arith.addf %90, %91 : vector<2x1024xf32>
    %cst_40 = arith.constant dense<0xFF800000> : vector<2xf32>
    %93 = vector.multi_reduction <maximumf>, %92, %cst_40 [1] : vector<2x1024xf32> to vector<2xf32>
    %94 = vector.shape_cast %93 : vector<2xf32> to vector<2x1xf32>
    %95 = vector.broadcast %94 : vector<2x1xf32> to vector<2x1024xf32>
    %96 = arith.subf %92, %95 : vector<2x1024xf32>
    %97 = math.exp %96 : vector<2x1024xf32>
    %c0_41 = arith.constant 0 : index
    %c0_42 = arith.constant 0 : index
    %98 = vector.load %arg3[%c0_41, %c0_42] : memref<1024x32xf32, #tpu.memory_space<vmem>>, vector<1024x32xf32>
    %cst_43 = arith.constant dense<0.000000e+00> : vector<2x32xf32>
    %99 = tpu.matmul %97, %98, %cst_43 {dimension_numbers = #tpu.dot_dimension_numbers<[1], [0], [0], [1], [0, 0, 1, 1], [], []>, precision = #tpu.contract_precision<fp32>} : vector<2x1024xf32>, vector<1024x32xf32>, vector<2x32xf32> -> vector<2x32xf32>
    %cst_44 = arith.constant dense<0.000000e+00> : vector<2x1024xf32>
    %100 = tpu.matmul %99, %54, %cst_44 {dimension_numbers = #tpu.dot_dimension_numbers<[1], [0], [0], [1], [0, 0, 1, 1], [], []>, precision = #tpu.contract_precision<fp32>} : vector<2x32xf32>, vector<32x1024xf32>, vector<2x1024xf32> -> vector<2x1024xf32>
    %101 = math.log %100 : vector<2x1024xf32>
    %102 = arith.subf %96, %101 : vector<2x1024xf32>
    %c0_45 = arith.constant 0 : index
    %c0_46 = arith.constant 0 : index
    %103 = vector.load %arg6[%c0_45, %c0_46] : memref<2x1024xf32, #tpu.memory_space<vmem>>, vector<2x1024xf32>
    tpu.vector_store %arg6[%c0_45, %c0_46], %102 {strides = array<i32>} : memref<2x1024xf32, #tpu.memory_space<vmem>>, vector<2x1024xf32>,
    return
  }
}

</mosaic_0001>

<bundles_post_ra>
// kernel: demucs_wav2vec_forward.1
= control target key start
LH: loop header
LB: loop body
LE: loop exit
PB: predicated region body
PF: predicated region fallthrough
CT: control target
= control target key end

     0   :  { %11 = vsyncpa [#allocation3], 0  ;;  %s22796_s0 = inlined_call_operand.vmem [shape: f32[4,441], index: 0, kind: input, shape index: {}]   ;;  %s22797_s1 = inlined_call_operand.vmem [shape: f32[16,8], index: 1, kind: input, shape index: {}]   ;;  %s22798_s2 = inlined_call_operand.hbm [shape: f32[40,1024], index: 2, kind: input, shape index: {}]   ;;  %s22799_s3 = inlined_call_operand.vmem [shape: f32[1024,32], index: 3, kind: input, shape index: {}]   ;;  %s22800_s4 = inlined_call_operand.vmem [shape: bf16[441,160], index: 4, kind: input, shape index: {}]   ;;  %s22801_s5 = inlined_call_operand.hbm [shape: bf16[2208,1024], index: 5, kind: input, shape index: {}]   ;;  %s22802_s6 = inlined_call_operand.vmem [shape: f32[2,1024], index: 6, kind: output, shape index: {}]  }
   0x1   :  { %12 = vsyncpa [#allocation5], 0  ;;  %s18545_s21 = smov [#allocation2]   ;;  %s18497_s25 = scalar_lea.hbm %s22798_s2, 5120 }
   0x2   :  { %s22_s22 = sshll.u32 %s18545_s21, 4  ;;  %p18498_p0 = scmp.ne.s32.totalorder %s22798_s2, %s18497_s25  ;;  %s23_s22 = int_to_ptr.vmem [resolvable:$true] %s22_s22 }
   0x3   :  { %p18501_p1 = scmp.lt.u32.totalorder %s18497_s25, %s22798_s2 }
   0x5   :  { %p18503_p2 = pnand %p18501_p1, %p18498_p0 }
   0x7   :  { %18506 = shalt.err (!%p18503_p2)
}
   0x8   :  { %s18507_s30 = scalar_lea.vmem %s23_s22, 5120  ;;  %p18512_p4 = scmp.lt.s32.totalorder %s23_s22, %s23_s22 }
   0x9   :  { %p18508_p3 = scmp.ne.s32.totalorder %s23_s22, %s18507_s30  ;;  %p18513_p5 = scmp.lt.s32.totalorder %s18507_s30, %s18507_s30 }
   0xb   :  { %p18514_p6 = por %p18513_p5, %p18512_p4 }
   0xd   :  { %p18515_p7 = pnand %p18514_p6, %p18508_p3 }
   0xf   :  { %18518 = shalt.err (!%p18515_p7)
}
  0x10   :  { %s18546_s7 = smov 1024   ;;  %s18547_s8 = smov 64  }
  0x11   :  { %28 = dma.hbm_to_vmem [thread:$0]  %s22798_s2, 5120, %s23_s22, [#allocation3], %s18546_s7, %s18546_s7, %s18547_s8  }
  0x12   :  { %s18548_s11 = smov [#allocation4]   ;;  %s18519_s15 = scalar_lea.hbm %s22801_s5, 141312 }
  0x13   :  { %s38_s12 = sshll.u32 %s18548_s11, 4  ;;  %p18520_p8 = scmp.ne.s32.totalorder %s22801_s5, %s18519_s15  ;;  %s39_s12 = int_to_ptr.vmem [resolvable:$true] %s38_s12 }
  0x14   :  { %p18523_p9 = scmp.lt.u32.totalorder %s18519_s15, %s22801_s5 }
  0x16   :  { %p18525_p10 = pnand %p18523_p9, %p18520_p8 }
  0x18   :  { %18528 = shalt.err (!%p18525_p10)
}
  0x19   :  { %s18529_s20 = scalar_lea.vmem %s39_s12, 141312  ;;  %p18534_p12 = scmp.lt.s32.totalorder %s39_s12, %s39_s12 }
  0x1a   :  { %p18530_p11 = scmp.ne.s32.totalorder %s39_s12, %s18529_s20  ;;  %p18535_p13 = scmp.lt.s32.totalorder %s18529_s20, %s18529_s20 }
  0x1c   :  { %p18536_p0 = por %p18535_p13, %p18534_p12 }
  0x1e   :  { %p18537_p1 = pnand %p18536_p0, %p18530_p11 }
  0x20   :  { %18540 = shalt.err (!%p18537_p1)
}
  0x21   :  { %s18549_s2 = smov 512   ;;  %s18550_s21 = smov 32  }
  0x22   :  { %44 = dma.hbm_to_vmem [thread:$0]  %s22801_s5, 141312, %s39_s12, [#allocation5], %s18549_s2, %s18549_s2, %s18550_s21  }
  0x23   :  { %18541 = dma.done.wait [#allocation3], 5120  }
  0x24   :  { %18542 = vsyncadd [#allocation3], 4294962176 }
  0x25   :  { %18543 = dma.done.wait [#allocation5], 141312  }
  0x26   :  { %18544 = vsyncadd [#allocation5], 4294825984  ;;  %v18551_v0 = vmov 0   ;;  %v124_v1 = vld [vmem:[%s22797_s1] sm:$0x1]  ;;  %v123_v2 = vld [vmem:[%s22797_s1 + $0x8] sm:$0xff]  ;;  %v75_v42 = vlaneseq }
  0x27   :  { %18341 = vset.pattern.permute.xlu1 %v18551_v0  ;;  %18340 = vset.pattern.permute.xlu0 %v18551_v0  ;;  %s18552_s28 = smov 124   ;;  %v18347_v3 = vld [vmem:[%s22800_s4 + $0x4] ss:$8 sps:$4 sm:$0xff]   ;;  %v18349_v4 = vld [vmem:[%s22800_s4] ss:$8 sps:$4 sm:$0xff]   ;;  %v18553_v8 = vmov 1  }
  0x28   :  { %397 = vrot.lane.b32.xlu0 %v124_v1, %s18552_s28  ;;  %172 = vperm.xlu1 %18341, %v123_v2   ;;  %v122_v5 = vld [vmem:[%s22797_s1] sm:$0xff]  ;;  %v18350_v6 = vld [vmem:[%s22800_s4 + $0x14] ss:$8 sps:$4 sm:$0xff]   ;;  %v18352_v7 = vld [vmem:[%s22800_s4 + $0x10] ss:$8 sps:$4 sm:$0xff]   ;;  %v18554_v11 = vmov 2  }
  0x29   :  { %793 = vmatprep.subr.bf16.mxu0 %v18347_v3  ;;  %v18353_v9 = vld [vmem:[%s22800_s4 + $0x24] ss:$8 sps:$4 sm:$0xff]   ;;  %v18355_v10 = vld [vmem:[%s22800_s4 + $0x20] ss:$8 sps:$4 sm:$0xff]   ;;  %v18356_v12 = vld [vmem:[%s22800_s4 + $0x34] ss:$8 sps:$4 sm:$0xff]  }
  0x2a   :  { %794 = vmatpush1.bf16.msra.mxu0 %v18349_v4  ;;  %v18358_v13 = vld [vmem:[%s22800_s4 + $0x30] ss:$8 sps:$4 sm:$0xff]   ;;  %v18359_v14 = vld [vmem:[%s22800_s4 + $0x44] ss:$8 sps:$4 sm:$0xff]   ;;  %v18555_v15 = vmov 3   ;;  %v18733_v47 = vshrl.u32 %v75_v42, 7 }
  0x2b   :  { %795 = vmatprep.subr.bf16.mxu0 %v18350_v6  ;;  %v18361_v16 = vld [vmem:[%s22800_s4 + $0x40] ss:$8 sps:$4 sm:$0xff]   ;;  %v18362_v17 = vld [vmem:[%s22800_s4 + $0x54] ss:$8 sps:$4 sm:$0xff]   ;;  %v18364_v18 = vld [vmem:[%s22800_s4 + $0x50] ss:$8 sps:$4 sm:$0xff]  }
  0x2c   :  { %18342 = vset.pattern.permute.xlu1 %v18553_v8  ;;  %167 = vperm.xlu0 %18340, %v122_v5   ;;  %v18365_v19 = vld [vmem:[%s22800_s4 + $0x64] ss:$8 sps:$4 sm:$0xff]   ;;  %v18367_v20 = vld [vmem:[%s22800_s4 + $0x60] ss:$8 sps:$4 sm:$0xff]   ;;  %v18368_v21 = vld [vmem:[%s22800_s4 + $0x74] ss:$8 sps:$4 sm:$0xff]  }
  0x2d   :  { %232 = vperm.xlu1 %18342, %v122_v5   ;;  %v18370_v22 = vld [vmem:[%s22800_s4 + $0x70] ss:$8 sps:$4 sm:$0xff]   ;;  %v18371_v23 = vld [vmem:[%s22800_s4 + $0x84] ss:$8 sps:$4 sm:$0xff]   ;;  %v18373_v24 = vld [vmem:[%s22800_s4 + $0x80] ss:$8 sps:$4 sm:$0xff]  }
  0x2e   :  { %796 = vmatpush1.bf16.msra.mxu0 %v18352_v7  ;;  %v18374_v25 = vld [vmem:[%s22800_s4 + $0x94] ss:$8 sps:$4 sm:$0xff]   ;;  %v18376_v26 = vld [vmem:[%s22800_s4 + $0x90] ss:$8 sps:$4 sm:$0xff]   ;;  %v18377_v27 = vld [vmem:[%s22800_s4 + $0xa4] ss:$8 sps:$4 sm:$0xff]  }
  0x2f   :  { %797 = vmatprep.subr.bf16.mxu0 %v18353_v9  ;;  %v18379_v28 = vld [vmem:[%s22800_s4 + $0xa0] ss:$8 sps:$4 sm:$0xff]   ;;  %v18380_v29 = vld [vmem:[%s22800_s4 + $0xb4] ss:$8 sps:$4 sm:$0xff]   ;;  %v18382_v30 = vld [vmem:[%s22800_s4 + $0xb0] ss:$8 sps:$4 sm:$0xff]  }
  0x30   :  { %18343 = vset.pattern.permute.xlu0 %v18554_v11  ;;  %v18383_v31 = vld [vmem:[%s22800_s4 + $0xc4] ss:$8 sps:$4 sm:$0xff]   ;;  %v18385_v32 = vld [vmem:[%s22800_s4 + $0xc0] ss:$8 sps:$4 sm:$0xff]   ;;  %v18386_v33 = vld [vmem:[%s22800_s4 + $0xd4] ss:$8 sps:$4 sm:$0xff]  }
  0x31   :  { %236 = vperm.xlu1 %18342, %v123_v2   ;;  %272 = vperm.xlu0 %18343, %v122_v5   ;;  %v18388_v34 = vld [vmem:[%s22800_s4 + $0xd0] ss:$8 sps:$4 sm:$0xff]   ;;  %v18389_v35 = vld [vmem:[%s22800_s4 + $0xe4] ss:$8 sps:$4 sm:$0xff]   ;;  %v18391_v36 = vld [vmem:[%s22800_s4 + $0xe0] ss:$8 sps:$4 sm:$0xff]  }
  0x32   :  { %798 = vmatpush1.bf16.msra.mxu0 %v18355_v10  ;;  %v18392_v37 = vld [vmem:[%s22800_s4 + $0xf4] ss:$8 sps:$4 sm:$0xff]   ;;  %v18394_v38 = vld [vmem:[%s22800_s4 + $0xf0] ss:$8 sps:$4 sm:$0xff]   ;;  %v18397_v39 = vld [vmem:[%s22800_s4 + $0x104] ss:$8 sps:$4 sm:$0xff]  }
  0x33   :  { %799 = vmatprep.subr.bf16.mxu0 %v18356_v12  ;;  %v18556_v40 = vmov 1966171168   ;;  %v15200_v44 = vld.sshfl [vmem:[%s22796_s0] sm:$0xaa pattern:$0x75316420] }
  0x34   :  { %v73_v41 = vunpack.c.l.s4 %v18556_v40  ;;  %v15201_v45 = vld.sshfl [vmem:[%s22796_s0 + $0x8] sm:$0xaa pattern:$0x75316420]  ;;  %23099 = vst [vmem:[#allocation8_spill] sm:$0xff] %v18733_v47  ;;  %v18743_v58 = vsub.s32 0, %v18733_v47 }
  0x35   :  { %18344 = vset.pattern.permute.xlu1 %v18554_v11  ;;  %18346 = vset.pattern.permute.xlu0 %v18555_v15  ;;  %v104_v48 = vcombine.low %v15200_v44, %v15201_v45  ;;  %v105_v49 = vcombine.high %v15200_v44, %v15201_v45  ;;  %v15198_v51 = vld.sshfl [vmem:[%s22796_s0] sm:$0x55 pattern:$0x75316420]  ;;  %v18746_v61 = vsub.s32 1, %v18733_v47  ;;  %v18749_v62 = vsub.s32 2, %v18733_v47 }
  0x36   :  { %276 = vperm.xlu1 %18344, %v123_v2   ;;  %316 = vperm.xlu0 %18346, %v123_v2   ;;  %v74_v46 = vunpack.c.0.s8 %v73_v41  ;;  %v15199_v52 = vld.sshfl [vmem:[%s22796_s0 + $0x8] sm:$0x55 pattern:$0x75316420]  ;;  %v18752_v63 = vsub.s32 3, %v18733_v47  ;;  %vm356_vm0 = vcmask 465920  }
  0x37   :  { %800 = vmatpush1.bf16.msra.mxu0 %v18358_v13  ;;  %v70_v55 = vcombine.low %v15198_v51, %v15199_v52  ;;  %v71_v56 = vcombine.high %v15198_v51, %v15199_v52  ;;  %vm490_vm1 = vcmask 1041409   ;;  %vm783_vm2 = vcmask 1043456  }
  0x38   :  { %801 = vmatprep.subr.bf16.mxu0 %v18359_v14  ;;  %v77_v50 = vsub.s32 %v74_v46, %v18733_v47  ;;  %vm784_vm3 = vcmask 1044480   ;;  %vm875_vm4 = vcmask 1041408   ;;  %vm877_vm5 = vcmask 254976  }
  0x39   :  { %vm2488_vm6 = vcmask 261120  }
  0x3a   :  { %18345 = vset.pattern.permute.xlu1 %v18555_v15  ;;  %v112_v53 = vrot.slane %v104_v48, %v77_v50  ;;  %v119_v54 = vrot.slane %v105_v49, %v77_v50  ;;  %v78_v0 = vrot.slane %v70_v55, %v77_v50  ;;  %v85_v1 = vrot.slane %v71_v56, %v77_v50 }
  0x3b   :  { %312 = vperm.xlu1 %18345, %v122_v5   ;;  %802 = vmatpush1.bf16.msra.mxu0 %v18361_v16 }
  0x3c   :  { %803 = vmatprep.subr.bf16.mxu0 %v18362_v17  ;;  %v120_v57 = vcombine.high %v112_v53, %v112_v53  ;;  %v121_v60 = vcombine.high %v119_v54, %v119_v54  ;;  %v128_v5 = vrot.slane %v78_v0, %v18743_v58  ;;  %v132_v6 = vrot.slane %v78_v0, %v18746_v61 }
  0x3d   :  { %v18761_v7 = vrot.slane %v78_v0, %v18749_v62  ;;  %v140_v8 = vrot.slane %v78_v0, %v18752_v63  ;;  %v144_v10 = vrot.slane %v85_v1, %v18743_v58  ;;  %v148_v11 = vrot.slane %v85_v1, %v18746_v61 }
  0x3e   :  { %v194_v2 = vrot.slane %v120_v57, %v18743_v58  ;;  %v210_v3 = vrot.slane %v121_v60, %v18743_v58  ;;  %v18769_v12 = vrot.slane %v85_v1, %v18749_v62  ;;  %v198_v13 = vrot.slane %v120_v57, %v18746_v61 }
  0x3f   :  { %804 = vmatpush1.bf16.msra.mxu0 %v18364_v18  ;;  %v156_v14 = vrot.slane %v85_v1, %v18752_v63  ;;  %v18774_v15 = vrot.slane %v120_v57, %v18749_v62  ;;  %v206_v18 = vrot.slane %v120_v57, %v18752_v63 }
  0x40   :  { %805 = vmatprep.subr.bf16.mxu0 %v18365_v19  ;;  %v214_v19 = vrot.slane %v121_v60, %v18746_v61 }
  0x43   :  { %806 = vmatpush1.bf16.msra.mxu0 %v18367_v20 }
  0x44   :  { %807 = vmatprep.subr.bf16.mxu0 %v18368_v21 }
  0x47   :  { %808 = vmatpush1.bf16.msra.mxu0 %v18370_v22 }
  0x48   :  { %809 = vmatprep.subr.bf16.mxu0 %v18371_v23 }
  0x4b   :  { %810 = vmatpush1.bf16.msra.mxu0 %v18373_v24  ;;  %v18783_v24 = vrot.slane %v121_v60, %v18749_v62 }
  0x4c   :  { %811 = vmatprep.subr.bf16.mxu0 %v18374_v25  ;;  %v222_v25 = vrot.slane %v121_v60, %v18752_v63 }
  0x4f   :  { %812 = vmatpush1.bf16.msra.mxu0 %v18376_v26 }
  0x50   :  { %813 = vmatprep.subr.bf16.mxu0 %v18377_v27 }
  0x53   :  { %814 = vmatpush1.bf16.msra.mxu0 %v18379_v28 }
  0x54   :  { %815 = vmatprep.subr.bf16.mxu0 %v18380_v29 }
  0x57   :  { %816 = vmatpush1.bf16.msra.mxu0 %v18382_v30 }
  0x58   :  { %817 = vmatprep.subr.bf16.mxu0 %v18383_v31 }
  0x5b   :  { %818 = vmatpush1.bf16.msra.mxu0 %v18385_v32 }
  0x5c   :  { %819 = vmatprep.subr.bf16.mxu0 %v18386_v33 }
  0x5f   :  { %820 = vmatpush1.bf16.msra.mxu0 %v18388_v34 }
  0x60   :  { %821 = vmatprep.subr.bf16.mxu0 %v18389_v35 }
  0x63   :  { %822 = vmatpush1.bf16.msra.mxu0 %v18391_v36 }
  0x64   :  { %823 = vmatprep.subr.bf16.mxu0 %v18392_v37 }
  0x67   :  { %824 = vmatpush1.bf16.msra.mxu0 %v18394_v38 }
  0x68   :  { %834 = vmatprep.subr.bf16.mxu0 %v18397_v39 }
  0x9a   :  { %v398_v43 = vpop.permute.xlu0 %397 }
  0x9b   :  { %18323 = vpush %v398_v43 }
  0xa7   :  { %v173_v59 = vpop.permute.xlu1 %172 }
  0xa8   :  { %v179_v22 = vmul.f32 %v173_v59, %v128_v5  ;;  %v180_v23 = vmul.f32 %v173_v59, %v132_v6  ;;  %v18789_v27 = vmul.f32 %v173_v59, %v18761_v7  ;;  %v182_v31 = vmul.f32 %v173_v59, %v140_v8 }
  0xa9   :  { %v187_v32 = vmul.f32 %v173_v59, %v144_v10  ;;  %v188_v40 = vmul.f32 %v173_v59, %v148_v11  ;;  %v18801_v41 = vmul.f32 %v173_v59, %v18769_v12  ;;  %v190_v44 = vmul.f32 %v173_v59, %v156_v14 }
  0xab   :  { %v18756_v4 = vpop.permute.xlu0 %167 }
  0xac   :  { %v18764_v9 = vpop.permute.xlu1 %232  ;;  %v175_v17 = vmul.f32 %v18756_v4, %v128_v5  ;;  %v183_v21 = vmul.f32 %v18756_v4, %v144_v10  ;;  %v176_v29 = vmul.f32 %v18756_v4, %v132_v6  ;;  %v184_v36 = vmul.f32 %v18756_v4, %v148_v11 }
  0xad   :  { %v239_v16 = vmul.f32 %v18764_v9, %v194_v2  ;;  %v247_v20 = vmul.f32 %v18764_v9, %v210_v3  ;;  %v240_v28 = vmul.f32 %v18764_v9, %v198_v13  ;;  %v248_v35 = vmul.f32 %v18764_v9, %v214_v19 }
  0xae   :  { %v178_v45 = vmul.f32 %v18756_v4, %v140_v8  ;;  %v242_v54 = vmul.f32 %v18764_v9, %v206_v18  ;;  %v250_v55 = vmul.f32 %v18764_v9, %v222_v25  ;;  %v186_v60 = vmul.f32 %v18756_v4, %v156_v14 }
  0xaf   :  { %v255_v34 = vadd.f32 %v239_v16, %v175_v17  ;;  %v263_v39 = vadd.f32 %v247_v20, %v183_v21  ;;  %v256_v49 = vadd.f32 %v240_v28, %v176_v29  ;;  %v264_v59 = vadd.f32 %v248_v35, %v184_v36 }
  0xb0   :  { %v18786_v26 = vpop.permute.xlu1 %236  ;;  %v18798_v38 = vpop.permute.xlu0 %272  ;;  %v258_v20 = vadd.f32 %v242_v54, %v178_v45 }
  0xb1   :  { %v243_v30 = vmul.f32 %v18786_v26, %v194_v2  ;;  %v251_v33 = vmul.f32 %v18786_v26, %v210_v3  ;;  %v244_v37 = vmul.f32 %v18786_v26, %v198_v13  ;;  %v252_v46 = vmul.f32 %v18786_v26, %v214_v19 }
  0xb2   :  { %v279_v50 = vadd.f32 %v18798_v38, %v255_v34  ;;  %v287_v51 = vadd.f32 %v18798_v38, %v263_v39  ;;  %v246_v0 = vmul.f32 %v18786_v26, %v206_v18  ;;  %v280_v5 = vadd.f32 %v18798_v38, %v256_v49 }
  0xb3   :  { %v259_v42 = vadd.f32 %v243_v30, %v179_v22  ;;  %v267_v43 = vadd.f32 %v251_v33, %v187_v32  ;;  %v260_v57 = vadd.f32 %v244_v37, %v180_v23  ;;  %v268_v3 = vadd.f32 %v252_v46, %v188_v40 }
  0xb4   :  { %v288_v8 = vadd.f32 %v18798_v38, %v264_v59  ;;  %v295_v10 = vmax.f32 %v279_v50, 0.0  ;;  %v303_v11 = vmax.f32 %v287_v51, 0.0  ;;  %v254_v14 = vmul.f32 %v18786_v26, %v222_v25 }
  0xb5   :  { %v18805_v48 = vpop.permute.xlu1 %276  ;;  %v18813_v56 = vpop.permute.xlu0 %316  ;;  %v296_v19 = vmax.f32 %v280_v5, 0.0  ;;  %v262_v32 = vadd.f32 %v246_v0, %v182_v31  ;;  %v266_v33 = vadd.f32 %v250_v55, %v186_v60  ;;  %v282_v40 = vadd.f32 %v18798_v38, %v258_v20 }
  0xb6   :  { %v283_v52 = vadd.f32 %v18805_v48, %v259_v42  ;;  %v291_v53 = vadd.f32 %v18805_v48, %v267_v43  ;;  %v284_v6 = vadd.f32 %v18805_v48, %v260_v57  ;;  %v292_v18 = vadd.f32 %v18805_v48, %v268_v3 }
  0xb7   :  { %v304_v22 = vmax.f32 %v288_v8, 0.0  ;;  %v270_v39 = vadd.f32 %v254_v14, %v190_v44  ;;  %v286_v42 = vadd.f32 %v18805_v48, %v262_v32  ;;  %v290_v49 = vadd.f32 %v18798_v38, %v266_v33 }
  0xb8   :  { %v299_v1 = vmax.f32 %v283_v52, 0.0  ;;  %v307_v2 = vmax.f32 %v291_v53, 0.0  ;;  %v300_v21 = vmax.f32 %v284_v6, 0.0  ;;  %v308_v29 = vmax.f32 %v292_v18, 0.0 }
  0xb9   :  { %v294_v50 = vadd.f32 %v18805_v48, %v270_v39  ;;  %v298_v51 = vmax.f32 %v282_v40, 0.0  ;;  %v302_v52 = vmax.f32 %v286_v42, 0.0  ;;  %v306_v57 = vmax.f32 %v290_v49, 0.0 }
  0xba   :  { %v18820_v13 = vpop.permute.xlu1 %312  ;;  %v323_v16 = vmul.f32 %v18813_v56, %v299_v1  ;;  %v331_v17 = vmul.f32 %v18813_v56, %v307_v2  ;;  %v324_v34 = vmul.f32 %v18813_v56, %v300_v21  ;;  %v332_v37 = vmul.f32 %v18813_v56, %v308_v29 }
  0xbb   :  { %v319_v23 = vmul.f32 %v18820_v13, %v295_v10  ;;  %v327_v28 = vmul.f32 %v18820_v13, %v303_v11  ;;  %v320_v30 = vmul.f32 %v18820_v13, %v296_v19  ;;  %v328_v35 = vmul.f32 %v18820_v13, %v304_v22 }
  0xbc   :  { %v310_v44 = vmax.f32 %v294_v50, 0.0  ;;  %v322_v60 = vmul.f32 %v18820_v13, %v298_v51  ;;  %v326_v0 = vmul.f32 %v18813_v56, %v302_v52  ;;  %v330_v5 = vmul.f32 %v18820_v13, %v306_v57 }
  0xbd   :  { %v335_v25 = vadd.f32 %v323_v16, %v319_v23  ;;  %v366_v36 = vadd.f32 %v331_v17, %v327_v28  ;;  %v342_v43 = vadd.f32 %v324_v34, %v320_v30  ;;  %v373_v31 = vadd.f32 %v332_v37, %v328_v35 }
  0xbe   :  { %v334_v8 = vmul.f32 %v18813_v56, %v310_v44  ;;  %v357_v10 = vsel %vm356_vm0, %v322_v60, 0.0  ;;  %v358_v11 = vsel %vm356_vm0, %v326_v0, 0.0  ;;  %v245_v19 = vmul.f32 %v18786_v26, %v18774_v15 }
  0xbf   :  { %v336_v45 = vrot.slane %v335_v25, 4  ;;  %v367_v46 = vrot.slane %v366_v36, 4  ;;  %v343_v53 = vrot.slane %v342_v43, 4  ;;  %v374_v59 = vrot.slane %v373_v31, 4 }
  0xc0   :  { %v359_v18 = vadd.f32 %v358_v11, %v357_v10  ;;  %v387_v21 = vsel %vm356_vm0, %v330_v5, 0.0  ;;  %v388_v22 = vsel %vm356_vm0, %v334_v8, 0.0  ;;  %v177_v32 = vmul.f32 %v18756_v4, %v18761_v7 }
  0xc1   :  { %v337_v54 = vadd.f32 %v336_v45, %v335_v25  ;;  %v368_v55 = vadd.f32 %v367_v46, %v366_v36  ;;  %v344_v1 = vadd.f32 %v343_v53, %v342_v43  ;;  %v375_v6 = vadd.f32 %v374_v59, %v373_v31 }
  0xc2   :  { %v360_v30 = vrot.slane %v359_v18, 4  ;;  %v253_v33 = vmul.f32 %v18786_v26, %v18783_v24  ;;  %v389_v35 = vadd.f32 %v388_v22, %v387_v21  ;;  %v241_v25 = vmul.f32 %v18764_v9, %v18774_v15 }
  0xc3   :  { %v338_v2 = vrot.slane %v337_v54, 2  ;;  %v369_v3 = vrot.slane %v368_v55, 2  ;;  %v345_v16 = vrot.slane %v344_v1, 2  ;;  %v376_v20 = vrot.slane %v375_v6, 2 }
  0xc4   :  { %v249_v36 = vmul.f32 %v18764_v9, %v18783_v24  ;;  %v361_v39 = vadd.f32 %v360_v30, %v359_v18  ;;  %v185_v40 = vmul.f32 %v18756_v4, %v18769_v12  ;;  %v261_v42 = vadd.f32 %v245_v19, %v18789_v27 }
  0xc5   :  { %v339_v17 = vadd.f32 %v338_v2, %v337_v54  ;;  %v370_v14 = vadd.f32 %v369_v3, %v368_v55  ;;  %v346_v23 = vadd.f32 %v345_v16, %v344_v1  ;;  %v377_v34 = vadd.f32 %v376_v20, %v375_v6 }
  0xc6   :  { %v390_v43 = vrot.slane %v389_v35, 4  ;;  %v362_v49 = vrot.slane %v361_v39, 2  ;;  %v269_v31 = vadd.f32 %v253_v33, %v18801_v41  ;;  %v257_v27 = vadd.f32 %v241_v25, %v177_v32 }
  0xc7   :  { %v340_v28 = vrot.slane %v339_v17, 1  ;;  %v371_v29 = vrot.slane %v370_v14, 1  ;;  %v347_v37 = vrot.slane %v346_v23, 1  ;;  %v378_v7 = vrot.slane %v377_v34, 1 }
  0xc8   :  { %v391_v9 = vadd.f32 %v390_v43, %v389_v35  ;;  %v363_v12 = vadd.f32 %v362_v49, %v361_v39  ;;  %v265_v52 = vadd.f32 %v249_v36, %v185_v40  ;;  %v285_v44 = vadd.f32 %v18805_v48, %v261_v42  ;;  %v18398_v39 = vld [vmem:[%s22800_s4 + $0x110] ss:$8 sps:$4 sm:$0xff]   ;;  %v18403_v42 = vld [vmem:[%s22800_s4 + $0x124] ss:$8 sps:$4 sm:$0xff]  }
  0xc9   :  { %v348_v26 = vadd.f32 %v347_v37, %v346_v23  ;;  %v341_v45 = vadd.f32 %v340_v28, %v339_v17  ;;  %v372_v46 = vadd.f32 %v371_v29, %v370_v14  ;;  %v379_v50 = vadd.f32 %v378_v7, %v377_v34  ;;  %v18395_v23 = vld [vmem:[%s22800_s4 + $0x100] ss:$8 sps:$4 sm:$0xff]  }
  0xca   :  { %v392_v54 = vrot.slane %v391_v9, 2  ;;  %v364_v41 = vrot.slane %v363_v12, 1  ;;  %v293_v60 = vadd.f32 %v18805_v48, %v269_v31  ;;  %v281_v11 = vadd.f32 %v18798_v38, %v257_v27 }
  0xcb   :  { %v289_v16 = vadd.f32 %v18798_v38, %v265_v52  ;;  %v301_v20 = vmax.f32 %v285_v44, 0.0  ;;  %v18400_v38 = vld [vmem:[%s22800_s4 + $0x114] ss:$8 sps:$4 sm:$0xff]  }
  0xcc   :  { %s18324_s0 = spop %18323  ;;  %v393_v1 = vadd.f32 %v392_v54, %v391_v9  ;;  %v365_v6 = vadd.f32 %v364_v41, %v363_v12  ;;  %v309_v21 = vmax.f32 %v293_v60, 0.0  ;;  %v297_v30 = vmax.f32 %v281_v11, 0.0  ;;  %v18407_v9 = vld [vmem:[%s22800_s4 + $0x140] ss:$8 sps:$4 sm:$0xff]   ;;  %v18410_v12 = vld [vmem:[%s22800_s4 + $0x150] ss:$8 sps:$4 sm:$0xff]  }
  0xcd   :  { %v18858_v15 = vstv %s18324_s0  ;;  %v305_v32 = vmax.f32 %v289_v16, 0.0  ;;  %v325_v35 = vmul.f32 %v18813_v56, %v301_v20  ;;  %v18413_v54 = vld [vmem:[%s22800_s4 + $0x160] ss:$8 sps:$4 sm:$0xff]   ;;  %v18416_v41 = vld [vmem:[%s22800_s4 + $0x170] ss:$8 sps:$4 sm:$0xff]  }
  0xce   :  { %v403_v24 = vadd.f32 %v18858_v15, %v348_v26  ;;  %v402_v51 = vadd.f32 %v18858_v15, %v341_v45  ;;  %v406_v4 = vadd.f32 %v18858_v15, %v372_v46  ;;  %v407_v53 = vadd.f32 %v18858_v15, %v379_v50  ;;  %v18406_v45 = vld [vmem:[%s22800_s4 + $0x134] ss:$8 sps:$4 sm:$0xff]   ;;  %v18404_v46 = vld [vmem:[%s22800_s4 + $0x130] ss:$8 sps:$4 sm:$0xff]   ;;  %v18409_v50 = vld [vmem:[%s22800_s4 + $0x144] ss:$8 sps:$4 sm:$0xff]  }
  0xcf   :  { %v394_v10 = vrot.slane %v393_v1, 1  ;;  %v405_v14 = vadd.f32 %v18858_v15, %v365_v6  ;;  %v333_v25 = vmul.f32 %v18813_v56, %v309_v21  ;;  %v321_v36 = vmul.f32 %v18820_v13, %v297_v30  ;;  %v18401_v56 = vld [vmem:[%s22800_s4 + $0x120] ss:$8 sps:$4 sm:$0xff]   ;;  %v18422_v16 = vld [vmem:[%s22800_s4 + $0x190] ss:$8 sps:$4 sm:$0xff]  }
  0xd0   :  { %v411_v55 = vpack.c.bf16 %v403_v24, %v403_v24  ;;  %v410_v57 = vpack.c.bf16 %v402_v51, %v402_v51  ;;  %v414_v59 = vpack.c.bf16 %v406_v4, %v406_v4  ;;  %v415_v0 = vpack.c.bf16 %v407_v53, %v407_v53  ;;  %v18412_v4 = vld [vmem:[%s22800_s4 + $0x154] ss:$8 sps:$4 sm:$0xff]   ;;  %v18415_v53 = vld [vmem:[%s22800_s4 + $0x164] ss:$8 sps:$4 sm:$0xff]  }
  0xd1   :  { %v395_v48 = vadd.f32 %v394_v10, %v393_v1  ;;  %v413_v28 = vpack.c.bf16 %v405_v14, %v405_v14  ;;  %v329_v37 = vmul.f32 %v18820_v13, %v305_v32  ;;  %v349_v13 = vadd.f32 %v325_v35, %v321_v36  ;;  %v18419_v1 = vld [vmem:[%s22800_s4 + $0x180] ss:$8 sps:$4 sm:$0xff]   ;;  %v18430_v14 = vld [vmem:[%s22800_s4 + $0x1b4] ss:$8 sps:$4 sm:$0x1f]  }
  0xd2   :  { %v483_v2 = vunpack.c.l.b16 %v411_v55  ;;  %v482_v3 = vunpack.c.l.b16 %v410_v57  ;;  %v486_v5 = vunpack.c.l.b16 %v414_v59  ;;  %v487_v8 = vunpack.c.l.b16 %v415_v0  ;;  %v18418_v59 = vld [vmem:[%s22800_s4 + $0x174] ss:$8 sps:$4 sm:$0xff]   ;;  %v18421_v0 = vld [vmem:[%s22800_s4 + $0x184] ss:$8 sps:$4 sm:$0xff]  }
  0xd3   :  { %v409_v29 = vadd.f32 %v18858_v15, %v395_v48  ;;  %v485_v34 = vunpack.c.l.b16 %v413_v28  ;;  %v380_v26 = vadd.f32 %v333_v25, %v329_v37  ;;  %v350_v49 = vrot.slane %v349_v13, 4  ;;  %v18425_v48 = vld [vmem:[%s22800_s4 + $0x1a0] ss:$8 sps:$4 sm:$0xff]   ;;  %v18428_v20 = vld [vmem:[%s22800_s4 + $0x1b0] ss:$8 sps:$4 sm:$0x1f]  }
  0xd4   :  { %v491_v17 = vsel %vm490_vm1, %v486_v5, %v482_v3  ;;  %v492_v18 = vsel %vm490_vm1, %v487_v8, %v483_v2  ;;  %v18424_v5 = vld [vmem:[%s22800_s4 + $0x194] ss:$8 sps:$4 sm:$0xff]   ;;  %v18557_v10 = vmov 65535   ;;  %v898_v37 = vld [vmem:[#allocation4] sm:$0xff] }
  0xd5   :  { %v495_v19 = vpack.c.b16 %v491_v17, %v491_v17  ;;  %v496_v22 = vpack.c.b16 %v492_v18, %v492_v18  ;;  %v417_v33 = vpack.c.bf16 %v409_v29, %v409_v29  ;;  %v381_v31 = vrot.slane %v380_v26, 4  ;;  %v18427_v17 = vld [vmem:[%s22800_s4 + $0x1a4] ss:$8 sps:$4 sm:$0xff]  }
  0xd6   :  { %v351_v24 = vadd.f32 %v350_v49, %v349_v13  ;;  %v785_v11 = vsel %vm783_vm2, 4294967295, %v18557_v10  ;;  %v910_v13 = vld [vmem:[#allocation4 + $0x60] sm:$0xff]  ;;  %v909_v49 = vld [vmem:[#allocation4 + $0x58] sm:$0xff] }
  0xd7   :  { %825 = vmatprep.mubr.bf16.mxu0 %v496_v22  ;;  %v489_v40 = vunpack.c.l.b16 %v417_v33  ;;  %v382_v51 = vadd.f32 %v381_v31, %v380_v26  ;;  %v786_v18 = vsel %vm784_vm3, %v785_v11, 0  ;;  %v913_v31 = vld [vmem:[#allocation4 + $0x78] sm:$0xff] }
  0xd8   :  { %826 = vmatmul.mubr.bf16.vlgmr.msra.gmra.mrb[0].mxu0 %v495_v19  ;;  %v352_v27 = vrot.slane %v351_v24, 2  ;;  %v791_v21 = vand.u32 %v18430_v14, %v786_v18  ;;  %v788_v28 = vand.u32 %v18428_v20, %v786_v18 }
  0xd9   :  { %835 = vmatpush1.bf16.msra.mxu0 %v18395_v23  ;;  %v494_v7 = vsel %vm490_vm1, %v489_v40, %v485_v34  ;;  %v383_v52 = vrot.slane %v382_v51, 2  ;;  %v901_v40 = vld [vmem:[#allocation4 + $0x18] sm:$0xff] }
  0xda   :  { %836 = vmatprep.subr.bf16.mxu0 %v18400_v38  ;;  %v498_v43 = vpack.c.b16 %v494_v7, %v494_v7  ;;  %v353_v55 = vadd.f32 %v352_v27, %v351_v24  ;;  %v918_v24 = vld [vmem:[#allocation4 + $0xa0] sm:$0xff]  ;;  %v15273_v27 = vcombine.low %v909_v49, %v913_v31 }
  0xdb   :  { %v384_v57 = vadd.f32 %v383_v52, %v382_v51  ;;  %v917_v51 = vld [vmem:[#allocation4 + $0x98] sm:$0xff] }
  0xdc   :  { %15258 = vmatprep.mubr.msk.bf16.mxu0 %vm356_vm0, %v498_v43  ;;  %v354_v44 = vrot.slane %v353_v55, 1  ;;  %v905_v43 = vld [vmem:[#allocation4 + $0x38] sm:$0xff] }
  0xdd   :  { %837 = vmatpush1.bf16.msra.mxu0 %v18398_v39  ;;  %v385_v60 = vrot.slane %v384_v57, 1  ;;  %v902_v39 = vld [vmem:[#allocation4 + $0x20] sm:$0xff]  ;;  %v15265_v26 = vcombine.low %v901_v40, %v905_v43 }
  0xde   :  { %838 = vmatprep.subr.bf16.mxu0 %v18403_v42  ;;  %v355_v2 = vadd.f32 %v354_v44, %v353_v55  ;;  %v15260_v42 = vcombine.high %v898_v37, %v902_v39  ;;  %v15259_v7 = vcombine.low %v898_v37, %v902_v39  ;;  %v926_v55 = vld [vmem:[#allocation4 + $0xe0] sm:$0xff]  ;;  %v949_v37 = vld [vmem:[#allocation4 + $0x198] sm:$0xff] }
  0xdf   :  { %v386_v3 = vadd.f32 %v385_v60, %v384_v57  ;;  %v925_v57 = vld [vmem:[#allocation4 + $0xd8] sm:$0xff] }
  0xe0   :  { %v404_v6 = vadd.f32 %v18858_v15, %v355_v2  ;;  %2492 = vmatprep.subr.bf16.mxu1 %v15260_v42  ;;  %v934_v2 = vld [vmem:[#allocation4 + $0x120] sm:$0xff]  ;;  %v953_v39 = vld [vmem:[#allocation4 + $0x1b8] sm:$0xff] }
  0xe1   :  { %839 = vmatpush1.bf16.msra.mxu0 %v18401_v56  ;;  %v408_v8 = vadd.f32 %v18858_v15, %v386_v3  ;;  %v906_v56 = vld [vmem:[#allocation4 + $0x40] sm:$0xff]  ;;  %2493 = vmatpush1.bf16.msra.mxu1 %v15259_v7  ;;  %v933_v3 = vld [vmem:[#allocation4 + $0x118] sm:$0xff]  ;;  %v15314_v7 = vcombine.high %v949_v37, %v953_v39 }
  0xe2   :  { %840 = vmatprep.subr.bf16.mxu0 %v18406_v45  ;;  %v412_v19 = vpack.c.bf16 %v404_v6, %v404_v6  ;;  %v15266_v45 = vcombine.high %v901_v40, %v905_v43  ;;  %v954_v43 = vld [vmem:[#allocation4 + $0x1c0] sm:$0xff] }
  0xe3   :  { %v416_v15 = vpack.c.bf16 %v408_v8, %v408_v8 }
  0xe4   :  { %v484_v22 = vunpack.c.l.b16 %v412_v19 }
  0xe5   :  { %841 = vmatpush1.bf16.msra.mxu0 %v18404_v46  ;;  %v488_v23 = vunpack.c.l.b16 %v416_v15  ;;  %v15268_v46 = vcombine.high %v906_v56, %v910_v13 }
  0xe6   :  { %842 = vmatprep.subr.bf16.mxu0 %v18409_v50  ;;  %v914_v50 = vld [vmem:[#allocation4 + $0x80] sm:$0xff] }
  0xe7   :  { %v493_v29 = vsel %vm490_vm1, %v488_v23, %v484_v22  ;;  %2494 = vmatprep.subr.bf16.mxu1 %v15268_v46  ;;  %v15276_v52 = vcombine.high %v914_v50, %v918_v24  ;;  %v15313_v46 = vcombine.low %v949_v37, %v953_v39  ;;  %v923_v37 = vld [vmem:[#allocation4 + $0xc8] sm:$0xff] }
  0xe8   :  { %v497_v38 = vpack.c.b16 %v493_v29, %v493_v29  ;;  %v927_v39 = vld [vmem:[#allocation4 + $0xe8] sm:$0xff] }
  0xe9   :  { %843 = vmatpush1.bf16.msra.mxu0 %v18407_v9  ;;  %v15274_v9 = vcombine.high %v909_v49, %v913_v31  ;;  %v962_v49 = vld [vmem:[#allocation4 + $0x200] sm:$0xff] }
  0xea   :  { %844 = vmatprep.subr.bf16.mxu0 %v18412_v4  ;;  %v921_v4 = vld [vmem:[#allocation4 + $0xb8] sm:$0xff]  ;;  %v966_v31 = vld [vmem:[#allocation4 + $0x220] sm:$0xff] }
  0xeb   :  { %v15281_v44 = vcombine.low %v917_v51, %v921_v4 }
  0xed   :  { %845 = vmatpush1.bf16.msra.mxu0 %v18410_v12  ;;  %v15267_v12 = vcombine.low %v906_v56, %v910_v13  ;;  %v958_v56 = vld [vmem:[#allocation4 + $0x1e0] sm:$0xff]  ;;  %v957_v13 = vld [vmem:[#allocation4 + $0x1d8] sm:$0xff] }
  0xee   :  { %846 = vmatprep.subr.bf16.mxu0 %v18415_v53  ;;  %v15282_v53 = vcombine.high %v917_v51, %v921_v4  ;;  %v969_v51 = vld [vmem:[#allocation4 + $0x238] sm:$0xff]  ;;  %v15324_v4 = vcombine.high %v962_v49, %v966_v31 }
  0xef   :  { %2495 = vmatpush1.bf16.msra.mxu1 %v15267_v12 }
  0xf0   :  { %2496 = vmatprep.subr.bf16.mxu1 %v15276_v52  ;;  %v974_v52 = vld [vmem:[#allocation4 + $0x260] sm:$0xff] }
  0xf1   :  { %847 = vmatpush1.bf16.msra.mxu0 %v18413_v54  ;;  %v922_v54 = vld [vmem:[#allocation4 + $0xc0] sm:$0xff] }
  0xf2   :  { %848 = vmatprep.subr.bf16.mxu0 %v18418_v59  ;;  %v929_v59 = vld [vmem:[#allocation4 + $0xf8] sm:$0xff]  ;;  %v15284_v60 = vcombine.high %v922_v54, %v926_v55  ;;  %v15283_v6 = vcombine.low %v922_v54, %v926_v55  ;;  %v15323_v54 = vcombine.low %v962_v49, %v966_v31  ;;  %v1011_v49 = vld [vmem:[#allocation4 + $0x388] sm:$0xff] }
  0xf3   :  { %v15289_v8 = vcombine.low %v925_v57, %v929_v59  ;;  %v973_v55 = vld [vmem:[#allocation4 + $0x258] sm:$0xff]  ;;  %v1015_v31 = vld [vmem:[#allocation4 + $0x3a8] sm:$0xff] }
  0xf5   :  { %849 = vmatpush1.bf16.msra.mxu0 %v18416_v41  ;;  %v15275_v41 = vcombine.low %v914_v50, %v918_v24  ;;  %v965_v24 = vld [vmem:[#allocation4 + $0x218] sm:$0xff] }
  0xf6   :  { %850 = vmatprep.subr.bf16.mxu0 %v18421_v0  ;;  %v15290_v0 = vcombine.high %v925_v57, %v929_v59  ;;  %v977_v57 = vld [vmem:[#allocation4 + $0x278] sm:$0xff] }
  0xf7   :  { %2497 = vmatpush1.bf16.msra.mxu1 %v15275_v41  ;;  %v15329_v41 = vcombine.low %v965_v24, %v969_v51 }
  0xf8   :  { %2498 = vmatprep.subr.bf16.mxu1 %v15284_v60 }
  0xf9   :  { %851 = vmatpush1.bf16.msra.mxu0 %v18419_v1  ;;  %v930_v1 = vld [vmem:[#allocation4 + $0x100] sm:$0xff] }
  0xfa   :  { %852 = vmatprep.subr.bf16.mxu0 %v18424_v5  ;;  %v937_v5 = vld [vmem:[#allocation4 + $0x138] sm:$0xff]  ;;  %v15292_v10 = vcombine.high %v930_v1, %v934_v2  ;;  %v15291_v14 = vcombine.low %v930_v1, %v934_v2  ;;  %v903_v1 = vld [vmem:[#allocation4 + $0x28] sm:$0xff]  ;;  %v15337_v2 = vcombine.low %v973_v55, %v977_v57 }
  0xfb   :  { %v15298_v11 = vcombine.high %v933_v3, %v937_v5  ;;  %2499 = vmatpush1.bf16.msra.mxu1 %v15283_v6  ;;  %v15297_v18 = vcombine.low %v933_v3, %v937_v5  ;;  %v979_v6 = vld [vmem:[#allocation4 + $0x288] sm:$0xff] }
  0xfc   :  { %2500 = vmatprep.subr.bf16.mxu1 %v15292_v10 }
  0xfd   :  { %853 = vmatpush1.bf16.msra.mxu0 %v18422_v16  ;;  %v938_v16 = vld [vmem:[#allocation4 + $0x140] sm:$0xff] }
  0xfe   :  { %854 = vmatprep.subr.bf16.mxu0 %v18427_v17  ;;  %v942_v17 = vld [vmem:[#allocation4 + $0x160] sm:$0xff] }
  0xff   :  { %v15300_v19 = vcombine.high %v938_v16, %v942_v17  ;;  %2501 = vmatpush1.bf16.msra.mxu1 %v15291_v14 }
 0x101   :  { %855 = vmatpush1.bf16.msra.mxu0 %v18425_v48  ;;  %2502 = vmatprep.subr.bf16.mxu1 %v15300_v19 }
 0x102   :  { %856 = vmatprep.subr.bf16.mxu0 %v791_v21 }
 0x105   :  { %857 = vmatpush1.bf16.msra.mxu0 %v788_v28 }
 0x106   :  { %2615 = vmatprep.subr.bf16.mxu0 %v15266_v45  ;;  %v961_v45 = vld [vmem:[#allocation4 + $0x1f8] sm:$0xff] }
 0x107   :  { %v15322_v50 = vcombine.high %v957_v13, %v961_v45  ;;  %v15321_v12 = vcombine.low %v957_v13, %v961_v45  ;;  %v935_v45 = vld [vmem:[#allocation4 + $0x128] sm:$0xff] }
 0x108   :  { %867 = vmatmul.mubr.bf16.vlgmr.msra.gmra.mrb[0].mxu0 %v497_v38 }
 0x109   :  { %2616 = vmatpush1.bf16.msra.mxu0 %v15265_v26  ;;  %v15316_v26 = vcombine.high %v954_v43, %v958_v56 }
 0x10a   :  { %2617 = vmatprep.subr.bf16.mxu0 %v15274_v9  ;;  %v15315_v9 = vcombine.low %v954_v43, %v958_v56  ;;  %v15286_v56 = vcombine.high %v923_v37, %v927_v39 }
 0x10d   :  { %2618 = vmatpush1.bf16.msra.mxu0 %v15273_v27  ;;  %v970_v27 = vld [vmem:[#allocation4 + $0x240] sm:$0xff] }
 0x10e   :  { %2619 = vmatprep.subr.bf16.mxu0 %v15282_v53  ;;  %v15330_v53 = vcombine.high %v965_v24, %v969_v51  ;;  %v15332_v59 = vcombine.high %v970_v27, %v974_v52  ;;  %v15331_v60 = vcombine.low %v970_v27, %v974_v52  ;;  %v939_v51 = vld [vmem:[#allocation4 + $0x148] sm:$0xff] }
 0x10f   :  { %v1019_v27 = vld [vmem:[#allocation4 + $0x3c8] sm:$0xff] }
 0x110   :  { %v1023_v52 = vld [vmem:[#allocation4 + $0x3e8] sm:$0xff] }
 0x111   :  { %2620 = vmatpush1.bf16.msra.mxu0 %v15281_v44  ;;  %v15338_v44 = vcombine.high %v973_v55, %v977_v57  ;;  %v15377_v55 = vcombine.low %v1011_v49, %v1015_v31  ;;  %v947_v57 = vld [vmem:[#allocation4 + $0x188] sm:$0xff] }
 0x112   :  { %2621 = vmatprep.subr.bf16.mxu0 %v15290_v0  ;;  %v899_v0 = vld [vmem:[#allocation4 + $0x8] sm:$0xff] }
 0x113   :  { %v15261_v3 = vcombine.low %v899_v0, %v903_v1  ;;  %v15262_v5 = vcombine.high %v899_v0, %v903_v1 }
 0x115   :  { %2622 = vmatpush1.bf16.msra.mxu0 %v15289_v8  ;;  %v983_v8 = vld [vmem:[#allocation4 + $0x2a8] sm:$0xff] }
 0x116   :  { %2623 = vmatprep.subr.bf16.mxu0 %v15298_v11  ;;  %v15346_v10 = vcombine.high %v979_v6, %v983_v8 }
 0x119   :  { %2624 = vmatpush1.bf16.msra.mxu0 %v15297_v18 }
 0x1db   :  { %v18950_v30 = vpop.f32.mrb[0].mxu0 }
 0x1dc   :  { %v876_v32 = vsel %vm875_vm4, %v18950_v30, 0.0  ;;  %v18954_v33 = vpop.f32.mrb[1].mxu0 }
 0x1dd   :  { %v878_v34 = vsel %vm877_vm5, %v18954_v33, 0.0  ;;  %v872_v35 = vpop.f32.mrb[2].mxu0 }
 0x1de   :  { %v873_v25 = vpop.f32.mrb[3].mxu0  ;;  %v879_v36 = vadd.f32 %v878_v34, %v876_v32  ;;  %v15299_v32 = vcombine.low %v938_v16, %v942_v17  ;;  %v941_v34 = vld [vmem:[#allocation4 + $0x158] sm:$0xff] }
 0x1df   :  { %v945_v35 = vld [vmem:[#allocation4 + $0x178] sm:$0xff] }
 0x1e0   :  { %880 = vadd.xlane.f32.xlu1 %v879_v36  ;;  %v15305_v25 = vcombine.low %v941_v34, %v945_v35  ;;  %v15306_v36 = vcombine.high %v941_v34, %v945_v35  ;;  %2503 = vmatpush1.bf16.msra.mxu1 %v15299_v32  ;;  %v15345_v32 = vcombine.low %v979_v6, %v983_v8  ;;  %v919_v34 = vld [vmem:[#allocation4 + $0xa8] sm:$0xff] }
 0x1e1   :  { %v995_v35 = vld [vmem:[#allocation4 + $0x308] sm:$0xff] }
 0x1e2   :  { %2625 = vmatprep.subr.bf16.mxu0 %v15306_v36  ;;  %v1035_v8 = vld [vmem:[#allocation4 + $0x448] sm:$0xff] }
 0x1e3   :  { %2626 = vmatpush1.bf16.msra.mxu0 %v15305_v25 }
 0x1e4   :  { %2627 = vmatprep.subr.bf16.mxu0 %v15314_v7  ;;  %v1007_v7 = vld [vmem:[#allocation4 + $0x368] sm:$0xff] }
 0x1e7   :  { %2628 = vmatpush1.bf16.msra.mxu0 %v15313_v46 }
 0x1e8   :  { %2629 = vmatprep.subr.bf16.mxu0 %v15322_v50  ;;  %v15285_v50 = vcombine.low %v923_v37, %v927_v39  ;;  %v908_v39 = vld [vmem:[#allocation4 + $0x50] sm:$0xff] }
 0x1eb   :  { %2630 = vmatpush1.bf16.msra.mxu0 %v15321_v12  ;;  %v15378_v12 = vcombine.high %v1011_v49, %v1015_v31 }
 0x1ec   :  { %2631 = vmatprep.subr.bf16.mxu0 %v15330_v53 }
 0x1ef   :  { %2632 = vmatpush1.bf16.msra.mxu0 %v15329_v41  ;;  %v15386_v41 = vcombine.high %v1019_v27, %v1023_v52 }
 0x1f0   :  { %2633 = vmatprep.subr.bf16.mxu0 %v15338_v44  ;;  %v1027_v44 = vld [vmem:[#allocation4 + $0x408] sm:$0xff] }
 0x1f3   :  { %2634 = vmatpush1.bf16.msra.mxu0 %v15337_v2  ;;  %v15385_v2 = vcombine.low %v1019_v27, %v1023_v52  ;;  %v948_v52 = vld [vmem:[#allocation4 + $0x190] sm:$0xff] }
 0x1f4   :  { %5501 = vmatprep.subr.bf16.mxu0 %v15346_v10  ;;  %v1039_v10 = vld [vmem:[#allocation4 + $0x468] sm:$0xff] }
 0x26d   :  { %v881_v15 = vpop.xlane.xlu1 %880 }
 0x26e   :  { %v883_v48 = vmul.f32 0.00625, %v881_v15  ;;  %v907_v15 = vld [vmem:[#allocation4 + $0x48] sm:$0xff] }
 0x270   :  { %v18959_v20 = vsub.f32 %v18950_v30, %v883_v48  ;;  %v18962_v21 = vsub.f32 %v18954_v33, %v883_v48  ;;  %v946_v30 = vld [vmem:[#allocation4 + $0x180] sm:$0xff]  ;;  %v911_v48 = vld [vmem:[#allocation4 + $0x68] sm:$0xff] }
 0x271   :  { %v950_v33 = vld [vmem:[#allocation4 + $0x1a0] sm:$0xff]  ;;  %v15269_v25 = vcombine.low %v907_v15, %v911_v48 }
 0x272   :  { %v886_v22 = vmul.f32 %v18959_v20, %v18959_v20  ;;  %v887_v23 = vmul.f32 %v18962_v21, %v18962_v21  ;;  %v15308_v40 = vcombine.high %v946_v30, %v950_v33  ;;  %v15307_v42 = vcombine.low %v946_v30, %v950_v33  ;;  %v999_v30 = vld [vmem:[#allocation4 + $0x328] sm:$0xff] }
 0x273   :  { %v15361_v13 = vcombine.low %v995_v35, %v999_v30 }
 0x274   :  { %v888_v28 = vsel %vm875_vm4, %v886_v22, 0.0  ;;  %v889_v29 = vsel %vm877_vm5, %v887_v23, 0.0  ;;  %2504 = vmatprep.subr.bf16.mxu1 %v15308_v40  ;;  %v987_v22 = vld [vmem:[#allocation4 + $0x2c8] sm:$0xff]  ;;  %v15362_v40 = vcombine.high %v995_v35, %v999_v30 }
 0x275   :  { %v890_v38 = vadd.f32 %v889_v29, %v888_v28  ;;  %2505 = vmatpush1.bf16.msra.mxu1 %v15307_v42  ;;  %v991_v23 = vld [vmem:[#allocation4 + $0x2e8] sm:$0xff] }
 0x276   :  { %2506 = vmatprep.subr.bf16.mxu1 %v15316_v26  ;;  %v15353_v33 = vcombine.low %v987_v22, %v991_v23  ;;  %v1003_v42 = vld [vmem:[#allocation4 + $0x348] sm:$0xff] }
 0x277   :  { %891 = vadd.xlane.f32.xlu0 %v890_v38  ;;  %v15270_v38 = vcombine.high %v907_v15, %v911_v48  ;;  %v931_v26 = vld [vmem:[#allocation4 + $0x108] sm:$0xff]  ;;  %v15370_v46 = vcombine.high %v1003_v42, %v1007_v7  ;;  %v15369_v24 = vcombine.low %v1003_v42, %v1007_v7 }
 0x278   :  { %v15293_v53 = vcombine.low %v931_v26, %v935_v45  ;;  %v1043_v15 = vld [vmem:[#allocation4 + $0x488] sm:$0xff] }
 0x279   :  { %2507 = vmatpush1.bf16.msra.mxu1 %v15315_v9  ;;  %v15294_v9 = vcombine.high %v931_v26, %v935_v45  ;;  %v1047_v48 = vld [vmem:[#allocation4 + $0x4a8] sm:$0xff]  ;;  %v924_v45 = vld [vmem:[#allocation4 + $0xd0] sm:$0xff] }
 0x27a   :  { %2508 = vmatprep.subr.bf16.mxu1 %v15324_v4  ;;  %v943_v4 = vld [vmem:[#allocation4 + $0x168] sm:$0xff]  ;;  %v15409_v30 = vcombine.low %v1043_v15, %v1047_v48 }
 0x27b   :  { %v15301_v0 = vcombine.low %v939_v51, %v943_v4 }
 0x27d   :  { %2509 = vmatpush1.bf16.msra.mxu1 %v15323_v54  ;;  %v15302_v54 = vcombine.high %v939_v51, %v943_v4  ;;  %v940_v4 = vld [vmem:[#allocation4 + $0x150] sm:$0xff] }
 0x27e   :  { %2510 = vmatprep.subr.bf16.mxu1 %v15332_v59  ;;  %v951_v59 = vld [vmem:[#allocation4 + $0x1a8] sm:$0xff] }
 0x27f   :  { %v15310_v1 = vcombine.high %v947_v57, %v951_v59 }
 0x281   :  { %2511 = vmatpush1.bf16.msra.mxu1 %v15331_v60  ;;  %v1031_v60 = vld [vmem:[#allocation4 + $0x428] sm:$0xff] }
 0x282   :  { %2533 = vmatprep.subr.bf16.mxu1 %v15262_v5  ;;  %v959_v5 = vld [vmem:[#allocation4 + $0x1e8] sm:$0xff]  ;;  %v15394_v6 = vcombine.high %v1027_v44, %v1031_v60 }
 0x304   :  { %v892_v11 = vpop.xlane.xlu0 %891 }
 0x305   :  { %v893_v16 = vmul.f32 0.006289308, %v892_v11  ;;  %v15309_v11 = vcombine.low %v947_v57, %v951_v59  ;;  %v956_v57 = vld [vmem:[#allocation4 + $0x1d0] sm:$0xff] }
 0x306   :  { %v960_v59 = vld [vmem:[#allocation4 + $0x1f0] sm:$0xff] }
 0x307   :  { %v894_v17 = vadd.f32 1e-05, %v893_v16 }
 0x309   :  { %18431 = vrsqrt.f32 %v894_v17  ;;  %v15393_v17 = vcombine.low %v1027_v44, %v1031_v60  ;;  %v15320_v44 = vcombine.high %v956_v57, %v960_v59  ;;  %v964_v60 = vld [vmem:[#allocation4 + $0x210] sm:$0xff] }
 0x313   :  { %v18432_v14 = vpop.eup %18431 }
 0x314   :  { %v897_v18 = vmul.f32 %v18432_v14, %v18962_v21  ;;  %v896_v19 = vmul.f32 %v18432_v14, %v18959_v20  ;;  %v915_v21 = vld [vmem:[#allocation4 + $0x88] sm:$0xff]  ;;  %v15354_v20 = vcombine.high %v987_v22, %v991_v23 }
 0x315   :  { %v15278_v36 = vcombine.high %v915_v21, %v919_v34  ;;  %v15277_v43 = vcombine.low %v915_v21, %v919_v34  ;;  %v963_v14 = vld [vmem:[#allocation4 + $0x208] sm:$0xff]  ;;  %v15410_v34 = vcombine.high %v1043_v15, %v1047_v48  ;;  %v994_v48 = vld [vmem:[#allocation4 + $0x300] sm:$0xff] }
 0x316   :  { %v18972_v28 = vpack.c.bf16 %v897_v18, %v897_v18  ;;  %v18974_v29 = vpack.c.bf16 %v896_v19, %v896_v19  ;;  %v967_v18 = vld [vmem:[#allocation4 + $0x228] sm:$0xff]  ;;  %v15402_v19 = vcombine.high %v1035_v8, %v1039_v10 }
 0x317   :  { %v15326_v23 = vcombine.high %v963_v14, %v967_v18  ;;  %v975_v21 = vld [vmem:[#allocation4 + $0x268] sm:$0xff] }
 0x318   :  { %15339 = vmatprep.mubr.msk.bf16.mxu1 %vm2488_vm6, %v18972_v28  ;;  %15342 = vmatprep.mubr.msk.bf16.mxu0 %vm2488_vm6, %v18972_v28 }
 0x319   :  { %2525 = vmatmul.mubr.bf16.vlgmr.msra.gmra.mrb[0].mxu1 %v18974_v29  ;;  %2648 = vmatmul.mubr.bf16.vlgmr.msra.gmra.mrb[4].mxu0 %v18974_v29 }
 0x31a   :  { %2534 = vmatpush1.bf16.msra.mxu1 %v15261_v3  ;;  %15340 = vmatprep.mubr.msk.bf16.mxu1 %vm2488_vm6, %v18972_v28  ;;  %v955_v3 = vld [vmem:[#allocation4 + $0x1c8] sm:$0xff] }
 0x31b   :  { %2535 = vmatprep.subr.bf16.mxu1 %v15270_v38  ;;  %5502 = vmatpush1.bf16.msra.mxu0 %v15345_v32  ;;  %v15318_v16 = vcombine.high %v955_v3, %v959_v5  ;;  %v15317_v22 = vcombine.low %v955_v3, %v959_v5  ;;  %v15401_v38 = vcombine.low %v1035_v8, %v1039_v10  ;;  %v971_v32 = vld [vmem:[#allocation4 + $0x248] sm:$0xff]  ;;  %v972_v3 = vld [vmem:[#allocation4 + $0x250] sm:$0xff]  ;;  %v978_v10 = vld [vmem:[#allocation4 + $0x280] sm:$0xff] }
 0x31c   :  { %5503 = vmatprep.subr.bf16.mxu0 %v15354_v20  ;;  %v15325_v20 = vcombine.low %v963_v14, %v967_v18  ;;  %v15334_v35 = vcombine.high %v971_v32, %v975_v21  ;;  %v976_v5 = vld [vmem:[#allocation4 + $0x270] sm:$0xff]  ;;  %v986_v14 = vld [vmem:[#allocation4 + $0x2c0] sm:$0xff] }
 0x31d   :  { %v15336_v8 = vcombine.high %v972_v3, %v976_v5  ;;  %v990_v18 = vld [vmem:[#allocation4 + $0x2e0] sm:$0xff] }
 0x31e   :  { %2536 = vmatpush1.bf16.msra.mxu1 %v15269_v25  ;;  %v900_v25 = vld [vmem:[#allocation4 + $0x10] sm:$0xff]  ;;  %v15352_v15 = vcombine.high %v986_v14, %v990_v18 }
 0x31f   :  { %2537 = vmatprep.subr.bf16.mxu1 %v15278_v36  ;;  %5504 = vmatpush1.bf16.msra.mxu0 %v15353_v33  ;;  %v904_v36 = vld [vmem:[#allocation4 + $0x30] sm:$0xff]  ;;  %v15333_v33 = vcombine.low %v971_v32, %v975_v21  ;;  %v1002_v32 = vld [vmem:[#allocation4 + $0x340] sm:$0xff] }
 0x320   :  { %5505 = vmatprep.subr.bf16.mxu0 %v15362_v40  ;;  %v15264_v37 = vcombine.high %v900_v25, %v904_v36  ;;  %v912_v40 = vld [vmem:[#allocation4 + $0x70] sm:$0xff]  ;;  %v15263_v42 = vcombine.low %v900_v25, %v904_v36  ;;  %v1006_v21 = vld [vmem:[#allocation4 + $0x360] sm:$0xff] }
 0x321   :  { %v15272_v7 = vcombine.high %v908_v39, %v912_v40  ;;  %v15367_v25 = vcombine.low %v1002_v32, %v1006_v21 }
 0x322   :  { %2538 = vmatpush1.bf16.msra.mxu1 %v15277_v43  ;;  %v916_v43 = vld [vmem:[#allocation4 + $0x90] sm:$0xff] }
 0x323   :  { %2539 = vmatprep.subr.bf16.mxu1 %v15286_v56  ;;  %5506 = vmatpush1.bf16.msra.mxu0 %v15361_v13  ;;  %v920_v56 = vld [vmem:[#allocation4 + $0xb0] sm:$0xff]  ;;  %v15271_v13 = vcombine.low %v908_v39, %v912_v40  ;;  %v1051_v39 = vld [vmem:[#allocation4 + $0x4c8] sm:$0xff] }
 0x324   :  { %5507 = vmatprep.subr.bf16.mxu0 %v15370_v46  ;;  %v15280_v26 = vcombine.high %v916_v43, %v920_v56  ;;  %v928_v46 = vld [vmem:[#allocation4 + $0xf0] sm:$0xff]  ;;  %v15279_v49 = vcombine.low %v916_v43, %v920_v56  ;;  %v1030_v43 = vld [vmem:[#allocation4 + $0x420] sm:$0xff] }
 0x325   :  { %v15288_v31 = vcombine.high %v924_v45, %v928_v46 }
 0x326   :  { %2540 = vmatpush1.bf16.msra.mxu1 %v15285_v50  ;;  %v932_v50 = vld [vmem:[#allocation4 + $0x110] sm:$0xff] }
 0x327   :  { %2541 = vmatprep.subr.bf16.mxu1 %v15294_v9  ;;  %5508 = vmatpush1.bf16.msra.mxu0 %v15369_v24  ;;  %v936_v9 = vld [vmem:[#allocation4 + $0x130] sm:$0xff]  ;;  %v15287_v24 = vcombine.low %v924_v45, %v928_v46  ;;  %v1063_v45 = vld [vmem:[#allocation4 + $0x528] sm:$0xff] }
 0x328   :  { %5509 = vmatprep.subr.bf16.mxu0 %v15378_v12  ;;  %v15296_v51 = vcombine.high %v932_v50, %v936_v9  ;;  %v944_v12 = vld [vmem:[#allocation4 + $0x170] sm:$0xff]  ;;  %v15295_v27 = vcombine.low %v932_v50, %v936_v9 }
 0x32a   :  { %2542 = vmatpush1.bf16.msra.mxu1 %v15293_v53  ;;  %v952_v53 = vld [vmem:[#allocation4 + $0x1b0] sm:$0xff] }
 0x32b   :  { %2543 = vmatprep.subr.bf16.mxu1 %v15302_v54  ;;  %5510 = vmatpush1.bf16.msra.mxu0 %v15377_v55  ;;  %v15303_v54 = vcombine.low %v940_v4, %v944_v12  ;;  %v15312_v55 = vcombine.high %v948_v52, %v952_v53 }
 0x32c   :  { %5511 = vmatprep.subr.bf16.mxu0 %v15386_v41  ;;  %v15311_v41 = vcombine.low %v948_v52, %v952_v53 }
 0x32e   :  { %2544 = vmatpush1.bf16.msra.mxu1 %v15301_v0  ;;  %v968_v0 = vld [vmem:[#allocation4 + $0x230] sm:$0xff] }
 0x32f   :  { %2545 = vmatprep.subr.bf16.mxu1 %v15310_v1  ;;  %5512 = vmatpush1.bf16.msra.mxu0 %v15385_v2  ;;  %v15319_v1 = vcombine.low %v956_v57, %v960_v59  ;;  %v15328_v2 = vcombine.high %v964_v60, %v968_v0  ;;  %v1046_v57 = vld [vmem:[#allocation4 + $0x4a0] sm:$0xff] }
 0x330   :  { %5513 = vmatprep.subr.bf16.mxu0 %v15394_v6  ;;  %v15327_v6 = vcombine.low %v964_v60, %v968_v0 }
 0x332   :  { %2546 = vmatpush1.bf16.msra.mxu1 %v15309_v11  ;;  %v982_v11 = vld [vmem:[#allocation4 + $0x2a0] sm:$0xff] }
 0x333   :  { %2547 = vmatprep.subr.bf16.mxu1 %v15318_v16  ;;  %5514 = vmatpush1.bf16.msra.mxu0 %v15393_v17  ;;  %v15335_v16 = vcombine.low %v972_v3, %v976_v5  ;;  %v15344_v17 = vcombine.high %v978_v10, %v982_v11  ;;  %v1054_v3 = vld [vmem:[#allocation4 + $0x4e0] sm:$0xff] }
 0x334   :  { %5515 = vmatprep.subr.bf16.mxu0 %v15402_v19  ;;  %v15343_v19 = vcombine.low %v978_v10, %v982_v11 }
 0x336   :  { %2548 = vmatpush1.bf16.msra.mxu1 %v15317_v22  ;;  %v998_v22 = vld [vmem:[#allocation4 + $0x320] sm:$0xff] }
 0x337   :  { %2549 = vmatprep.subr.bf16.mxu1 %v15326_v23  ;;  %5516 = vmatpush1.bf16.msra.mxu0 %v15401_v38  ;;  %v15351_v23 = vcombine.low %v986_v14, %v990_v18  ;;  %v15360_v38 = vcombine.high %v994_v48, %v998_v22  ;;  %v1062_v14 = vld [vmem:[#allocation4 + $0x520] sm:$0xff] }
 0x338   :  { %5517 = vmatprep.subr.bf16.mxu0 %v15410_v34  ;;  %v15359_v34 = vcombine.low %v994_v48, %v998_v22 }
 0x33a   :  { %2550 = vmatpush1.bf16.msra.mxu1 %v15325_v20  ;;  %v15368_v20 = vcombine.high %v1002_v32, %v1006_v21  ;;  %v18990_v32 = vld [vmem:[#allocation4 + $0x6a0] sm:$0xff]  ;;  %v18992_v21 = vld [vmem:[#allocation4 + $0x688] sm:$0xff] }
 0x33b   :  { %2551 = vmatprep.subr.bf16.mxu1 %v15334_v35  ;;  %5518 = vmatpush1.bf16.msra.mxu0 %v15409_v30  ;;  %v1010_v35 = vld [vmem:[#allocation4 + $0x380] sm:$0xff] }
 0x33c   :  { %v1014_v30 = vld [vmem:[#allocation4 + $0x3a0] sm:$0xff] }
 0x33d   :  { %v15376_v36 = vcombine.high %v1010_v35, %v1014_v30 }
 0x33e   :  { %2552 = vmatpush1.bf16.msra.mxu1 %v15333_v33  ;;  %v1018_v33 = vld [vmem:[#allocation4 + $0x3c0] sm:$0xff] }
 0x33f   :  { %2574 = vmatprep.subr.bf16.mxu1 %v15264_v37  ;;  %v1022_v37 = vld [vmem:[#allocation4 + $0x3e0] sm:$0xff] }
 0x340   :  { %v15384_v40 = vcombine.high %v1018_v33, %v1022_v37  ;;  %v15383_v50 = vcombine.low %v1018_v33, %v1022_v37 }
 0x341   :  { %2566 = vmatmul.mubr.bf16.vlgmr.msra.gmra.mrb[4].mxu1 %v18974_v29 }
 0x342   :  { %2575 = vmatpush1.bf16.msra.mxu1 %v15263_v42  ;;  %15341 = vmatprep.mubr.msk.bf16.mxu1 %vm2488_vm6, %v18972_v28  ;;  %v15304_v28 = vcombine.high %v940_v4, %v944_v12  ;;  %v1026_v42 = vld [vmem:[#allocation4 + $0x400] sm:$0xff] }
 0x343   :  { %2576 = vmatprep.subr.bf16.mxu1 %v15272_v7  ;;  %v1055_v7 = vld [vmem:[#allocation4 + $0x4e8] sm:$0xff]  ;;  %v15392_v9 = vcombine.high %v1026_v42, %v1030_v43  ;;  %v1038_v4 = vld [vmem:[#allocation4 + $0x460] sm:$0xff]  ;;  %v15391_v52 = vcombine.low %v1026_v42, %v1030_v43 }
 0x344   :  { %v15417_v56 = vcombine.low %v1051_v39, %v1055_v7 }
 0x346   :  { %2577 = vmatpush1.bf16.msra.mxu1 %v15271_v13  ;;  %v15418_v13 = vcombine.high %v1051_v39, %v1055_v7  ;;  %v1074_v39 = vld [vmem:[#allocation4 + $0x580] sm:$0xff] }
 0x347   :  { %2578 = vmatprep.subr.bf16.mxu1 %v15280_v26  ;;  %v1059_v26 = vld [vmem:[#allocation4 + $0x508] sm:$0xff] }
 0x348   :  { %v15426_v46 = vcombine.high %v1059_v26, %v1063_v45  ;;  %5519 = vmatprep.subr.bf16.mxu0 %v15418_v13  ;;  %v1086_v13 = vld [vmem:[#allocation4 + $0x5e0] sm:$0xff] }
 0x349   :  { %5520 = vmatpush1.bf16.msra.mxu0 %v15417_v56  ;;  %v1082_v56 = vld [vmem:[#allocation4 + $0x5c0] sm:$0xff] }
 0x34a   :  { %2579 = vmatpush1.bf16.msra.mxu1 %v15279_v49  ;;  %v1067_v49 = vld [vmem:[#allocation4 + $0x548] sm:$0xff]  ;;  %5521 = vmatprep.subr.bf16.mxu0 %v15426_v46  ;;  %v1090_v46 = vld [vmem:[#allocation4 + $0x600] sm:$0xff] }
 0x34b   :  { %2580 = vmatprep.subr.bf16.mxu1 %v15288_v31  ;;  %v1071_v31 = vld [vmem:[#allocation4 + $0x568] sm:$0xff] }
 0x34c   :  { %v15434_v12 = vcombine.high %v1067_v49, %v1071_v31 }
 0x34e   :  { %2581 = vmatpush1.bf16.msra.mxu1 %v15287_v24  ;;  %v15425_v24 = vcombine.low %v1059_v26, %v1063_v45  ;;  %v15448_v45 = vcombine.high %v1082_v56, %v1086_v13 }
 0x34f   :  { %2582 = vmatprep.subr.bf16.mxu1 %v15296_v51  ;;  %v1034_v51 = vld [vmem:[#allocation4 + $0x440] sm:$0xff] }
 0x350   :  { %v15400_v53 = vcombine.high %v1034_v51, %v1038_v4  ;;  %5522 = vmatpush1.bf16.msra.mxu0 %v15425_v24  ;;  %v15399_v60 = vcombine.low %v1034_v51, %v1038_v4  ;;  %v1102_v24 = vld [vmem:[#allocation4 + $0x660] sm:$0xff] }
 0x351   :  { %5523 = vmatprep.subr.bf16.mxu0 %v15434_v12 }
 0x352   :  { %2583 = vmatpush1.bf16.msra.mxu1 %v15295_v27  ;;  %v1075_v27 = vld [vmem:[#allocation4 + $0x588] sm:$0xff] }
 0x353   :  { %2584 = vmatprep.subr.bf16.mxu1 %v15304_v28  ;;  %v1079_v28 = vld [vmem:[#allocation4 + $0x5a8] sm:$0xff] }
 0x354   :  { %v15442_v59 = vcombine.high %v1075_v27, %v1079_v28 }
 0x356   :  { %2585 = vmatpush1.bf16.msra.mxu1 %v15303_v54  ;;  %v15433_v54 = vcombine.low %v1067_v49, %v1071_v31  ;;  %v1094_v49 = vld [vmem:[#allocation4 + $0x620] sm:$0xff]  ;;  %v15447_v31 = vcombine.low %v1082_v56, %v1086_v13 }
 0x357   :  { %2586 = vmatprep.subr.bf16.mxu1 %v15312_v55  ;;  %v1042_v55 = vld [vmem:[#allocation4 + $0x480] sm:$0xff]  ;;  %v15455_v51 = vcombine.low %v1090_v46, %v1094_v49 }
 0x358   :  { %v15408_v0 = vcombine.high %v1042_v55, %v1046_v57  ;;  %5524 = vmatpush1.bf16.msra.mxu0 %v15433_v54  ;;  %v15407_v10 = vcombine.low %v1042_v55, %v1046_v57 }
 0x359   :  { %5525 = vmatprep.subr.bf16.mxu0 %v15442_v59 }
 0x35a   :  { %2587 = vmatpush1.bf16.msra.mxu1 %v15311_v41  ;;  %v1083_v41 = vld [vmem:[#allocation4 + $0x5c8] sm:$0xff] }
 0x35b   :  { %2588 = vmatprep.subr.bf16.mxu1 %v15320_v44  ;;  %v1087_v44 = vld [vmem:[#allocation4 + $0x5e8] sm:$0xff] }
 0x35c   :  { %v15450_v5 = vcombine.high %v1083_v41, %v1087_v44 }
 0x35e   :  { %2589 = vmatpush1.bf16.msra.mxu1 %v15319_v1  ;;  %v15441_v1 = vcombine.low %v1075_v27, %v1079_v28  ;;  %v2002_v28 = vld [vmem:[#allocation2] ss:$8 sm:$0xf] }
 0x35f   :  { %2590 = vmatprep.subr.bf16.mxu1 %v15328_v2  ;;  %v1050_v2 = vld [vmem:[#allocation4 + $0x4c0] sm:$0xff] }
 0x360   :  { %v15416_v11 = vcombine.high %v1050_v2, %v1054_v3  ;;  %5526 = vmatpush1.bf16.msra.mxu0 %v15441_v1  ;;  %v15415_v48 = vcombine.low %v1050_v2, %v1054_v3 }
 0x361   :  { %5527 = vmatprep.subr.bf16.mxu0 %v15450_v5 }
 0x362   :  { %2591 = vmatpush1.bf16.msra.mxu1 %v15327_v6  ;;  %v1091_v6 = vld [vmem:[#allocation4 + $0x608] sm:$0xff] }
 0x363   :  { %2592 = vmatprep.subr.bf16.mxu1 %v15336_v8  ;;  %v1095_v8 = vld [vmem:[#allocation4 + $0x628] sm:$0xff] }
 0x364   :  { %v15458_v18 = vcombine.high %v1091_v6, %v1095_v8 }
 0x366   :  { %2593 = vmatpush1.bf16.msra.mxu1 %v15335_v16  ;;  %v15449_v16 = vcombine.low %v1083_v41, %v1087_v44 }
 0x367   :  { %5337 = vmatprep.subr.bf16.mxu1 %v15344_v17  ;;  %v1058_v17 = vld [vmem:[#allocation4 + $0x500] sm:$0xff] }
 0x368   :  { %v15424_v22 = vcombine.high %v1058_v17, %v1062_v14  ;;  %5528 = vmatpush1.bf16.msra.mxu0 %v15449_v16  ;;  %v15423_v33 = vcombine.low %v1058_v17, %v1062_v14 }
 0x369   :  { %2607 = vmatmul.mubr.bf16.vlgmr.msra.gmra.mrb[8].mxu1 %v18974_v29  ;;  %v15375_v29 = vcombine.low %v1010_v35, %v1014_v30  ;;  %5529 = vmatprep.subr.bf16.mxu0 %v15458_v18 }
 0x36a   :  { %5338 = vmatpush1.bf16.msra.mxu1 %v15343_v19  ;;  %v1099_v19 = vld [vmem:[#allocation4 + $0x648] sm:$0xff] }
 0x36b   :  { %5339 = vmatprep.subr.bf16.mxu1 %v15352_v15  ;;  %v1103_v15 = vld [vmem:[#allocation4 + $0x668] sm:$0xff] }
 0x36c   :  { %v15466_v35 = vcombine.high %v1099_v19, %v1103_v15 }
 0x36e   :  { %5340 = vmatpush1.bf16.msra.mxu1 %v15351_v23  ;;  %v15457_v23 = vcombine.low %v1091_v6, %v1095_v8 }
 0x36f   :  { %5341 = vmatprep.subr.bf16.mxu1 %v15360_v38  ;;  %v18988_v38 = vld [vmem:[#allocation4 + $0x680] sm:$0xff] }
 0x370   :  { %v15471_v30 = vcombine.low %v18988_v38, %v18990_v32  ;;  %5530 = vmatpush1.bf16.msra.mxu0 %v15457_v23  ;;  %v15472_v27 = vcombine.high %v18988_v38, %v18990_v32 }
 0x371   :  { %5531 = vmatprep.subr.bf16.mxu0 %v15466_v35 }
 0x372   :  { %5342 = vmatpush1.bf16.msra.mxu1 %v15359_v34  ;;  %v1066_v34 = vld [vmem:[#allocation4 + $0x540] sm:$0xff] }
 0x373   :  { %5343 = vmatprep.subr.bf16.mxu1 %v15368_v20  ;;  %v1070_v20 = vld [vmem:[#allocation4 + $0x560] sm:$0xff] }
 0x374   :  { %v15432_v37 = vcombine.high %v1066_v34, %v1070_v20  ;;  %v15431_v7 = vcombine.low %v1066_v34, %v1070_v20 }
 0x376   :  { %5344 = vmatpush1.bf16.msra.mxu1 %v15367_v25  ;;  %v18996_v25 = vld [vmem:[#allocation4 + $0x6a8] sm:$0xff] }
 0x377   :  { %5345 = vmatprep.subr.bf16.mxu1 %v15376_v36  ;;  %v15473_v36 = vcombine.low %v18992_v21, %v18996_v25  ;;  %v15474_v42 = vcombine.high %v18992_v21, %v18996_v25  ;;  %v1142_v25 = vld [vmem:[#allocation4 + $0x7a0] sm:$0xff] }
 0x37a   :  { %5346 = vmatpush1.bf16.msra.mxu1 %v15375_v29  ;;  %v15465_v29 = vcombine.low %v1099_v19, %v1103_v15 }
 0x37b   :  { %5347 = vmatprep.subr.bf16.mxu1 %v15384_v40  ;;  %v1078_v40 = vld [vmem:[#allocation4 + $0x5a0] sm:$0xff] }
 0x37c   :  { %v15440_v43 = vcombine.high %v1074_v39, %v1078_v40  ;;  %5532 = vmatpush1.bf16.msra.mxu0 %v15465_v29  ;;  %v15439_v26 = vcombine.low %v1074_v39, %v1078_v40  ;;  %v1118_v39 = vld [vmem:[#allocation4 + $0x6e0] sm:$0xff]  ;;  %v1115_v40 = vld [vmem:[#allocation4 + $0x6c8] sm:$0xff] }
 0x37d   :  { %5542 = vmatprep.subr.bf16.mxu0 %v15474_v42  ;;  %v1119_v42 = vld [vmem:[#allocation4 + $0x6e8] sm:$0xff] }
 0x37e   :  { %5348 = vmatpush1.bf16.msra.mxu1 %v15383_v50  ;;  %v15456_v50 = vcombine.high %v1090_v46, %v1094_v49  ;;  %v15482_v13 = vcombine.high %v1115_v40, %v1119_v42  ;;  %v1123_v46 = vld [vmem:[#allocation4 + $0x708] sm:$0xff] }
 0x37f   :  { %5349 = vmatprep.subr.bf16.mxu1 %v15392_v9  ;;  %v1098_v9 = vld [vmem:[#allocation4 + $0x640] sm:$0xff]  ;;  %v1127_v49 = vld [vmem:[#allocation4 + $0x728] sm:$0xff] }
 0x380   :  { %v15464_v4 = vcombine.high %v1098_v9, %v1102_v24  ;;  %v15463_v12 = vcombine.low %v1098_v9, %v1102_v24  ;;  %v15490_v24 = vcombine.high %v1123_v46, %v1127_v49 }
 0x382   :  { %5350 = vmatpush1.bf16.msra.mxu1 %v15391_v52  ;;  %v2003_v52 = vld [vmem:[#allocation2] ss:$8 sm:$0xf0] }
 0x383   :  { %5351 = vmatprep.subr.bf16.mxu1 %v15400_v53  ;;  %v19004_v53 = vor.u32 %v2003_v52, %v2002_v28  ;;  %v15489_v52 = vcombine.low %v1123_v46, %v1127_v49 }
 0x385   :  { %v2051_v54 = vrot.slane %v19004_v53, %v18743_v58  ;;  %v2055_v55 = vrot.slane %v19004_v53, %v18746_v61  ;;  %v2063_v38 = vrot.slane %v19004_v53, %v18752_v63 }
 0x386   :  { %5352 = vmatpush1.bf16.msra.mxu1 %v15399_v60 }
 0x387   :  { %5353 = vmatprep.subr.bf16.mxu1 %v15408_v0 }
 0x38a   :  { %5354 = vmatpush1.bf16.msra.mxu1 %v15407_v10 }
 0x38b   :  { %5355 = vmatprep.subr.bf16.mxu1 %v15416_v11 }
 0x38e   :  { %5356 = vmatpush1.bf16.msra.mxu1 %v15415_v48 }
 0x38f   :  { %5357 = vmatprep.subr.bf16.mxu1 %v15424_v22 }
 0x392   :  { %5358 = vmatpush1.bf16.msra.mxu1 %v15423_v33 }
 0x393   :  { %5359 = vmatprep.subr.bf16.mxu1 %v15432_v37  ;;  %v1114_v37 = vld [vmem:[#allocation4 + $0x6c0] sm:$0xff] }
 0x394   :  { %v15480_v56 = vcombine.high %v1114_v37, %v1118_v39 }
 0x396   :  { %5360 = vmatpush1.bf16.msra.mxu1 %v15431_v7 }
 0x397   :  { %5361 = vmatprep.subr.bf16.mxu1 %v15440_v43 }
 0x39a   :  { %5362 = vmatpush1.bf16.msra.mxu1 %v15439_v26  ;;  %v1122_v26 = vld [vmem:[#allocation4 + $0x700] sm:$0xff] }
 0x39b   :  { %5363 = vmatprep.subr.bf16.mxu1 %v15448_v45  ;;  %v1126_v45 = vld [vmem:[#allocation4 + $0x720] sm:$0xff] }
 0x39c   :  { %v15488_v9 = vcombine.high %v1122_v26, %v1126_v45  ;;  %v15487_v28 = vcombine.low %v1122_v26, %v1126_v45  ;;  %v1163_v26 = vld [vmem:[#allocation4 + $0x848] sm:$0xff] }
 0x39d   :  { %v1167_v45 = vld [vmem:[#allocation4 + $0x868] sm:$0xff] }
 0x39e   :  { %5364 = vmatpush1.bf16.msra.mxu1 %v15447_v31  ;;  %v15479_v31 = vcombine.low %v1114_v37, %v1118_v39 }
 0x39f   :  { %5365 = vmatprep.subr.bf16.mxu1 %v15456_v50  ;;  %v15481_v50 = vcombine.low %v1115_v40, %v1119_v42 }
 0x3a2   :  { %5366 = vmatpush1.bf16.msra.mxu1 %v15455_v51  ;;  %v1130_v51 = vld [vmem:[#allocation4 + $0x740] sm:$0xff] }
 0x3a3   :  { %5367 = vmatprep.subr.bf16.mxu1 %v15464_v4  ;;  %v1134_v4 = vld [vmem:[#allocation4 + $0x760] sm:$0xff] }
 0x3a4   :  { %v15496_v32 = vcombine.high %v1130_v51, %v1134_v4 }
 0x3a6   :  { %5368 = vmatpush1.bf16.msra.mxu1 %v15463_v12  ;;  %v1131_v12 = vld [vmem:[#allocation4 + $0x748] sm:$0xff] }
 0x3a7   :  { %5378 = vmatprep.subr.bf16.mxu1 %v15472_v27  ;;  %v1135_v27 = vld [vmem:[#allocation4 + $0x768] sm:$0xff] }
 0x3a8   :  { %v15498_v21 = vcombine.high %v1131_v12, %v1135_v27 }
 0x3ec   :  { %v2526_v57 = vpop.f32.mrb[0].mxu1  ;;  %v19010_v59 = vpop.f32.mrb[4].mxu0 }
 0x3ed   :  { %v2527_v41 = vadd.f32 %v2526_v57, %v2051_v54  ;;  %v2528_v44 = vpop.f32.mrb[1].mxu1  ;;  %v19012_v60 = vpop.f32.mrb[5].mxu0  ;;  %v1143_v54 = vld [vmem:[#allocation4 + $0x7a8] sm:$0xff] }
 0x3ee   :  { %v2529_v0 = vadd.f32 %v2528_v44, %v2055_v55  ;;  %v2530_v1 = vpop.f32.mrb[2].mxu1  ;;  %v2653_v2 = vpop.f32.mrb[6].mxu0  ;;  %v15497_v44 = vcombine.low %v1131_v12, %v1135_v27  ;;  %v1171_v12 = vld [vmem:[#allocation4 + $0x888] sm:$0xff] }
 0x3ef   :  { %v2664_v3 = vmul.f32 0.044715, %v2527_v41  ;;  %v2531_v5 = vpop.f32.mrb[3].mxu1  ;;  %v2654_v6 = vpop.f32.mrb[7].mxu0  ;;  %v2656_v23 = vmul.f32 0.5, %v2527_v41  ;;  %v1175_v27 = vld [vmem:[#allocation4 + $0x8a8] sm:$0xff] }
 0x3f0   :  { %v2665_v8 = vmul.f32 0.044715, %v2529_v0  ;;  %v2657_v20 = vmul.f32 0.5, %v2529_v0  ;;  %v1146_v5 = vld [vmem:[#allocation4 + $0x7c0] sm:$0xff] }
 0x3f1   :  { %v2672_v10 = vmul.f32 %v2664_v3, %v2527_v41 }
 0x3f2   :  { %v2673_v11 = vmul.f32 %v2665_v8, %v2529_v0  ;;  %v1150_v8 = vld [vmem:[#allocation4 + $0x7e0] sm:$0xff] }
 0x3f3   :  { %v2680_v16 = vmul.f32 %v2672_v10, %v2527_v41  ;;  %v1147_v10 = vld [vmem:[#allocation4 + $0x7c8] sm:$0xff]  ;;  %v15511_v37 = vcombine.low %v1146_v5, %v1150_v8 }
 0x3f4   :  { %v2681_v17 = vmul.f32 %v2673_v11, %v2529_v0  ;;  %v1151_v11 = vld [vmem:[#allocation4 + $0x7e8] sm:$0xff] }
 0x3f5   :  { %v2688_v14 = vadd.f32 %v2680_v16, %v2527_v41  ;;  %v15495_v41 = vcombine.low %v1130_v51, %v1134_v4  ;;  %v1170_v51 = vld [vmem:[#allocation4 + $0x880] sm:$0xff] }
 0x3f6   :  { %v2689_v18 = vadd.f32 %v2681_v17, %v2529_v0  ;;  %v2059_v17 = vrot.slane %v19004_v53, %v18749_v62  ;;  %v1174_v4 = vld [vmem:[#allocation4 + $0x8a0] sm:$0xff] }
 0x3f7   :  { %v2696_v19 = vmul.f32 0.7978846, %v2688_v14 }
 0x3f8   :  { %v2697_v15 = vmul.f32 0.7978846, %v2689_v18 }
 0x3f9   :  { %18433 = vtanh.f32 %v2696_v19 }
 0x3fa   :  { %18435 = vtanh.f32 %v2697_v15  ;;  %v15512_v15 = vcombine.high %v1146_v5, %v1150_v8  ;;  %v1187_v5 = vld [vmem:[#allocation4 + $0x908] sm:$0xff] }
 0x403   :  { %v18434_v48 = vpop.eup %18433 }
 0x404   :  { %v18436_v22 = vpop.eup %18435  ;;  %v2712_v34 = vadd.f32 1.0, %v18434_v48  ;;  %v15514_v48 = vcombine.high %v1147_v10, %v1151_v11 }
 0x405   :  { %v2713_v35 = vadd.f32 1.0, %v18436_v22  ;;  %v1154_v22 = vld [vmem:[#allocation4 + $0x800] sm:$0xff] }
 0x406   :  { %v2720_v33 = vmul.f32 %v2712_v34, %v2656_v23  ;;  %v1158_v23 = vld [vmem:[#allocation4 + $0x820] sm:$0xff]  ;;  %v1155_v34 = vld [vmem:[#allocation4 + $0x808] sm:$0xff] }
 0x407   :  { %v2721_v29 = vmul.f32 %v2713_v35, %v2657_v20  ;;  %v1159_v20 = vld [vmem:[#allocation4 + $0x828] sm:$0xff]  ;;  %v15520_v40 = vcombine.high %v1154_v22, %v1158_v23 }
 0x408   :  { %v19016_v43 = vpack.c.bf16 %v2720_v33, %v2720_v33  ;;  %v15522_v42 = vcombine.high %v1155_v34, %v1159_v20 }
 0x409   :  { %v19014_v7 = vpack.c.bf16 %v2721_v29, %v2721_v29  ;;  %v15513_v29 = vcombine.low %v1147_v10, %v1151_v11 }
 0x40b   :  { %5369 = vmatprep.mubr.bf16.mxu1 %v19014_v7  ;;  %5533 = vmatprep.mubr.bf16.mxu0 %v19014_v7 }
 0x40c   :  { %5370 = vmatmul.mubr.bf16.vlgmr.msra.gmra.mrb[12].mxu1 %v19016_v43  ;;  %5534 = vmatmul.mubr.bf16.vlgmr.msra.gmra.mrb[8].mxu0 %v19016_v43 }
 0x40d   :  { %5379 = vmatpush1.bf16.msra.mxu1 %v15471_v30  ;;  %5543 = vmatpush1.bf16.msra.mxu0 %v15473_v36  ;;  %v1138_v30 = vld [vmem:[#allocation4 + $0x780] sm:$0xff]  ;;  %v1139_v36 = vld [vmem:[#allocation4 + $0x788] sm:$0xff] }
 0x40e   :  { %5380 = vmatprep.subr.bf16.mxu1 %v15480_v56  ;;  %5544 = vmatprep.subr.bf16.mxu0 %v15482_v13  ;;  %v15504_v2 = vcombine.high %v1138_v30, %v1142_v25  ;;  %v15506_v3 = vcombine.high %v1139_v36, %v1143_v54  ;;  %v15503_v14 = vcombine.low %v1138_v30, %v1142_v25  ;;  %v1162_v56 = vld [vmem:[#allocation4 + $0x840] sm:$0xff] }
 0x40f   :  { %v15505_v18 = vcombine.low %v1139_v36, %v1143_v54  ;;  %v1166_v13 = vld [vmem:[#allocation4 + $0x860] sm:$0xff]  ;;  %v1179_v36 = vld [vmem:[#allocation4 + $0x8c8] sm:$0xff] }
 0x410   :  { %v1178_v30 = vld [vmem:[#allocation4 + $0x8c0] sm:$0xff]  ;;  %v1183_v54 = vld [vmem:[#allocation4 + $0x8e8] sm:$0xff] }
 0x411   :  { %5381 = vmatpush1.bf16.msra.mxu1 %v15479_v31  ;;  %5545 = vmatpush1.bf16.msra.mxu0 %v15481_v50  ;;  %v15519_v31 = vcombine.low %v1154_v22, %v1158_v23  ;;  %v15521_v50 = vcombine.low %v1155_v34, %v1159_v20  ;;  %v1182_v25 = vld [vmem:[#allocation4 + $0x8e0] sm:$0xff]  ;;  %v1195_v23 = vld [vmem:[#allocation4 + $0x948] sm:$0xff] }
 0x412   :  { %5382 = vmatprep.subr.bf16.mxu1 %v15488_v9  ;;  %5546 = vmatprep.subr.bf16.mxu0 %v15490_v24  ;;  %v15528_v9 = vcombine.high %v1162_v56, %v1166_v13  ;;  %v15530_v24 = vcombine.high %v1163_v26, %v1167_v45  ;;  %v15543_v10 = vcombine.low %v1178_v30, %v1182_v25  ;;  %v1198_v22 = vld [vmem:[#allocation4 + $0x960] sm:$0xff]  ;;  %v1199_v34 = vld [vmem:[#allocation4 + $0x968] sm:$0xff] }
 0x414   :  { %v2567_v55 = vpop.f32.mrb[4].mxu1 }
 0x415   :  { %v2569_v57 = vpop.f32.mrb[5].mxu1  ;;  %5383 = vmatpush1.bf16.msra.mxu1 %v15487_v28  ;;  %5547 = vmatpush1.bf16.msra.mxu0 %v15489_v52  ;;  %v19037_v33 = vadd.f32 %v2567_v55, %v2059_v17  ;;  %v15527_v52 = vcombine.low %v1162_v56, %v1166_v13  ;;  %v1203_v56 = vld [vmem:[#allocation4 + $0x988] sm:$0xff] }
 0x416   :  { %v19030_v0 = vadd.f32 %v2569_v57, %v2063_v38  ;;  %v2571_v1 = vpop.f32.mrb[6].mxu1  ;;  %5384 = vmatprep.subr.bf16.mxu1 %v15496_v32  ;;  %5548 = vmatprep.subr.bf16.mxu0 %v15498_v21  ;;  %v15529_v38 = vcombine.low %v1163_v26, %v1167_v45  ;;  %v15536_v32 = vcombine.high %v1170_v51, %v1174_v4  ;;  %v1207_v13 = vld [vmem:[#allocation4 + $0x9a8] sm:$0xff] }
 0x417   :  { %v2572_v6 = vpop.f32.mrb[7].mxu1  ;;  %v2666_v49 = vmul.f32 0.044715, %v19037_v33  ;;  %v15538_v21 = vcombine.high %v1171_v12, %v1175_v27  ;;  %v15535_v57 = vcombine.low %v1170_v51, %v1174_v4  ;;  %v15546_v1 = vcombine.high %v1179_v36, %v1183_v54  ;;  %v1215_v51 = vld [vmem:[#allocation4 + $0x9e8] sm:$0xff] }
 0x418   :  { %v2667_v16 = vmul.f32 0.044715, %v19030_v0  ;;  %v1191_v6 = vld [vmem:[#allocation4 + $0x928] sm:$0xff]  ;;  %v2659_v17 = vmul.f32 0.5, %v19030_v0  ;;  %v15561_v45 = vcombine.low %v1195_v23, %v1199_v34 }
 0x419   :  { %5385 = vmatpush1.bf16.msra.mxu1 %v15495_v41  ;;  %5549 = vmatpush1.bf16.msra.mxu0 %v15497_v44  ;;  %v2674_v28 = vmul.f32 %v2666_v49, %v19037_v33  ;;  %v15537_v41 = vcombine.low %v1171_v12, %v1175_v27  ;;  %v15544_v44 = vcombine.high %v1178_v30, %v1182_v25  ;;  %v1223_v30 = vld [vmem:[#allocation4 + $0xa28] sm:$0xff] }
 0x41a   :  { %v2675_v19 = vmul.f32 %v2667_v16, %v19030_v0  ;;  %5386 = vmatprep.subr.bf16.mxu1 %v15504_v2  ;;  %5550 = vmatprep.subr.bf16.mxu0 %v15506_v3  ;;  %v1186_v2 = vld [vmem:[#allocation4 + $0x900] sm:$0xff]  ;;  %v15545_v16 = vcombine.low %v1179_v36, %v1183_v54  ;;  %v15570_v49 = vcombine.high %v1203_v56, %v1207_v13 }
 0x41b   :  { %v2682_v55 = vmul.f32 %v2674_v28, %v19037_v33  ;;  %v1190_v3 = vld [vmem:[#allocation4 + $0x920] sm:$0xff]  ;;  %v15569_v12 = vcombine.low %v1203_v56, %v1207_v13 }
 0x41c   :  { %v2683_v35 = vmul.f32 %v2675_v19, %v19030_v0  ;;  %v15554_v19 = vcombine.high %v1187_v5, %v1191_v6  ;;  %v1242_v13 = vld [vmem:[#allocation4 + $0xac0] sm:$0xff] }
 0x41d   :  { %5387 = vmatpush1.bf16.msra.mxu1 %v15503_v14  ;;  %5551 = vmatpush1.bf16.msra.mxu0 %v15505_v18  ;;  %v2690_v11 = vadd.f32 %v2682_v55, %v19037_v33  ;;  %v15552_v18 = vcombine.high %v1186_v2, %v1190_v3 }
 0x41e   :  { %v2691_v39 = vadd.f32 %v2683_v35, %v19030_v0  ;;  %5388 = vmatprep.subr.bf16.mxu1 %v15512_v15  ;;  %5552 = vmatprep.subr.bf16.mxu0 %v15514_v48  ;;  %v1194_v15 = vld [vmem:[#allocation4 + $0x940] sm:$0xff]  ;;  %v15551_v35 = vcombine.low %v1186_v2, %v1190_v3 }
 0x41f   :  { %v15560_v0 = vcombine.high %v1194_v15, %v1198_v22  ;;  %v15559_v26 = vcombine.low %v1194_v15, %v1198_v22  ;;  %v1226_v2 = vld [vmem:[#allocation4 + $0xa40] sm:$0xff] }
 0x420   :  { %v2699_v46 = vmul.f32 0.7978846, %v2691_v39  ;;  %v15562_v39 = vcombine.high %v1195_v23, %v1199_v34  ;;  %v1238_v22 = vld [vmem:[#allocation4 + $0xaa0] sm:$0xff]  ;;  %v1235_v23 = vld [vmem:[#allocation4 + $0xa88] sm:$0xff] }
 0x421   :  { %5389 = vmatpush1.bf16.msra.mxu1 %v15511_v37  ;;  %5553 = vmatpush1.bf16.msra.mxu0 %v15513_v29  ;;  %v15553_v37 = vcombine.low %v1187_v5, %v1191_v6  ;;  %v2698_v29 = vmul.f32 0.7978846, %v2690_v11  ;;  %v1230_v6 = vld [vmem:[#allocation4 + $0xa60] sm:$0xff]  ;;  %v1239_v34 = vld [vmem:[#allocation4 + $0xaa8] sm:$0xff] }
 0x422   :  { %5390 = vmatprep.subr.bf16.mxu1 %v15520_v40  ;;  %5554 = vmatprep.subr.bf16.mxu0 %v15522_v42  ;;  %18437 = vtanh.f32 %v2699_v46  ;;  %v1202_v40 = vld [vmem:[#allocation4 + $0x980] sm:$0xff]  ;;  %v15602_v56 = vcombine.high %v1235_v23, %v1239_v34 }
 0x423   :  { %v1206_v42 = vld [vmem:[#allocation4 + $0x9a0] sm:$0xff]  ;;  %18439 = vtanh.f32 %v2698_v29  ;;  %v15591_v29 = vcombine.low %v1226_v2, %v1230_v6 }
 0x424   :  { %v15568_v46 = vcombine.high %v1202_v40, %v1206_v42  ;;  %v15567_v4 = vcombine.low %v1202_v40, %v1206_v42 }
 0x425   :  { %5391 = vmatpush1.bf16.msra.mxu1 %v15519_v31  ;;  %5555 = vmatpush1.bf16.msra.mxu0 %v15521_v50  ;;  %v19050_v31 = vsub.s32 5, %v18733_v47  ;;  %v1210_v50 = vld [vmem:[#allocation4 + $0x9c0] sm:$0xff] }
 0x426   :  { %5392 = vmatprep.subr.bf16.mxu1 %v15528_v9  ;;  %5556 = vmatprep.subr.bf16.mxu0 %v15530_v24  ;;  %v1214_v9 = vld [vmem:[#allocation4 + $0x9e0] sm:$0xff]  ;;  %v1211_v24 = vld [vmem:[#allocation4 + $0x9c8] sm:$0xff] }
 0x427   :  { %v2071_v27 = vrot.slane %v19004_v53, %v19050_v31  ;;  %v15576_v28 = vcombine.high %v1210_v50, %v1214_v9  ;;  %v15575_v54 = vcombine.low %v1210_v50, %v1214_v9  ;;  %v15577_v55 = vcombine.low %v1211_v24, %v1215_v51 }
 0x429   :  { %5393 = vmatpush1.bf16.msra.mxu1 %v15527_v52  ;;  %5557 = vmatpush1.bf16.msra.mxu0 %v15529_v38  ;;  %v15578_v52 = vcombine.high %v1211_v24, %v1215_v51  ;;  %v1218_v38 = vld [vmem:[#allocation4 + $0xa00] sm:$0xff] }
 0x42a   :  { %5394 = vmatprep.subr.bf16.mxu1 %v15536_v32  ;;  %5558 = vmatprep.subr.bf16.mxu0 %v15538_v21  ;;  %v1222_v32 = vld [vmem:[#allocation4 + $0xa20] sm:$0xff]  ;;  %v1219_v21 = vld [vmem:[#allocation4 + $0xa08] sm:$0xff] }
 0x42c   :  { %v18438_v8 = vpop.eup %18437 }
 0x42d   :  { %5395 = vmatpush1.bf16.msra.mxu1 %v15535_v57  ;;  %5559 = vmatpush1.bf16.msra.mxu0 %v15537_v41  ;;  %v2715_v14 = vadd.f32 1.0, %v18438_v8  ;;  %v18440_v3 = vpop.eup %18439  ;;  %v1227_v8 = vld [vmem:[#allocation4 + $0xa48] sm:$0xff] }
 0x42e   :  { %5396 = vmatprep.subr.bf16.mxu1 %v15544_v44  ;;  %5560 = vmatprep.subr.bf16.mxu0 %v15546_v1  ;;  %v15584_v44 = vcombine.high %v1218_v38, %v1222_v32  ;;  %v15586_v1 = vcombine.high %v1219_v21, %v1223_v30  ;;  %v2714_v15 = vadd.f32 1.0, %v18440_v3  ;;  %v1266_v3 = vld [vmem:[#allocation4 + $0xb80] sm:$0xff] }
 0x42f   :  { %v2723_v48 = vmul.f32 %v2715_v14, %v2659_v17  ;;  %v15585_v17 = vcombine.low %v1219_v21, %v1223_v30  ;;  %v1258_v30 = vld [vmem:[#allocation4 + $0xb40] sm:$0xff] }
 0x431   :  { %5397 = vmatpush1.bf16.msra.mxu1 %v15543_v10  ;;  %5561 = vmatpush1.bf16.msra.mxu0 %v15545_v16  ;;  %v19045_v20 = vpack.c.bf16 %v2723_v48, %v2723_v48  ;;  %v1231_v10 = vld [vmem:[#allocation4 + $0xa68] sm:$0xff]  ;;  %v15583_v16 = vcombine.low %v1218_v38, %v1222_v32  ;;  %v1234_v48 = vld [vmem:[#allocation4 + $0xa80] sm:$0xff] }
 0x432   :  { %5398 = vmatprep.subr.bf16.mxu1 %v15552_v18  ;;  %5562 = vmatprep.subr.bf16.mxu0 %v15554_v19  ;;  %v15592_v18 = vcombine.high %v1226_v2, %v1230_v6  ;;  %v15594_v19 = vcombine.high %v1227_v8, %v1231_v10  ;;  %v15599_v50 = vcombine.low %v1234_v48, %v1238_v22  ;;  %v1267_v6 = vld [vmem:[#allocation4 + $0xb88] sm:$0xff] }
 0x433   :  { %5410 = vmatprep.mubr.bf16.mxu1 %v19045_v20  ;;  %5574 = vmatprep.mubr.bf16.mxu0 %v19045_v20 }
 0x435   :  { %5399 = vmatpush1.bf16.msra.mxu1 %v15551_v35  ;;  %5563 = vmatpush1.bf16.msra.mxu0 %v15553_v37  ;;  %v2658_v37 = vmul.f32 0.5, %v19037_v33  ;;  %v15601_v33 = vcombine.low %v1235_v23, %v1239_v34  ;;  %v1278_v34 = vld [vmem:[#allocation4 + $0xbe0] sm:$0xff] }
 0x436   :  { %5400 = vmatprep.subr.bf16.mxu1 %v15560_v0  ;;  %5564 = vmatprep.subr.bf16.mxu0 %v15562_v39  ;;  %v15593_v0 = vcombine.low %v1227_v8, %v1231_v10  ;;  %v15600_v39 = vcombine.high %v1234_v48, %v1238_v22  ;;  %v1271_v8 = vld [vmem:[#allocation4 + $0xba8] sm:$0xff]  ;;  %v1274_v22 = vld [vmem:[#allocation4 + $0xbc0] sm:$0xff] }
 0x437   :  { %v2722_v42 = vmul.f32 %v2714_v15, %v2658_v37  ;;  %v15634_v48 = vcombine.high %v1267_v6, %v1271_v8  ;;  %v1279_v37 = vld [vmem:[#allocation4 + $0xbe8] sm:$0xff] }
 0x439   :  { %5401 = vmatpush1.bf16.msra.mxu1 %v15559_v26  ;;  %5565 = vmatpush1.bf16.msra.mxu0 %v15561_v45  ;;  %v1246_v26 = vld [vmem:[#allocation4 + $0xae0] sm:$0xff]  ;;  %v1243_v45 = vld [vmem:[#allocation4 + $0xac8] sm:$0xff]  ;;  %v19063_v9 = vpack.c.bf16 %v2722_v42, %v2722_v42  ;;  %v15640_v42 = vcombine.high %v1274_v22, %v1278_v34 }
 0x43a   :  { %5402 = vmatprep.subr.bf16.mxu1 %v15568_v46  ;;  %5566 = vmatprep.subr.bf16.mxu0 %v15570_v49  ;;  %v1247_v46 = vld [vmem:[#allocation4 + $0xae8] sm:$0xff]  ;;  %v15608_v24 = vcombine.high %v1242_v13, %v1246_v26 }
 0x43b   :  { %v15610_v51 = vcombine.high %v1243_v45, %v1247_v46  ;;  %v15609_v38 = vcombine.low %v1243_v45, %v1247_v46  ;;  %v1283_v45 = vld [vmem:[#allocation4 + $0xc08] sm:$0xff] }
 0x43c   :  { %v19054_v25 = vpop.f32.mrb[8].mxu1  ;;  %v1287_v46 = vld [vmem:[#allocation4 + $0xc28] sm:$0xff] }
 0x43d   :  { %v2610_v36 = vpop.f32.mrb[9].mxu1  ;;  %5403 = vmatpush1.bf16.msra.mxu1 %v15567_v4  ;;  %5567 = vmatpush1.bf16.msra.mxu0 %v15569_v12  ;;  %v1250_v4 = vld [vmem:[#allocation4 + $0xb00] sm:$0xff] }
 0x43e   :  { %v19056_v57 = vadd.f32 %v2610_v36, %v2071_v27  ;;  %v2612_v41 = vpop.f32.mrb[10].mxu1  ;;  %5404 = vmatprep.subr.bf16.mxu1 %v15576_v28  ;;  %5568 = vmatprep.subr.bf16.mxu0 %v15578_v52  ;;  %v1254_v12 = vld [vmem:[#allocation4 + $0xb20] sm:$0xff]  ;;  %v1251_v27 = vld [vmem:[#allocation4 + $0xb08] sm:$0xff]  ;;  %v15607_v52 = vcombine.low %v1242_v13, %v1246_v26 }
 0x43f   :  { %v2613_v5 = vpop.f32.mrb[11].mxu1  ;;  %v1255_v28 = vld [vmem:[#allocation4 + $0xb28] sm:$0xff]  ;;  %v15616_v32 = vcombine.high %v1250_v4, %v1254_v12  ;;  %v1262_v36 = vld [vmem:[#allocation4 + $0xb60] sm:$0xff]  ;;  %v15615_v41 = vcombine.low %v1250_v4, %v1254_v12  ;;  %v15650_v4 = vcombine.high %v1283_v45, %v1287_v46 }
 0x440   :  { %v2669_v11 = vmul.f32 0.044715, %v19056_v57  ;;  %v15618_v21 = vcombine.high %v1251_v27, %v1255_v28  ;;  %v1270_v5 = vld [vmem:[#allocation4 + $0xba0] sm:$0xff] }
 0x441   :  { %5405 = vmatpush1.bf16.msra.mxu1 %v15575_v54  ;;  %5569 = vmatpush1.bf16.msra.mxu0 %v15577_v55  ;;  %v1259_v54 = vld [vmem:[#allocation4 + $0xb48] sm:$0xff]  ;;  %v15632_v15 = vcombine.high %v1266_v3, %v1270_v5  ;;  %v1282_v13 = vld [vmem:[#allocation4 + $0xc00] sm:$0xff] }
 0x442   :  { %v2677_v14 = vmul.f32 %v2669_v11, %v19056_v57  ;;  %5406 = vmatprep.subr.bf16.mxu1 %v15584_v44  ;;  %5570 = vmatprep.subr.bf16.mxu0 %v15586_v1  ;;  %v1263_v55 = vld [vmem:[#allocation4 + $0xb68] sm:$0xff]  ;;  %v15617_v44 = vcombine.low %v1251_v27, %v1255_v28  ;;  %v15624_v1 = vcombine.high %v1258_v30, %v1262_v36  ;;  %v19068_v11 = vsub.s32 4, %v18733_v47  ;;  %v1286_v26 = vld [vmem:[#allocation4 + $0xc20] sm:$0xff] }
 0x443   :  { %v15626_v2 = vcombine.high %v1259_v54, %v1263_v55  ;;  %v1290_v12 = vld [vmem:[#allocation4 + $0xc40] sm:$0xff]  ;;  %v1291_v28 = vld [vmem:[#allocation4 + $0xc48] sm:$0xff] }
 0x444   :  { %v2685_v35 = vmul.f32 %v2677_v14, %v19056_v57  ;;  %v2661_v14 = vmul.f32 0.5, %v19056_v57  ;;  %v1294_v27 = vld [vmem:[#allocation4 + $0xc60] sm:$0xff] }
 0x445   :  { %5407 = vmatpush1.bf16.msra.mxu1 %v15583_v16  ;;  %5571 = vmatpush1.bf16.msra.mxu0 %v15585_v17  ;;  %v15623_v16 = vcombine.low %v1258_v30, %v1262_v36  ;;  %v15625_v17 = vcombine.low %v1259_v54, %v1263_v55  ;;  %v1298_v36 = vld [vmem:[#allocation4 + $0xc80] sm:$0xff]  ;;  %v1299_v55 = vld [vmem:[#allocation4 + $0xc88] sm:$0xff] }
 0x446   :  { %v2693_v40 = vadd.f32 %v2685_v35, %v19056_v57  ;;  %5408 = vmatprep.subr.bf16.mxu1 %v15592_v18  ;;  %5572 = vmatprep.subr.bf16.mxu0 %v15594_v19  ;;  %v19072_v19 = vsub.s32 7, %v18733_v47  ;;  %v1275_v35 = vld [vmem:[#allocation4 + $0xbc8] sm:$0xff]  ;;  %v15631_v57 = vcombine.low %v1266_v3, %v1270_v5  ;;  %v1302_v54 = vld [vmem:[#allocation4 + $0xca0] sm:$0xff] }
 0x447   :  { %v15664_v5 = vcombine.high %v1298_v36, %v1302_v54 }
 0x448   :  { %v2701_v49 = vmul.f32 0.7978846, %v2693_v40  ;;  %v2079_v40 = vrot.slane %v19004_v53, %v19072_v19 }
 0x449   :  { %5409 = vmatpush1.bf16.msra.mxu1 %v15591_v29  ;;  %5573 = vmatpush1.bf16.msra.mxu0 %v15593_v0  ;;  %v2067_v29 = vrot.slane %v19004_v53, %v19068_v11 }
 0x44a   :  { %5419 = vmatprep.subr.bf16.mxu1 %v15600_v39  ;;  %5583 = vmatprep.subr.bf16.mxu0 %v15602_v56  ;;  %18441 = vtanh.f32 %v2701_v49  ;;  %v15633_v39 = vcombine.low %v1267_v6, %v1271_v8  ;;  %v15642_v56 = vcombine.high %v1275_v35, %v1279_v37  ;;  %v1306_v8 = vld [vmem:[#allocation4 + $0xcc0] sm:$0xff] }
 0x44b   :  { %v19083_v49 = vadd.f32 %v19054_v25, %v2067_v29  ;;  %v15647_v25 = vcombine.low %v1282_v13, %v1286_v26  ;;  %v1319_v29 = vld [vmem:[#allocation4 + $0xd28] sm:$0xff] }
 0x44c   :  { %5411 = vmatmul.mubr.bf16.vlgmr.msra.gmra.mrb[12].mxu1 %v19063_v9  ;;  %5575 = vmatmul.mubr.bf16.vlgmr.msra.gmra.mrb[8].mxu0 %v19063_v9 }
 0x44d   :  { %5420 = vmatpush1.bf16.msra.mxu1 %v15599_v50  ;;  %5584 = vmatpush1.bf16.msra.mxu0 %v15601_v33  ;;  %v15639_v50 = vcombine.low %v1274_v22, %v1278_v34  ;;  %v15641_v33 = vcombine.low %v1275_v35, %v1279_v37  ;;  %v1314_v34 = vld [vmem:[#allocation4 + $0xd00] sm:$0xff]  ;;  %v1315_v37 = vld [vmem:[#allocation4 + $0xd08] sm:$0xff] }
 0x44e   :  { %5421 = vmatprep.subr.bf16.mxu1 %v15608_v24  ;;  %5585 = vmatprep.subr.bf16.mxu0 %v15610_v51  ;;  %v19086_v24 = vadd.f32 %v19012_v60, %v2079_v40  ;;  %v15648_v51 = vcombine.high %v1282_v13, %v1286_v26  ;;  %v15656_v60 = vcombine.high %v1290_v12, %v1294_v27  ;;  %v1318_v35 = vld [vmem:[#allocation4 + $0xd20] sm:$0xff] }
 0x44f   :  { %v15682_v13 = vcombine.high %v1315_v37, %v1319_v29  ;;  %v1322_v26 = vld [vmem:[#allocation4 + $0xd40] sm:$0xff] }
 0x451   :  { %5422 = vmatpush1.bf16.msra.mxu1 %v15607_v52  ;;  %5586 = vmatpush1.bf16.msra.mxu0 %v15609_v38  ;;  %v1295_v52 = vld [vmem:[#allocation4 + $0xc68] sm:$0xff]  ;;  %v2668_v38 = vmul.f32 0.044715, %v19083_v49 }
 0x452   :  { %5423 = vmatprep.subr.bf16.mxu1 %v15616_v32  ;;  %5587 = vmatprep.subr.bf16.mxu0 %v15618_v21  ;;  %v15649_v32 = vcombine.low %v1283_v45, %v1287_v46  ;;  %v2671_v21 = vmul.f32 0.044715, %v19086_v24  ;;  %v15658_v30 = vcombine.high %v1291_v28, %v1295_v52  ;;  %v1326_v45 = vld [vmem:[#allocation4 + $0xd60] sm:$0xff]  ;;  %v1323_v46 = vld [vmem:[#allocation4 + $0xd48] sm:$0xff] }
 0x454   :  { %v18442_v10 = vpop.eup %18441  ;;  %v2679_v3 = vmul.f32 %v2671_v21, %v19086_v24  ;;  %v15687_v21 = vcombine.low %v1322_v26, %v1326_v45 }
 0x455   :  { %5424 = vmatpush1.bf16.msra.mxu1 %v15615_v41  ;;  %5588 = vmatpush1.bf16.msra.mxu0 %v15617_v44  ;;  %v2717_v18 = vadd.f32 1.0, %v18442_v10  ;;  %v1303_v41 = vld [vmem:[#allocation4 + $0xca8] sm:$0xff]  ;;  %v2676_v44 = vmul.f32 %v2668_v38, %v19083_v49  ;;  %v1310_v10 = vld [vmem:[#allocation4 + $0xce0] sm:$0xff] }
 0x456   :  { %5425 = vmatprep.subr.bf16.mxu1 %v15624_v1  ;;  %5589 = vmatprep.subr.bf16.mxu0 %v15626_v2  ;;  %v15655_v1 = vcombine.low %v1290_v12, %v1294_v27  ;;  %v15657_v2 = vcombine.low %v1291_v28, %v1295_v52  ;;  %v15666_v6 = vcombine.high %v1299_v55, %v1303_v41  ;;  %v1330_v28 = vld [vmem:[#allocation4 + $0xd80] sm:$0xff] }
 0x457   :  { %v2725_v23 = vmul.f32 %v2717_v18, %v2661_v14  ;;  %v2684_v14 = vmul.f32 %v2676_v44, %v19083_v49  ;;  %v15663_v18 = vcombine.low %v1298_v36, %v1302_v54  ;;  %v15672_v22 = vcombine.high %v1306_v8, %v1310_v10  ;;  %v1334_v38 = vld [vmem:[#allocation4 + $0xda0] sm:$0xff]  ;;  %v1343_v44 = vld [vmem:[#allocation4 + $0xde8] sm:$0xff] }
 0x458   :  { %v15688_v12 = vcombine.high %v1322_v26, %v1326_v45  ;;  %v1338_v54 = vld [vmem:[#allocation4 + $0xdc0] sm:$0xff]  ;;  %v1363_v26 = vld [vmem:[#allocation4 + $0xe88] sm:$0xff] }
 0x459   :  { %5426 = vmatpush1.bf16.msra.mxu1 %v15623_v16  ;;  %5590 = vmatpush1.bf16.msra.mxu0 %v15625_v17  ;;  %v19076_v0 = vpack.c.bf16 %v2725_v23, %v2725_v23  ;;  %v1307_v16 = vld [vmem:[#allocation4 + $0xcc8] sm:$0xff] }
 0x45a   :  { %5427 = vmatprep.subr.bf16.mxu1 %v15632_v15  ;;  %5591 = vmatprep.subr.bf16.mxu0 %v15634_v48  ;;  %v1311_v17 = vld [vmem:[#allocation4 + $0xce8] sm:$0xff]  ;;  %v15665_v15 = vcombine.low %v1299_v55, %v1303_v41  ;;  %v2687_v48 = vmul.f32 %v2679_v3, %v19086_v24  ;;  %v1342_v55 = vld [vmem:[#allocation4 + $0xde0] sm:$0xff] }
 0x45b   :  { %5451 = vmatprep.mubr.bf16.mxu1 %v19076_v0  ;;  %5615 = vmatprep.mubr.bf16.mxu0 %v19076_v0  ;;  %v15674_v23 = vcombine.high %v1307_v16, %v1311_v17  ;;  %v15673_v40 = vcombine.low %v1307_v16, %v1311_v17  ;;  %v1339_v41 = vld [vmem:[#allocation4 + $0xdc8] sm:$0xff]  ;;  %v15704_v3 = vcombine.high %v1338_v54, %v1342_v55 }
 0x45c   :  { %v1351_v16 = vld [vmem:[#allocation4 + $0xe28] sm:$0xff]  ;;  %v15703_v17 = vcombine.low %v1338_v54, %v1342_v55  ;;  %v1378_v55 = vld [vmem:[#allocation4 + $0xf00] sm:$0xff] }
 0x45d   :  { %5428 = vmatpush1.bf16.msra.mxu1 %v15631_v57  ;;  %5592 = vmatpush1.bf16.msra.mxu0 %v15633_v39  ;;  %v2692_v57 = vadd.f32 %v2684_v14, %v19083_v49  ;;  %v15671_v39 = vcombine.low %v1306_v8, %v1310_v10  ;;  %v1350_v8 = vld [vmem:[#allocation4 + $0xe20] sm:$0xff]  ;;  %v1347_v10 = vld [vmem:[#allocation4 + $0xe08] sm:$0xff]  ;;  %v15705_v14 = vcombine.low %v1339_v41, %v1343_v44 }
 0x45e   :  { %5429 = vmatprep.subr.bf16.mxu1 %v15640_v42  ;;  %5593 = vmatprep.subr.bf16.mxu0 %v15642_v56  ;;  %v2695_v42 = vadd.f32 %v2687_v48, %v19086_v24  ;;  %v15680_v56 = vcombine.high %v1314_v34, %v1318_v35  ;;  %v1354_v48 = vld [vmem:[#allocation4 + $0xe40] sm:$0xff]  ;;  %v1367_v45 = vld [vmem:[#allocation4 + $0xea8] sm:$0xff] }
 0x460   :  { %v2703_v52 = vmul.f32 0.7978846, %v2695_v42 }
 0x461   :  { %5430 = vmatpush1.bf16.msra.mxu1 %v15639_v50  ;;  %5594 = vmatpush1.bf16.msra.mxu0 %v15641_v33  ;;  %v1327_v50 = vld [vmem:[#allocation4 + $0xd68] sm:$0xff]  ;;  %v15679_v33 = vcombine.low %v1314_v34, %v1318_v35 }
 0x462   :  { %5431 = vmatprep.subr.bf16.mxu1 %v15648_v51  ;;  %5595 = vmatprep.subr.bf16.mxu0 %v15650_v4  ;;  %v15681_v51 = vcombine.low %v1315_v37, %v1319_v29  ;;  %v2700_v4 = vmul.f32 0.7978846, %v2692_v57  ;;  %v15690_v27 = vcombine.high %v1323_v46, %v1327_v50  ;;  %v1355_v34 = vld [vmem:[#allocation4 + $0xe48] sm:$0xff]  ;;  %v15713_v57 = vcombine.low %v1347_v10, %v1351_v16 }
 0x463   :  { %v1359_v35 = vld [vmem:[#allocation4 + $0xe68] sm:$0xff] }
 0x464   :  { %18443 = vtanh.f32 %v2700_v4  ;;  %v2663_v4 = vmul.f32 0.5, %v19086_v24 }
 0x465   :  { %5432 = vmatpush1.bf16.msra.mxu1 %v15647_v25  ;;  %5596 = vmatpush1.bf16.msra.mxu0 %v15649_v32  ;;  %v1331_v25 = vld [vmem:[#allocation4 + $0xd88] sm:$0xff]  ;;  %18445 = vtanh.f32 %v2703_v52 }
 0x466   :  { %5433 = vmatprep.subr.bf16.mxu1 %v15656_v60  ;;  %5597 = vmatprep.subr.bf16.mxu0 %v15658_v30  ;;  %v1335_v32 = vld [vmem:[#allocation4 + $0xda8] sm:$0xff]  ;;  %v15689_v60 = vcombine.low %v1323_v46, %v1327_v50  ;;  %v15696_v30 = vcombine.high %v1330_v28, %v1334_v38  ;;  %v2660_v50 = vmul.f32 0.5, %v19083_v49 }
 0x467   :  { %v15698_v36 = vcombine.high %v1331_v25, %v1335_v32 }
 0x469   :  { %5434 = vmatpush1.bf16.msra.mxu1 %v15655_v1  ;;  %5598 = vmatpush1.bf16.msra.mxu0 %v15657_v2  ;;  %v15695_v1 = vcombine.low %v1330_v28, %v1334_v38  ;;  %v15697_v2 = vcombine.low %v1331_v25, %v1335_v32  ;;  %v15730_v28 = vcombine.high %v1363_v26, %v1367_v45  ;;  %v1370_v38 = vld [vmem:[#allocation4 + $0xec0] sm:$0xff]  ;;  %v1371_v32 = vld [vmem:[#allocation4 + $0xec8] sm:$0xff] }
 0x46a   :  { %5435 = vmatprep.subr.bf16.mxu1 %v15664_v5  ;;  %5599 = vmatprep.subr.bf16.mxu0 %v15666_v6  ;;  %v15706_v5 = vcombine.high %v1339_v41, %v1343_v44  ;;  %v1346_v6 = vld [vmem:[#allocation4 + $0xe00] sm:$0xff]  ;;  %v1379_v44 = vld [vmem:[#allocation4 + $0xf08] sm:$0xff] }
 0x46b   :  { %v15711_v29 = vcombine.low %v1346_v6, %v1350_v8  ;;  %v1374_v25 = vld [vmem:[#allocation4 + $0xee0] sm:$0xff] }
 0x46c   :  { %v15736_v24 = vcombine.high %v1370_v38, %v1374_v25  ;;  %v1382_v41 = vld [vmem:[#allocation4 + $0xf20] sm:$0xff] }
 0x46d   :  { %5436 = vmatpush1.bf16.msra.mxu1 %v15663_v18  ;;  %5600 = vmatpush1.bf16.msra.mxu0 %v15665_v15  ;;  %v15712_v18 = vcombine.high %v1346_v6, %v1350_v8  ;;  %v15714_v15 = vcombine.high %v1347_v10, %v1351_v16  ;;  %v1386_v8 = vld [vmem:[#allocation4 + $0xf40] sm:$0xff]  ;;  %v1387_v16 = vld [vmem:[#allocation4 + $0xf48] sm:$0xff] }
 0x46e   :  { %5437 = vmatprep.subr.bf16.mxu1 %v15672_v22  ;;  %5601 = vmatprep.subr.bf16.mxu0 %v15674_v23  ;;  %v18444_v22 = vpop.eup %18443  ;;  %v1358_v23 = vld [vmem:[#allocation4 + $0xe60] sm:$0xff] }
 0x46f   :  { %v18446_v37 = vpop.eup %18445  ;;  %v2716_v42 = vadd.f32 1.0, %v18444_v22  ;;  %v1390_v10 = vld [vmem:[#allocation4 + $0xf60] sm:$0xff] }
 0x470   :  { %v2719_v46 = vadd.f32 1.0, %v18446_v37  ;;  %v1394_v22 = vld [vmem:[#allocation4 + $0xf80] sm:$0xff]  ;;  %v19107_v37 = vsub.s32 6, %v18733_v47 }
 0x471   :  { %5438 = vmatpush1.bf16.msra.mxu1 %v15671_v39  ;;  %5602 = vmatpush1.bf16.msra.mxu0 %v15673_v40  ;;  %v15720_v39 = vcombine.high %v1354_v48, %v1358_v23  ;;  %v15722_v40 = vcombine.high %v1355_v34, %v1359_v35 }
 0x472   :  { %5439 = vmatprep.subr.bf16.mxu1 %v15680_v56  ;;  %5603 = vmatprep.subr.bf16.mxu0 %v15682_v13  ;;  %v1362_v56 = vld [vmem:[#allocation4 + $0xe80] sm:$0xff]  ;;  %v2727_v52 = vmul.f32 %v2719_v46, %v2663_v4 }
 0x473   :  { %v1366_v13 = vld [vmem:[#allocation4 + $0xea0] sm:$0xff] }
 0x474   :  { %v1410_v4 = vld [vmem:[#allocation4 + $0x1000] sm:$0xff] }
 0x475   :  { %5440 = vmatpush1.bf16.msra.mxu1 %v15679_v33  ;;  %5604 = vmatpush1.bf16.msra.mxu0 %v15681_v51  ;;  %v15719_v33 = vcombine.low %v1354_v48, %v1358_v23  ;;  %v15721_v51 = vcombine.low %v1355_v34, %v1359_v35  ;;  %v1398_v23 = vld [vmem:[#allocation4 + $0xfa0] sm:$0xff]  ;;  %v1395_v34 = vld [vmem:[#allocation4 + $0xf88] sm:$0xff] }
 0x476   :  { %5441 = vmatprep.subr.bf16.mxu1 %v15688_v12  ;;  %5605 = vmatprep.subr.bf16.mxu0 %v15690_v27  ;;  %v2724_v12 = vmul.f32 %v2716_v42, %v2660_v50  ;;  %v15728_v27 = vcombine.high %v1362_v56, %v1366_v13  ;;  %v1399_v35 = vld [vmem:[#allocation4 + $0xfa8] sm:$0xff]  ;;  %v1402_v42 = vld [vmem:[#allocation4 + $0xfc0] sm:$0xff]  ;;  %v15759_v46 = vcombine.low %v1394_v22, %v1398_v23 }
 0x477   :  { %v15761_v50 = vcombine.low %v1395_v34, %v1399_v35 }
 0x478   :  { %v19098_v49 = vpack.c.bf16 %v2724_v12, %v2724_v12  ;;  %v1414_v12 = vld [vmem:[#allocation4 + $0x1020] sm:$0xff] }
 0x479   :  { %5442 = vmatpush1.bf16.msra.mxu1 %v15687_v21  ;;  %5606 = vmatpush1.bf16.msra.mxu0 %v15689_v60  ;;  %v1375_v21 = vld [vmem:[#allocation4 + $0xee8] sm:$0xff]  ;;  %v15727_v60 = vcombine.low %v1362_v56, %v1366_v13  ;;  %v1406_v56 = vld [vmem:[#allocation4 + $0xfe0] sm:$0xff] }
 0x47a   :  { %5443 = vmatprep.subr.bf16.mxu1 %v15696_v30  ;;  %5607 = vmatprep.subr.bf16.mxu0 %v15698_v36  ;;  %v15729_v30 = vcombine.low %v1363_v26, %v1367_v45  ;;  %v19100_v36 = vpack.c.bf16 %v2727_v52, %v2727_v52  ;;  %v15738_v54 = vcombine.high %v1371_v32, %v1375_v21  ;;  %v1403_v13 = vld [vmem:[#allocation4 + $0xfc8] sm:$0xff] }
 0x47b   :  { %v1407_v26 = vld [vmem:[#allocation4 + $0xfe8] sm:$0xff]  ;;  %v2075_v45 = vrot.slane %v19004_v53, %v19107_v37 }
 0x47c   :  { %v15769_v53 = vcombine.low %v1403_v13, %v1407_v26 }
 0x47d   :  { %5444 = vmatpush1.bf16.msra.mxu1 %v15695_v1  ;;  %5608 = vmatpush1.bf16.msra.mxu0 %v15697_v2  ;;  %v1383_v1 = vld [vmem:[#allocation4 + $0xf28] sm:$0xff]  ;;  %v15735_v2 = vcombine.low %v1370_v38, %v1374_v25  ;;  %v19112_v52 = vadd.f32 %v19010_v59, %v2075_v45  ;;  %v15767_v38 = vcombine.low %v1402_v42, %v1406_v56 }
 0x47e   :  { %5445 = vmatprep.subr.bf16.mxu1 %v15704_v3  ;;  %5609 = vmatprep.subr.bf16.mxu0 %v15706_v5  ;;  %v15737_v3 = vcombine.low %v1371_v32, %v1375_v21  ;;  %v15744_v5 = vcombine.high %v1378_v55, %v1382_v41  ;;  %v15746_v6 = vcombine.high %v1379_v44, %v1383_v1  ;;  %v1418_v21 = vld [vmem:[#allocation4 + $0x1040] sm:$0xff] }
 0x47f   :  { %v15776_v25 = vcombine.high %v1410_v4, %v1414_v12 }
 0x481   :  { %5446 = vmatpush1.bf16.msra.mxu1 %v15703_v17  ;;  %5610 = vmatpush1.bf16.msra.mxu0 %v15705_v14  ;;  %v1391_v17 = vld [vmem:[#allocation4 + $0xf68] sm:$0xff]  ;;  %v15743_v14 = vcombine.low %v1378_v55, %v1382_v41  ;;  %v15775_v55 = vcombine.low %v1410_v4, %v1414_v12 }
 0x482   :  { %5447 = vmatprep.subr.bf16.mxu1 %v15712_v18  ;;  %5611 = vmatprep.subr.bf16.mxu0 %v15714_v15  ;;  %v15745_v18 = vcombine.low %v1379_v44, %v1383_v1  ;;  %v15752_v15 = vcombine.high %v1386_v8, %v1390_v10  ;;  %v15754_v48 = vcombine.high %v1387_v16, %v1391_v17  ;;  %v1426_v1 = vld [vmem:[#allocation4 + $0x1080] sm:$0xff]  ;;  %v1455_v4 = vld [vmem:[#allocation4 + $0x1168] sm:$0xff] }
 0x485   :  { %5448 = vmatpush1.bf16.msra.mxu1 %v15711_v29  ;;  %5612 = vmatpush1.bf16.msra.mxu0 %v15713_v57  ;;  %v15751_v29 = vcombine.low %v1386_v8, %v1390_v10  ;;  %v15753_v57 = vcombine.low %v1387_v16, %v1391_v17 }
 0x486   :  { %5449 = vmatprep.subr.bf16.mxu1 %v15720_v39  ;;  %5613 = vmatprep.subr.bf16.mxu0 %v15722_v40  ;;  %v15760_v39 = vcombine.high %v1394_v22, %v1398_v23  ;;  %v15762_v40 = vcombine.high %v1395_v34, %v1399_v35 }
 0x489   :  { %5450 = vmatpush1.bf16.msra.mxu1 %v15719_v33  ;;  %5614 = vmatpush1.bf16.msra.mxu0 %v15721_v51  ;;  %v15768_v33 = vcombine.high %v1402_v42, %v1406_v56  ;;  %v15770_v51 = vcombine.high %v1403_v13, %v1407_v26  ;;  %v1447_v42 = vld [vmem:[#allocation4 + $0x1128] sm:$0xff] }
 0x48a   :  { %5460 = vmatprep.subr.bf16.mxu1 %v15728_v27  ;;  %5624 = vmatprep.subr.bf16.mxu0 %v15730_v28  ;;  %v1411_v27 = vld [vmem:[#allocation4 + $0x1008] sm:$0xff] }
 0x48b   :  { %v1415_v28 = vld [vmem:[#allocation4 + $0x1028] sm:$0xff] }
 0x48c   :  { %5452 = vmatmul.mubr.bf16.vlgmr.msra.gmra.mrb[12].mxu1 %v19098_v49  ;;  %5616 = vmatmul.mubr.bf16.vlgmr.msra.gmra.mrb[8].mxu0 %v19098_v49  ;;  %v15778_v32 = vcombine.high %v1411_v27, %v1415_v28  ;;  %v15777_v59 = vcombine.low %v1411_v27, %v1415_v28 }
 0x48d   :  { %5461 = vmatpush1.bf16.msra.mxu1 %v15727_v60  ;;  %5492 = vmatprep.mubr.bf16.mxu1 %v19100_v36  ;;  %v1422_v60 = vld [vmem:[#allocation4 + $0x1060] sm:$0xff] }
 0x48e   :  { %5625 = vmatpush1.bf16.msra.mxu0 %v15729_v30  ;;  %5656 = vmatprep.mubr.bf16.mxu0 %v19100_v36  ;;  %v1419_v30 = vld [vmem:[#allocation4 + $0x1048] sm:$0xff]  ;;  %v15784_v41 = vcombine.high %v1418_v21, %v1422_v60  ;;  %v15783_v8 = vcombine.low %v1418_v21, %v1422_v60 }
 0x48f   :  { %5462 = vmatprep.subr.bf16.mxu1 %v15736_v24  ;;  %5626 = vmatprep.subr.bf16.mxu0 %v15738_v54  ;;  %v1423_v24 = vld [vmem:[#allocation4 + $0x1068] sm:$0xff]  ;;  %v2670_v54 = vmul.f32 0.044715, %v19112_v52 }
 0x490   :  { %v15786_v44 = vcombine.high %v1419_v30, %v1423_v24  ;;  %v15785_v10 = vcombine.low %v1419_v30, %v1423_v24  ;;  %v1459_v21 = vld [vmem:[#allocation4 + $0x1188] sm:$0xff] }
 0x491   :  { %5463 = vmatpush1.bf16.msra.mxu1 %v15735_v2  ;;  %v1430_v2 = vld [vmem:[#allocation4 + $0x10a0] sm:$0xff]  ;;  %v1463_v60 = vld [vmem:[#allocation4 + $0x11a8] sm:$0xff] }
 0x492   :  { %5627 = vmatpush1.bf16.msra.mxu0 %v15737_v3  ;;  %5464 = vmatprep.subr.bf16.mxu1 %v15744_v5  ;;  %v1427_v3 = vld [vmem:[#allocation4 + $0x1088] sm:$0xff]  ;;  %v15792_v16 = vcombine.high %v1426_v1, %v1430_v2  ;;  %v15791_v23 = vcombine.low %v1426_v1, %v1430_v2 }
 0x493   :  { %5628 = vmatprep.subr.bf16.mxu0 %v15746_v6  ;;  %v1431_v5 = vld [vmem:[#allocation4 + $0x10a8] sm:$0xff]  ;;  %v2678_v6 = vmul.f32 %v2670_v54, %v19112_v52 }
 0x494   :  { %v15794_v17 = vcombine.high %v1427_v3, %v1431_v5  ;;  %v15793_v34 = vcombine.low %v1427_v3, %v1431_v5  ;;  %v1471_v1 = vld [vmem:[#allocation4 + $0x11e8] sm:$0xff]  ;;  %v15825_v3 = vcombine.low %v1459_v21, %v1463_v60 }
 0x495   :  { %5465 = vmatpush1.bf16.msra.mxu1 %v15743_v14  ;;  %v1434_v14 = vld [vmem:[#allocation4 + $0x10c0] sm:$0xff]  ;;  %v2686_v22 = vmul.f32 %v2678_v6, %v19112_v52 }
 0x496   :  { %5629 = vmatpush1.bf16.msra.mxu0 %v15745_v18  ;;  %5466 = vmatprep.subr.bf16.mxu1 %v15752_v15  ;;  %v1438_v18 = vld [vmem:[#allocation4 + $0x10e0] sm:$0xff]  ;;  %v1435_v15 = vld [vmem:[#allocation4 + $0x10c8] sm:$0xff] }
 0x497   :  { %5630 = vmatprep.subr.bf16.mxu0 %v15754_v48  ;;  %v1439_v48 = vld [vmem:[#allocation4 + $0x10e8] sm:$0xff]  ;;  %v15800_v35 = vcombine.high %v1434_v14, %v1438_v18  ;;  %v2694_v56 = vadd.f32 %v2686_v22, %v19112_v52  ;;  %v15799_v13 = vcombine.low %v1434_v14, %v1438_v18 }
 0x498   :  { %v15801_v26 = vcombine.low %v1435_v15, %v1439_v48 }
 0x499   :  { %5467 = vmatpush1.bf16.msra.mxu1 %v15751_v29  ;;  %v15802_v29 = vcombine.high %v1435_v15, %v1439_v48  ;;  %v2702_v27 = vmul.f32 0.7978846, %v2694_v56 }
 0x49a   :  { %5631 = vmatpush1.bf16.msra.mxu0 %v15753_v57  ;;  %5468 = vmatprep.subr.bf16.mxu1 %v15760_v39  ;;  %v1442_v57 = vld [vmem:[#allocation4 + $0x1100] sm:$0xff] }
 0x49b   :  { %5632 = vmatprep.subr.bf16.mxu0 %v15762_v40  ;;  %v1446_v39 = vld [vmem:[#allocation4 + $0x1120] sm:$0xff]  ;;  %v1443_v40 = vld [vmem:[#allocation4 + $0x1108] sm:$0xff]  ;;  %18447 = vtanh.f32 %v2702_v27 }
 0x49c   :  { %v15808_v45 = vcombine.high %v1442_v57, %v1446_v39  ;;  %v15807_v12 = vcombine.low %v1442_v57, %v1446_v39  ;;  %v15809_v28 = vcombine.low %v1443_v40, %v1447_v42 }
 0x49d   :  { %5469 = vmatpush1.bf16.msra.mxu1 %v15759_v46  ;;  %v15810_v46 = vcombine.high %v1443_v40, %v1447_v42 }
 0x49e   :  { %5633 = vmatpush1.bf16.msra.mxu0 %v15761_v50  ;;  %5470 = vmatprep.subr.bf16.mxu1 %v15768_v33  ;;  %v1450_v50 = vld [vmem:[#allocation4 + $0x1140] sm:$0xff] }
 0x49f   :  { %5634 = vmatprep.subr.bf16.mxu0 %v15770_v51  ;;  %v1454_v33 = vld [vmem:[#allocation4 + $0x1160] sm:$0xff]  ;;  %v1451_v51 = vld [vmem:[#allocation4 + $0x1148] sm:$0xff] }
 0x4a0   :  { %v15815_v30 = vcombine.low %v1450_v50, %v1454_v33  ;;  %v15817_v24 = vcombine.low %v1451_v51, %v1455_v4 }
 0x4a1   :  { %5471 = vmatpush1.bf16.msra.mxu1 %v15767_v38  ;;  %v15816_v38 = vcombine.high %v1450_v50, %v1454_v33  ;;  %v985_v50 = vld [vmem:[#allocation4 + $0x2b8] sm:$0xff] }
 0x4a2   :  { %5635 = vmatpush1.bf16.msra.mxu0 %v15769_v53  ;;  %5472 = vmatprep.subr.bf16.mxu1 %v15776_v25  ;;  %v15818_v53 = vcombine.high %v1451_v51, %v1455_v4  ;;  %v1458_v25 = vld [vmem:[#allocation4 + $0x1180] sm:$0xff] }
 0x4a3   :  { %5636 = vmatprep.subr.bf16.mxu0 %v15778_v32  ;;  %v1462_v32 = vld [vmem:[#allocation4 + $0x11a0] sm:$0xff] }
 0x4a4   :  { %v15824_v54 = vcombine.high %v1458_v25, %v1462_v32  ;;  %v15823_v2 = vcombine.low %v1458_v25, %v1462_v32  ;;  %v989_v25 = vld [vmem:[#allocation4 + $0x2d8] sm:$0xff] }
 0x4a5   :  { %5473 = vmatpush1.bf16.msra.mxu1 %v15775_v55  ;;  %v15826_v55 = vcombine.high %v1459_v21, %v1463_v60  ;;  %v18448_v48 = vpop.eup %18447  ;;  %v993_v32 = vld [vmem:[#allocation4 + $0x2f8] sm:$0xff] }
 0x4a6   :  { %5637 = vmatpush1.bf16.msra.mxu0 %v15777_v59  ;;  %5474 = vmatprep.subr.bf16.mxu1 %v15784_v41  ;;  %v1466_v59 = vld [vmem:[#allocation4 + $0x11c0] sm:$0xff]  ;;  %v2718_v42 = vadd.f32 1.0, %v18448_v48  ;;  %v1013_v48 = vld [vmem:[#allocation4 + $0x398] sm:$0xff] }
 0x4a7   :  { %5638 = vmatprep.subr.bf16.mxu0 %v15786_v44  ;;  %v1470_v41 = vld [vmem:[#allocation4 + $0x11e0] sm:$0xff]  ;;  %v1467_v44 = vld [vmem:[#allocation4 + $0x11c8] sm:$0xff] }
 0x4a8   :  { %v15832_v5 = vcombine.high %v1466_v59, %v1470_v41  ;;  %v15834_v6 = vcombine.high %v1467_v44, %v1471_v1  ;;  %v15831_v14 = vcombine.low %v1466_v59, %v1470_v41  ;;  %v15833_v18 = vcombine.low %v1467_v44, %v1471_v1  ;;  %v1001_v59 = vld [vmem:[#allocation4 + $0x338] sm:$0xff] }
 0x4a9   :  { %5475 = vmatpush1.bf16.msra.mxu1 %v15783_v8  ;;  %v1474_v8 = vld [vmem:[#allocation4 + $0x1200] sm:$0xff]  ;;  %v15357_v44 = vcombine.low %v989_v25, %v993_v32 }
 0x4aa   :  { %5639 = vmatpush1.bf16.msra.mxu0 %v15785_v10  ;;  %5476 = vmatprep.subr.bf16.mxu1 %v15792_v16  ;;  %v1478_v10 = vld [vmem:[#allocation4 + $0x1220] sm:$0xff]  ;;  %v1475_v16 = vld [vmem:[#allocation4 + $0x1208] sm:$0xff] }
 0x4ab   :  { %5640 = vmatprep.subr.bf16.mxu0 %v15794_v17  ;;  %v1479_v17 = vld [vmem:[#allocation4 + $0x1228] sm:$0xff]  ;;  %v15840_v15 = vcombine.high %v1474_v8, %v1478_v10  ;;  %v15839_v57 = vcombine.low %v1474_v8, %v1478_v10  ;;  %v1009_v8 = vld [vmem:[#allocation4 + $0x378] sm:$0xff] }
 0x4ac   :  { %v15842_v22 = vcombine.high %v1475_v16, %v1479_v17  ;;  %v15841_v39 = vcombine.low %v1475_v16, %v1479_v17 }
 0x4ad   :  { %5477 = vmatpush1.bf16.msra.mxu1 %v15791_v23  ;;  %v1482_v23 = vld [vmem:[#allocation4 + $0x1240] sm:$0xff] }
 0x4ae   :  { %5641 = vmatpush1.bf16.msra.mxu0 %v15793_v34  ;;  %5478 = vmatprep.subr.bf16.mxu1 %v15800_v35  ;;  %v1486_v34 = vld [vmem:[#allocation4 + $0x1260] sm:$0xff]  ;;  %v1483_v35 = vld [vmem:[#allocation4 + $0x1248] sm:$0xff] }
 0x4af   :  { %5642 = vmatprep.subr.bf16.mxu0 %v15802_v29  ;;  %v1487_v29 = vld [vmem:[#allocation4 + $0x1268] sm:$0xff]  ;;  %v15848_v40 = vcombine.high %v1482_v23, %v1486_v34  ;;  %v15847_v33 = vcombine.low %v1482_v23, %v1486_v34 }
 0x4b0   :  { %v15850_v56 = vcombine.high %v1483_v35, %v1487_v29  ;;  %v15849_v51 = vcombine.low %v1483_v35, %v1487_v29  ;;  %v1020_v29 = vld [vmem:[#allocation4 + $0x3d0] sm:$0xff] }
 0x4b1   :  { %5479 = vmatpush1.bf16.msra.mxu1 %v15799_v13  ;;  %v980_v13 = vld [vmem:[#allocation4 + $0x290] sm:$0xff] }
 0x4b2   :  { %5643 = vmatpush1.bf16.msra.mxu0 %v15801_v26  ;;  %5480 = vmatprep.subr.bf16.mxu1 %v15808_v45  ;;  %v984_v26 = vld [vmem:[#allocation4 + $0x2b0] sm:$0xff]  ;;  %v2662_v45 = vmul.f32 0.5, %v19112_v52 }
 0x4b3   :  { %5644 = vmatprep.subr.bf16.mxu0 %v15810_v46  ;;  %v981_v46 = vld [vmem:[#allocation4 + $0x298] sm:$0xff] }
 0x4b4   :  { %v2726_v4 = vmul.f32 %v2718_v42, %v2662_v45  ;;  %v15350_v27 = vcombine.high %v981_v46, %v985_v50  ;;  %v15349_v52 = vcombine.low %v981_v46, %v985_v50  ;;  %v1028_v45 = vld [vmem:[#allocation4 + $0x410] sm:$0xff]  ;;  %v1029_v50 = vld [vmem:[#allocation4 + $0x418] sm:$0xff] }
 0x4b5   :  { %5481 = vmatpush1.bf16.msra.mxu1 %v15807_v12  ;;  %v15348_v12 = vcombine.high %v980_v13, %v984_v26  ;;  %v1032_v46 = vld [vmem:[#allocation4 + $0x430] sm:$0xff] }
 0x4b6   :  { %5645 = vmatpush1.bf16.msra.mxu0 %v15809_v28  ;;  %5482 = vmatprep.subr.bf16.mxu1 %v15816_v38  ;;  %v988_v28 = vld [vmem:[#allocation4 + $0x2d0] sm:$0xff]  ;;  %v19119_v21 = vpack.c.bf16 %v2726_v4, %v2726_v4 }
 0x4b7   :  { %5646 = vmatprep.subr.bf16.mxu0 %v15818_v53  ;;  %v992_v38 = vld [vmem:[#allocation4 + $0x2f0] sm:$0xff]  ;;  %v15347_v53 = vcombine.low %v980_v13, %v984_v26 }
 0x4b8   :  { %v15356_v60 = vcombine.high %v988_v28, %v992_v38  ;;  %v15355_v41 = vcombine.low %v988_v28, %v992_v38  ;;  %v1036_v28 = vld [vmem:[#allocation4 + $0x450] sm:$0xff] }
 0x4b9   :  { %5483 = vmatpush1.bf16.msra.mxu1 %v15815_v30  ;;  %v996_v30 = vld [vmem:[#allocation4 + $0x310] sm:$0xff] }
 0x4ba   :  { %5647 = vmatpush1.bf16.msra.mxu0 %v15817_v24  ;;  %5484 = vmatprep.subr.bf16.mxu1 %v15824_v54  ;;  %v1000_v24 = vld [vmem:[#allocation4 + $0x330] sm:$0xff]  ;;  %v15358_v54 = vcombine.high %v989_v25, %v993_v32  ;;  %v1041_v25 = vld [vmem:[#allocation4 + $0x478] sm:$0xff]  ;;  %v15395_v32 = vcombine.low %v1028_v45, %v1032_v46 }
 0x4bb   :  { %5648 = vmatprep.subr.bf16.mxu0 %v15826_v55  ;;  %v997_v55 = vld [vmem:[#allocation4 + $0x318] sm:$0xff]  ;;  %v15364_v1 = vcombine.high %v996_v30, %v1000_v24  ;;  %v15363_v10 = vcombine.low %v996_v30, %v1000_v24  ;;  %v1040_v38 = vld [vmem:[#allocation4 + $0x470] sm:$0xff] }
 0x4bc   :  { %v15365_v16 = vcombine.low %v997_v55, %v1001_v59  ;;  %v1044_v24 = vld [vmem:[#allocation4 + $0x490] sm:$0xff] }
 0x4bd   :  { %5485 = vmatpush1.bf16.msra.mxu1 %v15823_v2  ;;  %v15366_v2 = vcombine.high %v997_v55, %v1001_v59  ;;  %v1045_v55 = vld [vmem:[#allocation4 + $0x498] sm:$0xff] }
 0x4be   :  { %5649 = vmatpush1.bf16.msra.mxu0 %v15825_v3  ;;  %5486 = vmatprep.subr.bf16.mxu1 %v15832_v5  ;;  %v1004_v3 = vld [vmem:[#allocation4 + $0x350] sm:$0xff]  ;;  %v1049_v59 = vld [vmem:[#allocation4 + $0x4b8] sm:$0xff] }
 0x4bf   :  { %5650 = vmatprep.subr.bf16.mxu0 %v15834_v6  ;;  %v1008_v5 = vld [vmem:[#allocation4 + $0x370] sm:$0xff]  ;;  %v1005_v6 = vld [vmem:[#allocation4 + $0x358] sm:$0xff] }
 0x4c0   :  { %v15372_v17 = vcombine.high %v1004_v3, %v1008_v5  ;;  %v15373_v23 = vcombine.low %v1005_v6, %v1009_v8 }
 0x4c1   :  { %5487 = vmatpush1.bf16.msra.mxu1 %v15831_v14  ;;  %v15374_v14 = vcombine.high %v1005_v6, %v1009_v8  ;;  %v1053_v6 = vld [vmem:[#allocation4 + $0x4d8] sm:$0xff] }
 0x4c2   :  { %5651 = vmatpush1.bf16.msra.mxu0 %v15833_v18  ;;  %5488 = vmatprep.subr.bf16.mxu1 %v15840_v15  ;;  %v1012_v18 = vld [vmem:[#allocation4 + $0x390] sm:$0xff]  ;;  %v1057_v8 = vld [vmem:[#allocation4 + $0x4f8] sm:$0xff] }
 0x4c3   :  { %5652 = vmatprep.subr.bf16.mxu0 %v15842_v22  ;;  %v1016_v15 = vld [vmem:[#allocation4 + $0x3b0] sm:$0xff]  ;;  %v1017_v22 = vld [vmem:[#allocation4 + $0x3b8] sm:$0xff] }
 0x4c4   :  { %v15380_v34 = vcombine.high %v1012_v18, %v1016_v15  ;;  %v15382_v35 = vcombine.high %v1013_v48, %v1017_v22  ;;  %v15379_v42 = vcombine.low %v1012_v18, %v1016_v15  ;;  %v1060_v18 = vld [vmem:[#allocation4 + $0x510] sm:$0xff] }
 0x4c5   :  { %5489 = vmatpush1.bf16.msra.mxu1 %v15839_v57  ;;  %v1024_v57 = vld [vmem:[#allocation4 + $0x3f0] sm:$0xff] }
 0x4c6   :  { %5653 = vmatpush1.bf16.msra.mxu0 %v15841_v39  ;;  %5490 = vmatprep.subr.bf16.mxu1 %v15848_v40  ;;  %v1021_v39 = vld [vmem:[#allocation4 + $0x3d8] sm:$0xff]  ;;  %v15388_v13 = vcombine.high %v1020_v29, %v1024_v57  ;;  %v1064_v15 = vld [vmem:[#allocation4 + $0x530] sm:$0xff] }
 0x4c7   :  { %5654 = vmatprep.subr.bf16.mxu0 %v15850_v56  ;;  %v1025_v40 = vld [vmem:[#allocation4 + $0x3f8] sm:$0xff]  ;;  %v15381_v56 = vcombine.low %v1013_v48, %v1017_v22 }
 0x4c8   :  { %v15390_v26 = vcombine.high %v1021_v39, %v1025_v40  ;;  %v15389_v4 = vcombine.low %v1021_v39, %v1025_v40  ;;  %v1061_v48 = vld [vmem:[#allocation4 + $0x518] sm:$0xff] }
 0x4c9   :  { %5491 = vmatpush1.bf16.msra.mxu1 %v15847_v33  ;;  %v1033_v33 = vld [vmem:[#allocation4 + $0x438] sm:$0xff] }
 0x4ca   :  { %5655 = vmatpush1.bf16.msra.mxu0 %v15849_v51  ;;  %5665 = vmatprep.subr.bf16.mxu1 %v15348_v12  ;;  %v15387_v51 = vcombine.low %v1020_v29, %v1024_v57  ;;  %v15396_v12 = vcombine.high %v1028_v45, %v1032_v46  ;;  %v1065_v22 = vld [vmem:[#allocation4 + $0x538] sm:$0xff]  ;;  %v1068_v29 = vld [vmem:[#allocation4 + $0x550] sm:$0xff] }
 0x4cb   :  { %5829 = vmatprep.subr.bf16.mxu0 %v15350_v27  ;;  %v15398_v27 = vcombine.high %v1029_v50, %v1033_v33  ;;  %v1072_v57 = vld [vmem:[#allocation4 + $0x570] sm:$0xff]  ;;  %v1069_v39 = vld [vmem:[#allocation4 + $0x558] sm:$0xff] }
 0x4cc   :  { %5493 = vmatmul.mubr.bf16.vlgmr.msra.gmra.mrb[12].mxu1 %v19119_v21  ;;  %v1073_v40 = vld [vmem:[#allocation4 + $0x578] sm:$0xff]  ;;  %v1076_v45 = vld [vmem:[#allocation4 + $0x590] sm:$0xff] }
 0x4cd   :  { %5657 = vmatmul.mubr.bf16.vlgmr.msra.gmra.mrb[8].mxu0 %v19119_v21  ;;  %5666 = vmatpush1.bf16.msra.mxu1 %v15347_v53  ;;  %v1037_v53 = vld [vmem:[#allocation4 + $0x458] sm:$0xff]  ;;  %v1080_v46 = vld [vmem:[#allocation4 + $0x5b0] sm:$0xff] }
 0x4ce   :  { %5697 = vmatprep.mubr.bf16.mxu1 %v19014_v7  ;;  %5830 = vmatpush1.bf16.msra.mxu0 %v15349_v52  ;;  %v15397_v52 = vcombine.low %v1029_v50, %v1033_v33  ;;  %v15406_v30 = vcombine.high %v1037_v53, %v1041_v25  ;;  %v1077_v50 = vld [vmem:[#allocation4 + $0x598] sm:$0xff] }
 0x4cf   :  { %5861 = vmatprep.mubr.bf16.mxu0 %v19014_v7  ;;  %5667 = vmatprep.subr.bf16.mxu1 %v15356_v60  ;;  %v15371_v7 = vcombine.low %v1004_v3, %v1008_v5  ;;  %v15404_v60 = vcombine.high %v1036_v28, %v1040_v38  ;;  %v1052_v3 = vld [vmem:[#allocation4 + $0x4d0] sm:$0xff]  ;;  %v1081_v33 = vld [vmem:[#allocation4 + $0x5b8] sm:$0xff] }
 0x4d0   :  { %5831 = vmatprep.subr.bf16.mxu0 %v15358_v54  ;;  %v1048_v54 = vld [vmem:[#allocation4 + $0x4b0] sm:$0xff] }
 0x4d1   :  { %5668 = vmatpush1.bf16.msra.mxu1 %v15355_v41  ;;  %v15403_v41 = vcombine.low %v1036_v28, %v1040_v38  ;;  %v1056_v5 = vld [vmem:[#allocation4 + $0x4f0] sm:$0xff] }
 0x4d2   :  { %5832 = vmatpush1.bf16.msra.mxu0 %v15357_v44  ;;  %5669 = vmatprep.subr.bf16.mxu1 %v15364_v1  ;;  %v15405_v44 = vcombine.low %v1037_v53, %v1041_v25  ;;  %v15412_v1 = vcombine.high %v1044_v24, %v1048_v54  ;;  %v1084_v28 = vld [vmem:[#allocation4 + $0x5d0] sm:$0xff]  ;;  %v1085_v53 = vld [vmem:[#allocation4 + $0x5d8] sm:$0xff] }
 0x4d3   :  { %5833 = vmatprep.subr.bf16.mxu0 %v15366_v2  ;;  %v15414_v2 = vcombine.high %v1045_v55, %v1049_v59  ;;  %v1088_v38 = vld [vmem:[#allocation4 + $0x5f0] sm:$0xff]  ;;  %v1089_v25 = vld [vmem:[#allocation4 + $0x5f8] sm:$0xff] }
 0x4d5   :  { %5670 = vmatpush1.bf16.msra.mxu1 %v15363_v10  ;;  %v15411_v10 = vcombine.low %v1044_v24, %v1048_v54  ;;  %v1092_v24 = vld [vmem:[#allocation4 + $0x610] sm:$0xff] }
 0x4d6   :  { %5834 = vmatpush1.bf16.msra.mxu0 %v15365_v16  ;;  %5671 = vmatprep.subr.bf16.mxu1 %v15372_v17  ;;  %v15413_v16 = vcombine.low %v1045_v55, %v1049_v59  ;;  %v15420_v17 = vcombine.high %v1052_v3, %v1056_v5  ;;  %v1096_v54 = vld [vmem:[#allocation4 + $0x630] sm:$0xff]  ;;  %v1093_v55 = vld [vmem:[#allocation4 + $0x618] sm:$0xff] }
 0x4d7   :  { %5835 = vmatprep.subr.bf16.mxu0 %v15374_v14  ;;  %v15422_v14 = vcombine.high %v1053_v6, %v1057_v8  ;;  %v1097_v59 = vld [vmem:[#allocation4 + $0x638] sm:$0xff] }
 0x4d9   :  { %5672 = vmatpush1.bf16.msra.mxu1 %v15371_v7  ;;  %v15419_v7 = vcombine.low %v1052_v3, %v1056_v5  ;;  %v1100_v3 = vld [vmem:[#allocation4 + $0x650] sm:$0xff] }
 0x4da   :  { %5836 = vmatpush1.bf16.msra.mxu0 %v15373_v23  ;;  %5673 = vmatprep.subr.bf16.mxu1 %v15380_v34  ;;  %v15421_v23 = vcombine.low %v1053_v6, %v1057_v8  ;;  %v15428_v34 = vcombine.high %v1060_v18, %v1064_v15  ;;  %v1104_v5 = vld [vmem:[#allocation4 + $0x670] sm:$0xff]  ;;  %v1101_v6 = vld [vmem:[#allocation4 + $0x658] sm:$0xff] }
 0x4db   :  { %5837 = vmatprep.subr.bf16.mxu0 %v15382_v35  ;;  %v15430_v35 = vcombine.high %v1061_v48, %v1065_v22  ;;  %v1105_v8 = vld [vmem:[#allocation4 + $0x678] sm:$0xff] }
 0x4dd   :  { %5674 = vmatpush1.bf16.msra.mxu1 %v15379_v42  ;;  %v15427_v42 = vcombine.low %v1060_v18, %v1064_v15  ;;  %v1108_v18 = vld [vmem:[#allocation4 + $0x690] sm:$0xff] }
 0x4de   :  { %5838 = vmatpush1.bf16.msra.mxu0 %v15381_v56  ;;  %5675 = vmatprep.subr.bf16.mxu1 %v15388_v13  ;;  %v15429_v56 = vcombine.low %v1061_v48, %v1065_v22  ;;  %v15436_v13 = vcombine.high %v1068_v29, %v1072_v57  ;;  %v1112_v15 = vld [vmem:[#allocation4 + $0x6b0] sm:$0xff]  ;;  %v1109_v48 = vld [vmem:[#allocation4 + $0x698] sm:$0xff] }
 0x4df   :  { %5839 = vmatprep.subr.bf16.mxu0 %v15390_v26  ;;  %v15438_v26 = vcombine.high %v1069_v39, %v1073_v40  ;;  %v1113_v22 = vld [vmem:[#allocation4 + $0x6b8] sm:$0xff] }
 0x4e1   :  { %5676 = vmatpush1.bf16.msra.mxu1 %v15387_v51  ;;  %v15435_v51 = vcombine.low %v1068_v29, %v1072_v57  ;;  %v1116_v29 = vld [vmem:[#allocation4 + $0x6d0] sm:$0xff] }
 0x4e2   :  { %5840 = vmatpush1.bf16.msra.mxu0 %v15389_v4  ;;  %5677 = vmatprep.subr.bf16.mxu1 %v15396_v12  ;;  %v15437_v4 = vcombine.low %v1069_v39, %v1073_v40  ;;  %v15444_v12 = vcombine.high %v1076_v45, %v1080_v46  ;;  %v1120_v57 = vld [vmem:[#allocation4 + $0x6f0] sm:$0xff]  ;;  %v15475_v39 = vcombine.low %v1108_v18, %v1112_v15  ;;  %v1117_v40 = vld [vmem:[#allocation4 + $0x6d8] sm:$0xff] }
 0x4e3   :  { %5841 = vmatprep.subr.bf16.mxu0 %v15398_v27  ;;  %v15446_v27 = vcombine.high %v1077_v50, %v1081_v33 }
 0x4e5   :  { %5678 = vmatpush1.bf16.msra.mxu1 %v15395_v32  ;;  %v15443_v32 = vcombine.low %v1076_v45, %v1080_v46  ;;  %v1128_v45 = vld [vmem:[#allocation4 + $0x730] sm:$0xff] }
 0x4e6   :  { %5842 = vmatpush1.bf16.msra.mxu0 %v15397_v52  ;;  %5679 = vmatprep.subr.bf16.mxu1 %v15404_v60  ;;  %v15445_v52 = vcombine.low %v1077_v50, %v1081_v33  ;;  %v15452_v60 = vcombine.high %v1084_v28, %v1088_v38  ;;  %v1125_v50 = vld [vmem:[#allocation4 + $0x718] sm:$0xff] }
 0x4e7   :  { %5843 = vmatprep.subr.bf16.mxu0 %v15406_v30  ;;  %v15454_v30 = vcombine.high %v1085_v53, %v1089_v25  ;;  %v1129_v33 = vld [vmem:[#allocation4 + $0x738] sm:$0xff] }
 0x4e9   :  { %5680 = vmatpush1.bf16.msra.mxu1 %v15403_v41  ;;  %v15451_v41 = vcombine.low %v1084_v28, %v1088_v38  ;;  %v1132_v28 = vld [vmem:[#allocation4 + $0x750] sm:$0xff] }
 0x4ea   :  { %5844 = vmatpush1.bf16.msra.mxu0 %v15405_v44  ;;  %5681 = vmatprep.subr.bf16.mxu1 %v15412_v1  ;;  %v15453_v44 = vcombine.low %v1085_v53, %v1089_v25  ;;  %v15460_v1 = vcombine.high %v1092_v24, %v1096_v54  ;;  %v1136_v38 = vld [vmem:[#allocation4 + $0x770] sm:$0xff]  ;;  %v1133_v53 = vld [vmem:[#allocation4 + $0x758] sm:$0xff] }
 0x4eb   :  { %5845 = vmatprep.subr.bf16.mxu0 %v15414_v2  ;;  %v15462_v2 = vcombine.high %v1093_v55, %v1097_v59  ;;  %v1137_v25 = vld [vmem:[#allocation4 + $0x778] sm:$0xff] }
 0x4ed   :  { %5682 = vmatpush1.bf16.msra.mxu1 %v15411_v10  ;;  %v15459_v10 = vcombine.low %v1092_v24, %v1096_v54  ;;  %v1144_v24 = vld [vmem:[#allocation4 + $0x7b0] sm:$0xff]  ;;  %v1141_v54 = vld [vmem:[#allocation4 + $0x798] sm:$0xff] }
 0x4ee   :  { %5846 = vmatpush1.bf16.msra.mxu0 %v15413_v16  ;;  %5683 = vmatprep.subr.bf16.mxu1 %v15420_v17  ;;  %v15461_v16 = vcombine.low %v1093_v55, %v1097_v59  ;;  %v15468_v17 = vcombine.high %v1100_v3, %v1104_v5  ;;  %v1145_v55 = vld [vmem:[#allocation4 + $0x7b8] sm:$0xff]  ;;  %v15501_v59 = vcombine.low %v1133_v53, %v1137_v25 }
 0x4ef   :  { %5847 = vmatprep.subr.bf16.mxu0 %v15422_v14  ;;  %v15470_v14 = vcombine.high %v1101_v6, %v1105_v8 }
 0x4f1   :  { %5684 = vmatpush1.bf16.msra.mxu1 %v15419_v7  ;;  %v15467_v7 = vcombine.low %v1100_v3, %v1104_v5  ;;  %v1149_v3 = vld [vmem:[#allocation4 + $0x7d8] sm:$0xff] }
 0x4f2   :  { %5848 = vmatpush1.bf16.msra.mxu0 %v15421_v23  ;;  %5685 = vmatprep.subr.bf16.mxu1 %v15428_v34  ;;  %v15469_v23 = vcombine.low %v1101_v6, %v1105_v8  ;;  %v15476_v34 = vcombine.high %v1108_v18, %v1112_v15  ;;  %v1153_v5 = vld [vmem:[#allocation4 + $0x7f8] sm:$0xff]  ;;  %v15509_v8 = vcombine.low %v1141_v54, %v1145_v55 }
 0x4f3   :  { %5849 = vmatprep.subr.bf16.mxu0 %v15430_v35  ;;  %v15478_v35 = vcombine.high %v1109_v48, %v1113_v22  ;;  %v1157_v18 = vld [vmem:[#allocation4 + $0x818] sm:$0xff] }
 0x4f4   :  { %v1161_v15 = vld [vmem:[#allocation4 + $0x838] sm:$0xff] }
 0x4f5   :  { %5686 = vmatpush1.bf16.msra.mxu1 %v15427_v42  ;;  %v1121_v42 = vld [vmem:[#allocation4 + $0x6f8] sm:$0xff] }
 0x4f6   :  { %5850 = vmatpush1.bf16.msra.mxu0 %v15429_v56  ;;  %5687 = vmatprep.subr.bf16.mxu1 %v15436_v13  ;;  %v15477_v56 = vcombine.low %v1109_v48, %v1113_v22  ;;  %v15484_v13 = vcombine.high %v1116_v29, %v1120_v57  ;;  %v15486_v46 = vcombine.high %v1117_v40, %v1121_v42 }
 0x4f7   :  { %5851 = vmatprep.subr.bf16.mxu0 %v15438_v26  ;;  %v1124_v26 = vld [vmem:[#allocation4 + $0x710] sm:$0xff]  ;;  %v15517_v22 = vcombine.low %v1149_v3, %v1153_v5 }
 0x4f9   :  { %5688 = vmatpush1.bf16.msra.mxu1 %v15435_v51  ;;  %v15483_v51 = vcombine.low %v1116_v29, %v1120_v57  ;;  %v1165_v29 = vld [vmem:[#allocation4 + $0x858] sm:$0xff] }
 0x4fa   :  { %5852 = vmatpush1.bf16.msra.mxu0 %v15437_v4  ;;  %5689 = vmatprep.subr.bf16.mxu1 %v15444_v12  ;;  %v15485_v4 = vcombine.low %v1117_v40, %v1121_v42  ;;  %v15492_v12 = vcombine.high %v1124_v26, %v1128_v45  ;;  %v1169_v57 = vld [vmem:[#allocation4 + $0x878] sm:$0xff]  ;;  %v15525_v40 = vcombine.low %v1157_v18, %v1161_v15 }
 0x4fb   :  { %5853 = vmatprep.subr.bf16.mxu0 %v15446_v27  ;;  %v15494_v27 = vcombine.high %v1125_v50, %v1129_v33 }
 0x4fd   :  { %5690 = vmatpush1.bf16.msra.mxu1 %v15443_v32  ;;  %v15491_v32 = vcombine.low %v1124_v26, %v1128_v45  ;;  %v1176_v26 = vld [vmem:[#allocation4 + $0x8b0] sm:$0xff]  ;;  %v1173_v45 = vld [vmem:[#allocation4 + $0x898] sm:$0xff] }
 0x4fe   :  { %5854 = vmatpush1.bf16.msra.mxu0 %v15445_v52  ;;  %5691 = vmatprep.subr.bf16.mxu1 %v15452_v60  ;;  %v15500_v52 = vcombine.high %v1132_v28, %v1136_v38  ;;  %v15502_v60 = vcombine.high %v1133_v53, %v1137_v25 }
 0x4ff   :  { %5855 = vmatprep.subr.bf16.mxu0 %v15454_v30  ;;  %v1140_v30 = vld [vmem:[#allocation4 + $0x790] sm:$0xff] }
 0x500   :  { %v15507_v6 = vcombine.low %v1140_v30, %v1144_v24 }
 0x501   :  { %5692 = vmatpush1.bf16.msra.mxu1 %v15451_v41  ;;  %v15508_v41 = vcombine.high %v1140_v30, %v1144_v24  ;;  %v1189_v30 = vld [vmem:[#allocation4 + $0x918] sm:$0xff] }
 0x502   :  { %5856 = vmatpush1.bf16.msra.mxu0 %v15453_v44  ;;  %5693 = vmatprep.subr.bf16.mxu1 %v15460_v1  ;;  %v15510_v44 = vcombine.high %v1141_v54, %v1145_v55  ;;  %v1148_v1 = vld [vmem:[#allocation4 + $0x7d0] sm:$0xff]  ;;  %v1193_v24 = vld [vmem:[#allocation4 + $0x938] sm:$0xff] }
 0x503   :  { %5857 = vmatprep.subr.bf16.mxu0 %v15462_v2  ;;  %v1152_v2 = vld [vmem:[#allocation4 + $0x7f0] sm:$0xff] }
 0x504   :  { %v15515_v48 = vcombine.low %v1148_v1, %v1152_v2 }
 0x505   :  { %5694 = vmatpush1.bf16.msra.mxu1 %v15459_v10  ;;  %v15516_v10 = vcombine.high %v1148_v1, %v1152_v2  ;;  %v1197_v1 = vld [vmem:[#allocation4 + $0x958] sm:$0xff] }
 0x506   :  { %5858 = vmatpush1.bf16.msra.mxu0 %v15461_v16  ;;  %5695 = vmatprep.subr.bf16.mxu1 %v15468_v17  ;;  %v15518_v16 = vcombine.high %v1149_v3, %v1153_v5  ;;  %v1156_v17 = vld [vmem:[#allocation4 + $0x810] sm:$0xff]  ;;  %v1201_v2 = vld [vmem:[#allocation4 + $0x978] sm:$0xff]  ;;  %v15557_v5 = vcombine.low %v1189_v30, %v1193_v24 }
 0x507   :  { %5859 = vmatprep.subr.bf16.mxu0 %v15470_v14  ;;  %v1160_v14 = vld [vmem:[#allocation4 + $0x830] sm:$0xff] }
 0x509   :  { %5696 = vmatpush1.bf16.msra.mxu1 %v15467_v7  ;;  %v15524_v7 = vcombine.high %v1156_v17, %v1160_v14 }
 0x50a   :  { %5860 = vmatpush1.bf16.msra.mxu0 %v15469_v23  ;;  %5706 = vmatprep.subr.bf16.mxu1 %v15476_v34  ;;  %v15526_v23 = vcombine.high %v1157_v18, %v1161_v15  ;;  %v1164_v34 = vld [vmem:[#allocation4 + $0x850] sm:$0xff]  ;;  %v15565_v15 = vcombine.low %v1197_v1, %v1201_v2 }
 0x50b   :  { %5870 = vmatprep.subr.bf16.mxu0 %v15478_v35  ;;  %v1168_v35 = vld [vmem:[#allocation4 + $0x870] sm:$0xff] }
 0x50c   :  { %5698 = vmatmul.mubr.bf16.vlgmr.msra.gmra.mrb[16].mxu1 %v19016_v43  ;;  %v15532_v42 = vcombine.high %v1164_v34, %v1168_v35 }
 0x50d   :  { %5862 = vmatmul.mubr.bf16.vlgmr.msra.gmra.mrb[12].mxu0 %v19016_v43  ;;  %5707 = vmatpush1.bf16.msra.mxu1 %v15475_v39  ;;  %v15493_v43 = vcombine.low %v1125_v50, %v1129_v33  ;;  %v15523_v39 = vcombine.low %v1156_v17, %v1160_v14  ;;  %v15531_v50 = vcombine.low %v1164_v34, %v1168_v35  ;;  %v1205_v17 = vld [vmem:[#allocation4 + $0x998] sm:$0xff] }
 0x50e   :  { %5738 = vmatprep.mubr.bf16.mxu1 %v19045_v20  ;;  %5871 = vmatpush1.bf16.msra.mxu0 %v15477_v56  ;;  %v15534_v56 = vcombine.high %v1165_v29, %v1169_v57  ;;  %v15533_v33 = vcombine.low %v1165_v29, %v1169_v57  ;;  %v1209_v14 = vld [vmem:[#allocation4 + $0x9b8] sm:$0xff] }
 0x50f   :  { %5902 = vmatprep.mubr.bf16.mxu0 %v19045_v20  ;;  %5708 = vmatprep.subr.bf16.mxu1 %v15484_v13  ;;  %v15499_v20 = vcombine.low %v1132_v28, %v1136_v38  ;;  %v1172_v13 = vld [vmem:[#allocation4 + $0x890] sm:$0xff]  ;;  %v1181_v28 = vld [vmem:[#allocation4 + $0x8d8] sm:$0xff]  ;;  %v15573_v57 = vcombine.low %v1205_v17, %v1209_v14 }
 0x510   :  { %5872 = vmatprep.subr.bf16.mxu0 %v15486_v46  ;;  %v1177_v46 = vld [vmem:[#allocation4 + $0x8b8] sm:$0xff]  ;;  %v15539_v53 = vcombine.low %v1172_v13, %v1176_v26 }
 0x511   :  { %5709 = vmatpush1.bf16.msra.mxu1 %v15483_v51  ;;  %v15540_v51 = vcombine.high %v1172_v13, %v1176_v26  ;;  %v1185_v38 = vld [vmem:[#allocation4 + $0x8f8] sm:$0xff]  ;;  %v15541_v25 = vcombine.low %v1173_v45, %v1177_v46 }
 0x512   :  { %5873 = vmatpush1.bf16.msra.mxu0 %v15485_v4  ;;  %5710 = vmatprep.subr.bf16.mxu1 %v15492_v12  ;;  %v15542_v4 = vcombine.high %v1173_v45, %v1177_v46  ;;  %v1180_v12 = vld [vmem:[#allocation4 + $0x8d0] sm:$0xff]  ;;  %v15549_v55 = vcombine.low %v1181_v28, %v1185_v38  ;;  %v1213_v34 = vld [vmem:[#allocation4 + $0x9d8] sm:$0xff] }
 0x513   :  { %5874 = vmatprep.subr.bf16.mxu0 %v15494_v27  ;;  %v1184_v27 = vld [vmem:[#allocation4 + $0x8f0] sm:$0xff]  ;;  %v1217_v35 = vld [vmem:[#allocation4 + $0x9f8] sm:$0xff] }
 0x514   :  { %v15547_v54 = vcombine.low %v1180_v12, %v1184_v27  ;;  %v1221_v13 = vld [vmem:[#allocation4 + $0xa18] sm:$0xff]  ;;  %v15581_v46 = vcombine.low %v1213_v34, %v1217_v35 }
 0x515   :  { %5711 = vmatpush1.bf16.msra.mxu1 %v15491_v32  ;;  %v15548_v32 = vcombine.high %v1180_v12, %v1184_v27  ;;  %v1225_v26 = vld [vmem:[#allocation4 + $0xa38] sm:$0xff] }
 0x516   :  { %5875 = vmatpush1.bf16.msra.mxu0 %v15493_v43  ;;  %5712 = vmatprep.subr.bf16.mxu1 %v15500_v52  ;;  %v15550_v43 = vcombine.high %v1181_v28, %v1185_v38  ;;  %v1188_v52 = vld [vmem:[#allocation4 + $0x910] sm:$0xff]  ;;  %v1229_v12 = vld [vmem:[#allocation4 + $0xa58] sm:$0xff]  ;;  %v15589_v38 = vcombine.low %v1221_v13, %v1225_v26 }
 0x517   :  { %5876 = vmatprep.subr.bf16.mxu0 %v15502_v60  ;;  %v1192_v60 = vld [vmem:[#allocation4 + $0x930] sm:$0xff]  ;;  %v1233_v27 = vld [vmem:[#allocation4 + $0xa78] sm:$0xff] }
 0x518   :  { %v15555_v3 = vcombine.low %v1188_v52, %v1192_v60 }
 0x519   :  { %5713 = vmatpush1.bf16.msra.mxu1 %v15499_v20  ;;  %v15556_v20 = vcombine.high %v1188_v52, %v1192_v60  ;;  %v1237_v52 = vld [vmem:[#allocation4 + $0xa98] sm:$0xff] }
 0x51a   :  { %5877 = vmatpush1.bf16.msra.mxu0 %v15501_v59  ;;  %5714 = vmatprep.subr.bf16.mxu1 %v15508_v41  ;;  %v15558_v59 = vcombine.high %v1189_v30, %v1193_v24  ;;  %v1196_v41 = vld [vmem:[#allocation4 + $0x950] sm:$0xff]  ;;  %v1241_v60 = vld [vmem:[#allocation4 + $0xab8] sm:$0xff]  ;;  %v15597_v24 = vcombine.low %v1229_v12, %v1233_v27 }
 0x51b   :  { %5878 = vmatprep.subr.bf16.mxu0 %v15510_v44  ;;  %v1200_v44 = vld [vmem:[#allocation4 + $0x970] sm:$0xff] }
 0x51c   :  { %v15563_v18 = vcombine.low %v1196_v41, %v1200_v44 }
 0x51d   :  { %5715 = vmatpush1.bf16.msra.mxu1 %v15507_v6  ;;  %v15564_v6 = vcombine.high %v1196_v41, %v1200_v44  ;;  %v1245_v44 = vld [vmem:[#allocation4 + $0xad8] sm:$0xff] }
 0x51e   :  { %5879 = vmatpush1.bf16.msra.mxu0 %v15509_v8  ;;  %5716 = vmatprep.subr.bf16.mxu1 %v15516_v10  ;;  %v15566_v8 = vcombine.high %v1197_v1, %v1201_v2  ;;  %v1204_v10 = vld [vmem:[#allocation4 + $0x990] sm:$0xff]  ;;  %v1249_v1 = vld [vmem:[#allocation4 + $0xaf8] sm:$0xff]  ;;  %v15605_v2 = vcombine.low %v1237_v52, %v1241_v60 }
 0x51f   :  { %5880 = vmatprep.subr.bf16.mxu0 %v15518_v16  ;;  %v1208_v16 = vld [vmem:[#allocation4 + $0x9b0] sm:$0xff] }
 0x520   :  { %v15571_v29 = vcombine.low %v1204_v10, %v1208_v16 }
 0x521   :  { %5717 = vmatpush1.bf16.msra.mxu1 %v15515_v48  ;;  %v15572_v48 = vcombine.high %v1204_v10, %v1208_v16  ;;  %v1253_v10 = vld [vmem:[#allocation4 + $0xb18] sm:$0xff] }
 0x522   :  { %5881 = vmatpush1.bf16.msra.mxu0 %v15517_v22  ;;  %5718 = vmatprep.subr.bf16.mxu1 %v15524_v7  ;;  %v15574_v22 = vcombine.high %v1205_v17, %v1209_v14  ;;  %v1212_v7 = vld [vmem:[#allocation4 + $0x9d0] sm:$0xff]  ;;  %v1257_v16 = vld [vmem:[#allocation4 + $0xb38] sm:$0xff]  ;;  %v15613_v14 = vcombine.low %v1245_v44, %v1249_v1 }
 0x523   :  { %5882 = vmatprep.subr.bf16.mxu0 %v15526_v23  ;;  %v1216_v23 = vld [vmem:[#allocation4 + $0x9f0] sm:$0xff] }
 0x524   :  { %v15579_v45 = vcombine.low %v1212_v7, %v1216_v23 }
 0x525   :  { %5719 = vmatpush1.bf16.msra.mxu1 %v15523_v39  ;;  %v15580_v39 = vcombine.high %v1212_v7, %v1216_v23  ;;  %v1261_v7 = vld [vmem:[#allocation4 + $0xb58] sm:$0xff] }
 0x526   :  { %5883 = vmatpush1.bf16.msra.mxu0 %v15525_v40  ;;  %5720 = vmatprep.subr.bf16.mxu1 %v15532_v42  ;;  %v15582_v40 = vcombine.high %v1213_v34, %v1217_v35  ;;  %v1220_v42 = vld [vmem:[#allocation4 + $0xa10] sm:$0xff]  ;;  %v1265_v23 = vld [vmem:[#allocation4 + $0xb78] sm:$0xff] }
 0x527   :  { %5884 = vmatprep.subr.bf16.mxu0 %v15534_v56  ;;  %v1224_v56 = vld [vmem:[#allocation4 + $0xa30] sm:$0xff] }
 0x528   :  { %v15587_v28 = vcombine.low %v1220_v42, %v1224_v56 }
 0x529   :  { %5721 = vmatpush1.bf16.msra.mxu1 %v15531_v50  ;;  %v15588_v50 = vcombine.high %v1220_v42, %v1224_v56  ;;  %v1273_v42 = vld [vmem:[#allocation4 + $0xbb8] sm:$0xff]  ;;  %v15629_v56 = vcombine.low %v1261_v7, %v1265_v23 }
 0x52a   :  { %5885 = vmatpush1.bf16.msra.mxu0 %v15533_v33  ;;  %5722 = vmatprep.subr.bf16.mxu1 %v15540_v51  ;;  %v15590_v33 = vcombine.high %v1221_v13, %v1225_v26  ;;  %v1228_v51 = vld [vmem:[#allocation4 + $0xa50] sm:$0xff] }
 0x52b   :  { %5886 = vmatprep.subr.bf16.mxu0 %v15542_v4  ;;  %v1232_v4 = vld [vmem:[#allocation4 + $0xa70] sm:$0xff] }
 0x52c   :  { %v15595_v30 = vcombine.low %v1228_v51, %v1232_v4 }
 0x52d   :  { %5723 = vmatpush1.bf16.msra.mxu1 %v15539_v53  ;;  %v15596_v53 = vcombine.high %v1228_v51, %v1232_v4 }
 0x52e   :  { %5887 = vmatpush1.bf16.msra.mxu0 %v15541_v25  ;;  %5724 = vmatprep.subr.bf16.mxu1 %v15548_v32  ;;  %v15598_v25 = vcombine.high %v1229_v12, %v1233_v27  ;;  %v1236_v32 = vld [vmem:[#allocation4 + $0xa90] sm:$0xff] }
 0x52f   :  { %5888 = vmatprep.subr.bf16.mxu0 %v15550_v43  ;;  %v1240_v43 = vld [vmem:[#allocation4 + $0xab0] sm:$0xff] }
 0x530   :  { %v15603_v41 = vcombine.low %v1236_v32, %v1240_v43 }
 0x531   :  { %5725 = vmatpush1.bf16.msra.mxu1 %v15547_v54  ;;  %v15604_v54 = vcombine.high %v1236_v32, %v1240_v43 }
 0x532   :  { %5889 = vmatpush1.bf16.msra.mxu0 %v15549_v55  ;;  %5726 = vmatprep.subr.bf16.mxu1 %v15556_v20  ;;  %v15606_v55 = vcombine.high %v1237_v52, %v1241_v60  ;;  %v1244_v20 = vld [vmem:[#allocation4 + $0xad0] sm:$0xff] }
 0x533   :  { %5890 = vmatprep.subr.bf16.mxu0 %v15558_v59  ;;  %v1248_v59 = vld [vmem:[#allocation4 + $0xaf0] sm:$0xff] }
 0x534   :  { %v15611_v17 = vcombine.low %v1244_v20, %v1248_v59 }
 0x535   :  { %5727 = vmatpush1.bf16.msra.mxu1 %v15555_v3  ;;  %v15612_v3 = vcombine.high %v1244_v20, %v1248_v59 }
 0x536   :  { %5891 = vmatpush1.bf16.msra.mxu0 %v15557_v5  ;;  %5728 = vmatprep.subr.bf16.mxu1 %v15564_v6  ;;  %v1252_v5 = vld [vmem:[#allocation4 + $0xb10] sm:$0xff] }
 0x537   :  { %5892 = vmatprep.subr.bf16.mxu0 %v15566_v8  ;;  %v1256_v6 = vld [vmem:[#allocation4 + $0xb30] sm:$0xff]  ;;  %v15614_v8 = vcombine.high %v1245_v44, %v1249_v1 }
 0x538   :  { %v15619_v34 = vcombine.low %v1252_v5, %v1256_v6  ;;  %v1300_v1 = vld [vmem:[#allocation4 + $0xc90] sm:$0xff] }
 0x539   :  { %5729 = vmatpush1.bf16.msra.mxu1 %v15563_v18  ;;  %v15620_v18 = vcombine.high %v1252_v5, %v1256_v6  ;;  %v1305_v5 = vld [vmem:[#allocation4 + $0xcb8] sm:$0xff] }
 0x53a   :  { %5893 = vmatpush1.bf16.msra.mxu0 %v15565_v15  ;;  %5730 = vmatprep.subr.bf16.mxu1 %v15572_v48  ;;  %v15622_v15 = vcombine.high %v1253_v10, %v1257_v16  ;;  %v1260_v48 = vld [vmem:[#allocation4 + $0xb50] sm:$0xff] }
 0x53b   :  { %5894 = vmatprep.subr.bf16.mxu0 %v15574_v22  ;;  %v1264_v22 = vld [vmem:[#allocation4 + $0xb70] sm:$0xff] }
 0x53c   :  { %v15628_v35 = vcombine.high %v1260_v48, %v1264_v22 }
 0x53d   :  { %5731 = vmatpush1.bf16.msra.mxu1 %v15571_v29  ;;  %v15630_v29 = vcombine.high %v1261_v7, %v1265_v23 }
 0x53e   :  { %5895 = vmatpush1.bf16.msra.mxu0 %v15573_v57  ;;  %5732 = vmatprep.subr.bf16.mxu1 %v15580_v39  ;;  %v1268_v57 = vld [vmem:[#allocation4 + $0xb90] sm:$0xff] }
 0x53f   :  { %5896 = vmatprep.subr.bf16.mxu0 %v15582_v40  ;;  %v1272_v39 = vld [vmem:[#allocation4 + $0xbb0] sm:$0xff]  ;;  %v1269_v40 = vld [vmem:[#allocation4 + $0xb98] sm:$0xff] }
 0x540   :  { %v15636_v13 = vcombine.high %v1268_v57, %v1272_v39  ;;  %v15638_v26 = vcombine.high %v1269_v40, %v1273_v42  ;;  %v15635_v51 = vcombine.low %v1268_v57, %v1272_v39  ;;  %v15637_v4 = vcombine.low %v1269_v40, %v1273_v42 }
 0x541   :  { %5733 = vmatpush1.bf16.msra.mxu1 %v15579_v45  ;;  %v1276_v45 = vld [vmem:[#allocation4 + $0xbd0] sm:$0xff] }
 0x542   :  { %5897 = vmatpush1.bf16.msra.mxu0 %v15581_v46  ;;  %5734 = vmatprep.subr.bf16.mxu1 %v15588_v50  ;;  %v1280_v46 = vld [vmem:[#allocation4 + $0xbf0] sm:$0xff]  ;;  %v1277_v50 = vld [vmem:[#allocation4 + $0xbd8] sm:$0xff] }
 0x543   :  { %5898 = vmatprep.subr.bf16.mxu0 %v15590_v33  ;;  %v1281_v33 = vld [vmem:[#allocation4 + $0xbf8] sm:$0xff]  ;;  %v15644_v12 = vcombine.high %v1276_v45, %v1280_v46  ;;  %v15643_v32 = vcombine.low %v1276_v45, %v1280_v46 }
 0x544   :  { %v15646_v27 = vcombine.high %v1277_v50, %v1281_v33  ;;  %v15645_v43 = vcombine.low %v1277_v50, %v1281_v33 }
 0x545   :  { %5735 = vmatpush1.bf16.msra.mxu1 %v15587_v28  ;;  %v1284_v28 = vld [vmem:[#allocation4 + $0xc10] sm:$0xff] }
 0x546   :  { %5899 = vmatpush1.bf16.msra.mxu0 %v15589_v38  ;;  %5736 = vmatprep.subr.bf16.mxu1 %v15596_v53  ;;  %v1288_v38 = vld [vmem:[#allocation4 + $0xc30] sm:$0xff]  ;;  %v1285_v53 = vld [vmem:[#allocation4 + $0xc18] sm:$0xff] }
 0x547   :  { %5900 = vmatprep.subr.bf16.mxu0 %v15598_v25  ;;  %v1289_v25 = vld [vmem:[#allocation4 + $0xc38] sm:$0xff]  ;;  %v15652_v52 = vcombine.high %v1284_v28, %v1288_v38  ;;  %v15651_v20 = vcombine.low %v1284_v28, %v1288_v38 }
 0x548   :  { %v15654_v60 = vcombine.high %v1285_v53, %v1289_v25  ;;  %v15653_v59 = vcombine.low %v1285_v53, %v1289_v25 }
 0x549   :  { %5737 = vmatpush1.bf16.msra.mxu1 %v15595_v30  ;;  %v1292_v30 = vld [vmem:[#allocation4 + $0xc50] sm:$0xff] }
 0x54a   :  { %5901 = vmatpush1.bf16.msra.mxu0 %v15597_v24  ;;  %5747 = vmatprep.subr.bf16.mxu1 %v15604_v54  ;;  %v1296_v24 = vld [vmem:[#allocation4 + $0xc70] sm:$0xff]  ;;  %v1293_v54 = vld [vmem:[#allocation4 + $0xc58] sm:$0xff] }
 0x54b   :  { %5911 = vmatprep.subr.bf16.mxu0 %v15606_v55  ;;  %v1297_v55 = vld [vmem:[#allocation4 + $0xc78] sm:$0xff]  ;;  %v15659_v6 = vcombine.low %v1292_v30, %v1296_v24 }
 0x54c   :  { %5739 = vmatmul.mubr.bf16.vlgmr.msra.gmra.mrb[16].mxu1 %v19063_v9  ;;  %v15662_v44 = vcombine.high %v1293_v54, %v1297_v55 }
 0x54d   :  { %5903 = vmatmul.mubr.bf16.vlgmr.msra.gmra.mrb[12].mxu0 %v19063_v9  ;;  %5748 = vmatpush1.bf16.msra.mxu1 %v15603_v41  ;;  %v15621_v9 = vcombine.low %v1253_v10, %v1257_v16  ;;  %v15660_v41 = vcombine.high %v1292_v30, %v1296_v24 }
 0x54e   :  { %5779 = vmatprep.mubr.bf16.mxu1 %v19076_v0  ;;  %5912 = vmatpush1.bf16.msra.mxu0 %v15605_v2  ;;  %v1304_v2 = vld [vmem:[#allocation4 + $0xcb0] sm:$0xff] }
 0x54f   :  { %5943 = vmatprep.mubr.bf16.mxu0 %v19076_v0  ;;  %5749 = vmatprep.subr.bf16.mxu1 %v15612_v3  ;;  %v15627_v0 = vcombine.low %v1260_v48, %v1264_v22  ;;  %v1301_v3 = vld [vmem:[#allocation4 + $0xc98] sm:$0xff]  ;;  %v15668_v10 = vcombine.high %v1300_v1, %v1304_v2  ;;  %v15667_v48 = vcombine.low %v1300_v1, %v1304_v2 }
 0x550   :  { %5913 = vmatprep.subr.bf16.mxu0 %v15614_v8  ;;  %v15661_v8 = vcombine.low %v1293_v54, %v1297_v55  ;;  %v15670_v16 = vcombine.high %v1301_v3, %v1305_v5  ;;  %v15669_v22 = vcombine.low %v1301_v3, %v1305_v5 }
 0x551   :  { %5750 = vmatpush1.bf16.msra.mxu1 %v15611_v17  ;;  %v1308_v17 = vld [vmem:[#allocation4 + $0xcd0] sm:$0xff] }
 0x552   :  { %5914 = vmatpush1.bf16.msra.mxu0 %v15613_v14  ;;  %5751 = vmatprep.subr.bf16.mxu1 %v15620_v18  ;;  %v1312_v14 = vld [vmem:[#allocation4 + $0xcf0] sm:$0xff]  ;;  %v1309_v18 = vld [vmem:[#allocation4 + $0xcd8] sm:$0xff] }
 0x553   :  { %5915 = vmatprep.subr.bf16.mxu0 %v15622_v15  ;;  %v1313_v15 = vld [vmem:[#allocation4 + $0xcf8] sm:$0xff]  ;;  %v15676_v7 = vcombine.high %v1308_v17, %v1312_v14  ;;  %v15675_v57 = vcombine.low %v1308_v17, %v1312_v14 }
 0x554   :  { %v15678_v23 = vcombine.high %v1309_v18, %v1313_v15  ;;  %v15677_v39 = vcombine.low %v1309_v18, %v1313_v15 }
 0x555   :  { %5752 = vmatpush1.bf16.msra.mxu1 %v15619_v34  ;;  %v1316_v34 = vld [vmem:[#allocation4 + $0xd10] sm:$0xff] }
 0x556   :  { %5916 = vmatpush1.bf16.msra.mxu0 %v15621_v9  ;;  %5753 = vmatprep.subr.bf16.mxu1 %v15628_v35  ;;  %v1320_v9 = vld [vmem:[#allocation4 + $0xd30] sm:$0xff]  ;;  %v1317_v35 = vld [vmem:[#allocation4 + $0xd18] sm:$0xff] }
 0x557   :  { %5917 = vmatprep.subr.bf16.mxu0 %v15630_v29  ;;  %v1321_v29 = vld [vmem:[#allocation4 + $0xd38] sm:$0xff]  ;;  %v15684_v40 = vcombine.high %v1316_v34, %v1320_v9  ;;  %v15683_v45 = vcombine.low %v1316_v34, %v1320_v9 }
 0x558   :  { %v15686_v42 = vcombine.high %v1317_v35, %v1321_v29  ;;  %v15685_v46 = vcombine.low %v1317_v35, %v1321_v29 }
 0x559   :  { %5754 = vmatpush1.bf16.msra.mxu1 %v15627_v0  ;;  %v1324_v0 = vld [vmem:[#allocation4 + $0xd50] sm:$0xff] }
 0x55a   :  { %5918 = vmatpush1.bf16.msra.mxu0 %v15629_v56  ;;  %5755 = vmatprep.subr.bf16.mxu1 %v15636_v13  ;;  %v1328_v56 = vld [vmem:[#allocation4 + $0xd70] sm:$0xff]  ;;  %v1325_v13 = vld [vmem:[#allocation4 + $0xd58] sm:$0xff] }
 0x55b   :  { %5919 = vmatprep.subr.bf16.mxu0 %v15638_v26  ;;  %v1329_v26 = vld [vmem:[#allocation4 + $0xd78] sm:$0xff]  ;;  %v15692_v50 = vcombine.high %v1324_v0, %v1328_v56  ;;  %v15691_v28 = vcombine.low %v1324_v0, %v1328_v56 }
 0x55c   :  { %v15694_v33 = vcombine.high %v1325_v13, %v1329_v26  ;;  %v15693_v38 = vcombine.low %v1325_v13, %v1329_v26  ;;  %v1377_v0 = vld [vmem:[#allocation4 + $0xef8] sm:$0xff]  ;;  %v1380_v26 = vld [vmem:[#allocation4 + $0xf10] sm:$0xff] }
 0x55d   :  { %5756 = vmatpush1.bf16.msra.mxu1 %v15635_v51  ;;  %v1332_v51 = vld [vmem:[#allocation4 + $0xd90] sm:$0xff] }
 0x55e   :  { %5920 = vmatpush1.bf16.msra.mxu0 %v15637_v4  ;;  %5757 = vmatprep.subr.bf16.mxu1 %v15644_v12  ;;  %v1336_v4 = vld [vmem:[#allocation4 + $0xdb0] sm:$0xff]  ;;  %v1333_v12 = vld [vmem:[#allocation4 + $0xd98] sm:$0xff] }
 0x55f   :  { %5921 = vmatprep.subr.bf16.mxu0 %v15646_v27  ;;  %v1337_v27 = vld [vmem:[#allocation4 + $0xdb8] sm:$0xff]  ;;  %v15700_v53 = vcombine.high %v1332_v51, %v1336_v4  ;;  %v15699_v30 = vcombine.low %v1332_v51, %v1336_v4 }
 0x560   :  { %v15702_v25 = vcombine.high %v1333_v12, %v1337_v27  ;;  %v15701_v24 = vcombine.low %v1333_v12, %v1337_v27 }
 0x561   :  { %5758 = vmatpush1.bf16.msra.mxu1 %v15643_v32  ;;  %v1340_v32 = vld [vmem:[#allocation4 + $0xdd0] sm:$0xff] }
 0x562   :  { %5922 = vmatpush1.bf16.msra.mxu0 %v15645_v43  ;;  %5759 = vmatprep.subr.bf16.mxu1 %v15652_v52  ;;  %v1344_v43 = vld [vmem:[#allocation4 + $0xdf0] sm:$0xff]  ;;  %v1341_v52 = vld [vmem:[#allocation4 + $0xdd8] sm:$0xff] }
 0x563   :  { %5923 = vmatprep.subr.bf16.mxu0 %v15654_v60  ;;  %v1345_v60 = vld [vmem:[#allocation4 + $0xdf8] sm:$0xff]  ;;  %v15708_v54 = vcombine.high %v1340_v32, %v1344_v43  ;;  %v15707_v1 = vcombine.low %v1340_v32, %v1344_v43 }
 0x564   :  { %v15710_v55 = vcombine.high %v1341_v52, %v1345_v60  ;;  %v15709_v2 = vcombine.low %v1341_v52, %v1345_v60  ;;  %v1396_v60 = vld [vmem:[#allocation4 + $0xf90] sm:$0xff] }
 0x565   :  { %5760 = vmatpush1.bf16.msra.mxu1 %v15651_v20  ;;  %v1348_v20 = vld [vmem:[#allocation4 + $0xe10] sm:$0xff] }
 0x566   :  { %5924 = vmatpush1.bf16.msra.mxu0 %v15653_v59  ;;  %5761 = vmatprep.subr.bf16.mxu1 %v15660_v41  ;;  %v1352_v59 = vld [vmem:[#allocation4 + $0xe30] sm:$0xff]  ;;  %v1349_v41 = vld [vmem:[#allocation4 + $0xe18] sm:$0xff] }
 0x567   :  { %5925 = vmatprep.subr.bf16.mxu0 %v15662_v44  ;;  %v1353_v44 = vld [vmem:[#allocation4 + $0xe38] sm:$0xff]  ;;  %v15716_v3 = vcombine.high %v1348_v20, %v1352_v59  ;;  %v15715_v17 = vcombine.low %v1348_v20, %v1352_v59 }
 0x568   :  { %v15718_v5 = vcombine.high %v1349_v41, %v1353_v44  ;;  %v15717_v14 = vcombine.low %v1349_v41, %v1353_v44  ;;  %v2006_v59 = vld [vmem:[#allocation2 + $0x1] ss:$8 sm:$0xf] }
 0x569   :  { %5762 = vmatpush1.bf16.msra.mxu1 %v15659_v6  ;;  %v1356_v6 = vld [vmem:[#allocation4 + $0xe50] sm:$0xff] }
 0x56a   :  { %5926 = vmatpush1.bf16.msra.mxu0 %v15661_v8  ;;  %5763 = vmatprep.subr.bf16.mxu1 %v15668_v10  ;;  %v1360_v8 = vld [vmem:[#allocation4 + $0xe70] sm:$0xff]  ;;  %v1357_v10 = vld [vmem:[#allocation4 + $0xe58] sm:$0xff] }
 0x56b   :  { %5927 = vmatprep.subr.bf16.mxu0 %v15670_v16  ;;  %v1361_v16 = vld [vmem:[#allocation4 + $0xe78] sm:$0xff]  ;;  %v15724_v18 = vcombine.high %v1356_v6, %v1360_v8  ;;  %v15723_v34 = vcombine.low %v1356_v6, %v1360_v8 }
 0x56c   :  { %v15726_v15 = vcombine.high %v1357_v10, %v1361_v16  ;;  %v15725_v9 = vcombine.low %v1357_v10, %v1361_v16  ;;  %v2007_v41 = vld [vmem:[#allocation2 + $0x1] ss:$8 sm:$0xf0] }
 0x56d   :  { %5764 = vmatpush1.bf16.msra.mxu1 %v15667_v48  ;;  %v1364_v48 = vld [vmem:[#allocation4 + $0xe90] sm:$0xff]  ;;  %v19137_v8 = vor.u32 %v2007_v41, %v2006_v59 }
 0x56e   :  { %5928 = vmatpush1.bf16.msra.mxu0 %v15669_v22  ;;  %5765 = vmatprep.subr.bf16.mxu1 %v15676_v7  ;;  %v1368_v22 = vld [vmem:[#allocation4 + $0xeb0] sm:$0xff]  ;;  %v1365_v7 = vld [vmem:[#allocation4 + $0xe98] sm:$0xff] }
 0x56f   :  { %5929 = vmatprep.subr.bf16.mxu0 %v15678_v23  ;;  %v1369_v23 = vld [vmem:[#allocation4 + $0xeb8] sm:$0xff]  ;;  %v15732_v35 = vcombine.high %v1364_v48, %v1368_v22 }
 0x570   :  { %v15734_v29 = vcombine.high %v1365_v7, %v1369_v23  ;;  %v15733_v56 = vcombine.low %v1365_v7, %v1369_v23 }
 0x571   :  { %5766 = vmatpush1.bf16.msra.mxu1 %v15675_v57  ;;  %v1372_v57 = vld [vmem:[#allocation4 + $0xed0] sm:$0xff] }
 0x572   :  { %5930 = vmatpush1.bf16.msra.mxu0 %v15677_v39  ;;  %5767 = vmatprep.subr.bf16.mxu1 %v15684_v40  ;;  %v1376_v39 = vld [vmem:[#allocation4 + $0xef0] sm:$0xff]  ;;  %v15731_v40 = vcombine.low %v1364_v48, %v1368_v22  ;;  %v1417_v48 = vld [vmem:[#allocation4 + $0x1038] sm:$0xff]  ;;  %v2744_v22 = vrot.slane %v19137_v8, %v18746_v61 }
 0x573   :  { %5931 = vmatprep.subr.bf16.mxu0 %v15686_v42  ;;  %v1373_v42 = vld [vmem:[#allocation4 + $0xed8] sm:$0xff]  ;;  %v15740_v13 = vcombine.high %v1372_v57, %v1376_v39  ;;  %v15739_v51 = vcombine.low %v1372_v57, %v1376_v39  ;;  %v1424_v57 = vld [vmem:[#allocation4 + $0x1070] sm:$0xff] }
 0x574   :  { %v15741_v4 = vcombine.low %v1373_v42, %v1377_v0 }
 0x575   :  { %5768 = vmatpush1.bf16.msra.mxu1 %v15683_v45  ;;  %v1384_v45 = vld [vmem:[#allocation4 + $0xf30] sm:$0xff] }
 0x576   :  { %5932 = vmatpush1.bf16.msra.mxu0 %v15685_v46  ;;  %5769 = vmatprep.subr.bf16.mxu1 %v15692_v50  ;;  %v15742_v46 = vcombine.high %v1373_v42, %v1377_v0  ;;  %v1381_v50 = vld [vmem:[#allocation4 + $0xf18] sm:$0xff]  ;;  %v15748_v12 = vcombine.high %v1380_v26, %v1384_v45  ;;  %v15747_v32 = vcombine.low %v1380_v26, %v1384_v45 }
 0x577   :  { %5933 = vmatprep.subr.bf16.mxu0 %v15694_v33  ;;  %v1385_v33 = vld [vmem:[#allocation4 + $0xf38] sm:$0xff] }
 0x578   :  { %v15750_v27 = vcombine.high %v1381_v50, %v1385_v33  ;;  %v1421_v42 = vld [vmem:[#allocation4 + $0x1058] sm:$0xff] }
 0x579   :  { %5770 = vmatpush1.bf16.msra.mxu1 %v15691_v28  ;;  %v1388_v28 = vld [vmem:[#allocation4 + $0xf50] sm:$0xff]  ;;  %v1425_v0 = vld [vmem:[#allocation4 + $0x1078] sm:$0xff] }
 0x57a   :  { %5934 = vmatpush1.bf16.msra.mxu0 %v15693_v38  ;;  %5771 = vmatprep.subr.bf16.mxu1 %v15700_v53  ;;  %v1392_v38 = vld [vmem:[#allocation4 + $0xf70] sm:$0xff]  ;;  %v1389_v53 = vld [vmem:[#allocation4 + $0xf58] sm:$0xff] }
 0x57b   :  { %5935 = vmatprep.subr.bf16.mxu0 %v15702_v25  ;;  %v1393_v25 = vld [vmem:[#allocation4 + $0xf78] sm:$0xff]  ;;  %v15756_v43 = vcombine.high %v1388_v28, %v1392_v38 }
 0x57c   :  { %v15758_v52 = vcombine.high %v1389_v53, %v1393_v25 }
 0x57d   :  { %5772 = vmatpush1.bf16.msra.mxu1 %v15699_v30  ;;  %v1400_v30 = vld [vmem:[#allocation4 + $0xfb0] sm:$0xff] }
 0x57e   :  { %5936 = vmatpush1.bf16.msra.mxu0 %v15701_v24  ;;  %5773 = vmatprep.subr.bf16.mxu1 %v15708_v54  ;;  %v1397_v24 = vld [vmem:[#allocation4 + $0xf98] sm:$0xff]  ;;  %v15764_v20 = vcombine.high %v1396_v60, %v1400_v30  ;;  %v15763_v6 = vcombine.low %v1396_v60, %v1400_v30  ;;  %v1436_v30 = vld [vmem:[#allocation4 + $0x10d0] sm:$0xff] }
 0x57f   :  { %5937 = vmatprep.subr.bf16.mxu0 %v15710_v55  ;;  %v1401_v54 = vld [vmem:[#allocation4 + $0xfb8] sm:$0xff]  ;;  %v15757_v55 = vcombine.low %v1389_v53, %v1393_v25 }
 0x580   :  { %v15766_v44 = vcombine.high %v1397_v24, %v1401_v54  ;;  %v15765_v10 = vcombine.low %v1397_v24, %v1401_v54  ;;  %v1429_v53 = vld [vmem:[#allocation4 + $0x1098] sm:$0xff]  ;;  %v1440_v24 = vld [vmem:[#allocation4 + $0x10f0] sm:$0xff] }
 0x581   :  { %5774 = vmatpush1.bf16.msra.mxu1 %v15707_v1  ;;  %v1404_v1 = vld [vmem:[#allocation4 + $0xfd0] sm:$0xff]  ;;  %v1433_v25 = vld [vmem:[#allocation4 + $0x10b8] sm:$0xff]  ;;  %v15804_v59 = vcombine.high %v1436_v30, %v1440_v24 }
 0x582   :  { %5938 = vmatpush1.bf16.msra.mxu0 %v15709_v2  ;;  %5775 = vmatprep.subr.bf16.mxu1 %v15716_v3  ;;  %v1408_v2 = vld [vmem:[#allocation4 + $0xff0] sm:$0xff]  ;;  %v1405_v3 = vld [vmem:[#allocation4 + $0xfd8] sm:$0xff]  ;;  %v15798_v60 = vcombine.high %v1429_v53, %v1433_v25 }
 0x583   :  { %5939 = vmatprep.subr.bf16.mxu0 %v15718_v5  ;;  %v1409_v5 = vld [vmem:[#allocation4 + $0xff8] sm:$0xff]  ;;  %v15772_v16 = vcombine.high %v1404_v1, %v1408_v2  ;;  %v15771_v7 = vcombine.low %v1404_v1, %v1408_v2  ;;  %v1444_v1 = vld [vmem:[#allocation4 + $0x1110] sm:$0xff] }
 0x584   :  { %v15773_v23 = vcombine.low %v1405_v3, %v1409_v5  ;;  %v1437_v54 = vld [vmem:[#allocation4 + $0x10d8] sm:$0xff]  ;;  %v1448_v2 = vld [vmem:[#allocation4 + $0x1130] sm:$0xff] }
 0x585   :  { %5776 = vmatpush1.bf16.msra.mxu1 %v15715_v17  ;;  %v15774_v17 = vcombine.high %v1405_v3, %v1409_v5  ;;  %v1445_v3 = vld [vmem:[#allocation4 + $0x1118] sm:$0xff] }
 0x586   :  { %5940 = vmatpush1.bf16.msra.mxu0 %v15717_v14  ;;  %5777 = vmatprep.subr.bf16.mxu1 %v15724_v18  ;;  %v1412_v14 = vld [vmem:[#allocation4 + $0x1010] sm:$0xff]  ;;  %v1449_v5 = vld [vmem:[#allocation4 + $0x1138] sm:$0xff] }
 0x587   :  { %5941 = vmatprep.subr.bf16.mxu0 %v15726_v15  ;;  %v1416_v18 = vld [vmem:[#allocation4 + $0x1030] sm:$0xff]  ;;  %v1413_v15 = vld [vmem:[#allocation4 + $0x1018] sm:$0xff] }
 0x588   :  { %v15779_v45 = vcombine.low %v1412_v14, %v1416_v18 }
 0x589   :  { %5778 = vmatpush1.bf16.msra.mxu1 %v15723_v34  ;;  %v15780_v34 = vcombine.high %v1412_v14, %v1416_v18  ;;  %v15814_v14 = vcombine.high %v1445_v3, %v1449_v5  ;;  %v1452_v18 = vld [vmem:[#allocation4 + $0x1150] sm:$0xff] }
 0x58a   :  { %5942 = vmatpush1.bf16.msra.mxu0 %v15725_v9  ;;  %5788 = vmatprep.subr.bf16.mxu1 %v15732_v35  ;;  %v15782_v35 = vcombine.high %v1413_v15, %v1417_v48 }
 0x58b   :  { %5952 = vmatprep.subr.bf16.mxu0 %v15734_v29  ;;  %v1420_v29 = vld [vmem:[#allocation4 + $0x1050] sm:$0xff] }
 0x58c   :  { %5780 = vmatmul.mubr.bf16.vlgmr.msra.gmra.mrb[16].mxu1 %v19098_v49 }
 0x58d   :  { %5944 = vmatmul.mubr.bf16.vlgmr.msra.gmra.mrb[12].mxu0 %v19098_v49  ;;  %5789 = vmatpush1.bf16.msra.mxu1 %v15731_v40  ;;  %v15749_v49 = vcombine.low %v1381_v50, %v1385_v33  ;;  %v15781_v33 = vcombine.low %v1413_v15, %v1417_v48  ;;  %v1456_v15 = vld [vmem:[#allocation4 + $0x1170] sm:$0xff]  ;;  %v1453_v48 = vld [vmem:[#allocation4 + $0x1158] sm:$0xff] }
 0x58e   :  { %5820 = vmatprep.mubr.bf16.mxu1 %v19100_v36  ;;  %5953 = vmatpush1.bf16.msra.mxu0 %v15733_v56 }
 0x58f   :  { %5984 = vmatprep.mubr.bf16.mxu0 %v19100_v36  ;;  %5790 = vmatprep.subr.bf16.mxu1 %v15740_v13  ;;  %v15755_v36 = vcombine.low %v1388_v28, %v1392_v38  ;;  %v1428_v28 = vld [vmem:[#allocation4 + $0x1090] sm:$0xff] }
 0x590   :  { %5954 = vmatprep.subr.bf16.mxu0 %v15742_v46  ;;  %v1432_v38 = vld [vmem:[#allocation4 + $0x10b0] sm:$0xff] }
 0x591   :  { %5791 = vmatpush1.bf16.msra.mxu1 %v15739_v51  ;;  %v15788_v51 = vcombine.high %v1420_v29, %v1424_v57 }
 0x592   :  { %5955 = vmatpush1.bf16.msra.mxu0 %v15741_v4  ;;  %5792 = vmatprep.subr.bf16.mxu1 %v15748_v12 }
 0x593   :  { %5956 = vmatprep.subr.bf16.mxu0 %v15750_v27  ;;  %v15790_v27 = vcombine.high %v1421_v42, %v1425_v0 }
 0x595   :  { %5793 = vmatpush1.bf16.msra.mxu1 %v15747_v32  ;;  %v15787_v32 = vcombine.low %v1420_v29, %v1424_v57  ;;  %v1460_v29 = vld [vmem:[#allocation4 + $0x1190] sm:$0xff] }
 0x596   :  { %5957 = vmatpush1.bf16.msra.mxu0 %v15749_v49  ;;  %5794 = vmatprep.subr.bf16.mxu1 %v15756_v43  ;;  %v15789_v49 = vcombine.low %v1421_v42, %v1425_v0  ;;  %v15796_v43 = vcombine.high %v1428_v28, %v1432_v38  ;;  %v1464_v57 = vld [vmem:[#allocation4 + $0x11b0] sm:$0xff]  ;;  %v1461_v42 = vld [vmem:[#allocation4 + $0x1198] sm:$0xff] }
 0x597   :  { %5958 = vmatprep.subr.bf16.mxu0 %v15758_v52  ;;  %v1465_v0 = vld [vmem:[#allocation4 + $0x11b8] sm:$0xff] }
 0x599   :  { %5795 = vmatpush1.bf16.msra.mxu1 %v15755_v36  ;;  %v1441_v36 = vld [vmem:[#allocation4 + $0x10f8] sm:$0xff] }
 0x59a   :  { %5959 = vmatpush1.bf16.msra.mxu0 %v15757_v55  ;;  %5796 = vmatprep.subr.bf16.mxu1 %v15764_v20  ;;  %v15795_v55 = vcombine.low %v1428_v28, %v1432_v38  ;;  %v15797_v20 = vcombine.low %v1429_v53, %v1433_v25  ;;  %v15829_v28 = vcombine.low %v1461_v42, %v1465_v0  ;;  %v1476_v25 = vld [vmem:[#allocation4 + $0x1210] sm:$0xff] }
 0x59b   :  { %5960 = vmatprep.subr.bf16.mxu0 %v15766_v44  ;;  %v15806_v44 = vcombine.high %v1437_v54, %v1441_v36 }
 0x59d   :  { %5797 = vmatpush1.bf16.msra.mxu1 %v15763_v6  ;;  %v15803_v6 = vcombine.low %v1436_v30, %v1440_v24 }
 0x59e   :  { %5961 = vmatpush1.bf16.msra.mxu0 %v15765_v10  ;;  %5798 = vmatprep.subr.bf16.mxu1 %v15772_v16  ;;  %v15805_v10 = vcombine.low %v1437_v54, %v1441_v36  ;;  %v15812_v16 = vcombine.high %v1444_v1, %v1448_v2  ;;  %v1484_v54 = vld [vmem:[#allocation4 + $0x1250] sm:$0xff] }
 0x59f   :  { %v19141_v9 = vpop.f32.mrb[12].mxu1  ;;  %5962 = vmatprep.subr.bf16.mxu0 %v15774_v17  ;;  %v1488_v36 = vld [vmem:[#allocation4 + $0x1270] sm:$0xff] }
 0x5a0   :  { %v19143_v39 = vpop.f32.mrb[8].mxu0  ;;  %v5496_v40 = vpop.f32.mrb[13].mxu1 }
 0x5a1   :  { %v19145_v56 = vadd.f32 %v5496_v40, %v2744_v22  ;;  %v19147_v13 = vpop.f32.mrb[9].mxu0  ;;  %v5498_v26 = vpop.f32.mrb[14].mxu1  ;;  %5799 = vmatpush1.bf16.msra.mxu1 %v15771_v7  ;;  %v1457_v22 = vld [vmem:[#allocation4 + $0x1178] sm:$0xff]  ;;  %v15811_v7 = vcombine.low %v1444_v1, %v1448_v2  ;;  %v15852_v1 = vcombine.high %v1484_v54, %v1488_v36 }
 0x5a2   :  { %v5662_v46 = vpop.f32.mrb[10].mxu0  ;;  %5963 = vmatpush1.bf16.msra.mxu0 %v15773_v23  ;;  %v5499_v50 = vpop.f32.mrb[15].mxu1  ;;  %5800 = vmatprep.subr.bf16.mxu1 %v15780_v34  ;;  %v15813_v23 = vcombine.low %v1445_v3, %v1449_v5  ;;  %v15820_v34 = vcombine.high %v1452_v18, %v1456_v15  ;;  %v15819_v26 = vcombine.low %v1452_v18, %v1456_v15  ;;  %v1490_v3 = vld [vmem:[#allocation4 + $0x1280] sm:$0xff] }
 0x5a3   :  { %v6002_v4 = vmul.f32 0.044715, %v19145_v56  ;;  %v5663_v12 = vpop.f32.mrb[11].mxu0  ;;  %5964 = vmatprep.subr.bf16.mxu0 %v15782_v35  ;;  %v15822_v35 = vcombine.high %v1453_v48, %v1457_v22  ;;  %v15828_v46 = vcombine.high %v1460_v29, %v1464_v57  ;;  %v15830_v50 = vcombine.high %v1461_v42, %v1465_v0  ;;  %v1494_v5 = vld [vmem:[#allocation4 + $0x12a0] sm:$0xff] }
 0x5a4   :  { %v1473_v12 = vld [vmem:[#allocation4 + $0x11f8] sm:$0xff]  ;;  %v15856_v18 = vcombine.high %v1490_v3, %v1494_v5  ;;  %v5994_v15 = vmul.f32 0.5, %v19145_v56  ;;  %v1506_v42 = vld [vmem:[#allocation4 + $0x1300] sm:$0xff] }
 0x5a5   :  { %5801 = vmatpush1.bf16.msra.mxu1 %v15779_v45  ;;  %v6010_v52 = vmul.f32 %v19145_v56, %v6002_v4  ;;  %v15821_v45 = vcombine.low %v1453_v48, %v1457_v22  ;;  %v1469_v4 = vld [vmem:[#allocation4 + $0x11d8] sm:$0xff]  ;;  %v1510_v0 = vld [vmem:[#allocation4 + $0x1320] sm:$0xff] }
 0x5a6   :  { %5965 = vmatpush1.bf16.msra.mxu0 %v15781_v33  ;;  %5802 = vmatprep.subr.bf16.mxu1 %v15788_v51  ;;  %v1468_v33 = vld [vmem:[#allocation4 + $0x11d0] sm:$0xff]  ;;  %v15838_v53 = vcombine.high %v1469_v4, %v1473_v12 }
 0x5a7   :  { %5966 = vmatprep.subr.bf16.mxu0 %v15790_v27  ;;  %v6018_v41 = vmul.f32 %v19145_v56, %v6010_v52  ;;  %v1472_v51 = vld [vmem:[#allocation4 + $0x11f0] sm:$0xff]  ;;  %v15827_v27 = vcombine.low %v1460_v29, %v1464_v57  ;;  %v1503_v29 = vld [vmem:[#allocation4 + $0x12e8] sm:$0xff] }
 0x5a8   :  { %v15836_v38 = vcombine.high %v1468_v33, %v1472_v51  ;;  %v15835_v52 = vcombine.low %v1468_v33, %v1472_v51  ;;  %v15872_v51 = vcombine.high %v1506_v42, %v1510_v0 }
 0x5a9   :  { %5803 = vmatpush1.bf16.msra.mxu1 %v15787_v32  ;;  %v6026_v17 = vadd.f32 %v19145_v56, %v6018_v41  ;;  %v1480_v32 = vld [vmem:[#allocation4 + $0x1230] sm:$0xff] }
 0x5aa   :  { %5967 = vmatpush1.bf16.msra.mxu0 %v15789_v49  ;;  %5804 = vmatprep.subr.bf16.mxu1 %v15796_v43  ;;  %v1477_v49 = vld [vmem:[#allocation4 + $0x1218] sm:$0xff]  ;;  %v15844_v30 = vcombine.high %v1476_v25, %v1480_v32  ;;  %v15843_v41 = vcombine.low %v1476_v25, %v1480_v32 }
 0x5ab   :  { %5968 = vmatprep.subr.bf16.mxu0 %v15798_v60  ;;  %v6034_v40 = vmul.f32 0.7978846, %v6026_v17  ;;  %v1481_v43 = vld [vmem:[#allocation4 + $0x1238] sm:$0xff]  ;;  %v15837_v60 = vcombine.low %v1469_v4, %v1473_v12  ;;  %v15851_v17 = vcombine.low %v1484_v54, %v1488_v36  ;;  %v1514_v12 = vld [vmem:[#allocation4 + $0x1340] sm:$0xff] }
 0x5ac   :  { %v15846_v24 = vcombine.high %v1477_v49, %v1481_v43 }
 0x5ad   :  { %5805 = vmatpush1.bf16.msra.mxu1 %v15795_v55  ;;  %18449 = vtanh.f32 %v6034_v40  ;;  %v1485_v55 = vld [vmem:[#allocation4 + $0x1258] sm:$0xff] }
 0x5ae   :  { %5969 = vmatpush1.bf16.msra.mxu0 %v15797_v20  ;;  %5806 = vmatprep.subr.bf16.mxu1 %v15804_v59  ;;  %v1489_v20 = vld [vmem:[#allocation4 + $0x1278] sm:$0xff] }
 0x5af   :  { %5970 = vmatprep.subr.bf16.mxu0 %v15806_v44  ;;  %v15845_v44 = vcombine.low %v1477_v49, %v1481_v43  ;;  %v15854_v2 = vcombine.high %v1485_v55, %v1489_v20  ;;  %v1522_v49 = vld [vmem:[#allocation4 + $0x1380] sm:$0xff] }
 0x5b0   :  { %v1526_v43 = vld [vmem:[#allocation4 + $0x13a0] sm:$0xff] }
 0x5b1   :  { %5807 = vmatpush1.bf16.msra.mxu1 %v15803_v6  ;;  %v1491_v6 = vld [vmem:[#allocation4 + $0x1288] sm:$0xff]  ;;  %v15888_v54 = vcombine.high %v1522_v49, %v1526_v43 }
 0x5b2   :  { %5971 = vmatpush1.bf16.msra.mxu0 %v15805_v10  ;;  %5808 = vmatprep.subr.bf16.mxu1 %v15812_v16  ;;  %v1495_v10 = vld [vmem:[#allocation4 + $0x12a8] sm:$0xff] }
 0x5b3   :  { %5972 = vmatprep.subr.bf16.mxu0 %v15814_v14  ;;  %v15853_v14 = vcombine.low %v1485_v55, %v1489_v20  ;;  %v15858_v48 = vcombine.high %v1491_v6, %v1495_v10  ;;  %v15857_v57 = vcombine.low %v1491_v6, %v1495_v10  ;;  %v1530_v55 = vld [vmem:[#allocation4 + $0x13c0] sm:$0xff] }
 0x5b4   :  { %v1534_v20 = vld [vmem:[#allocation4 + $0x13e0] sm:$0xff] }
 0x5b5   :  { %5809 = vmatpush1.bf16.msra.mxu1 %v15811_v7  ;;  %v1498_v7 = vld [vmem:[#allocation4 + $0x12c0] sm:$0xff] }
 0x5b6   :  { %5973 = vmatpush1.bf16.msra.mxu0 %v15813_v23  ;;  %5810 = vmatprep.subr.bf16.mxu1 %v15820_v34  ;;  %v1502_v23 = vld [vmem:[#allocation4 + $0x12e0] sm:$0xff]  ;;  %v15855_v34 = vcombine.low %v1490_v3, %v1494_v5  ;;  %v15896_v3 = vcombine.high %v1530_v55, %v1534_v20  ;;  %v2752_v5 = vrot.slane %v19137_v8, %v18752_v63 }
 0x5b7   :  { %5974 = vmatprep.subr.bf16.mxu0 %v15822_v35  ;;  %v18450_v59 = vpop.eup %18449  ;;  %v1499_v35 = vld [vmem:[#allocation4 + $0x12c8] sm:$0xff]  ;;  %v15864_v40 = vcombine.high %v1498_v7, %v1502_v23  ;;  %v1538_v10 = vld [vmem:[#allocation4 + $0x1400] sm:$0xff] }
 0x5b8   :  { %v6050_v16 = vadd.f32 1.0, %v18450_v59  ;;  %v15866_v56 = vcombine.high %v1499_v35, %v1503_v29  ;;  %v15865_v33 = vcombine.low %v1499_v35, %v1503_v29  ;;  %v1531_v59 = vld [vmem:[#allocation4 + $0x13c8] sm:$0xff]  ;;  %v1550_v35 = vld [vmem:[#allocation4 + $0x1460] sm:$0xff] }
 0x5b9   :  { %5811 = vmatpush1.bf16.msra.mxu1 %v15819_v26  ;;  %v1547_v29 = vld [vmem:[#allocation4 + $0x1448] sm:$0xff] }
 0x5ba   :  { %5975 = vmatpush1.bf16.msra.mxu0 %v15821_v45  ;;  %5812 = vmatprep.subr.bf16.mxu1 %v15828_v46  ;;  %v6058_v22 = vmul.f32 %v6050_v16, %v5994_v15  ;;  %v1507_v45 = vld [vmem:[#allocation4 + $0x1308] sm:$0xff]  ;;  %v1542_v16 = vld [vmem:[#allocation4 + $0x1420] sm:$0xff]  ;;  %v15895_v15 = vcombine.low %v1530_v55, %v1534_v20 }
 0x5bb   :  { %5976 = vmatprep.subr.bf16.mxu0 %v15830_v50  ;;  %v1511_v46 = vld [vmem:[#allocation4 + $0x1328] sm:$0xff]  ;;  %v15863_v50 = vcombine.low %v1498_v7, %v1502_v23  ;;  %v19168_v7 = vadd.f32 %v19147_v13, %v2752_v5  ;;  %v1554_v13 = vld [vmem:[#allocation4 + $0x1480] sm:$0xff] }
 0x5bc   :  { %v19155_v26 = vpack.c.bf16 %v6058_v22, %v6058_v22  ;;  %v15874_v4 = vcombine.high %v1507_v45, %v1511_v46  ;;  %v15904_v22 = vcombine.high %v1538_v10, %v1542_v16  ;;  %v1571_v55 = vld [vmem:[#allocation4 + $0x1508] sm:$0xff]  ;;  %v1578_v5 = vld [vmem:[#allocation4 + $0x1540] sm:$0xff] }
 0x5bd   :  { %5813 = vmatpush1.bf16.msra.mxu1 %v15827_v27  ;;  %v1518_v27 = vld [vmem:[#allocation4 + $0x1360] sm:$0xff]  ;;  %v1575_v20 = vld [vmem:[#allocation4 + $0x1528] sm:$0xff] }
 0x5be   :  { %5977 = vmatpush1.bf16.msra.mxu0 %v15829_v28  ;;  %5814 = vmatprep.subr.bf16.mxu1 %v15836_v38  ;;  %v1515_v28 = vld [vmem:[#allocation4 + $0x1348] sm:$0xff]  ;;  %v15880_v25 = vcombine.high %v1514_v12, %v1518_v27 }
 0x5bf   :  { %5978 = vmatprep.subr.bf16.mxu0 %v15838_v53  ;;  %v1519_v38 = vld [vmem:[#allocation4 + $0x1368] sm:$0xff]  ;;  %v15871_v53 = vcombine.low %v1506_v42, %v1510_v0 }
 0x5c0   :  { %v15882_v32 = vcombine.high %v1515_v28, %v1519_v38 }
 0x5c1   :  { %5815 = vmatpush1.bf16.msra.mxu1 %v15835_v52  ;;  %v1523_v52 = vld [vmem:[#allocation4 + $0x1388] sm:$0xff] }
 0x5c2   :  { %5979 = vmatpush1.bf16.msra.mxu0 %v15837_v60  ;;  %5816 = vmatprep.subr.bf16.mxu1 %v15844_v30  ;;  %v1527_v60 = vld [vmem:[#allocation4 + $0x13a8] sm:$0xff]  ;;  %v15879_v30 = vcombine.low %v1514_v12, %v1518_v27 }
 0x5c3   :  { %5980 = vmatprep.subr.bf16.mxu0 %v15846_v24  ;;  %v15881_v24 = vcombine.low %v1515_v28, %v1519_v38  ;;  %v15890_v36 = vcombine.high %v1523_v52, %v1527_v60 }
 0x5c5   :  { %5817 = vmatpush1.bf16.msra.mxu1 %v15843_v41  ;;  %v1535_v41 = vld [vmem:[#allocation4 + $0x13e8] sm:$0xff] }
 0x5c6   :  { %5981 = vmatpush1.bf16.msra.mxu0 %v15845_v44  ;;  %5818 = vmatprep.subr.bf16.mxu1 %v15852_v1  ;;  %v2740_v44 = vrot.slane %v19137_v8, %v18743_v58  ;;  %v15887_v1 = vcombine.low %v1522_v49, %v1526_v43  ;;  %v15898_v6 = vcombine.high %v1531_v59, %v1535_v41 }
 0x5c7   :  { %5982 = vmatprep.subr.bf16.mxu0 %v15854_v2  ;;  %v15889_v2 = vcombine.low %v1523_v52, %v1527_v60 }
 0x5c9   :  { %5819 = vmatpush1.bf16.msra.mxu1 %v15851_v17  ;;  %v1539_v17 = vld [vmem:[#allocation4 + $0x1408] sm:$0xff] }
 0x5ca   :  { %5983 = vmatpush1.bf16.msra.mxu0 %v15853_v14  ;;  %8674 = vmatprep.subr.bf16.mxu1 %v15856_v18  ;;  %v1543_v14 = vld [vmem:[#allocation4 + $0x1428] sm:$0xff]  ;;  %v19165_v18 = vadd.f32 %v19141_v9, %v2740_v44  ;;  %v15903_v9 = vcombine.low %v1538_v10, %v1542_v16 }
 0x5cb   :  { %8838 = vmatprep.subr.bf16.mxu0 %v15858_v48  ;;  %v15897_v48 = vcombine.low %v1531_v59, %v1535_v41  ;;  %v15906_v23 = vcombine.high %v1539_v17, %v1543_v14  ;;  %v15905_v42 = vcombine.low %v1539_v17, %v1543_v14  ;;  %v1579_v10 = vld [vmem:[#allocation4 + $0x1548] sm:$0xff] }
 0x5cc   :  { %5821 = vmatmul.mubr.bf16.vlgmr.msra.gmra.mrb[16].mxu1 %v19119_v21  ;;  %v1583_v16 = vld [vmem:[#allocation4 + $0x1568] sm:$0xff] }
 0x5cd   :  { %5985 = vmatmul.mubr.bf16.vlgmr.msra.gmra.mrb[12].mxu0 %v19119_v21  ;;  %8675 = vmatpush1.bf16.msra.mxu1 %v15855_v34  ;;  %v15873_v21 = vcombine.low %v1507_v45, %v1511_v46  ;;  %v1546_v34 = vld [vmem:[#allocation4 + $0x1440] sm:$0xff] }
 0x5ce   :  { %8706 = vmatprep.mubr.bf16.mxu1 %v19155_v26  ;;  %8839 = vmatpush1.bf16.msra.mxu0 %v15857_v57  ;;  %v1551_v57 = vld [vmem:[#allocation4 + $0x1468] sm:$0xff]  ;;  %v15912_v0 = vcombine.high %v1546_v34, %v1550_v35  ;;  %v1558_v46 = vld [vmem:[#allocation4 + $0x14a0] sm:$0xff] }
 0x5cf   :  { %8870 = vmatprep.mubr.bf16.mxu0 %v19155_v26  ;;  %8676 = vmatprep.subr.bf16.mxu1 %v15864_v40  ;;  %v6001_v40 = vmul.f32 0.044715, %v19165_v18  ;;  %v15914_v45 = vcombine.high %v1547_v29, %v1551_v57  ;;  %v15913_v12 = vcombine.low %v1547_v29, %v1551_v57  ;;  %v15920_v27 = vcombine.high %v1554_v13, %v1558_v46  ;;  %v1587_v29 = vld [vmem:[#allocation4 + $0x1588] sm:$0xff] }
 0x5d0   :  { %8840 = vmatprep.subr.bf16.mxu0 %v15866_v56  ;;  %v6004_v56 = vmul.f32 0.044715, %v19168_v7  ;;  %v15919_v43 = vcombine.low %v1554_v13, %v1558_v46  ;;  %v1591_v57 = vld [vmem:[#allocation4 + $0x15a8] sm:$0xff] }
 0x5d1   :  { %8677 = vmatpush1.bf16.msra.mxu1 %v15863_v50  ;;  %v1555_v50 = vld [vmem:[#allocation4 + $0x1488] sm:$0xff] }
 0x5d2   :  { %8841 = vmatpush1.bf16.msra.mxu0 %v15865_v33  ;;  %8678 = vmatprep.subr.bf16.mxu1 %v15872_v51  ;;  %v1559_v33 = vld [vmem:[#allocation4 + $0x14a8] sm:$0xff]  ;;  %v6009_v51 = vmul.f32 %v19165_v18, %v6001_v40  ;;  %v6012_v28 = vmul.f32 %v19168_v7, %v6004_v56  ;;  %v1594_v56 = vld [vmem:[#allocation4 + $0x15c0] sm:$0xff] }
 0x5d3   :  { %8842 = vmatprep.subr.bf16.mxu0 %v15874_v4  ;;  %v15911_v4 = vcombine.low %v1546_v34, %v1550_v35  ;;  %v15922_v38 = vcombine.high %v1555_v50, %v1559_v33  ;;  %v15921_v52 = vcombine.low %v1555_v50, %v1559_v33  ;;  %v1590_v34 = vld [vmem:[#allocation4 + $0x15a0] sm:$0xff]  ;;  %v1595_v13 = vld [vmem:[#allocation4 + $0x15c8] sm:$0xff]  ;;  %v15953_v33 = vcombine.low %v1587_v29, %v1591_v57 }
 0x5d4   :  { %v6017_v49 = vmul.f32 %v19165_v18, %v6009_v51  ;;  %v1599_v46 = vld [vmem:[#allocation4 + $0x15e8] sm:$0xff] }
 0x5d5   :  { %8679 = vmatpush1.bf16.msra.mxu1 %v15871_v53  ;;  %v1562_v53 = vld [vmem:[#allocation4 + $0x14c0] sm:$0xff] }
 0x5d6   :  { %8843 = vmatpush1.bf16.msra.mxu0 %v15873_v21  ;;  %8680 = vmatprep.subr.bf16.mxu1 %v15880_v25  ;;  %v1566_v21 = vld [vmem:[#allocation4 + $0x14e0] sm:$0xff]  ;;  %v1563_v25 = vld [vmem:[#allocation4 + $0x14c8] sm:$0xff]  ;;  %v6025_v59 = vadd.f32 %v19165_v18, %v6017_v49 }
 0x5d7   :  { %8844 = vmatprep.subr.bf16.mxu0 %v15882_v32  ;;  %v1567_v32 = vld [vmem:[#allocation4 + $0x14e8] sm:$0xff]  ;;  %v15928_v60 = vcombine.high %v1562_v53, %v1566_v21  ;;  %v15927_v41 = vcombine.low %v1562_v53, %v1566_v21  ;;  %v15961_v21 = vcombine.low %v1595_v13, %v1599_v46 }
 0x5d8   :  { %v15929_v44 = vcombine.low %v1563_v25, %v1567_v32  ;;  %v6033_v14 = vmul.f32 0.7978846, %v6025_v59 }
 0x5d9   :  { %8681 = vmatpush1.bf16.msra.mxu1 %v15879_v30  ;;  %v6020_v30 = vmul.f32 %v19168_v7, %v6012_v28  ;;  %v1603_v28 = vld [vmem:[#allocation4 + $0x1608] sm:$0xff] }
 0x5da   :  { %8845 = vmatpush1.bf16.msra.mxu0 %v15881_v24  ;;  %8682 = vmatprep.subr.bf16.mxu1 %v15888_v54  ;;  %v15930_v24 = vcombine.high %v1563_v25, %v1567_v32  ;;  %v1570_v54 = vld [vmem:[#allocation4 + $0x1500] sm:$0xff]  ;;  %18451 = vtanh.f32 %v6033_v14  ;;  %v5996_v14 = vmul.f32 0.5, %v19168_v7 }
 0x5db   :  { %8846 = vmatprep.subr.bf16.mxu0 %v15890_v36  ;;  %v1574_v36 = vld [vmem:[#allocation4 + $0x1520] sm:$0xff] }
 0x5dc   :  { %v15935_v17 = vcombine.low %v1570_v54, %v1574_v36 }
 0x5dd   :  { %8683 = vmatpush1.bf16.msra.mxu1 %v15887_v1  ;;  %v15936_v1 = vcombine.high %v1570_v54, %v1574_v36 }
 0x5de   :  { %8847 = vmatpush1.bf16.msra.mxu0 %v15889_v2  ;;  %8684 = vmatprep.subr.bf16.mxu1 %v15896_v3  ;;  %v6028_v2 = vadd.f32 %v19168_v7, %v6020_v30  ;;  %v15938_v3 = vcombine.high %v1571_v55, %v1575_v20  ;;  %v1615_v30 = vld [vmem:[#allocation4 + $0x1668] sm:$0xff] }
 0x5df   :  { %8848 = vmatprep.subr.bf16.mxu0 %v15898_v6  ;;  %v1582_v6 = vld [vmem:[#allocation4 + $0x1560] sm:$0xff] }
 0x5e0   :  { %v6036_v35 = vmul.f32 0.7978846, %v6028_v2  ;;  %v15943_v40 = vcombine.low %v1578_v5, %v1582_v6  ;;  %v1619_v2 = vld [vmem:[#allocation4 + $0x1688] sm:$0xff] }
 0x5e1   :  { %8685 = vmatpush1.bf16.msra.mxu1 %v15895_v15  ;;  %v15937_v15 = vcombine.low %v1571_v55, %v1575_v20 }
 0x5e2   :  { %8849 = vmatpush1.bf16.msra.mxu0 %v15897_v48  ;;  %8686 = vmatprep.subr.bf16.mxu1 %v15904_v22  ;;  %v15944_v48 = vcombine.high %v1578_v5, %v1582_v6  ;;  %v15946_v22 = vcombine.high %v1579_v10, %v1583_v16  ;;  %18453 = vtanh.f32 %v6036_v35  ;;  %v1631_v35 = vld [vmem:[#allocation4 + $0x16e8] sm:$0xff] }
 0x5e3   :  { %8850 = vmatprep.subr.bf16.mxu0 %v15906_v23  ;;  %v1586_v23 = vld [vmem:[#allocation4 + $0x1580] sm:$0xff] }
 0x5e4   :  { %v15951_v50 = vcombine.low %v1586_v23, %v1590_v34  ;;  %v18452_v32 = vpop.eup %18451 }
 0x5e5   :  { %8687 = vmatpush1.bf16.msra.mxu1 %v15903_v9  ;;  %v15945_v9 = vcombine.low %v1579_v10, %v1583_v16  ;;  %v6049_v20 = vadd.f32 1.0, %v18452_v32  ;;  %v1654_v32 = vld [vmem:[#allocation4 + $0x17a0] sm:$0xff] }
 0x5e6   :  { %8851 = vmatpush1.bf16.msra.mxu0 %v15905_v42  ;;  %8688 = vmatprep.subr.bf16.mxu1 %v15912_v0  ;;  %v15952_v42 = vcombine.high %v1586_v23, %v1590_v34  ;;  %v15954_v0 = vcombine.high %v1587_v29, %v1591_v57  ;;  %v1630_v23 = vld [vmem:[#allocation4 + $0x16e0] sm:$0xff] }
 0x5e7   :  { %8852 = vmatprep.subr.bf16.mxu0 %v15914_v45  ;;  %v1598_v45 = vld [vmem:[#allocation4 + $0x15e0] sm:$0xff] }
 0x5e8   :  { %v15960_v51 = vcombine.high %v1594_v56, %v1598_v45  ;;  %v15959_v53 = vcombine.low %v1594_v56, %v1598_v45  ;;  %v1635_v56 = vld [vmem:[#allocation4 + $0x1708] sm:$0xff] }
 0x5e9   :  { %8689 = vmatpush1.bf16.msra.mxu1 %v15911_v4  ;;  %v15962_v4 = vcombine.high %v1595_v13, %v1599_v46  ;;  %v1639_v45 = vld [vmem:[#allocation4 + $0x1728] sm:$0xff] }
 0x5ea   :  { %8853 = vmatpush1.bf16.msra.mxu0 %v15913_v12  ;;  %8690 = vmatprep.subr.bf16.mxu1 %v15920_v27  ;;  %v1602_v12 = vld [vmem:[#allocation4 + $0x1600] sm:$0xff] }
 0x5eb   :  { %8854 = vmatprep.subr.bf16.mxu0 %v15922_v38  ;;  %v1606_v27 = vld [vmem:[#allocation4 + $0x1620] sm:$0xff]  ;;  %v1607_v38 = vld [vmem:[#allocation4 + $0x1628] sm:$0xff] }
 0x5ec   :  { %v15968_v25 = vcombine.high %v1602_v12, %v1606_v27  ;;  %v15970_v49 = vcombine.high %v1603_v28, %v1607_v38  ;;  %v15967_v54 = vcombine.low %v1602_v12, %v1606_v27  ;;  %v15969_v36 = vcombine.low %v1603_v28, %v1607_v38  ;;  %v1643_v12 = vld [vmem:[#allocation4 + $0x1748] sm:$0xff] }
 0x5ed   :  { %8691 = vmatpush1.bf16.msra.mxu1 %v15919_v43  ;;  %v1610_v43 = vld [vmem:[#allocation4 + $0x1640] sm:$0xff]  ;;  %v1647_v27 = vld [vmem:[#allocation4 + $0x1768] sm:$0xff]  ;;  %v16001_v38 = vcombine.low %v1635_v56, %v1639_v45 }
 0x5ee   :  { %8855 = vmatpush1.bf16.msra.mxu0 %v15921_v52  ;;  %8692 = vmatprep.subr.bf16.mxu1 %v15928_v60  ;;  %v1614_v52 = vld [vmem:[#allocation4 + $0x1660] sm:$0xff]  ;;  %v1611_v60 = vld [vmem:[#allocation4 + $0x1648] sm:$0xff] }
 0x5ef   :  { %8856 = vmatprep.subr.bf16.mxu0 %v15930_v24  ;;  %v18454_v24 = vpop.eup %18453  ;;  %v15976_v55 = vcombine.high %v1610_v43, %v1614_v52  ;;  %v15978_v59 = vcombine.high %v1611_v60, %v1615_v30  ;;  %v15975_v6 = vcombine.low %v1610_v43, %v1614_v52  ;;  %v15977_v10 = vcombine.low %v1611_v60, %v1615_v30  ;;  %v1655_v43 = vld [vmem:[#allocation4 + $0x17a8] sm:$0xff] }
 0x5f0   :  { %v6052_v5 = vadd.f32 1.0, %v18454_v24  ;;  %v16009_v60 = vcombine.low %v1643_v12, %v1647_v27 }
 0x5f1   :  { %8693 = vmatpush1.bf16.msra.mxu1 %v15927_v41  ;;  %v1618_v41 = vld [vmem:[#allocation4 + $0x1680] sm:$0xff] }
 0x5f2   :  { %8857 = vmatpush1.bf16.msra.mxu0 %v15929_v44  ;;  %8694 = vmatprep.subr.bf16.mxu1 %v15936_v1  ;;  %v1622_v44 = vld [vmem:[#allocation4 + $0x16a0] sm:$0xff]  ;;  %v5993_v1 = vmul.f32 0.5, %v19165_v18  ;;  %v1627_v18 = vld [vmem:[#allocation4 + $0x16c8] sm:$0xff] }
 0x5f3   :  { %8858 = vmatprep.subr.bf16.mxu0 %v15938_v3  ;;  %v1623_v3 = vld [vmem:[#allocation4 + $0x16a8] sm:$0xff]  ;;  %v15983_v34 = vcombine.low %v1618_v41, %v1622_v44  ;;  %v15993_v46 = vcombine.low %v1627_v18, %v1631_v35 }
 0x5f4   :  { %v6057_v16 = vmul.f32 %v6049_v20, %v5993_v1  ;;  %v15985_v57 = vcombine.low %v1619_v2, %v1623_v3  ;;  %v1663_v20 = vld [vmem:[#allocation4 + $0x17e8] sm:$0xff] }
 0x5f5   :  { %8695 = vmatpush1.bf16.msra.mxu1 %v15935_v17  ;;  %v15984_v17 = vcombine.high %v1618_v41, %v1622_v44 }
 0x5f6   :  { %8859 = vmatpush1.bf16.msra.mxu0 %v15937_v15  ;;  %8696 = vmatprep.subr.bf16.mxu1 %v15944_v48  ;;  %v15986_v15 = vcombine.high %v1619_v2, %v1623_v3  ;;  %v6060_v48 = vmul.f32 %v6052_v5, %v5996_v14  ;;  %v19180_v29 = vpack.c.bf16 %v6057_v16, %v6057_v16  ;;  %v1666_v3 = vld [vmem:[#allocation4 + $0x1800] sm:$0xff] }
 0x5f7   :  { %8860 = vmatprep.subr.bf16.mxu0 %v15946_v22  ;;  %v1626_v22 = vld [vmem:[#allocation4 + $0x16c0] sm:$0xff] }
 0x5f8   :  { %v19183_v7 = vpack.c.bf16 %v6060_v48, %v6060_v48  ;;  %v15991_v13 = vcombine.low %v1626_v22, %v1630_v23  ;;  %v1670_v5 = vld [vmem:[#allocation4 + $0x1820] sm:$0xff] }
 0x5f9   :  { %8697 = vmatpush1.bf16.msra.mxu1 %v15943_v40  ;;  %v15992_v40 = vcombine.high %v1626_v22, %v1630_v23  ;;  %v1674_v22 = vld [vmem:[#allocation4 + $0x1840] sm:$0xff] }
 0x5fa   :  { %8861 = vmatpush1.bf16.msra.mxu0 %v15945_v9  ;;  %8698 = vmatprep.subr.bf16.mxu1 %v15952_v42  ;;  %v1634_v9 = vld [vmem:[#allocation4 + $0x1700] sm:$0xff] }
 0x5fb   :  { %8862 = vmatprep.subr.bf16.mxu0 %v15954_v0  ;;  %v1638_v42 = vld [vmem:[#allocation4 + $0x1720] sm:$0xff]  ;;  %v15994_v0 = vcombine.high %v1627_v18, %v1631_v35  ;;  %v1679_v18 = vld [vmem:[#allocation4 + $0x1868] sm:$0xff] }
 0x5fc   :  { %v15999_v28 = vcombine.low %v1634_v9, %v1638_v42  ;;  %v1678_v23 = vld [vmem:[#allocation4 + $0x1860] sm:$0xff] }
 0x5fd   :  { %8699 = vmatpush1.bf16.msra.mxu1 %v15951_v50  ;;  %v16000_v50 = vcombine.high %v1634_v9, %v1638_v42  ;;  %v1682_v42 = vld [vmem:[#allocation4 + $0x1880] sm:$0xff] }
 0x5fe   :  { %8863 = vmatpush1.bf16.msra.mxu0 %v15953_v33  ;;  %8700 = vmatprep.subr.bf16.mxu1 %v15960_v51  ;;  %v16002_v33 = vcombine.high %v1635_v56, %v1639_v45  ;;  %v1642_v51 = vld [vmem:[#allocation4 + $0x1740] sm:$0xff]  ;;  %v1683_v56 = vld [vmem:[#allocation4 + $0x1888] sm:$0xff] }
 0x5ff   :  { %8864 = vmatprep.subr.bf16.mxu0 %v15962_v4  ;;  %v1646_v4 = vld [vmem:[#allocation4 + $0x1760] sm:$0xff]  ;;  %v1687_v45 = vld [vmem:[#allocation4 + $0x18a8] sm:$0xff] }
 0x600   :  { %v16007_v52 = vcombine.low %v1642_v51, %v1646_v4 }
 0x601   :  { %8701 = vmatpush1.bf16.msra.mxu1 %v15959_v53  ;;  %v16008_v53 = vcombine.high %v1642_v51, %v1646_v4  ;;  %v16050_v51 = vcombine.high %v1683_v56, %v1687_v45  ;;  %v1690_v4 = vld [vmem:[#allocation4 + $0x18c0] sm:$0xff] }
 0x602   :  { %8865 = vmatpush1.bf16.msra.mxu0 %v15961_v21  ;;  %8702 = vmatprep.subr.bf16.mxu1 %v15968_v25  ;;  %v16010_v21 = vcombine.high %v1643_v12, %v1647_v27  ;;  %v1650_v25 = vld [vmem:[#allocation4 + $0x1780] sm:$0xff]  ;;  %v1691_v27 = vld [vmem:[#allocation4 + $0x18c8] sm:$0xff] }
 0x603   :  { %8866 = vmatprep.subr.bf16.mxu0 %v15970_v49  ;;  %v1651_v49 = vld [vmem:[#allocation4 + $0x1788] sm:$0xff]  ;;  %v16016_v30 = vcombine.high %v1650_v25, %v1654_v32  ;;  %v16015_v41 = vcombine.low %v1650_v25, %v1654_v32  ;;  %v1694_v12 = vld [vmem:[#allocation4 + $0x18e0] sm:$0xff] }
 0x604   :  { %v16018_v24 = vcombine.high %v1651_v49, %v1655_v43  ;;  %v16017_v44 = vcombine.low %v1651_v49, %v1655_v43  ;;  %v16056_v25 = vcombine.high %v1690_v4, %v1694_v12  ;;  %v1698_v49 = vld [vmem:[#allocation4 + $0x1900] sm:$0xff] }
 0x605   :  { %8703 = vmatpush1.bf16.msra.mxu1 %v15967_v54  ;;  %v1658_v54 = vld [vmem:[#allocation4 + $0x17c0] sm:$0xff] }
 0x606   :  { %8867 = vmatpush1.bf16.msra.mxu0 %v15969_v36  ;;  %8704 = vmatprep.subr.bf16.mxu1 %v15976_v55  ;;  %v1662_v36 = vld [vmem:[#allocation4 + $0x17e0] sm:$0xff]  ;;  %v1659_v55 = vld [vmem:[#allocation4 + $0x17c8] sm:$0xff] }
 0x607   :  { %8868 = vmatprep.subr.bf16.mxu0 %v15978_v59  ;;  %v2748_v59 = vrot.slane %v19137_v8, %v18749_v62  ;;  %v16024_v1 = vcombine.high %v1658_v54, %v1662_v36  ;;  %v16026_v2 = vcombine.high %v1659_v55, %v1663_v20  ;;  %v16025_v14 = vcombine.low %v1659_v55, %v1663_v20  ;;  %v1702_v43 = vld [vmem:[#allocation4 + $0x1920] sm:$0xff] }
 0x608   :  { %v1706_v20 = vld [vmem:[#allocation4 + $0x1940] sm:$0xff] }
 0x609   :  { %8705 = vmatpush1.bf16.msra.mxu1 %v15975_v6  ;;  %v1667_v6 = vld [vmem:[#allocation4 + $0x1808] sm:$0xff]  ;;  %v19191_v16 = vadd.f32 %v19143_v39, %v2748_v59  ;;  %v1710_v59 = vld [vmem:[#allocation4 + $0x1960] sm:$0xff] }
 0x60a   :  { %8869 = vmatpush1.bf16.msra.mxu0 %v15977_v10  ;;  %8715 = vmatprep.subr.bf16.mxu1 %v15984_v17  ;;  %v1671_v10 = vld [vmem:[#allocation4 + $0x1828] sm:$0xff]  ;;  %v16023_v17 = vcombine.low %v1658_v54, %v1662_v36  ;;  %v16064_v36 = vcombine.high %v1698_v49, %v1702_v43 }
 0x60b   :  { %8879 = vmatprep.subr.bf16.mxu0 %v15986_v15  ;;  %v16032_v15 = vcombine.high %v1666_v3, %v1670_v5  ;;  %v16034_v48 = vcombine.high %v1667_v6, %v1671_v10  ;;  %v6003_v35 = vmul.f32 0.044715, %v19191_v16  ;;  %v16033_v39 = vcombine.low %v1667_v6, %v1671_v10  ;;  %v1714_v10 = vld [vmem:[#allocation4 + $0x1980] sm:$0xff] }
 0x60c   :  { %8707 = vmatmul.mubr.bf16.vlgmr.msra.gmra.mrb[20].mxu1 %v19180_v29 }
 0x60d   :  { %8871 = vmatmul.mubr.bf16.vlgmr.msra.gmra.mrb[16].mxu0 %v19180_v29  ;;  %8716 = vmatpush1.bf16.msra.mxu1 %v15983_v34  ;;  %v1675_v34 = vld [vmem:[#allocation4 + $0x1848] sm:$0xff] }
 0x60e   :  { %8747 = vmatprep.mubr.bf16.mxu1 %v19183_v7  ;;  %8880 = vmatpush1.bf16.msra.mxu0 %v15985_v57  ;;  %v16031_v57 = vcombine.low %v1666_v3, %v1670_v5  ;;  %v16042_v9 = vcombine.high %v1675_v34, %v1679_v18  ;;  %v16072_v5 = vcombine.high %v1706_v20, %v1710_v59 }
 0x60f   :  { %8911 = vmatprep.mubr.bf16.mxu0 %v19183_v7  ;;  %8717 = vmatprep.subr.bf16.mxu1 %v15992_v40  ;;  %v16040_v40 = vcombine.high %v1674_v22, %v1678_v23 }
 0x610   :  { %8881 = vmatprep.subr.bf16.mxu0 %v15994_v0  ;;  %v1686_v0 = vld [vmem:[#allocation4 + $0x18a0] sm:$0xff] }
 0x611   :  { %8718 = vmatpush1.bf16.msra.mxu1 %v15991_v13  ;;  %v6011_v13 = vmul.f32 %v19191_v16, %v6003_v35  ;;  %v1726_v35 = vld [vmem:[#allocation4 + $0x19e0] sm:$0xff] }
 0x612   :  { %8882 = vmatpush1.bf16.msra.mxu0 %v15993_v46  ;;  %8719 = vmatprep.subr.bf16.mxu1 %v16000_v50  ;;  %v16039_v46 = vcombine.low %v1674_v22, %v1678_v23  ;;  %v16041_v50 = vcombine.low %v1675_v34, %v1679_v18  ;;  %v1722_v18 = vld [vmem:[#allocation4 + $0x19c0] sm:$0xff] }
 0x613   :  { %8883 = vmatprep.subr.bf16.mxu0 %v16002_v33  ;;  %v16048_v33 = vcombine.high %v1682_v42, %v1686_v0 }
 0x615   :  { %8720 = vmatpush1.bf16.msra.mxu1 %v15999_v28  ;;  %v1695_v28 = vld [vmem:[#allocation4 + $0x18e8] sm:$0xff] }
 0x616   :  { %8884 = vmatpush1.bf16.msra.mxu0 %v16001_v38  ;;  %8721 = vmatprep.subr.bf16.mxu1 %v16008_v53  ;;  %v6019_v38 = vmul.f32 %v19191_v16, %v6011_v13  ;;  %v16047_v53 = vcombine.low %v1682_v42, %v1686_v0  ;;  %v16058_v32 = vcombine.high %v1691_v27, %v1695_v28  ;;  %v1731_v13 = vld [vmem:[#allocation4 + $0x1a08] sm:$0xff] }
 0x617   :  { %8885 = vmatprep.subr.bf16.mxu0 %v16010_v21  ;;  %v16049_v21 = vcombine.low %v1683_v56, %v1687_v45  ;;  %v16057_v54 = vcombine.low %v1691_v27, %v1695_v28  ;;  %v16088_v42 = vcombine.high %v1722_v18, %v1726_v35  ;;  %v1730_v56 = vld [vmem:[#allocation4 + $0x1a00] sm:$0xff] }
 0x618   :  { %v1734_v45 = vld [vmem:[#allocation4 + $0x1a20] sm:$0xff] }
 0x619   :  { %8722 = vmatpush1.bf16.msra.mxu1 %v16007_v52  ;;  %v1699_v52 = vld [vmem:[#allocation4 + $0x1908] sm:$0xff]  ;;  %v1738_v27 = vld [vmem:[#allocation4 + $0x1a40] sm:$0xff] }
 0x61a   :  { %8886 = vmatpush1.bf16.msra.mxu0 %v16009_v60  ;;  %8723 = vmatprep.subr.bf16.mxu1 %v16016_v30  ;;  %v1703_v60 = vld [vmem:[#allocation4 + $0x1928] sm:$0xff]  ;;  %v6027_v30 = vadd.f32 %v19191_v16, %v6019_v38  ;;  %v1742_v28 = vld [vmem:[#allocation4 + $0x1a60] sm:$0xff] }
 0x61b   :  { %8887 = vmatprep.subr.bf16.mxu0 %v16018_v24  ;;  %v16055_v24 = vcombine.low %v1690_v4, %v1694_v12  ;;  %v16066_v55 = vcombine.high %v1699_v52, %v1703_v60  ;;  %v16065_v3 = vcombine.low %v1699_v52, %v1703_v60  ;;  %v1739_v38 = vld [vmem:[#allocation4 + $0x1a48] sm:$0xff]  ;;  %v1746_v52 = vld [vmem:[#allocation4 + $0x1a80] sm:$0xff] }
 0x61c   :  { %v1750_v60 = vld [vmem:[#allocation4 + $0x1aa0] sm:$0xff] }
 0x61d   :  { %8724 = vmatpush1.bf16.msra.mxu1 %v16015_v41  ;;  %v1707_v41 = vld [vmem:[#allocation4 + $0x1948] sm:$0xff] }
 0x61e   :  { %8888 = vmatpush1.bf16.msra.mxu0 %v16017_v44  ;;  %8725 = vmatprep.subr.bf16.mxu1 %v16024_v1  ;;  %v1711_v44 = vld [vmem:[#allocation4 + $0x1968] sm:$0xff]  ;;  %v16063_v1 = vcombine.low %v1698_v49, %v1702_v43 }
 0x61f   :  { %8889 = vmatprep.subr.bf16.mxu0 %v16026_v2  ;;  %v6035_v2 = vmul.f32 0.7978846, %v6027_v30  ;;  %v16074_v6 = vcombine.high %v1707_v41, %v1711_v44  ;;  %v16073_v22 = vcombine.low %v1707_v41, %v1711_v44  ;;  %v5995_v30 = vmul.f32 0.5, %v19191_v16  ;;  %v1754_v44 = vld [vmem:[#allocation4 + $0x1ac0] sm:$0xff] }
 0x621   :  { %8726 = vmatpush1.bf16.msra.mxu1 %v16023_v17  ;;  %v1718_v17 = vld [vmem:[#allocation4 + $0x19a0] sm:$0xff]  ;;  %18455 = vtanh.f32 %v6035_v2  ;;  %v1755_v2 = vld [vmem:[#allocation4 + $0x1ac8] sm:$0xff] }
 0x622   :  { %8890 = vmatpush1.bf16.msra.mxu0 %v16025_v14  ;;  %8727 = vmatprep.subr.bf16.mxu1 %v16032_v15  ;;  %v1715_v14 = vld [vmem:[#allocation4 + $0x1988] sm:$0xff]  ;;  %v16080_v23 = vcombine.high %v1714_v10, %v1718_v17 }
 0x623   :  { %8891 = vmatprep.subr.bf16.mxu0 %v16034_v48  ;;  %v1719_v15 = vld [vmem:[#allocation4 + $0x19a8] sm:$0xff]  ;;  %v16071_v48 = vcombine.low %v1706_v20, %v1710_v59  ;;  %v16112_v59 = vcombine.high %v1746_v52, %v1750_v60 }
 0x624   :  { %v16082_v34 = vcombine.high %v1715_v14, %v1719_v15 }
 0x625   :  { %8728 = vmatpush1.bf16.msra.mxu1 %v16031_v57  ;;  %v1723_v57 = vld [vmem:[#allocation4 + $0x19c8] sm:$0xff] }
 0x626   :  { %8892 = vmatpush1.bf16.msra.mxu0 %v16033_v39  ;;  %8729 = vmatprep.subr.bf16.mxu1 %v16040_v40  ;;  %v1727_v39 = vld [vmem:[#allocation4 + $0x19e8] sm:$0xff]  ;;  %v16079_v40 = vcombine.low %v1714_v10, %v1718_v17 }
 0x627   :  { %8893 = vmatprep.subr.bf16.mxu0 %v16042_v9  ;;  %v16081_v9 = vcombine.low %v1715_v14, %v1719_v15  ;;  %v16090_v0 = vcombine.high %v1723_v57, %v1727_v39  ;;  %v1762_v14 = vld [vmem:[#allocation4 + $0x1b00] sm:$0xff] }
 0x628   :  { %v1766_v15 = vld [vmem:[#allocation4 + $0x1b20] sm:$0xff] }
 0x629   :  { %8730 = vmatpush1.bf16.msra.mxu1 %v16039_v46  ;;  %v1735_v46 = vld [vmem:[#allocation4 + $0x1a28] sm:$0xff] }
 0x62a   :  { %8894 = vmatpush1.bf16.msra.mxu0 %v16041_v50  ;;  %8731 = vmatprep.subr.bf16.mxu1 %v16048_v33  ;;  %v16087_v50 = vcombine.low %v1722_v18, %v1726_v35  ;;  %v16089_v33 = vcombine.low %v1723_v57, %v1727_v39  ;;  %v16098_v12 = vcombine.high %v1731_v13, %v1735_v46  ;;  %v1770_v57 = vld [vmem:[#allocation4 + $0x1b40] sm:$0xff] }
 0x62b   :  { %8895 = vmatprep.subr.bf16.mxu0 %v16050_v51  ;;  %v16096_v51 = vcombine.high %v1730_v56, %v1734_v45  ;;  %v18456_v4 = vpop.eup %18455  ;;  %v16128_v18 = vcombine.high %v1762_v14, %v1766_v15  ;;  %v1774_v39 = vld [vmem:[#allocation4 + $0x1b60] sm:$0xff] }
 0x62c   :  { %v6051_v49 = vadd.f32 1.0, %v18456_v4 }
 0x62d   :  { %8732 = vmatpush1.bf16.msra.mxu1 %v16047_v53  ;;  %v1743_v53 = vld [vmem:[#allocation4 + $0x1a68] sm:$0xff] }
 0x62e   :  { %8896 = vmatpush1.bf16.msra.mxu0 %v16049_v21  ;;  %8733 = vmatprep.subr.bf16.mxu1 %v16056_v25  ;;  %v16095_v21 = vcombine.low %v1730_v56, %v1734_v45  ;;  %v16097_v25 = vcombine.low %v1731_v13, %v1735_v46  ;;  %v16106_v43 = vcombine.high %v1739_v38, %v1743_v53  ;;  %v1778_v13 = vld [vmem:[#allocation4 + $0x1b80] sm:$0xff] }
 0x62f   :  { %8897 = vmatprep.subr.bf16.mxu0 %v16058_v32  ;;  %v16104_v32 = vcombine.high %v1738_v27, %v1742_v28  ;;  %v6059_v20 = vmul.f32 %v6051_v49, %v5995_v30  ;;  %v16136_v56 = vcombine.high %v1770_v57, %v1774_v39  ;;  %v1782_v46 = vld [vmem:[#allocation4 + $0x1ba0] sm:$0xff]  ;;  %v1795_v30 = vld [vmem:[#allocation4 + $0x1c08] sm:$0xff] }
 0x631   :  { %8734 = vmatpush1.bf16.msra.mxu1 %v16055_v24  ;;  %v1747_v24 = vld [vmem:[#allocation4 + $0x1a88] sm:$0xff] }
 0x632   :  { %8898 = vmatpush1.bf16.msra.mxu0 %v16057_v54  ;;  %8735 = vmatprep.subr.bf16.mxu1 %v16064_v36  ;;  %v1751_v54 = vld [vmem:[#allocation4 + $0x1aa8] sm:$0xff]  ;;  %v16103_v36 = vcombine.low %v1738_v27, %v1742_v28  ;;  %v1786_v28 = vld [vmem:[#allocation4 + $0x1bc0] sm:$0xff] }
 0x633   :  { %8899 = vmatprep.subr.bf16.mxu0 %v16066_v55  ;;  %v16105_v55 = vcombine.low %v1739_v38, %v1743_v53  ;;  %v16114_v41 = vcombine.high %v1747_v24, %v1751_v54  ;;  %v16113_v16 = vcombine.low %v1747_v24, %v1751_v54  ;;  %v1790_v38 = vld [vmem:[#allocation4 + $0x1be0] sm:$0xff]  ;;  %v1787_v53 = vld [vmem:[#allocation4 + $0x1bc8] sm:$0xff] }
 0x634   :  { %v16152_v49 = vcombine.high %v1786_v28, %v1790_v38  ;;  %v1799_v24 = vld [vmem:[#allocation4 + $0x1c28] sm:$0xff]  ;;  %v16151_v54 = vcombine.low %v1786_v28, %v1790_v38 }
 0x635   :  { %8736 = vmatpush1.bf16.msra.mxu1 %v16063_v1  ;;  %v1758_v1 = vld [vmem:[#allocation4 + $0x1ae0] sm:$0xff]  ;;  %v1835_v28 = vld [vmem:[#allocation4 + $0x1d48] sm:$0xff] }
 0x636   :  { %8900 = vmatpush1.bf16.msra.mxu0 %v16065_v3  ;;  %8737 = vmatprep.subr.bf16.mxu1 %v16072_v5  ;;  %v1759_v3 = vld [vmem:[#allocation4 + $0x1ae8] sm:$0xff]  ;;  %v16111_v5 = vcombine.low %v1746_v52, %v1750_v60  ;;  %v16120_v10 = vcombine.high %v1754_v44, %v1758_v1  ;;  %v1794_v52 = vld [vmem:[#allocation4 + $0x1c00] sm:$0xff] }
 0x637   :  { %8901 = vmatprep.subr.bf16.mxu0 %v16074_v6  ;;  %v19198_v6 = vpack.c.bf16 %v6059_v20, %v6059_v20  ;;  %v16122_v17 = vcombine.high %v1755_v2, %v1759_v3  ;;  %v1798_v60 = vld [vmem:[#allocation4 + $0x1c20] sm:$0xff]  ;;  %v16162_v20 = vcombine.high %v1795_v30, %v1799_v24  ;;  %v1839_v38 = vld [vmem:[#allocation4 + $0x1d68] sm:$0xff] }
 0x639   :  { %8738 = vmatpush1.bf16.msra.mxu1 %v16071_v48  ;;  %v1763_v48 = vld [vmem:[#allocation4 + $0x1b08] sm:$0xff] }
 0x63a   :  { %8902 = vmatpush1.bf16.msra.mxu0 %v16073_v22  ;;  %8739 = vmatprep.subr.bf16.mxu1 %v16080_v23  ;;  %v1767_v22 = vld [vmem:[#allocation4 + $0x1b28] sm:$0xff]  ;;  %v16119_v23 = vcombine.low %v1754_v44, %v1758_v1 }
 0x63b   :  { %8903 = vmatprep.subr.bf16.mxu0 %v16082_v34  ;;  %v16121_v34 = vcombine.low %v1755_v2, %v1759_v3  ;;  %v16130_v35 = vcombine.high %v1763_v48, %v1767_v22  ;;  %v1803_v44 = vld [vmem:[#allocation4 + $0x1c48] sm:$0xff]  ;;  %v16159_v2 = vcombine.low %v1794_v52, %v1798_v60  ;;  %v16161_v3 = vcombine.low %v1795_v30, %v1799_v24 }
 0x63c   :  { %v1807_v1 = vld [vmem:[#allocation4 + $0x1c68] sm:$0xff]  ;;  %v16201_v24 = vcombine.low %v1835_v28, %v1839_v38 }
 0x63d   :  { %8740 = vmatpush1.bf16.msra.mxu1 %v16079_v40  ;;  %v1771_v40 = vld [vmem:[#allocation4 + $0x1b48] sm:$0xff] }
 0x63e   :  { %8904 = vmatpush1.bf16.msra.mxu0 %v16081_v9  ;;  %8741 = vmatprep.subr.bf16.mxu1 %v16088_v42  ;;  %v1775_v9 = vld [vmem:[#allocation4 + $0x1b68] sm:$0xff]  ;;  %v16127_v42 = vcombine.low %v1762_v14, %v1766_v15 }
 0x63f   :  { %8905 = vmatprep.subr.bf16.mxu0 %v16090_v0  ;;  %v16129_v0 = vcombine.low %v1763_v48, %v1767_v22  ;;  %v16138_v45 = vcombine.high %v1771_v40, %v1775_v9  ;;  %v16137_v4 = vcombine.low %v1771_v40, %v1775_v9  ;;  %v1811_v14 = vld [vmem:[#allocation4 + $0x1c88] sm:$0xff]  ;;  %v16169_v22 = vcombine.low %v1803_v44, %v1807_v1 }
 0x640   :  { %v1815_v15 = vld [vmem:[#allocation4 + $0x1ca8] sm:$0xff] }
 0x641   :  { %8742 = vmatpush1.bf16.msra.mxu1 %v16087_v50  ;;  %v1779_v50 = vld [vmem:[#allocation4 + $0x1b88] sm:$0xff]  ;;  %v16177_v9 = vcombine.low %v1811_v14, %v1815_v15 }
 0x642   :  { %8906 = vmatpush1.bf16.msra.mxu0 %v16089_v33  ;;  %8743 = vmatprep.subr.bf16.mxu1 %v16096_v51  ;;  %v1783_v33 = vld [vmem:[#allocation4 + $0x1ba8] sm:$0xff]  ;;  %v16135_v51 = vcombine.low %v1770_v57, %v1774_v39 }
 0x643   :  { %8907 = vmatprep.subr.bf16.mxu0 %v16098_v12  ;;  %v16144_v12 = vcombine.high %v1778_v13, %v1782_v46  ;;  %v16146_v27 = vcombine.high %v1779_v50, %v1783_v33  ;;  %v1819_v57 = vld [vmem:[#allocation4 + $0x1cc8] sm:$0xff] }
 0x644   :  { %v1823_v39 = vld [vmem:[#allocation4 + $0x1ce8] sm:$0xff] }
 0x645   :  { %8744 = vmatpush1.bf16.msra.mxu1 %v16095_v21  ;;  %v1791_v21 = vld [vmem:[#allocation4 + $0x1be8] sm:$0xff] }
 0x646   :  { %8908 = vmatpush1.bf16.msra.mxu0 %v16097_v25  ;;  %8745 = vmatprep.subr.bf16.mxu1 %v16104_v32  ;;  %v16143_v25 = vcombine.low %v1778_v13, %v1782_v46  ;;  %v16145_v32 = vcombine.low %v1779_v50, %v1783_v33  ;;  %v1827_v13 = vld [vmem:[#allocation4 + $0x1d08] sm:$0xff]  ;;  %v16185_v33 = vcombine.low %v1819_v57, %v1823_v39 }
 0x647   :  { %8909 = vmatprep.subr.bf16.mxu0 %v16106_v43  ;;  %v16154_v43 = vcombine.high %v1787_v53, %v1791_v21  ;;  %v1831_v46 = vld [vmem:[#allocation4 + $0x1d28] sm:$0xff] }
 0x649   :  { %8746 = vmatpush1.bf16.msra.mxu1 %v16103_v36  ;;  %v16153_v36 = vcombine.low %v1787_v53, %v1791_v21  ;;  %v16193_v21 = vcombine.low %v1827_v13, %v1831_v46 }
 0x64a   :  { %8910 = vmatpush1.bf16.msra.mxu0 %v16105_v55  ;;  %8756 = vmatprep.subr.bf16.mxu1 %v16112_v59  ;;  %v16160_v55 = vcombine.high %v1794_v52, %v1798_v60  ;;  %v1802_v59 = vld [vmem:[#allocation4 + $0x1c40] sm:$0xff]  ;;  %v1843_v52 = vld [vmem:[#allocation4 + $0x1d88] sm:$0xff] }
 0x64b   :  { %8920 = vmatprep.subr.bf16.mxu0 %v16114_v41  ;;  %v1806_v41 = vld [vmem:[#allocation4 + $0x1c60] sm:$0xff]  ;;  %v1847_v60 = vld [vmem:[#allocation4 + $0x1da8] sm:$0xff] }
 0x64c   :  { %8748 = vmatmul.mubr.bf16.vlgmr.msra.gmra.mrb[20].mxu1 %v19198_v6  ;;  %v16167_v48 = vcombine.low %v1802_v59, %v1806_v41 }
 0x64d   :  { %8912 = vmatmul.mubr.bf16.vlgmr.msra.gmra.mrb[16].mxu0 %v19198_v6  ;;  %8757 = vmatpush1.bf16.msra.mxu1 %v16111_v5  ;;  %v16168_v5 = vcombine.high %v1802_v59, %v1806_v41  ;;  %v1851_v59 = vld [vmem:[#allocation4 + $0x1dc8] sm:$0xff] }
 0x64e   :  { %8921 = vmatpush1.bf16.msra.mxu0 %v16113_v16  ;;  %8758 = vmatprep.subr.bf16.mxu1 %v16120_v10  ;;  %v16170_v16 = vcombine.high %v1803_v44, %v1807_v1  ;;  %v1810_v10 = vld [vmem:[#allocation4 + $0x1c80] sm:$0xff]  ;;  %v1855_v41 = vld [vmem:[#allocation4 + $0x1de8] sm:$0xff]  ;;  %v16209_v1 = vcombine.low %v1843_v52, %v1847_v60 }
 0x64f   :  { %8922 = vmatprep.subr.bf16.mxu0 %v16122_v17  ;;  %v1814_v17 = vld [vmem:[#allocation4 + $0x1ca0] sm:$0xff] }
 0x650   :  { %v16175_v40 = vcombine.low %v1810_v10, %v1814_v17 }
 0x651   :  { %8759 = vmatpush1.bf16.msra.mxu1 %v16119_v23  ;;  %v16176_v23 = vcombine.high %v1810_v10, %v1814_v17  ;;  %v1859_v10 = vld [vmem:[#allocation4 + $0x1e08] sm:$0xff] }
 0x652   :  { %8923 = vmatpush1.bf16.msra.mxu0 %v16121_v34  ;;  %8760 = vmatprep.subr.bf16.mxu1 %v16128_v18  ;;  %v16178_v34 = vcombine.high %v1811_v14, %v1815_v15  ;;  %v1818_v18 = vld [vmem:[#allocation4 + $0x1cc0] sm:$0xff]  ;;  %v1863_v17 = vld [vmem:[#allocation4 + $0x1e28] sm:$0xff]  ;;  %v16217_v15 = vcombine.low %v1851_v59, %v1855_v41 }
 0x653   :  { %8924 = vmatprep.subr.bf16.mxu0 %v16130_v35  ;;  %v1822_v35 = vld [vmem:[#allocation4 + $0x1ce0] sm:$0xff] }
 0x654   :  { %v16183_v50 = vcombine.low %v1818_v18, %v1822_v35 }
 0x655   :  { %8761 = vmatpush1.bf16.msra.mxu1 %v16127_v42  ;;  %v16184_v42 = vcombine.high %v1818_v18, %v1822_v35  ;;  %v1867_v18 = vld [vmem:[#allocation4 + $0x1e48] sm:$0xff] }
 0x656   :  { %8925 = vmatpush1.bf16.msra.mxu0 %v16129_v0  ;;  %8762 = vmatprep.subr.bf16.mxu1 %v16136_v56  ;;  %v16186_v0 = vcombine.high %v1819_v57, %v1823_v39  ;;  %v1826_v56 = vld [vmem:[#allocation4 + $0x1d00] sm:$0xff]  ;;  %v1871_v35 = vld [vmem:[#allocation4 + $0x1e68] sm:$0xff]  ;;  %v16225_v39 = vcombine.low %v1859_v10, %v1863_v17 }
 0x657   :  { %8926 = vmatprep.subr.bf16.mxu0 %v16138_v45  ;;  %v1830_v45 = vld [vmem:[#allocation4 + $0x1d20] sm:$0xff] }
 0x658   :  { %v16191_v53 = vcombine.low %v1826_v56, %v1830_v45 }
 0x659   :  { %8763 = vmatpush1.bf16.msra.mxu1 %v16135_v51  ;;  %v16192_v51 = vcombine.high %v1826_v56, %v1830_v45  ;;  %v19206_v56 = vld [vmem:[#allocation4 + $0x1e88] sm:$0xff] }
 0x65a   :  { %8927 = vmatpush1.bf16.msra.mxu0 %v16137_v4  ;;  %8764 = vmatprep.subr.bf16.mxu1 %v16144_v12  ;;  %v16194_v4 = vcombine.high %v1827_v13, %v1831_v46  ;;  %v1834_v12 = vld [vmem:[#allocation4 + $0x1d40] sm:$0xff]  ;;  %v19208_v45 = vld [vmem:[#allocation4 + $0x1ea8] sm:$0xff]  ;;  %v16233_v46 = vcombine.low %v1867_v18, %v1871_v35 }
 0x65b   :  { %8928 = vmatprep.subr.bf16.mxu0 %v16146_v27  ;;  %v1838_v27 = vld [vmem:[#allocation4 + $0x1d60] sm:$0xff] }
 0x65c   :  { %v16199_v30 = vcombine.low %v1834_v12, %v1838_v27 }
 0x65d   :  { %8765 = vmatpush1.bf16.msra.mxu1 %v16143_v25  ;;  %v16200_v25 = vcombine.high %v1834_v12, %v1838_v27  ;;  %v2768_v12 = vrot.slane %v19137_v8, %v19072_v19 }
 0x65e   :  { %8929 = vmatpush1.bf16.msra.mxu0 %v16145_v32  ;;  %8766 = vmatprep.subr.bf16.mxu1 %v16152_v49  ;;  %v16202_v32 = vcombine.high %v1835_v28, %v1839_v38  ;;  %v1842_v49 = vld [vmem:[#allocation4 + $0x1d80] sm:$0xff] }
 0x65f   :  { %8930 = vmatprep.subr.bf16.mxu0 %v16154_v43  ;;  %v1846_v43 = vld [vmem:[#allocation4 + $0x1da0] sm:$0xff] }
 0x660   :  { %v16207_v44 = vcombine.low %v1842_v49, %v1846_v43 }
 0x661   :  { %8767 = vmatpush1.bf16.msra.mxu1 %v16151_v54  ;;  %v16208_v54 = vcombine.high %v1842_v49, %v1846_v43 }
 0x662   :  { %8931 = vmatpush1.bf16.msra.mxu0 %v16153_v36  ;;  %8768 = vmatprep.subr.bf16.mxu1 %v16160_v55  ;;  %v16210_v36 = vcombine.high %v1843_v52, %v1847_v60  ;;  %v1850_v55 = vld [vmem:[#allocation4 + $0x1dc0] sm:$0xff] }
 0x663   :  { %8932 = vmatprep.subr.bf16.mxu0 %v16162_v20  ;;  %v1854_v20 = vld [vmem:[#allocation4 + $0x1de0] sm:$0xff] }
 0x664   :  { %v16215_v14 = vcombine.low %v1850_v55, %v1854_v20 }
 0x665   :  { %8769 = vmatpush1.bf16.msra.mxu1 %v16159_v2  ;;  %v16216_v2 = vcombine.high %v1850_v55, %v1854_v20 }
 0x666   :  { %8933 = vmatpush1.bf16.msra.mxu0 %v16161_v3  ;;  %8770 = vmatprep.subr.bf16.mxu1 %v16168_v5  ;;  %v16218_v3 = vcombine.high %v1851_v59, %v1855_v41  ;;  %v1858_v5 = vld [vmem:[#allocation4 + $0x1e00] sm:$0xff] }
 0x667   :  { %8934 = vmatprep.subr.bf16.mxu0 %v16170_v16  ;;  %v1862_v16 = vld [vmem:[#allocation4 + $0x1e20] sm:$0xff] }
 0x668   :  { %v16223_v57 = vcombine.low %v1858_v5, %v1862_v16 }
 0x669   :  { %8771 = vmatpush1.bf16.msra.mxu1 %v16167_v48  ;;  %v16224_v48 = vcombine.high %v1858_v5, %v1862_v16 }
 0x66a   :  { %8935 = vmatpush1.bf16.msra.mxu0 %v16169_v22  ;;  %8772 = vmatprep.subr.bf16.mxu1 %v16176_v23  ;;  %v16226_v22 = vcombine.high %v1859_v10, %v1863_v17  ;;  %v1866_v23 = vld [vmem:[#allocation4 + $0x1e40] sm:$0xff] }
 0x66b   :  { %8936 = vmatprep.subr.bf16.mxu0 %v16178_v34  ;;  %v1870_v34 = vld [vmem:[#allocation4 + $0x1e60] sm:$0xff] }
 0x66c   :  { %v16231_v13 = vcombine.low %v1866_v23, %v1870_v34 }
 0x66d   :  { %8773 = vmatpush1.bf16.msra.mxu1 %v16175_v40  ;;  %v16232_v40 = vcombine.high %v1866_v23, %v1870_v34 }
 0x66e   :  { %8937 = vmatpush1.bf16.msra.mxu0 %v16177_v9  ;;  %8774 = vmatprep.subr.bf16.mxu1 %v16184_v42  ;;  %v16234_v9 = vcombine.high %v1867_v18, %v1871_v35  ;;  %v19202_v42 = vld [vmem:[#allocation4 + $0x1e80] sm:$0xff] }
 0x66f   :  { %8938 = vmatprep.subr.bf16.mxu0 %v16186_v0  ;;  %v19204_v0 = vld [vmem:[#allocation4 + $0x1ea0] sm:$0xff] }
 0x671   :  { %8775 = vmatpush1.bf16.msra.mxu1 %v16183_v50  ;;  %v16240_v50 = vcombine.high %v19202_v42, %v19204_v0 }
 0x672   :  { %8939 = vmatpush1.bf16.msra.mxu0 %v16185_v33  ;;  %8776 = vmatprep.subr.bf16.mxu1 %v16192_v51  ;;  %v16242_v33 = vcombine.high %v19206_v56, %v19208_v45  ;;  %v2756_v51 = vrot.slane %v19137_v8, %v19068_v11 }
 0x673   :  { %8940 = vmatprep.subr.bf16.mxu0 %v16194_v4  ;;  %v2760_v4 = vrot.slane %v19137_v8, %v19050_v31 }
 0x675   :  { %8777 = vmatpush1.bf16.msra.mxu1 %v16191_v53 }
 0x676   :  { %8941 = vmatpush1.bf16.msra.mxu0 %v16193_v21  ;;  %8778 = vmatprep.subr.bf16.mxu1 %v16200_v25 }
 0x677   :  { %8942 = vmatprep.subr.bf16.mxu0 %v16202_v32 }
 0x679   :  { %8779 = vmatpush1.bf16.msra.mxu1 %v16199_v30 }
 0x67a   :  { %8943 = vmatpush1.bf16.msra.mxu0 %v16201_v24  ;;  %8780 = vmatprep.subr.bf16.mxu1 %v16208_v54 }
 0x67b   :  { %8944 = vmatprep.subr.bf16.mxu0 %v16210_v36 }
 0x67d   :  { %8781 = vmatpush1.bf16.msra.mxu1 %v16207_v44 }
 0x67e   :  { %8945 = vmatpush1.bf16.msra.mxu0 %v16209_v1  ;;  %8782 = vmatprep.subr.bf16.mxu1 %v16216_v2 }
 0x67f   :  { %8946 = vmatprep.subr.bf16.mxu0 %v16218_v3 }
 0x681   :  { %8783 = vmatpush1.bf16.msra.mxu1 %v16215_v14 }
 0x682   :  { %8947 = vmatpush1.bf16.msra.mxu0 %v16217_v15  ;;  %8784 = vmatprep.subr.bf16.mxu1 %v16224_v48 }
 0x683   :  { %8948 = vmatprep.subr.bf16.mxu0 %v16226_v22 }
 0x685   :  { %8785 = vmatpush1.bf16.msra.mxu1 %v16223_v57 }
 0x686   :  { %8949 = vmatpush1.bf16.msra.mxu0 %v16225_v39  ;;  %8786 = vmatprep.subr.bf16.mxu1 %v16232_v40  ;;  %v1882_v40 = vld [vmem:[#allocation4 + $0x1ec0] sm:$0xff] }
 0x687   :  { %8950 = vmatprep.subr.bf16.mxu0 %v16234_v9 }
 0x689   :  { %8787 = vmatpush1.bf16.msra.mxu1 %v16231_v13  ;;  %v1886_v13 = vld [vmem:[#allocation4 + $0x1ee0] sm:$0xff] }
 0x68a   :  { %8951 = vmatpush1.bf16.msra.mxu0 %v16233_v46  ;;  %8797 = vmatprep.subr.bf16.mxu1 %v16240_v50  ;;  %v1883_v46 = vld [vmem:[#allocation4 + $0x1ec8] sm:$0xff] }
 0x68b   :  { %8961 = vmatprep.subr.bf16.mxu0 %v16242_v33  ;;  %v1887_v50 = vld [vmem:[#allocation4 + $0x1ee8] sm:$0xff] }
 0x69f   :  { %v5822_v27 = vpop.f32.mrb[16].mxu1 }
 0x6a0   :  { %v18171_v28 = vadd.f32 %v5822_v27, %v2756_v51  ;;  %v19220_v38 = vpop.f32.mrb[12].mxu0  ;;  %v5824_v53 = vpop.f32.mrb[17].mxu1  ;;  %v16239_v51 = vcombine.low %v19202_v42, %v19204_v0  ;;  %v1890_v27 = vld [vmem:[#allocation4 + $0x1f00] sm:$0xff]  ;;  %v16247_v0 = vcombine.low %v1882_v40, %v1886_v13 }
 0x6a1   :  { %v18172_v21 = vadd.f32 %v5824_v53, %v2760_v4  ;;  %v5988_v25 = vpop.f32.mrb[13].mxu0  ;;  %v5826_v32 = vpop.f32.mrb[18].mxu1  ;;  %v16241_v4 = vcombine.low %v19206_v56, %v19208_v45  ;;  %v16250_v53 = vcombine.high %v1883_v46, %v1887_v50  ;;  %v16249_v56 = vcombine.low %v1883_v46, %v1887_v50  ;;  %v1930_v50 = vld [vmem:[#allocation4 + $0x2040] sm:$0xff] }
 0x6a2   :  { %v6005_v49 = vmul.f32 0.044715, %v18171_v28  ;;  %v18174_v43 = vadd.f32 %v5988_v25, %v2768_v12  ;;  %v5990_v52 = vpop.f32.mrb[14].mxu0  ;;  %v5827_v60 = vpop.f32.mrb[19].mxu1  ;;  %v5997_v15 = vmul.f32 0.5, %v18171_v28  ;;  %v1891_v25 = vld [vmem:[#allocation4 + $0x1f08] sm:$0xff] }
 0x6a3   :  { %v6006_v30 = vmul.f32 0.044715, %v18172_v21  ;;  %v5991_v24 = vpop.f32.mrb[15].mxu0  ;;  %v5998_v23 = vmul.f32 0.5, %v18172_v21  ;;  %v1895_v32 = vld [vmem:[#allocation4 + $0x1f28] sm:$0xff]  ;;  %v1902_v52 = vld [vmem:[#allocation4 + $0x1f60] sm:$0xff] }
 0x6a4   :  { %v6013_v54 = vmul.f32 %v18171_v28, %v6005_v49  ;;  %v6008_v36 = vmul.f32 0.044715, %v18174_v43  ;;  %v6000_v35 = vmul.f32 0.5, %v18174_v43  ;;  %v16258_v49 = vcombine.high %v1891_v25, %v1895_v32  ;;  %v1899_v60 = vld [vmem:[#allocation4 + $0x1f48] sm:$0xff] }
 0x6a5   :  { %v6014_v55 = vmul.f32 %v18172_v21, %v6006_v30  ;;  %v1903_v30 = vld [vmem:[#allocation4 + $0x1f68] sm:$0xff] }
 0x6a6   :  { %v6021_v20 = vmul.f32 %v18171_v28, %v6013_v54  ;;  %v6016_v59 = vmul.f32 %v18174_v43, %v6008_v36  ;;  %v16257_v54 = vcombine.low %v1891_v25, %v1895_v32  ;;  %v1938_v32 = vld [vmem:[#allocation4 + $0x2080] sm:$0xff] }
 0x6a7   :  { %v6022_v41 = vmul.f32 %v18172_v21, %v6014_v55  ;;  %v16266_v55 = vcombine.high %v1899_v60, %v1903_v30 }
 0x6a8   :  { %v6029_v44 = vadd.f32 %v18171_v28, %v6021_v20  ;;  %v6024_v1 = vmul.f32 %v18174_v43, %v6016_v59  ;;  %v16248_v28 = vcombine.high %v1882_v40, %v1886_v13  ;;  %v1906_v20 = vld [vmem:[#allocation4 + $0x1f80] sm:$0xff] }
 0x6a9   :  { %v6030_v2 = vadd.f32 %v18172_v21, %v6022_v41  ;;  %v1894_v21 = vld [vmem:[#allocation4 + $0x1f20] sm:$0xff]  ;;  %v1907_v41 = vld [vmem:[#allocation4 + $0x1f88] sm:$0xff] }
 0x6aa   :  { %v6032_v3 = vadd.f32 %v18174_v43, %v6024_v1  ;;  %v6037_v5 = vmul.f32 0.7978846, %v6029_v44  ;;  %v16256_v45 = vcombine.high %v1890_v27, %v1894_v21  ;;  %v1898_v43 = vld [vmem:[#allocation4 + $0x1f40] sm:$0xff]  ;;  %v16255_v24 = vcombine.low %v1890_v27, %v1894_v21  ;;  %v1911_v44 = vld [vmem:[#allocation4 + $0x1fa8] sm:$0xff] }
 0x6ab   :  { %v6038_v16 = vmul.f32 0.7978846, %v6030_v2  ;;  %v16264_v36 = vcombine.high %v1898_v43, %v1902_v52  ;;  %v1910_v59 = vld [vmem:[#allocation4 + $0x1fa0] sm:$0xff]  ;;  %v16263_v1 = vcombine.low %v1898_v43, %v1902_v52  ;;  %v16265_v2 = vcombine.low %v1899_v60, %v1903_v30  ;;  %v1935_v27 = vld [vmem:[#allocation4 + $0x2068] sm:$0xff] }
 0x6ac   :  { %18457 = vtanh.f32 %v6037_v5  ;;  %v6040_v10 = vmul.f32 0.7978846, %v6032_v3  ;;  %v16272_v3 = vcombine.high %v1906_v20, %v1910_v59  ;;  %v16274_v5 = vcombine.high %v1907_v41, %v1911_v44 }
 0x6ad   :  { %18459 = vtanh.f32 %v6038_v16  ;;  %v1914_v16 = vld [vmem:[#allocation4 + $0x1fc0] sm:$0xff] }
 0x6ae   :  { %18461 = vtanh.f32 %v6040_v10  ;;  %v1918_v10 = vld [vmem:[#allocation4 + $0x1fe0] sm:$0xff] }
 0x6b6   :  { %v18458_v17 = vpop.eup %18457 }
 0x6b7   :  { %v18460_v14 = vpop.eup %18459  ;;  %v6053_v48 = vadd.f32 1.0, %v18458_v17  ;;  %v1915_v17 = vld [vmem:[#allocation4 + $0x1fc8] sm:$0xff] }
 0x6b8   :  { %v18462_v22 = vpop.eup %18461  ;;  %v6054_v34 = vadd.f32 1.0, %v18460_v14  ;;  %v1919_v14 = vld [vmem:[#allocation4 + $0x1fe8] sm:$0xff] }
 0x6b9   :  { %v6061_v18 = vmul.f32 %v6053_v48, %v5997_v15  ;;  %v6056_v57 = vadd.f32 1.0, %v18462_v22  ;;  %v2764_v15 = vrot.slane %v19137_v8, %v19107_v37  ;;  %v16271_v48 = vcombine.low %v1906_v20, %v1910_v59 }
 0x6ba   :  { %v6062_v39 = vmul.f32 %v6054_v34, %v5998_v23  ;;  %v16273_v22 = vcombine.low %v1907_v41, %v1911_v44  ;;  %v16280_v23 = vcombine.high %v1914_v16, %v1918_v10  ;;  %v16282_v34 = vcombine.high %v1915_v17, %v1919_v14 }
 0x6bb   :  { %v6064_v9 = vmul.f32 %v6056_v57, %v6000_v35  ;;  %v19228_v12 = vpack.c.bf16 %v6061_v18, %v6061_v18  ;;  %v1922_v18 = vld [vmem:[#allocation4 + $0x2000] sm:$0xff]  ;;  %v1923_v57 = vld [vmem:[#allocation4 + $0x2008] sm:$0xff]  ;;  %v19241_v40 = vadd.f32 %v19220_v38, %v2764_v15  ;;  %v16281_v13 = vcombine.low %v1915_v17, %v1919_v14 }
 0x6bc   :  { %v19222_v33 = vpack.c.bf16 %v6062_v39, %v6062_v39  ;;  %v1926_v35 = vld [vmem:[#allocation4 + $0x2020] sm:$0xff]  ;;  %v1927_v39 = vld [vmem:[#allocation4 + $0x2028] sm:$0xff] }
 0x6bd   :  { %v19234_v42 = vpack.c.bf16 %v6064_v9, %v6064_v9  ;;  %v16279_v9 = vcombine.low %v1914_v16, %v1918_v10  ;;  %v16288_v8 = vcombine.high %v1922_v18, %v1926_v35  ;;  %v16290_v46 = vcombine.high %v1923_v57, %v1927_v39  ;;  %v1959_v16 = vld [vmem:[#allocation4 + $0x2128] sm:$0xff] }
 0x6be   :  { %8788 = vmatprep.mubr.bf16.mxu1 %v19222_v33  ;;  %8952 = vmatprep.mubr.bf16.mxu0 %v19222_v33  ;;  %v16289_v21 = vcombine.low %v1923_v57, %v1927_v39 }
 0x6bf   :  { %8789 = vmatmul.mubr.bf16.vlgmr.msra.gmra.mrb[20].mxu1 %v19228_v12  ;;  %8953 = vmatmul.mubr.bf16.vlgmr.msra.gmra.mrb[16].mxu0 %v19228_v12 }
 0x6c0   :  { %8798 = vmatpush1.bf16.msra.mxu1 %v16239_v51  ;;  %8962 = vmatpush1.bf16.msra.mxu0 %v16241_v4  ;;  %v1934_v51 = vld [vmem:[#allocation4 + $0x2060] sm:$0xff]  ;;  %v1931_v4 = vld [vmem:[#allocation4 + $0x2048] sm:$0xff] }
 0x6c1   :  { %8829 = vmatprep.mubr.bf16.mxu1 %v19234_v42  ;;  %8993 = vmatprep.mubr.bf16.mxu0 %v19234_v42  ;;  %v16296_v38 = vcombine.high %v1930_v50, %v1934_v51  ;;  %v16298_v25 = vcombine.high %v1931_v4, %v1935_v27  ;;  %v16295_v43 = vcombine.low %v1930_v50, %v1934_v51  ;;  %v1971_v50 = vld [vmem:[#allocation4 + $0x2188] sm:$0xff] }
 0x6c2   :  { %8799 = vmatprep.subr.bf16.mxu1 %v16248_v28  ;;  %8963 = vmatprep.subr.bf16.mxu0 %v16250_v53  ;;  %v6007_v28 = vmul.f32 0.044715, %v19241_v40  ;;  %v16287_v53 = vcombine.low %v1922_v18, %v1926_v35  ;;  %v16297_v52 = vcombine.low %v1931_v4, %v1935_v27  ;;  %v1967_v18 = vld [vmem:[#allocation4 + $0x2168] sm:$0xff] }
 0x6c3   :  { %v1975_v51 = vld [vmem:[#allocation4 + $0x21a8] sm:$0xff] }
 0x6c4   :  { %8800 = vmatpush1.bf16.msra.mxu1 %v16247_v0  ;;  %8964 = vmatpush1.bf16.msra.mxu0 %v16249_v56  ;;  %v1942_v0 = vld [vmem:[#allocation4 + $0x20a0] sm:$0xff]  ;;  %v1939_v56 = vld [vmem:[#allocation4 + $0x2088] sm:$0xff] }
 0x6c5   :  { %8801 = vmatprep.subr.bf16.mxu1 %v16256_v45  ;;  %8965 = vmatprep.subr.bf16.mxu0 %v16258_v49  ;;  %v1943_v45 = vld [vmem:[#allocation4 + $0x20a8] sm:$0xff]  ;;  %v6015_v49 = vmul.f32 %v19241_v40, %v6007_v28  ;;  %v16304_v60 = vcombine.high %v1938_v32, %v1942_v0  ;;  %v16303_v59 = vcombine.low %v1938_v32, %v1942_v0 }
 0x6c6   :  { %v16306_v30 = vcombine.high %v1939_v56, %v1943_v45  ;;  %v16305_v41 = vcombine.low %v1939_v56, %v1943_v45  ;;  %v1983_v32 = vld [vmem:[#allocation4 + $0x21e8] sm:$0xff]  ;;  %v16337_v56 = vcombine.low %v1971_v50, %v1975_v51 }
 0x6c7   :  { %v6023_v20 = vmul.f32 %v19241_v40, %v6015_v49 }
 0x6c8   :  { %8802 = vmatpush1.bf16.msra.mxu1 %v16255_v24  ;;  %8966 = vmatpush1.bf16.msra.mxu0 %v16257_v54  ;;  %v1946_v24 = vld [vmem:[#allocation4 + $0x20c0] sm:$0xff] }
 0x6c9   :  { %8803 = vmatprep.subr.bf16.mxu1 %v16264_v36  ;;  %8967 = vmatprep.subr.bf16.mxu0 %v16266_v55  ;;  %v1950_v54 = vld [vmem:[#allocation4 + $0x20e0] sm:$0xff]  ;;  %v1947_v36 = vld [vmem:[#allocation4 + $0x20c8] sm:$0xff]  ;;  %v6031_v10 = vadd.f32 %v19241_v40, %v6023_v20 }
 0x6ca   :  { %v1951_v55 = vld [vmem:[#allocation4 + $0x20e8] sm:$0xff]  ;;  %v16312_v44 = vcombine.high %v1946_v24, %v1950_v54  ;;  %v16311_v17 = vcombine.low %v1946_v24, %v1950_v54  ;;  %v1994_v20 = vld [vmem:[#allocation4 + $0x2240] sm:$0xff] }
 0x6cb   :  { %v16313_v14 = vcombine.low %v1947_v36, %v1951_v55  ;;  %v6039_v39 = vmul.f32 0.7978846, %v6031_v10 }
 0x6cc   :  { %8804 = vmatpush1.bf16.msra.mxu1 %v16263_v1  ;;  %8968 = vmatpush1.bf16.msra.mxu0 %v16265_v2  ;;  %v16314_v1 = vcombine.high %v1947_v36, %v1951_v55  ;;  %v1954_v2 = vld [vmem:[#allocation4 + $0x2100] sm:$0xff] }
 0x6cd   :  { %8805 = vmatprep.subr.bf16.mxu1 %v16272_v3  ;;  %8969 = vmatprep.subr.bf16.mxu0 %v16274_v5  ;;  %v1958_v3 = vld [vmem:[#allocation4 + $0x2120] sm:$0xff]  ;;  %v1955_v5 = vld [vmem:[#allocation4 + $0x2108] sm:$0xff]  ;;  %18463 = vtanh.f32 %v6039_v39  ;;  %v1500_v39 = vld [vmem:[#allocation4 + $0x12d0] sm:$0xff] }
 0x6ce   :  { %v16320_v15 = vcombine.high %v1954_v2, %v1958_v3  ;;  %v16319_v35 = vcombine.low %v1954_v2, %v1958_v3  ;;  %v16321_v57 = vcombine.low %v1955_v5, %v1959_v16 }
 0x6d0   :  { %8806 = vmatpush1.bf16.msra.mxu1 %v16271_v48  ;;  %8970 = vmatpush1.bf16.msra.mxu0 %v16273_v22  ;;  %v16322_v48 = vcombine.high %v1955_v5, %v1959_v16  ;;  %v1962_v22 = vld [vmem:[#allocation4 + $0x2140] sm:$0xff] }
 0x6d1   :  { %8807 = vmatprep.subr.bf16.mxu1 %v16280_v23  ;;  %8971 = vmatprep.subr.bf16.mxu0 %v16282_v34  ;;  %v1966_v23 = vld [vmem:[#allocation4 + $0x2160] sm:$0xff]  ;;  %v1963_v34 = vld [vmem:[#allocation4 + $0x2148] sm:$0xff] }
 0x6d2   :  { %v16327_v4 = vcombine.low %v1962_v22, %v1966_v23  ;;  %v16329_v27 = vcombine.low %v1963_v34, %v1967_v18 }
 0x6d4   :  { %8808 = vmatpush1.bf16.msra.mxu1 %v16279_v9  ;;  %8972 = vmatpush1.bf16.msra.mxu0 %v16281_v13  ;;  %v16328_v9 = vcombine.high %v1962_v22, %v1966_v23  ;;  %v16330_v13 = vcombine.high %v1963_v34, %v1967_v18  ;;  %v5999_v22 = vmul.f32 0.5, %v19241_v40 }
 0x6d5   :  { %8809 = vmatprep.subr.bf16.mxu1 %v16288_v8  ;;  %8973 = vmatprep.subr.bf16.mxu0 %v16290_v46  ;;  %v1970_v8 = vld [vmem:[#allocation4 + $0x2180] sm:$0xff] }
 0x6d6   :  { %v1974_v46 = vld [vmem:[#allocation4 + $0x21a0] sm:$0xff] }
 0x6d7   :  { %v16336_v28 = vcombine.high %v1970_v8, %v1974_v46  ;;  %v16335_v0 = vcombine.low %v1970_v8, %v1974_v46  ;;  %v1505_v8 = vld [vmem:[#allocation4 + $0x12f8] sm:$0xff] }
 0x6d8   :  { %8810 = vmatpush1.bf16.msra.mxu1 %v16287_v53  ;;  %8974 = vmatpush1.bf16.msra.mxu0 %v16289_v21  ;;  %v16338_v53 = vcombine.high %v1971_v50, %v1975_v51  ;;  %v1978_v21 = vld [vmem:[#allocation4 + $0x21c0] sm:$0xff] }
 0x6d9   :  { %8811 = vmatprep.subr.bf16.mxu1 %v16296_v38  ;;  %8975 = vmatprep.subr.bf16.mxu0 %v16298_v25  ;;  %v1982_v38 = vld [vmem:[#allocation4 + $0x21e0] sm:$0xff]  ;;  %v1979_v25 = vld [vmem:[#allocation4 + $0x21c8] sm:$0xff] }
 0x6da   :  { %v16344_v45 = vcombine.high %v1978_v21, %v1982_v38  ;;  %v16346_v49 = vcombine.high %v1979_v25, %v1983_v32  ;;  %v16343_v24 = vcombine.low %v1978_v21, %v1982_v38  ;;  %v16345_v54 = vcombine.low %v1979_v25, %v1983_v32  ;;  %v1513_v21 = vld [vmem:[#allocation4 + $0x1338] sm:$0xff] }
 0x6dc   :  { %8812 = vmatpush1.bf16.msra.mxu1 %v16295_v43  ;;  %8976 = vmatpush1.bf16.msra.mxu0 %v16297_v52  ;;  %v1986_v43 = vld [vmem:[#allocation4 + $0x2200] sm:$0xff] }
 0x6dd   :  { %8813 = vmatprep.subr.bf16.mxu1 %v16304_v60  ;;  %8977 = vmatprep.subr.bf16.mxu0 %v16306_v30  ;;  %v1990_v52 = vld [vmem:[#allocation4 + $0x2220] sm:$0xff]  ;;  %v1987_v60 = vld [vmem:[#allocation4 + $0x2208] sm:$0xff] }
 0x6de   :  { %v1991_v30 = vld [vmem:[#allocation4 + $0x2228] sm:$0xff]  ;;  %v16352_v36 = vcombine.high %v1986_v43, %v1990_v52  ;;  %v16351_v2 = vcombine.low %v1986_v43, %v1990_v52  ;;  %v1521_v43 = vld [vmem:[#allocation4 + $0x1378] sm:$0xff] }
 0x6df   :  { %v16354_v55 = vcombine.high %v1987_v60, %v1991_v30  ;;  %v16353_v3 = vcombine.low %v1987_v60, %v1991_v30 }
 0x6e0   :  { %8814 = vmatpush1.bf16.msra.mxu1 %v16303_v59  ;;  %8978 = vmatpush1.bf16.msra.mxu0 %v16305_v41  ;;  %v18464_v59 = vpop.eup %18463  ;;  %v1998_v41 = vld [vmem:[#allocation4 + $0x2260] sm:$0xff] }
 0x6e1   :  { %8815 = vmatprep.subr.bf16.mxu1 %v16312_v44  ;;  %8979 = vmatprep.subr.bf16.mxu0 %v16314_v1  ;;  %v1995_v44 = vld [vmem:[#allocation4 + $0x2248] sm:$0xff]  ;;  %v16360_v5 = vcombine.high %v1994_v20, %v1998_v41  ;;  %v6055_v10 = vadd.f32 1.0, %v18464_v59  ;;  %v16359_v23 = vcombine.low %v1994_v20, %v1998_v41 }
 0x6e2   :  { %v1999_v1 = vld [vmem:[#allocation4 + $0x2268] sm:$0xff] }
 0x6e3   :  { %v16362_v16 = vcombine.high %v1995_v44, %v1999_v1  ;;  %v16361_v34 = vcombine.low %v1995_v44, %v1999_v1  ;;  %v6063_v18 = vmul.f32 %v6055_v10, %v5999_v22  ;;  %v1532_v1 = vld [vmem:[#allocation4 + $0x13d0] sm:$0xff]  ;;  %v1541_v22 = vld [vmem:[#allocation4 + $0x1418] sm:$0xff] }
 0x6e4   :  { %8816 = vmatpush1.bf16.msra.mxu1 %v16311_v17  ;;  %8980 = vmatpush1.bf16.msra.mxu0 %v16313_v14  ;;  %v1492_v17 = vld [vmem:[#allocation4 + $0x1290] sm:$0xff] }
 0x6e5   :  { %8817 = vmatprep.subr.bf16.mxu1 %v16320_v15  ;;  %8981 = vmatprep.subr.bf16.mxu0 %v16322_v48  ;;  %v1496_v14 = vld [vmem:[#allocation4 + $0x12b0] sm:$0xff]  ;;  %v1493_v15 = vld [vmem:[#allocation4 + $0x1298] sm:$0xff]  ;;  %v19248_v50 = vpack.c.bf16 %v6063_v18, %v6063_v18 }
 0x6e6   :  { %v1497_v48 = vld [vmem:[#allocation4 + $0x12b8] sm:$0xff]  ;;  %v15859_v46 = vcombine.low %v1492_v17, %v1496_v14 }
 0x6e7   :  { %v15861_v40 = vcombine.low %v1493_v15, %v1497_v48 }
 0x6e8   :  { %8818 = vmatpush1.bf16.msra.mxu1 %v16319_v35  ;;  %8982 = vmatpush1.bf16.msra.mxu0 %v16321_v57  ;;  %v15860_v35 = vcombine.high %v1492_v17, %v1496_v14  ;;  %v15862_v57 = vcombine.high %v1493_v15, %v1497_v48  ;;  %v1540_v15 = vld [vmem:[#allocation4 + $0x1410] sm:$0xff] }
 0x6e9   :  { %8819 = vmatprep.subr.bf16.mxu1 %v16328_v9  ;;  %8983 = vmatprep.subr.bf16.mxu0 %v16330_v13  ;;  %v1504_v9 = vld [vmem:[#allocation4 + $0x12f0] sm:$0xff]  ;;  %v1501_v13 = vld [vmem:[#allocation4 + $0x12d8] sm:$0xff] }
 0x6ea   :  { %v15868_v51 = vcombine.high %v1500_v39, %v1504_v9  ;;  %v15867_v38 = vcombine.low %v1500_v39, %v1504_v9  ;;  %v15869_v25 = vcombine.low %v1501_v13, %v1505_v8  ;;  %v1544_v48 = vld [vmem:[#allocation4 + $0x1430] sm:$0xff] }
 0x6eb   :  { %v1548_v39 = vld [vmem:[#allocation4 + $0x1450] sm:$0xff] }
 0x6ec   :  { %8820 = vmatpush1.bf16.msra.mxu1 %v16327_v4  ;;  %8984 = vmatpush1.bf16.msra.mxu0 %v16329_v27  ;;  %v15870_v4 = vcombine.high %v1501_v13, %v1505_v8  ;;  %v1508_v27 = vld [vmem:[#allocation4 + $0x1310] sm:$0xff]  ;;  %v1549_v13 = vld [vmem:[#allocation4 + $0x1458] sm:$0xff] }
 0x6ed   :  { %8821 = vmatprep.subr.bf16.mxu1 %v16336_v28  ;;  %8985 = vmatprep.subr.bf16.mxu0 %v16338_v53  ;;  %v1512_v28 = vld [vmem:[#allocation4 + $0x1330] sm:$0xff]  ;;  %v1509_v53 = vld [vmem:[#allocation4 + $0x1318] sm:$0xff] }
 0x6ee   :  { %v15876_v32 = vcombine.high %v1508_v27, %v1512_v28  ;;  %v15875_v52 = vcombine.low %v1508_v27, %v1512_v28  ;;  %v15877_v60 = vcombine.low %v1509_v53, %v1513_v21  ;;  %v1552_v9 = vld [vmem:[#allocation4 + $0x1470] sm:$0xff]  ;;  %v1553_v8 = vld [vmem:[#allocation4 + $0x1478] sm:$0xff] }
 0x6ef   :  { %v1556_v27 = vld [vmem:[#allocation4 + $0x1490] sm:$0xff] }
 0x6f0   :  { %8822 = vmatpush1.bf16.msra.mxu1 %v16335_v0  ;;  %8986 = vmatpush1.bf16.msra.mxu0 %v16337_v56  ;;  %v15878_v0 = vcombine.high %v1509_v53, %v1513_v21  ;;  %v1516_v56 = vld [vmem:[#allocation4 + $0x1350] sm:$0xff]  ;;  %v1557_v53 = vld [vmem:[#allocation4 + $0x1498] sm:$0xff] }
 0x6f1   :  { %8823 = vmatprep.subr.bf16.mxu1 %v16344_v45  ;;  %8987 = vmatprep.subr.bf16.mxu0 %v16346_v49  ;;  %v1520_v45 = vld [vmem:[#allocation4 + $0x1370] sm:$0xff]  ;;  %v1517_v49 = vld [vmem:[#allocation4 + $0x1358] sm:$0xff] }
 0x6f2   :  { %v15884_v30 = vcombine.high %v1516_v56, %v1520_v45  ;;  %v15883_v20 = vcombine.low %v1516_v56, %v1520_v45  ;;  %v15885_v59 = vcombine.low %v1517_v49, %v1521_v43  ;;  %v1560_v28 = vld [vmem:[#allocation4 + $0x14b0] sm:$0xff]  ;;  %v1561_v21 = vld [vmem:[#allocation4 + $0x14b8] sm:$0xff] }
 0x6f3   :  { %v1564_v56 = vld [vmem:[#allocation4 + $0x14d0] sm:$0xff] }
 0x6f4   :  { %8824 = vmatpush1.bf16.msra.mxu1 %v16343_v24  ;;  %8988 = vmatpush1.bf16.msra.mxu0 %v16345_v54  ;;  %v15886_v24 = vcombine.high %v1517_v49, %v1521_v43  ;;  %v1524_v54 = vld [vmem:[#allocation4 + $0x1390] sm:$0xff]  ;;  %v1565_v49 = vld [vmem:[#allocation4 + $0x14d8] sm:$0xff] }
 0x6f5   :  { %8825 = vmatprep.subr.bf16.mxu1 %v16352_v36  ;;  %8989 = vmatprep.subr.bf16.mxu0 %v16354_v55  ;;  %v1528_v36 = vld [vmem:[#allocation4 + $0x13b0] sm:$0xff]  ;;  %v1529_v55 = vld [vmem:[#allocation4 + $0x13b8] sm:$0xff] }
 0x6f6   :  { %v15892_v41 = vcombine.high %v1524_v54, %v1528_v36  ;;  %v1568_v45 = vld [vmem:[#allocation4 + $0x14f0] sm:$0xff]  ;;  %v1569_v43 = vld [vmem:[#allocation4 + $0x14f8] sm:$0xff] }
 0x6f8   :  { %8826 = vmatpush1.bf16.msra.mxu1 %v16351_v2  ;;  %8990 = vmatpush1.bf16.msra.mxu0 %v16353_v3  ;;  %v1536_v2 = vld [vmem:[#allocation4 + $0x13f0] sm:$0xff]  ;;  %v1533_v3 = vld [vmem:[#allocation4 + $0x13d8] sm:$0xff] }
 0x6f9   :  { %8827 = vmatprep.subr.bf16.mxu1 %v16360_v5  ;;  %8991 = vmatprep.subr.bf16.mxu0 %v16362_v16  ;;  %v1537_v5 = vld [vmem:[#allocation4 + $0x13f8] sm:$0xff]  ;;  %v15891_v16 = vcombine.low %v1524_v54, %v1528_v36  ;;  %v15900_v17 = vcombine.high %v1532_v1, %v1536_v2  ;;  %v1572_v54 = vld [vmem:[#allocation4 + $0x1510] sm:$0xff] }
 0x6fa   :  { %v15902_v14 = vcombine.high %v1533_v3, %v1537_v5  ;;  %v15901_v18 = vcombine.low %v1533_v3, %v1537_v5  ;;  %v1576_v36 = vld [vmem:[#allocation4 + $0x1530] sm:$0xff]  ;;  %v1581_v3 = vld [vmem:[#allocation4 + $0x1558] sm:$0xff] }
 0x6fb   :  { %v1585_v5 = vld [vmem:[#allocation4 + $0x1578] sm:$0xff] }
 0x6fc   :  { %8828 = vmatpush1.bf16.msra.mxu1 %v16359_v23  ;;  %8992 = vmatpush1.bf16.msra.mxu0 %v16361_v34  ;;  %v1545_v23 = vld [vmem:[#allocation4 + $0x1438] sm:$0xff]  ;;  %v15899_v34 = vcombine.low %v1532_v1, %v1536_v2  ;;  %v1580_v1 = vld [vmem:[#allocation4 + $0x1550] sm:$0xff] }
 0x6fd   :  { %9002 = vmatprep.subr.bf16.mxu1 %v15860_v35  ;;  %9166 = vmatprep.subr.bf16.mxu0 %v15862_v57  ;;  %v15908_v35 = vcombine.high %v1540_v15, %v1544_v48  ;;  %v15910_v57 = vcombine.high %v1541_v22, %v1545_v23  ;;  %v1584_v2 = vld [vmem:[#allocation4 + $0x1570] sm:$0xff] }
 0x6ff   :  { %8830 = vmatmul.mubr.bf16.vlgmr.msra.gmra.mrb[20].mxu1 %v19248_v50  ;;  %8994 = vmatmul.mubr.bf16.vlgmr.msra.gmra.mrb[16].mxu0 %v19248_v50 }
 0x700   :  { %9003 = vmatpush1.bf16.msra.mxu1 %v15859_v46  ;;  %9034 = vmatprep.mubr.bf16.mxu1 %v19155_v26  ;;  %v15907_v46 = vcombine.low %v1540_v15, %v1544_v48  ;;  %v1588_v15 = vld [vmem:[#allocation4 + $0x1590] sm:$0xff] }
 0x701   :  { %9167 = vmatpush1.bf16.msra.mxu0 %v15861_v40  ;;  %9198 = vmatprep.mubr.bf16.mxu0 %v19155_v26  ;;  %v1525_v26 = vld [vmem:[#allocation4 + $0x1398] sm:$0xff]  ;;  %v15909_v40 = vcombine.low %v1541_v22, %v1545_v23  ;;  %v1592_v48 = vld [vmem:[#allocation4 + $0x15b0] sm:$0xff] }
 0x702   :  { %9004 = vmatprep.subr.bf16.mxu1 %v15868_v51  ;;  %9168 = vmatprep.subr.bf16.mxu0 %v15870_v4  ;;  %v15894_v44 = vcombine.high %v1525_v26, %v1529_v55  ;;  %v15893_v10 = vcombine.low %v1525_v26, %v1529_v55  ;;  %v15916_v51 = vcombine.high %v1548_v39, %v1552_v9  ;;  %v1573_v26 = vld [vmem:[#allocation4 + $0x1518] sm:$0xff] }
 0x703   :  { %v15918_v4 = vcombine.high %v1549_v13, %v1553_v8  ;;  %v1577_v55 = vld [vmem:[#allocation4 + $0x1538] sm:$0xff] }
 0x704   :  { %9005 = vmatpush1.bf16.msra.mxu1 %v15867_v38  ;;  %v15915_v38 = vcombine.low %v1548_v39, %v1552_v9  ;;  %v1589_v22 = vld [vmem:[#allocation4 + $0x1598] sm:$0xff]  ;;  %v1596_v39 = vld [vmem:[#allocation4 + $0x15d0] sm:$0xff] }
 0x705   :  { %9169 = vmatpush1.bf16.msra.mxu0 %v15869_v25  ;;  %9006 = vmatprep.subr.bf16.mxu1 %v15876_v32  ;;  %v15917_v25 = vcombine.low %v1549_v13, %v1553_v8  ;;  %v15924_v32 = vcombine.high %v1556_v27, %v1560_v28  ;;  %v1593_v23 = vld [vmem:[#allocation4 + $0x15b8] sm:$0xff]  ;;  %v1600_v9 = vld [vmem:[#allocation4 + $0x15f0] sm:$0xff] }
 0x706   :  { %9170 = vmatprep.subr.bf16.mxu0 %v15878_v0  ;;  %v15926_v0 = vcombine.high %v1557_v53, %v1561_v21  ;;  %v1597_v13 = vld [vmem:[#allocation4 + $0x15d8] sm:$0xff] }
 0x707   :  { %v1601_v8 = vld [vmem:[#allocation4 + $0x15f8] sm:$0xff] }
 0x708   :  { %9007 = vmatpush1.bf16.msra.mxu1 %v15875_v52  ;;  %v15923_v52 = vcombine.low %v1556_v27, %v1560_v28  ;;  %v1604_v27 = vld [vmem:[#allocation4 + $0x1610] sm:$0xff] }
 0x709   :  { %9171 = vmatpush1.bf16.msra.mxu0 %v15877_v60  ;;  %9008 = vmatprep.subr.bf16.mxu1 %v15884_v30  ;;  %v15925_v60 = vcombine.low %v1557_v53, %v1561_v21  ;;  %v15932_v30 = vcombine.high %v1564_v56, %v1568_v45  ;;  %v1608_v28 = vld [vmem:[#allocation4 + $0x1630] sm:$0xff]  ;;  %v1605_v53 = vld [vmem:[#allocation4 + $0x1618] sm:$0xff] }
 0x70a   :  { %9172 = vmatprep.subr.bf16.mxu0 %v15886_v24  ;;  %v15934_v24 = vcombine.high %v1565_v49, %v1569_v43  ;;  %v1609_v21 = vld [vmem:[#allocation4 + $0x1638] sm:$0xff] }
 0x70c   :  { %9009 = vmatpush1.bf16.msra.mxu1 %v15883_v20  ;;  %v15931_v20 = vcombine.low %v1564_v56, %v1568_v45  ;;  %v1612_v56 = vld [vmem:[#allocation4 + $0x1650] sm:$0xff] }
 0x70d   :  { %9173 = vmatpush1.bf16.msra.mxu0 %v15885_v59  ;;  %9010 = vmatprep.subr.bf16.mxu1 %v15892_v41  ;;  %v15933_v59 = vcombine.low %v1565_v49, %v1569_v43  ;;  %v15940_v41 = vcombine.high %v1572_v54, %v1576_v36  ;;  %v1616_v45 = vld [vmem:[#allocation4 + $0x1670] sm:$0xff]  ;;  %v1613_v49 = vld [vmem:[#allocation4 + $0x1658] sm:$0xff] }
 0x70e   :  { %9174 = vmatprep.subr.bf16.mxu0 %v15894_v44  ;;  %v15942_v44 = vcombine.high %v1573_v26, %v1577_v55  ;;  %v1617_v43 = vld [vmem:[#allocation4 + $0x1678] sm:$0xff] }
 0x710   :  { %9011 = vmatpush1.bf16.msra.mxu1 %v15891_v16  ;;  %v15939_v16 = vcombine.low %v1572_v54, %v1576_v36  ;;  %v1620_v54 = vld [vmem:[#allocation4 + $0x1690] sm:$0xff] }
 0x711   :  { %9175 = vmatpush1.bf16.msra.mxu0 %v15893_v10  ;;  %9012 = vmatprep.subr.bf16.mxu1 %v15900_v17  ;;  %v15941_v10 = vcombine.low %v1573_v26, %v1577_v55  ;;  %v15948_v17 = vcombine.high %v1580_v1, %v1584_v2  ;;  %v1624_v36 = vld [vmem:[#allocation4 + $0x16b0] sm:$0xff]  ;;  %v1621_v26 = vld [vmem:[#allocation4 + $0x1698] sm:$0xff] }
 0x712   :  { %9176 = vmatprep.subr.bf16.mxu0 %v15902_v14  ;;  %v15950_v14 = vcombine.high %v1581_v3, %v1585_v5  ;;  %v1625_v55 = vld [vmem:[#allocation4 + $0x16b8] sm:$0xff] }
 0x714   :  { %9013 = vmatpush1.bf16.msra.mxu1 %v15899_v34  ;;  %v15947_v34 = vcombine.low %v1580_v1, %v1584_v2  ;;  %v1628_v1 = vld [vmem:[#allocation4 + $0x16d0] sm:$0xff] }
 0x715   :  { %9177 = vmatpush1.bf16.msra.mxu0 %v15901_v18  ;;  %9014 = vmatprep.subr.bf16.mxu1 %v15908_v35  ;;  %v15949_v18 = vcombine.low %v1581_v3, %v1585_v5  ;;  %v15956_v35 = vcombine.high %v1588_v15, %v1592_v48  ;;  %v1632_v2 = vld [vmem:[#allocation4 + $0x16f0] sm:$0xff]  ;;  %v15987_v3 = vcombine.low %v1620_v54, %v1624_v36  ;;  %v1629_v5 = vld [vmem:[#allocation4 + $0x16d8] sm:$0xff] }
 0x716   :  { %9178 = vmatprep.subr.bf16.mxu0 %v15910_v57  ;;  %v15958_v57 = vcombine.high %v1589_v22, %v1593_v23 }
 0x718   :  { %9015 = vmatpush1.bf16.msra.mxu1 %v15907_v46  ;;  %v15955_v46 = vcombine.low %v1588_v15, %v1592_v48  ;;  %v1640_v15 = vld [vmem:[#allocation4 + $0x1730] sm:$0xff] }
 0x719   :  { %9179 = vmatpush1.bf16.msra.mxu0 %v15909_v40  ;;  %9016 = vmatprep.subr.bf16.mxu1 %v15916_v51  ;;  %v15957_v40 = vcombine.low %v1589_v22, %v1593_v23  ;;  %v15964_v51 = vcombine.high %v1596_v39, %v1600_v9  ;;  %v1637_v22 = vld [vmem:[#allocation4 + $0x1718] sm:$0xff] }
 0x71a   :  { %9180 = vmatprep.subr.bf16.mxu0 %v15918_v4  ;;  %v15966_v4 = vcombine.high %v1597_v13, %v1601_v8  ;;  %v1641_v23 = vld [vmem:[#allocation4 + $0x1738] sm:$0xff] }
 0x71c   :  { %9017 = vmatpush1.bf16.msra.mxu1 %v15915_v38  ;;  %v15963_v38 = vcombine.low %v1596_v39, %v1600_v9  ;;  %v1644_v39 = vld [vmem:[#allocation4 + $0x1750] sm:$0xff] }
 0x71d   :  { %9181 = vmatpush1.bf16.msra.mxu0 %v15917_v25  ;;  %9018 = vmatprep.subr.bf16.mxu1 %v15924_v32  ;;  %v15965_v25 = vcombine.low %v1597_v13, %v1601_v8  ;;  %v15972_v32 = vcombine.high %v1604_v27, %v1608_v28  ;;  %v1648_v9 = vld [vmem:[#allocation4 + $0x1770] sm:$0xff]  ;;  %v1645_v13 = vld [vmem:[#allocation4 + $0x1758] sm:$0xff] }
 0x71e   :  { %9182 = vmatprep.subr.bf16.mxu0 %v15926_v0  ;;  %v15974_v0 = vcombine.high %v1605_v53, %v1609_v21  ;;  %v1649_v8 = vld [vmem:[#allocation4 + $0x1778] sm:$0xff] }
 0x720   :  { %9019 = vmatpush1.bf16.msra.mxu1 %v15923_v52  ;;  %v15971_v52 = vcombine.low %v1604_v27, %v1608_v28  ;;  %v1656_v27 = vld [vmem:[#allocation4 + $0x17b0] sm:$0xff]  ;;  %v1653_v28 = vld [vmem:[#allocation4 + $0x1798] sm:$0xff] }
 0x721   :  { %9183 = vmatpush1.bf16.msra.mxu0 %v15925_v60  ;;  %9020 = vmatprep.subr.bf16.mxu1 %v15932_v30  ;;  %v15973_v60 = vcombine.low %v1605_v53, %v1609_v21  ;;  %v15980_v30 = vcombine.high %v1612_v56, %v1616_v45  ;;  %v1657_v53 = vld [vmem:[#allocation4 + $0x17b8] sm:$0xff]  ;;  %v16013_v21 = vcombine.low %v1645_v13, %v1649_v8 }
 0x722   :  { %9184 = vmatprep.subr.bf16.mxu0 %v15934_v24  ;;  %v15982_v24 = vcombine.high %v1613_v49, %v1617_v43 }
 0x724   :  { %9021 = vmatpush1.bf16.msra.mxu1 %v15931_v20  ;;  %v15979_v20 = vcombine.low %v1612_v56, %v1616_v45  ;;  %v1661_v56 = vld [vmem:[#allocation4 + $0x17d8] sm:$0xff] }
 0x725   :  { %9185 = vmatpush1.bf16.msra.mxu0 %v15933_v59  ;;  %9022 = vmatprep.subr.bf16.mxu1 %v15940_v41  ;;  %v15981_v59 = vcombine.low %v1613_v49, %v1617_v43  ;;  %v15988_v41 = vcombine.high %v1620_v54, %v1624_v36  ;;  %v1665_v45 = vld [vmem:[#allocation4 + $0x17f8] sm:$0xff]  ;;  %v16021_v43 = vcombine.low %v1653_v28, %v1657_v53 }
 0x726   :  { %9186 = vmatprep.subr.bf16.mxu0 %v15942_v44  ;;  %v15990_v44 = vcombine.high %v1621_v26, %v1625_v55  ;;  %v1669_v54 = vld [vmem:[#allocation4 + $0x1818] sm:$0xff] }
 0x727   :  { %v1673_v36 = vld [vmem:[#allocation4 + $0x1838] sm:$0xff] }
 0x728   :  { %9023 = vmatpush1.bf16.msra.mxu1 %v15939_v16  ;;  %v1633_v16 = vld [vmem:[#allocation4 + $0x16f8] sm:$0xff] }
 0x729   :  { %9187 = vmatpush1.bf16.msra.mxu0 %v15941_v10  ;;  %9024 = vmatprep.subr.bf16.mxu1 %v15948_v17  ;;  %v15989_v10 = vcombine.low %v1621_v26, %v1625_v55  ;;  %v15996_v17 = vcombine.high %v1628_v1, %v1632_v2  ;;  %v15998_v48 = vcombine.high %v1629_v5, %v1633_v16 }
 0x72a   :  { %9188 = vmatprep.subr.bf16.mxu0 %v15950_v14  ;;  %v1636_v14 = vld [vmem:[#allocation4 + $0x1710] sm:$0xff]  ;;  %v16029_v55 = vcombine.low %v1661_v56, %v1665_v45 }
 0x72c   :  { %9025 = vmatpush1.bf16.msra.mxu1 %v15947_v34  ;;  %v15995_v34 = vcombine.low %v1628_v1, %v1632_v2  ;;  %v1677_v1 = vld [vmem:[#allocation4 + $0x1858] sm:$0xff] }
 0x72d   :  { %9189 = vmatpush1.bf16.msra.mxu0 %v15949_v18  ;;  %9026 = vmatprep.subr.bf16.mxu1 %v15956_v35  ;;  %v15997_v18 = vcombine.low %v1629_v5, %v1633_v16  ;;  %v16004_v35 = vcombine.high %v1636_v14, %v1640_v15  ;;  %v1681_v2 = vld [vmem:[#allocation4 + $0x1878] sm:$0xff]  ;;  %v16037_v5 = vcombine.low %v1669_v54, %v1673_v36 }
 0x72e   :  { %9190 = vmatprep.subr.bf16.mxu0 %v15958_v57  ;;  %v16006_v57 = vcombine.high %v1637_v22, %v1641_v23 }
 0x730   :  { %9027 = vmatpush1.bf16.msra.mxu1 %v15955_v46  ;;  %v16003_v46 = vcombine.low %v1636_v14, %v1640_v15  ;;  %v1688_v14 = vld [vmem:[#allocation4 + $0x18b0] sm:$0xff]  ;;  %v1685_v15 = vld [vmem:[#allocation4 + $0x1898] sm:$0xff] }
 0x731   :  { %9191 = vmatpush1.bf16.msra.mxu0 %v15957_v40  ;;  %9028 = vmatprep.subr.bf16.mxu1 %v15964_v51  ;;  %v16012_v40 = vcombine.high %v1644_v39, %v1648_v9  ;;  %v16014_v51 = vcombine.high %v1645_v13, %v1649_v8 }
 0x732   :  { %9192 = vmatprep.subr.bf16.mxu0 %v15966_v4  ;;  %v1652_v4 = vld [vmem:[#allocation4 + $0x1790] sm:$0xff] }
 0x733   :  { %v16019_v49 = vcombine.low %v1652_v4, %v1656_v27 }
 0x734   :  { %9029 = vmatpush1.bf16.msra.mxu1 %v15963_v38  ;;  %v16020_v38 = vcombine.high %v1652_v4, %v1656_v27  ;;  %v1701_v4 = vld [vmem:[#allocation4 + $0x1918] sm:$0xff] }
 0x735   :  { %9193 = vmatpush1.bf16.msra.mxu0 %v15965_v25  ;;  %9030 = vmatprep.subr.bf16.mxu1 %v15972_v32  ;;  %v16022_v25 = vcombine.high %v1653_v28, %v1657_v53  ;;  %v1660_v32 = vld [vmem:[#allocation4 + $0x17d0] sm:$0xff]  ;;  %v1705_v27 = vld [vmem:[#allocation4 + $0x1938] sm:$0xff] }
 0x736   :  { %9194 = vmatprep.subr.bf16.mxu0 %v15974_v0  ;;  %v1664_v0 = vld [vmem:[#allocation4 + $0x17f0] sm:$0xff] }
 0x737   :  { %v16027_v26 = vcombine.low %v1660_v32, %v1664_v0 }
 0x738   :  { %9031 = vmatpush1.bf16.msra.mxu1 %v15971_v52  ;;  %v16028_v52 = vcombine.high %v1660_v32, %v1664_v0  ;;  %v1709_v32 = vld [vmem:[#allocation4 + $0x1958] sm:$0xff] }
 0x739   :  { %9195 = vmatpush1.bf16.msra.mxu0 %v15973_v60  ;;  %9032 = vmatprep.subr.bf16.mxu1 %v15980_v30  ;;  %v16030_v60 = vcombine.high %v1661_v56, %v1665_v45  ;;  %v1668_v30 = vld [vmem:[#allocation4 + $0x1810] sm:$0xff]  ;;  %v1713_v0 = vld [vmem:[#allocation4 + $0x1978] sm:$0xff]  ;;  %v16069_v45 = vcombine.low %v1701_v4, %v1705_v27 }
 0x73a   :  { %9196 = vmatprep.subr.bf16.mxu0 %v15982_v24  ;;  %v1672_v24 = vld [vmem:[#allocation4 + $0x1830] sm:$0xff] }
 0x73c   :  { %9033 = vmatpush1.bf16.msra.mxu1 %v15979_v20  ;;  %v16036_v20 = vcombine.high %v1668_v30, %v1672_v24 }
 0x73d   :  { %9197 = vmatpush1.bf16.msra.mxu0 %v15981_v59  ;;  %9043 = vmatprep.subr.bf16.mxu1 %v15988_v41  ;;  %v16038_v59 = vcombine.high %v1669_v54, %v1673_v36  ;;  %v1676_v41 = vld [vmem:[#allocation4 + $0x1850] sm:$0xff]  ;;  %v16077_v36 = vcombine.low %v1709_v32, %v1713_v0 }
 0x73e   :  { %9207 = vmatprep.subr.bf16.mxu0 %v15990_v44  ;;  %v1680_v44 = vld [vmem:[#allocation4 + $0x1870] sm:$0xff] }
 0x73f   :  { %9035 = vmatmul.mubr.bf16.vlgmr.msra.gmra.mrb[24].mxu1 %v19180_v29  ;;  %v16044_v16 = vcombine.high %v1676_v41, %v1680_v44 }
 0x740   :  { %9199 = vmatmul.mubr.bf16.vlgmr.msra.gmra.mrb[20].mxu0 %v19180_v29  ;;  %9044 = vmatpush1.bf16.msra.mxu1 %v15987_v3  ;;  %v16005_v29 = vcombine.low %v1637_v22, %v1641_v23  ;;  %v16035_v3 = vcombine.low %v1668_v30, %v1672_v24  ;;  %v16043_v22 = vcombine.low %v1676_v41, %v1680_v44  ;;  %v1717_v30 = vld [vmem:[#allocation4 + $0x1998] sm:$0xff] }
 0x741   :  { %9075 = vmatprep.mubr.bf16.mxu1 %v19183_v7  ;;  %9208 = vmatpush1.bf16.msra.mxu0 %v15989_v10  ;;  %v16046_v10 = vcombine.high %v1677_v1, %v1681_v2  ;;  %v16045_v23 = vcombine.low %v1677_v1, %v1681_v2  ;;  %v1721_v24 = vld [vmem:[#allocation4 + $0x19b8] sm:$0xff] }
 0x742   :  { %9239 = vmatprep.mubr.bf16.mxu0 %v19183_v7  ;;  %9045 = vmatprep.subr.bf16.mxu1 %v15996_v17  ;;  %v16011_v7 = vcombine.low %v1644_v39, %v1648_v9  ;;  %v1684_v17 = vld [vmem:[#allocation4 + $0x1890] sm:$0xff]  ;;  %v1693_v39 = vld [vmem:[#allocation4 + $0x18d8] sm:$0xff]  ;;  %v16085_v2 = vcombine.low %v1717_v30, %v1721_v24 }
 0x743   :  { %9209 = vmatprep.subr.bf16.mxu0 %v15998_v48  ;;  %v1689_v48 = vld [vmem:[#allocation4 + $0x18b8] sm:$0xff]  ;;  %v16051_v13 = vcombine.low %v1684_v17, %v1688_v14 }
 0x744   :  { %9046 = vmatpush1.bf16.msra.mxu1 %v15995_v34  ;;  %v16052_v34 = vcombine.high %v1684_v17, %v1688_v14  ;;  %v1697_v9 = vld [vmem:[#allocation4 + $0x18f8] sm:$0xff]  ;;  %v16053_v8 = vcombine.low %v1685_v15, %v1689_v48 }
 0x745   :  { %9210 = vmatpush1.bf16.msra.mxu0 %v15997_v18  ;;  %9047 = vmatprep.subr.bf16.mxu1 %v16004_v35  ;;  %v16054_v18 = vcombine.high %v1685_v15, %v1689_v48  ;;  %v1692_v35 = vld [vmem:[#allocation4 + $0x18d0] sm:$0xff]  ;;  %v16061_v53 = vcombine.low %v1693_v39, %v1697_v9  ;;  %v1725_v41 = vld [vmem:[#allocation4 + $0x19d8] sm:$0xff] }
 0x746   :  { %9211 = vmatprep.subr.bf16.mxu0 %v16006_v57  ;;  %v1696_v57 = vld [vmem:[#allocation4 + $0x18f0] sm:$0xff]  ;;  %v1729_v44 = vld [vmem:[#allocation4 + $0x19f8] sm:$0xff] }
 0x747   :  { %v16059_v28 = vcombine.low %v1692_v35, %v1696_v57  ;;  %v1733_v17 = vld [vmem:[#allocation4 + $0x1a18] sm:$0xff]  ;;  %v16093_v48 = vcombine.low %v1725_v41, %v1729_v44 }
 0x748   :  { %9048 = vmatpush1.bf16.msra.mxu1 %v16003_v46  ;;  %v16060_v46 = vcombine.high %v1692_v35, %v1696_v57  ;;  %v1737_v14 = vld [vmem:[#allocation4 + $0x1a38] sm:$0xff] }
 0x749   :  { %9212 = vmatpush1.bf16.msra.mxu0 %v16005_v29  ;;  %9049 = vmatprep.subr.bf16.mxu1 %v16012_v40  ;;  %v16062_v29 = vcombine.high %v1693_v39, %v1697_v9  ;;  %v1700_v40 = vld [vmem:[#allocation4 + $0x1910] sm:$0xff]  ;;  %v1741_v35 = vld [vmem:[#allocation4 + $0x1a58] sm:$0xff]  ;;  %v16101_v9 = vcombine.low %v1733_v17, %v1737_v14 }
 0x74a   :  { %9213 = vmatprep.subr.bf16.mxu0 %v16014_v51  ;;  %v1704_v51 = vld [vmem:[#allocation4 + $0x1930] sm:$0xff]  ;;  %v1745_v57 = vld [vmem:[#allocation4 + $0x1a78] sm:$0xff] }
 0x74b   :  { %v16067_v56 = vcombine.low %v1700_v40, %v1704_v51 }
 0x74c   :  { %9050 = vmatpush1.bf16.msra.mxu1 %v16011_v7  ;;  %v16068_v7 = vcombine.high %v1700_v40, %v1704_v51  ;;  %v1749_v40 = vld [vmem:[#allocation4 + $0x1a98] sm:$0xff] }
 0x74d   :  { %9214 = vmatpush1.bf16.msra.mxu0 %v16013_v21  ;;  %9051 = vmatprep.subr.bf16.mxu1 %v16020_v38  ;;  %v16070_v21 = vcombine.high %v1701_v4, %v1705_v27  ;;  %v1708_v38 = vld [vmem:[#allocation4 + $0x1950] sm:$0xff]  ;;  %v1753_v51 = vld [vmem:[#allocation4 + $0x1ab8] sm:$0xff]  ;;  %v16109_v27 = vcombine.low %v1741_v35, %v1745_v57 }
 0x74e   :  { %9215 = vmatprep.subr.bf16.mxu0 %v16022_v25  ;;  %v1712_v25 = vld [vmem:[#allocation4 + $0x1970] sm:$0xff] }
 0x74f   :  { %v16075_v54 = vcombine.low %v1708_v38, %v1712_v25 }
 0x750   :  { %9052 = vmatpush1.bf16.msra.mxu1 %v16019_v49  ;;  %v16076_v49 = vcombine.high %v1708_v38, %v1712_v25  ;;  %v1757_v25 = vld [vmem:[#allocation4 + $0x1ad8] sm:$0xff] }
 0x751   :  { %9216 = vmatpush1.bf16.msra.mxu0 %v16021_v43  ;;  %9053 = vmatprep.subr.bf16.mxu1 %v16028_v52  ;;  %v16078_v43 = vcombine.high %v1709_v32, %v1713_v0  ;;  %v1716_v52 = vld [vmem:[#allocation4 + $0x1990] sm:$0xff]  ;;  %v1761_v32 = vld [vmem:[#allocation4 + $0x1af8] sm:$0xff]  ;;  %v16117_v0 = vcombine.low %v1749_v40, %v1753_v51 }
 0x752   :  { %9217 = vmatprep.subr.bf16.mxu0 %v16030_v60  ;;  %v1720_v60 = vld [vmem:[#allocation4 + $0x19b0] sm:$0xff] }
 0x753   :  { %v16083_v1 = vcombine.low %v1716_v52, %v1720_v60 }
 0x754   :  { %9054 = vmatpush1.bf16.msra.mxu1 %v16027_v26  ;;  %v16084_v26 = vcombine.high %v1716_v52, %v1720_v60  ;;  %v1765_v52 = vld [vmem:[#allocation4 + $0x1b18] sm:$0xff] }
 0x755   :  { %9218 = vmatpush1.bf16.msra.mxu0 %v16029_v55  ;;  %9055 = vmatprep.subr.bf16.mxu1 %v16036_v20  ;;  %v16086_v55 = vcombine.high %v1717_v30, %v1721_v24  ;;  %v1724_v20 = vld [vmem:[#allocation4 + $0x19d0] sm:$0xff]  ;;  %v1769_v60 = vld [vmem:[#allocation4 + $0x1b38] sm:$0xff]  ;;  %v16125_v24 = vcombine.low %v1757_v25, %v1761_v32 }
 0x756   :  { %9219 = vmatprep.subr.bf16.mxu0 %v16038_v59  ;;  %v1728_v59 = vld [vmem:[#allocation4 + $0x19f0] sm:$0xff] }
 0x757   :  { %v16091_v15 = vcombine.low %v1724_v20, %v1728_v59 }
 0x758   :  { %9056 = vmatpush1.bf16.msra.mxu1 %v16035_v3  ;;  %v16092_v3 = vcombine.high %v1724_v20, %v1728_v59  ;;  %v1773_v20 = vld [vmem:[#allocation4 + $0x1b58] sm:$0xff] }
 0x759   :  { %9220 = vmatpush1.bf16.msra.mxu0 %v16037_v5  ;;  %9057 = vmatprep.subr.bf16.mxu1 %v16044_v16  ;;  %v16094_v5 = vcombine.high %v1725_v41, %v1729_v44  ;;  %v1732_v16 = vld [vmem:[#allocation4 + $0x1a10] sm:$0xff]  ;;  %v1777_v59 = vld [vmem:[#allocation4 + $0x1b78] sm:$0xff] }
 0x75a   :  { %9221 = vmatprep.subr.bf16.mxu0 %v16046_v10  ;;  %v1736_v10 = vld [vmem:[#allocation4 + $0x1a30] sm:$0xff] }
 0x75b   :  { %v16099_v39 = vcombine.low %v1732_v16, %v1736_v10 }
 0x75c   :  { %9058 = vmatpush1.bf16.msra.mxu1 %v16043_v22  ;;  %v16100_v22 = vcombine.high %v1732_v16, %v1736_v10  ;;  %v1785_v16 = vld [vmem:[#allocation4 + $0x1bb8] sm:$0xff]  ;;  %v16141_v10 = vcombine.low %v1773_v20, %v1777_v59 }
 0x75d   :  { %9222 = vmatpush1.bf16.msra.mxu0 %v16045_v23  ;;  %9059 = vmatprep.subr.bf16.mxu1 %v16052_v34  ;;  %v16102_v23 = vcombine.high %v1733_v17, %v1737_v14  ;;  %v1740_v34 = vld [vmem:[#allocation4 + $0x1a50] sm:$0xff] }
 0x75e   :  { %9223 = vmatprep.subr.bf16.mxu0 %v16054_v18  ;;  %v1744_v18 = vld [vmem:[#allocation4 + $0x1a70] sm:$0xff] }
 0x75f   :  { %v16107_v4 = vcombine.low %v1740_v34, %v1744_v18 }
 0x760   :  { %9060 = vmatpush1.bf16.msra.mxu1 %v16051_v13  ;;  %v16108_v13 = vcombine.high %v1740_v34, %v1744_v18 }
 0x761   :  { %9224 = vmatpush1.bf16.msra.mxu0 %v16053_v8  ;;  %9061 = vmatprep.subr.bf16.mxu1 %v16060_v46  ;;  %v16110_v8 = vcombine.high %v1741_v35, %v1745_v57  ;;  %v1748_v46 = vld [vmem:[#allocation4 + $0x1a90] sm:$0xff] }
 0x762   :  { %9225 = vmatprep.subr.bf16.mxu0 %v16062_v29  ;;  %v1752_v29 = vld [vmem:[#allocation4 + $0x1ab0] sm:$0xff] }
 0x763   :  { %v16115_v38 = vcombine.low %v1748_v46, %v1752_v29 }
 0x764   :  { %9062 = vmatpush1.bf16.msra.mxu1 %v16059_v28  ;;  %v16116_v28 = vcombine.high %v1748_v46, %v1752_v29 }
 0x765   :  { %9226 = vmatpush1.bf16.msra.mxu0 %v16061_v53  ;;  %9063 = vmatprep.subr.bf16.mxu1 %v16068_v7  ;;  %v16118_v53 = vcombine.high %v1749_v40, %v1753_v51  ;;  %v1756_v7 = vld [vmem:[#allocation4 + $0x1ad0] sm:$0xff] }
 0x766   :  { %9227 = vmatprep.subr.bf16.mxu0 %v16070_v21  ;;  %v1760_v21 = vld [vmem:[#allocation4 + $0x1af0] sm:$0xff] }
 0x767   :  { %v16123_v30 = vcombine.low %v1756_v7, %v1760_v21 }
 0x768   :  { %9064 = vmatpush1.bf16.msra.mxu1 %v16067_v56  ;;  %v16124_v56 = vcombine.high %v1756_v7, %v1760_v21 }
 0x769   :  { %9228 = vmatpush1.bf16.msra.mxu0 %v16069_v45  ;;  %9065 = vmatprep.subr.bf16.mxu1 %v16076_v49  ;;  %v1764_v45 = vld [vmem:[#allocation4 + $0x1b10] sm:$0xff] }
 0x76a   :  { %9229 = vmatprep.subr.bf16.mxu0 %v16078_v43  ;;  %v1768_v49 = vld [vmem:[#allocation4 + $0x1b30] sm:$0xff]  ;;  %v16126_v43 = vcombine.high %v1757_v25, %v1761_v32 }
 0x76b   :  { %v16131_v41 = vcombine.low %v1764_v45, %v1768_v49  ;;  %v1812_v32 = vld [vmem:[#allocation4 + $0x1c90] sm:$0xff] }
 0x76c   :  { %9066 = vmatpush1.bf16.msra.mxu1 %v16075_v54  ;;  %v16132_v54 = vcombine.high %v1764_v45, %v1768_v49  ;;  %v1817_v45 = vld [vmem:[#allocation4 + $0x1cb8] sm:$0xff] }
 0x76d   :  { %9230 = vmatpush1.bf16.msra.mxu0 %v16077_v36  ;;  %9067 = vmatprep.subr.bf16.mxu1 %v16084_v26  ;;  %v16134_v36 = vcombine.high %v1765_v52, %v1769_v60  ;;  %v1772_v26 = vld [vmem:[#allocation4 + $0x1b50] sm:$0xff] }
 0x76e   :  { %9231 = vmatprep.subr.bf16.mxu0 %v16086_v55  ;;  %v1776_v55 = vld [vmem:[#allocation4 + $0x1b70] sm:$0xff] }
 0x76f   :  { %v16140_v44 = vcombine.high %v1772_v26, %v1776_v55 }
 0x770   :  { %9068 = vmatpush1.bf16.msra.mxu1 %v16083_v1  ;;  %v16142_v1 = vcombine.high %v1773_v20, %v1777_v59 }
 0x771   :  { %9232 = vmatpush1.bf16.msra.mxu0 %v16085_v2  ;;  %9069 = vmatprep.subr.bf16.mxu1 %v16092_v3  ;;  %v1780_v2 = vld [vmem:[#allocation4 + $0x1b90] sm:$0xff] }
 0x772   :  { %9233 = vmatprep.subr.bf16.mxu0 %v16094_v5  ;;  %v1784_v3 = vld [vmem:[#allocation4 + $0x1bb0] sm:$0xff]  ;;  %v1781_v5 = vld [vmem:[#allocation4 + $0x1b98] sm:$0xff] }
 0x773   :  { %v16148_v17 = vcombine.high %v1780_v2, %v1784_v3  ;;  %v16150_v14 = vcombine.high %v1781_v5, %v1785_v16  ;;  %v16147_v34 = vcombine.low %v1780_v2, %v1784_v3  ;;  %v16149_v18 = vcombine.low %v1781_v5, %v1785_v16 }
 0x774   :  { %9070 = vmatpush1.bf16.msra.mxu1 %v16091_v15  ;;  %v1788_v15 = vld [vmem:[#allocation4 + $0x1bd0] sm:$0xff] }
 0x775   :  { %9234 = vmatpush1.bf16.msra.mxu0 %v16093_v48  ;;  %9071 = vmatprep.subr.bf16.mxu1 %v16100_v22  ;;  %v1792_v48 = vld [vmem:[#allocation4 + $0x1bf0] sm:$0xff]  ;;  %v1789_v22 = vld [vmem:[#allocation4 + $0x1bd8] sm:$0xff] }
 0x776   :  { %9235 = vmatprep.subr.bf16.mxu0 %v16102_v23  ;;  %v1793_v23 = vld [vmem:[#allocation4 + $0x1bf8] sm:$0xff]  ;;  %v16156_v35 = vcombine.high %v1788_v15, %v1792_v48  ;;  %v16155_v46 = vcombine.low %v1788_v15, %v1792_v48 }
 0x777   :  { %v16158_v57 = vcombine.high %v1789_v22, %v1793_v23  ;;  %v16157_v29 = vcombine.low %v1789_v22, %v1793_v23 }
 0x778   :  { %9072 = vmatpush1.bf16.msra.mxu1 %v16099_v39  ;;  %v1796_v39 = vld [vmem:[#allocation4 + $0x1c10] sm:$0xff] }
 0x779   :  { %9236 = vmatpush1.bf16.msra.mxu0 %v16101_v9  ;;  %9073 = vmatprep.subr.bf16.mxu1 %v16108_v13  ;;  %v1800_v9 = vld [vmem:[#allocation4 + $0x1c30] sm:$0xff]  ;;  %v1797_v13 = vld [vmem:[#allocation4 + $0x1c18] sm:$0xff] }
 0x77a   :  { %9237 = vmatprep.subr.bf16.mxu0 %v16110_v8  ;;  %v1801_v8 = vld [vmem:[#allocation4 + $0x1c38] sm:$0xff]  ;;  %v16164_v40 = vcombine.high %v1796_v39, %v1800_v9  ;;  %v16163_v7 = vcombine.low %v1796_v39, %v1800_v9 }
 0x77b   :  { %v16166_v51 = vcombine.high %v1797_v13, %v1801_v8  ;;  %v16165_v21 = vcombine.low %v1797_v13, %v1801_v8 }
 0x77c   :  { %9074 = vmatpush1.bf16.msra.mxu1 %v16107_v4  ;;  %v1804_v4 = vld [vmem:[#allocation4 + $0x1c50] sm:$0xff] }
 0x77d   :  { %9238 = vmatpush1.bf16.msra.mxu0 %v16109_v27  ;;  %9084 = vmatprep.subr.bf16.mxu1 %v16116_v28  ;;  %v1808_v27 = vld [vmem:[#allocation4 + $0x1c70] sm:$0xff]  ;;  %v1805_v28 = vld [vmem:[#allocation4 + $0x1c58] sm:$0xff] }
 0x77e   :  { %9248 = vmatprep.subr.bf16.mxu0 %v16118_v53  ;;  %v1809_v53 = vld [vmem:[#allocation4 + $0x1c78] sm:$0xff]  ;;  %v16171_v49 = vcombine.low %v1804_v4, %v1808_v27 }
 0x77f   :  { %9076 = vmatmul.mubr.bf16.vlgmr.msra.gmra.mrb[24].mxu1 %v19198_v6  ;;  %v16174_v25 = vcombine.high %v1805_v28, %v1809_v53 }
 0x780   :  { %9240 = vmatmul.mubr.bf16.vlgmr.msra.gmra.mrb[20].mxu0 %v19198_v6  ;;  %9085 = vmatpush1.bf16.msra.mxu1 %v16115_v38  ;;  %v16133_v6 = vcombine.low %v1765_v52, %v1769_v60  ;;  %v16172_v38 = vcombine.high %v1804_v4, %v1808_v27 }
 0x781   :  { %9116 = vmatprep.mubr.bf16.mxu1 %v19222_v33  ;;  %9249 = vmatpush1.bf16.msra.mxu0 %v16117_v0  ;;  %v1816_v0 = vld [vmem:[#allocation4 + $0x1cb0] sm:$0xff] }
 0x782   :  { %9280 = vmatprep.mubr.bf16.mxu0 %v19222_v33  ;;  %9086 = vmatprep.subr.bf16.mxu1 %v16124_v56  ;;  %v16139_v33 = vcombine.low %v1772_v26, %v1776_v55  ;;  %v1813_v56 = vld [vmem:[#allocation4 + $0x1c98] sm:$0xff]  ;;  %v16180_v52 = vcombine.high %v1812_v32, %v1816_v0  ;;  %v16179_v26 = vcombine.low %v1812_v32, %v1816_v0 }
 0x783   :  { %9250 = vmatprep.subr.bf16.mxu0 %v16126_v43  ;;  %v16173_v43 = vcombine.low %v1805_v28, %v1809_v53  ;;  %v16182_v60 = vcombine.high %v1813_v56, %v1817_v45  ;;  %v16181_v55 = vcombine.low %v1813_v56, %v1817_v45 }
 0x784   :  { %9087 = vmatpush1.bf16.msra.mxu1 %v16123_v30  ;;  %v1820_v30 = vld [vmem:[#allocation4 + $0x1cd0] sm:$0xff] }
 0x785   :  { %9251 = vmatpush1.bf16.msra.mxu0 %v16125_v24  ;;  %9088 = vmatprep.subr.bf16.mxu1 %v16132_v54  ;;  %v1824_v24 = vld [vmem:[#allocation4 + $0x1cf0] sm:$0xff]  ;;  %v1821_v54 = vld [vmem:[#allocation4 + $0x1cd8] sm:$0xff] }
 0x786   :  { %9252 = vmatprep.subr.bf16.mxu0 %v16134_v36  ;;  %v1825_v36 = vld [vmem:[#allocation4 + $0x1cf8] sm:$0xff]  ;;  %v16188_v20 = vcombine.high %v1820_v30, %v1824_v24  ;;  %v16187_v2 = vcombine.low %v1820_v30, %v1824_v24 }
 0x787   :  { %v16190_v59 = vcombine.high %v1821_v54, %v1825_v36  ;;  %v16189_v3 = vcombine.low %v1821_v54, %v1825_v36 }
 0x788   :  { %9089 = vmatpush1.bf16.msra.mxu1 %v16131_v41  ;;  %v1828_v41 = vld [vmem:[#allocation4 + $0x1d10] sm:$0xff] }
 0x789   :  { %9253 = vmatpush1.bf16.msra.mxu0 %v16133_v6  ;;  %9090 = vmatprep.subr.bf16.mxu1 %v16140_v44  ;;  %v1832_v6 = vld [vmem:[#allocation4 + $0x1d30] sm:$0xff]  ;;  %v1829_v44 = vld [vmem:[#allocation4 + $0x1d18] sm:$0xff] }
 0x78a   :  { %9254 = vmatprep.subr.bf16.mxu0 %v16142_v1  ;;  %v1833_v1 = vld [vmem:[#allocation4 + $0x1d38] sm:$0xff]  ;;  %v16196_v5 = vcombine.high %v1828_v41, %v1832_v6  ;;  %v16195_v15 = vcombine.low %v1828_v41, %v1832_v6 }
 0x78b   :  { %v16198_v16 = vcombine.high %v1829_v44, %v1833_v1  ;;  %v16197_v48 = vcombine.low %v1829_v44, %v1833_v1 }
 0x78c   :  { %9091 = vmatpush1.bf16.msra.mxu1 %v16139_v33  ;;  %v1836_v33 = vld [vmem:[#allocation4 + $0x1d50] sm:$0xff] }
 0x78d   :  { %9255 = vmatpush1.bf16.msra.mxu0 %v16141_v10  ;;  %9092 = vmatprep.subr.bf16.mxu1 %v16148_v17  ;;  %v1840_v10 = vld [vmem:[#allocation4 + $0x1d70] sm:$0xff]  ;;  %v1837_v17 = vld [vmem:[#allocation4 + $0x1d58] sm:$0xff] }
 0x78e   :  { %9256 = vmatprep.subr.bf16.mxu0 %v16150_v14  ;;  %v1841_v14 = vld [vmem:[#allocation4 + $0x1d78] sm:$0xff]  ;;  %v16204_v22 = vcombine.high %v1836_v33, %v1840_v10  ;;  %v16203_v39 = vcombine.low %v1836_v33, %v1840_v10 }
 0x78f   :  { %v16206_v23 = vcombine.high %v1837_v17, %v1841_v14  ;;  %v16205_v9 = vcombine.low %v1837_v17, %v1841_v14  ;;  %v1889_v33 = vld [vmem:[#allocation4 + $0x1ef8] sm:$0xff]  ;;  %v1892_v14 = vld [vmem:[#allocation4 + $0x1f10] sm:$0xff] }
 0x790   :  { %9093 = vmatpush1.bf16.msra.mxu1 %v16147_v34  ;;  %v1844_v34 = vld [vmem:[#allocation4 + $0x1d90] sm:$0xff] }
 0x791   :  { %9257 = vmatpush1.bf16.msra.mxu0 %v16149_v18  ;;  %9094 = vmatprep.subr.bf16.mxu1 %v16156_v35  ;;  %v1848_v18 = vld [vmem:[#allocation4 + $0x1db0] sm:$0xff]  ;;  %v1845_v35 = vld [vmem:[#allocation4 + $0x1d98] sm:$0xff] }
 0x792   :  { %9258 = vmatprep.subr.bf16.mxu0 %v16158_v57  ;;  %v1849_v57 = vld [vmem:[#allocation4 + $0x1db8] sm:$0xff]  ;;  %v16212_v13 = vcombine.high %v1844_v34, %v1848_v18  ;;  %v16211_v4 = vcombine.low %v1844_v34, %v1848_v18 }
 0x793   :  { %v16214_v8 = vcombine.high %v1845_v35, %v1849_v57  ;;  %v16213_v27 = vcombine.low %v1845_v35, %v1849_v57 }
 0x794   :  { %9095 = vmatpush1.bf16.msra.mxu1 %v16155_v46  ;;  %v1852_v46 = vld [vmem:[#allocation4 + $0x1dd0] sm:$0xff] }
 0x795   :  { %9259 = vmatpush1.bf16.msra.mxu0 %v16157_v29  ;;  %9096 = vmatprep.subr.bf16.mxu1 %v16164_v40  ;;  %v1856_v29 = vld [vmem:[#allocation4 + $0x1df0] sm:$0xff]  ;;  %v1853_v40 = vld [vmem:[#allocation4 + $0x1dd8] sm:$0xff] }
 0x796   :  { %9260 = vmatprep.subr.bf16.mxu0 %v16166_v51  ;;  %v1857_v51 = vld [vmem:[#allocation4 + $0x1df8] sm:$0xff]  ;;  %v16220_v28 = vcombine.high %v1852_v46, %v1856_v29  ;;  %v16219_v32 = vcombine.low %v1852_v46, %v1856_v29 }
 0x797   :  { %v16222_v53 = vcombine.high %v1853_v40, %v1857_v51  ;;  %v16221_v0 = vcombine.low %v1853_v40, %v1857_v51  ;;  %v1908_v51 = vld [vmem:[#allocation4 + $0x1f90] sm:$0xff] }
 0x798   :  { %9097 = vmatpush1.bf16.msra.mxu1 %v16163_v7  ;;  %v1860_v7 = vld [vmem:[#allocation4 + $0x1e10] sm:$0xff] }
 0x799   :  { %9261 = vmatpush1.bf16.msra.mxu0 %v16165_v21  ;;  %9098 = vmatprep.subr.bf16.mxu1 %v16172_v38  ;;  %v1864_v21 = vld [vmem:[#allocation4 + $0x1e30] sm:$0xff]  ;;  %v1861_v38 = vld [vmem:[#allocation4 + $0x1e18] sm:$0xff] }
 0x79a   :  { %9262 = vmatprep.subr.bf16.mxu0 %v16174_v25  ;;  %v1865_v25 = vld [vmem:[#allocation4 + $0x1e38] sm:$0xff]  ;;  %v16228_v56 = vcombine.high %v1860_v7, %v1864_v21  ;;  %v16227_v30 = vcombine.low %v1860_v7, %v1864_v21 }
 0x79b   :  { %v16230_v45 = vcombine.high %v1861_v38, %v1865_v25  ;;  %v16229_v24 = vcombine.low %v1861_v38, %v1865_v25  ;;  %v1916_v38 = vld [vmem:[#allocation4 + $0x1fd0] sm:$0xff] }
 0x79c   :  { %9099 = vmatpush1.bf16.msra.mxu1 %v16171_v49  ;;  %v1868_v49 = vld [vmem:[#allocation4 + $0x1e50] sm:$0xff] }
 0x79d   :  { %9263 = vmatpush1.bf16.msra.mxu0 %v16173_v43  ;;  %9100 = vmatprep.subr.bf16.mxu1 %v16180_v52  ;;  %v1872_v43 = vld [vmem:[#allocation4 + $0x1e70] sm:$0xff]  ;;  %v1869_v52 = vld [vmem:[#allocation4 + $0x1e58] sm:$0xff] }
 0x79e   :  { %9264 = vmatprep.subr.bf16.mxu0 %v16182_v60  ;;  %v1873_v60 = vld [vmem:[#allocation4 + $0x1e78] sm:$0xff]  ;;  %v16236_v54 = vcombine.high %v1868_v49, %v1872_v43  ;;  %v16235_v41 = vcombine.low %v1868_v49, %v1872_v43  ;;  %v1920_v25 = vld [vmem:[#allocation4 + $0x1ff0] sm:$0xff] }
 0x79f   :  { %v16238_v36 = vcombine.high %v1869_v52, %v1873_v60  ;;  %v16237_v6 = vcombine.low %v1869_v52, %v1873_v60  ;;  %v16284_v49 = vcombine.high %v1916_v38, %v1920_v25  ;;  %v1924_v52 = vld [vmem:[#allocation4 + $0x2010] sm:$0xff] }
 0x7a0   :  { %9101 = vmatpush1.bf16.msra.mxu1 %v16179_v26  ;;  %v1876_v26 = vld [vmem:[#allocation4 + $0x1e90] sm:$0xff] }
 0x7a1   :  { %9265 = vmatpush1.bf16.msra.mxu0 %v16181_v55  ;;  %9102 = vmatprep.subr.bf16.mxu1 %v16188_v20  ;;  %v1880_v55 = vld [vmem:[#allocation4 + $0x1eb0] sm:$0xff]  ;;  %v1877_v20 = vld [vmem:[#allocation4 + $0x1e98] sm:$0xff] }
 0x7a2   :  { %9266 = vmatprep.subr.bf16.mxu0 %v16190_v59  ;;  %v1881_v59 = vld [vmem:[#allocation4 + $0x1eb8] sm:$0xff]  ;;  %v16244_v44 = vcombine.high %v1876_v26, %v1880_v55  ;;  %v1928_v60 = vld [vmem:[#allocation4 + $0x2030] sm:$0xff] }
 0x7a3   :  { %v16246_v1 = vcombine.high %v1877_v20, %v1881_v59  ;;  %v16245_v10 = vcombine.low %v1877_v20, %v1881_v59 }
 0x7a4   :  { %9103 = vmatpush1.bf16.msra.mxu1 %v16187_v2  ;;  %v1884_v2 = vld [vmem:[#allocation4 + $0x1ed0] sm:$0xff] }
 0x7a5   :  { %9267 = vmatpush1.bf16.msra.mxu0 %v16189_v3  ;;  %9104 = vmatprep.subr.bf16.mxu1 %v16196_v5  ;;  %v1888_v3 = vld [vmem:[#allocation4 + $0x1ef0] sm:$0xff]  ;;  %v16243_v5 = vcombine.low %v1876_v26, %v1880_v55  ;;  %v16292_v26 = vcombine.high %v1924_v52, %v1928_v60 }
 0x7a6   :  { %9268 = vmatprep.subr.bf16.mxu0 %v16198_v16  ;;  %v1885_v16 = vld [vmem:[#allocation4 + $0x1ed8] sm:$0xff]  ;;  %v16252_v17 = vcombine.high %v1884_v2, %v1888_v3  ;;  %v16251_v34 = vcombine.low %v1884_v2, %v1888_v3 }
 0x7a7   :  { %v16253_v18 = vcombine.low %v1885_v16, %v1889_v33  ;;  %v1933_v2 = vld [vmem:[#allocation4 + $0x2058] sm:$0xff] }
 0x7a8   :  { %9105 = vmatpush1.bf16.msra.mxu1 %v16195_v15  ;;  %v1896_v15 = vld [vmem:[#allocation4 + $0x1f30] sm:$0xff]  ;;  %v1937_v3 = vld [vmem:[#allocation4 + $0x2078] sm:$0xff] }
 0x7a9   :  { %9269 = vmatpush1.bf16.msra.mxu0 %v16197_v48  ;;  %9106 = vmatprep.subr.bf16.mxu1 %v16204_v22  ;;  %v16254_v48 = vcombine.high %v1885_v16, %v1889_v33  ;;  %v1893_v22 = vld [vmem:[#allocation4 + $0x1f18] sm:$0xff]  ;;  %v16260_v35 = vcombine.high %v1892_v14, %v1896_v15  ;;  %v16259_v46 = vcombine.low %v1892_v14, %v1896_v15 }
 0x7aa   :  { %9270 = vmatprep.subr.bf16.mxu0 %v16206_v23  ;;  %v1897_v23 = vld [vmem:[#allocation4 + $0x1f38] sm:$0xff]  ;;  %v16291_v33 = vcombine.low %v1924_v52, %v1928_v60 }
 0x7ab   :  { %v16262_v57 = vcombine.high %v1893_v22, %v1897_v23 }
 0x7ac   :  { %9107 = vmatpush1.bf16.msra.mxu1 %v16203_v39  ;;  %v1900_v39 = vld [vmem:[#allocation4 + $0x1f50] sm:$0xff] }
 0x7ad   :  { %9271 = vmatpush1.bf16.msra.mxu0 %v16205_v9  ;;  %9108 = vmatprep.subr.bf16.mxu1 %v16212_v13  ;;  %v1904_v9 = vld [vmem:[#allocation4 + $0x1f70] sm:$0xff]  ;;  %v1901_v13 = vld [vmem:[#allocation4 + $0x1f58] sm:$0xff] }
 0x7ae   :  { %9272 = vmatprep.subr.bf16.mxu0 %v16214_v8  ;;  %v1905_v8 = vld [vmem:[#allocation4 + $0x1f78] sm:$0xff]  ;;  %v16268_v29 = vcombine.high %v1900_v39, %v1904_v9 }
 0x7af   :  { %v16270_v40 = vcombine.high %v1901_v13, %v1905_v8 }
 0x7b0   :  { %9109 = vmatpush1.bf16.msra.mxu1 %v16211_v4  ;;  %v1912_v4 = vld [vmem:[#allocation4 + $0x1fb0] sm:$0xff] }
 0x7b1   :  { %9273 = vmatpush1.bf16.msra.mxu0 %v16213_v27  ;;  %9110 = vmatprep.subr.bf16.mxu1 %v16220_v28  ;;  %v1909_v27 = vld [vmem:[#allocation4 + $0x1f98] sm:$0xff]  ;;  %v16276_v7 = vcombine.high %v1908_v51, %v1912_v4 }
 0x7b2   :  { %9274 = vmatprep.subr.bf16.mxu0 %v16222_v53  ;;  %v1913_v28 = vld [vmem:[#allocation4 + $0x1fb8] sm:$0xff]  ;;  %v16269_v53 = vcombine.low %v1901_v13, %v1905_v8  ;;  %v1948_v13 = vld [vmem:[#allocation4 + $0x20d0] sm:$0xff] }
 0x7b3   :  { %v16278_v21 = vcombine.high %v1909_v27, %v1913_v28  ;;  %v1952_v8 = vld [vmem:[#allocation4 + $0x20f0] sm:$0xff] }
 0x7b4   :  { %9111 = vmatpush1.bf16.msra.mxu1 %v16219_v32  ;;  %v1917_v32 = vld [vmem:[#allocation4 + $0x1fd8] sm:$0xff] }
 0x7b5   :  { %9275 = vmatpush1.bf16.msra.mxu0 %v16221_v0  ;;  %9112 = vmatprep.subr.bf16.mxu1 %v16228_v56  ;;  %v1921_v0 = vld [vmem:[#allocation4 + $0x1ff8] sm:$0xff]  ;;  %v16275_v56 = vcombine.low %v1908_v51, %v1912_v4  ;;  %v16316_v51 = vcombine.high %v1948_v13, %v1952_v8 }
 0x7b6   :  { %9276 = vmatprep.subr.bf16.mxu0 %v16230_v45  ;;  %v16277_v45 = vcombine.low %v1909_v27, %v1913_v28  ;;  %v16286_v43 = vcombine.high %v1917_v32, %v1921_v0  ;;  %v1956_v27 = vld [vmem:[#allocation4 + $0x2110] sm:$0xff] }
 0x7b7   :  { %v1960_v28 = vld [vmem:[#allocation4 + $0x2130] sm:$0xff] }
 0x7b8   :  { %9113 = vmatpush1.bf16.msra.mxu1 %v16227_v30  ;;  %v1925_v30 = vld [vmem:[#allocation4 + $0x2018] sm:$0xff] }
 0x7b9   :  { %9277 = vmatpush1.bf16.msra.mxu0 %v16229_v24  ;;  %9114 = vmatprep.subr.bf16.mxu1 %v16236_v54  ;;  %v1929_v24 = vld [vmem:[#allocation4 + $0x2038] sm:$0xff]  ;;  %v16283_v54 = vcombine.low %v1916_v38, %v1920_v25  ;;  %v16324_v38 = vcombine.high %v1956_v27, %v1960_v28 }
 0x7ba   :  { %9278 = vmatprep.subr.bf16.mxu0 %v16238_v36  ;;  %v16285_v36 = vcombine.low %v1917_v32, %v1921_v0  ;;  %v16294_v59 = vcombine.high %v1925_v30, %v1929_v24  ;;  %v16293_v14 = vcombine.low %v1925_v30, %v1929_v24  ;;  %v1964_v32 = vld [vmem:[#allocation4 + $0x2150] sm:$0xff] }
 0x7bb   :  { %v1968_v0 = vld [vmem:[#allocation4 + $0x2170] sm:$0xff] }
 0x7bc   :  { %9115 = vmatpush1.bf16.msra.mxu1 %v16235_v41  ;;  %v1932_v41 = vld [vmem:[#allocation4 + $0x2050] sm:$0xff]  ;;  %v16332_v52 = vcombine.high %v1964_v32, %v1968_v0 }
 0x7bd   :  { %9279 = vmatpush1.bf16.msra.mxu0 %v16237_v6  ;;  %9125 = vmatprep.subr.bf16.mxu1 %v16244_v44  ;;  %v1936_v6 = vld [vmem:[#allocation4 + $0x2070] sm:$0xff] }
 0x7be   :  { %9289 = vmatprep.subr.bf16.mxu0 %v16246_v1  ;;  %v16300_v15 = vcombine.high %v1932_v41, %v1936_v6  ;;  %v1972_v30 = vld [vmem:[#allocation4 + $0x2190] sm:$0xff] }
 0x7bf   :  { %9117 = vmatmul.mubr.bf16.vlgmr.msra.gmra.mrb[24].mxu1 %v19228_v12  ;;  %v1976_v24 = vld [vmem:[#allocation4 + $0x21b0] sm:$0xff] }
 0x7c0   :  { %9281 = vmatmul.mubr.bf16.vlgmr.msra.gmra.mrb[20].mxu0 %v19228_v12  ;;  %9126 = vmatpush1.bf16.msra.mxu1 %v16243_v5  ;;  %v16261_v12 = vcombine.low %v1893_v22, %v1897_v23  ;;  %v1940_v22 = vld [vmem:[#allocation4 + $0x2090] sm:$0xff] }
 0x7c1   :  { %9157 = vmatprep.mubr.bf16.mxu1 %v19234_v42  ;;  %9290 = vmatpush1.bf16.msra.mxu0 %v16245_v10  ;;  %v1944_v23 = vld [vmem:[#allocation4 + $0x20b0] sm:$0xff] }
 0x7c2   :  { %9321 = vmatprep.mubr.bf16.mxu0 %v19234_v42  ;;  %9127 = vmatprep.subr.bf16.mxu1 %v16252_v17  ;;  %v16267_v42 = vcombine.low %v1900_v39, %v1904_v9  ;;  %v16308_v39 = vcombine.high %v1940_v22, %v1944_v23 }
 0x7c3   :  { %9291 = vmatprep.subr.bf16.mxu0 %v16254_v48  ;;  %v16302_v48 = vcombine.high %v1933_v2, %v1937_v3 }
 0x7c4   :  { %9128 = vmatpush1.bf16.msra.mxu1 %v16251_v34  ;;  %v1941_v34 = vld [vmem:[#allocation4 + $0x2098] sm:$0xff] }
 0x7c5   :  { %9292 = vmatpush1.bf16.msra.mxu0 %v16253_v18  ;;  %9129 = vmatprep.subr.bf16.mxu1 %v16260_v35  ;;  %v1945_v18 = vld [vmem:[#allocation4 + $0x20b8] sm:$0xff]  ;;  %v16299_v35 = vcombine.low %v1932_v41, %v1936_v6  ;;  %v16340_v41 = vcombine.high %v1972_v30, %v1976_v24 }
 0x7c6   :  { %9293 = vmatprep.subr.bf16.mxu0 %v16262_v57  ;;  %v16301_v57 = vcombine.low %v1933_v2, %v1937_v3  ;;  %v16310_v9 = vcombine.high %v1941_v34, %v1945_v18  ;;  %v1980_v2 = vld [vmem:[#allocation4 + $0x21d0] sm:$0xff] }
 0x7c7   :  { %v1984_v3 = vld [vmem:[#allocation4 + $0x21f0] sm:$0xff] }
 0x7c8   :  { %9130 = vmatpush1.bf16.msra.mxu1 %v16259_v46  ;;  %v1949_v46 = vld [vmem:[#allocation4 + $0x20d8] sm:$0xff] }
 0x7c9   :  { %9294 = vmatpush1.bf16.msra.mxu0 %v16261_v12  ;;  %9131 = vmatprep.subr.bf16.mxu1 %v16268_v29  ;;  %v1953_v12 = vld [vmem:[#allocation4 + $0x20f8] sm:$0xff]  ;;  %v16307_v29 = vcombine.low %v1940_v22, %v1944_v23 }
 0x7ca   :  { %9295 = vmatprep.subr.bf16.mxu0 %v16270_v40  ;;  %v16309_v40 = vcombine.low %v1941_v34, %v1945_v18  ;;  %v16318_v4 = vcombine.high %v1949_v46, %v1953_v12  ;;  %v1989_v22 = vld [vmem:[#allocation4 + $0x2218] sm:$0xff]  ;;  %v16347_v34 = vcombine.low %v1980_v2, %v1984_v3 }
 0x7cb   :  { %v1993_v23 = vld [vmem:[#allocation4 + $0x2238] sm:$0xff] }
 0x7cc   :  { %9132 = vmatpush1.bf16.msra.mxu1 %v16267_v42  ;;  %v1957_v42 = vld [vmem:[#allocation4 + $0x2118] sm:$0xff] }
 0x7cd   :  { %9296 = vmatpush1.bf16.msra.mxu0 %v16269_v53  ;;  %9133 = vmatprep.subr.bf16.mxu1 %v16276_v7  ;;  %v1961_v53 = vld [vmem:[#allocation4 + $0x2138] sm:$0xff]  ;;  %v16315_v7 = vcombine.low %v1948_v13, %v1952_v8 }
 0x7ce   :  { %9297 = vmatprep.subr.bf16.mxu0 %v16278_v21  ;;  %v16317_v21 = vcombine.low %v1949_v46, %v1953_v12  ;;  %v16326_v25 = vcombine.high %v1957_v42, %v1961_v53  ;;  %v1997_v13 = vld [vmem:[#allocation4 + $0x2258] sm:$0xff]  ;;  %v16357_v12 = vcombine.low %v1989_v22, %v1993_v23 }
 0x7cf   :  { %v2001_v8 = vld [vmem:[#allocation4 + $0x2278] sm:$0xff] }
 0x7d0   :  { %9134 = vmatpush1.bf16.msra.mxu1 %v16275_v56  ;;  %v1965_v56 = vld [vmem:[#allocation4 + $0x2158] sm:$0xff] }
 0x7d1   :  { %9298 = vmatpush1.bf16.msra.mxu0 %v16277_v45  ;;  %9135 = vmatprep.subr.bf16.mxu1 %v16284_v49  ;;  %v1969_v45 = vld [vmem:[#allocation4 + $0x2178] sm:$0xff]  ;;  %v16323_v49 = vcombine.low %v1956_v27, %v1960_v28  ;;  %v9387_v27 = vld [vmem:[%s22799_s3 + $0x80] sm:$0xff]  ;;  %v9388_v28 = vld [vmem:[%s22799_s3 + $0x88] sm:$0xff] }
 0x7d2   :  { %v19266_v55 = vpop.f32.mrb[20].mxu1  ;;  %v19268_v20 = vpop.f32.mrb[16].mxu0  ;;  %9299 = vmatprep.subr.bf16.mxu0 %v16286_v43  ;;  %v16325_v43 = vcombine.low %v1957_v42, %v1961_v53  ;;  %v16334_v60 = vcombine.high %v1965_v56, %v1969_v45  ;;  %v9371_v42 = vld [vmem:[%s22799_s3] sm:$0xff]  ;;  %v9548_v53 = vand.u32 4294901760, %v9387_v27 }
 0x7d3   :  { %v19270_v44 = vpop.f32.mrb[21].mxu1  ;;  %v19272_v1 = vpop.f32.mrb[17].mxu0 }
 0x7d4   :  { %v8835_v5 = vpop.f32.mrb[22].mxu1  ;;  %v8999_v16 = vpop.f32.mrb[18].mxu0  ;;  %9136 = vmatpush1.bf16.msra.mxu1 %v16283_v54  ;;  %v1973_v54 = vld [vmem:[#allocation4 + $0x2198] sm:$0xff] }
 0x7d5   :  { %9300 = vmatpush1.bf16.msra.mxu0 %v16285_v36  ;;  %v8836_v10 = vpop.f32.mrb[23].mxu1  ;;  %v9000_v17 = vpop.f32.mrb[19].mxu0  ;;  %9137 = vmatprep.subr.bf16.mxu1 %v16292_v26  ;;  %v1977_v36 = vld [vmem:[#allocation4 + $0x21b8] sm:$0xff]  ;;  %v16331_v26 = vcombine.low %v1964_v32, %v1968_v0 }
 0x7d6   :  { %9301 = vmatprep.subr.bf16.mxu0 %v16294_v59  ;;  %v16333_v59 = vcombine.low %v1965_v56, %v1969_v45  ;;  %v16342_v6 = vcombine.high %v1973_v54, %v1977_v36  ;;  %v1981_v5 = vld [vmem:[#allocation4 + $0x21d8] sm:$0xff]  ;;  %v16341_v10 = vcombine.low %v1973_v54, %v1977_v36  ;;  %v16348_v17 = vcombine.high %v1980_v2, %v1984_v3  ;;  %v19303_v45 = vld [vmem:[%s22799_s3 + $0x10] sm:$0xff] }
 0x7d7   :  { %v1985_v16 = vld [vmem:[#allocation4 + $0x21f8] sm:$0xff] }
 0x7d8   :  { %9138 = vmatpush1.bf16.msra.mxu1 %v16291_v33  ;;  %v16339_v33 = vcombine.low %v1972_v30, %v1976_v24  ;;  %v16349_v18 = vcombine.low %v1981_v5, %v1985_v16  ;;  %v9506_v30 = vand.u32 4294901760, %v19303_v45 }
 0x7d9   :  { %9302 = vmatpush1.bf16.msra.mxu0 %v16293_v14  ;;  %9139 = vmatprep.subr.bf16.mxu1 %v16300_v15  ;;  %v16350_v14 = vcombine.high %v1981_v5, %v1985_v16  ;;  %v1988_v15 = vld [vmem:[#allocation4 + $0x2210] sm:$0xff] }
 0x7da   :  { %9303 = vmatprep.subr.bf16.mxu0 %v16302_v48  ;;  %v1992_v48 = vld [vmem:[#allocation4 + $0x2230] sm:$0xff]  ;;  %v19332_v2 = vsub.f32 %v19303_v45, %v9506_v30 }
 0x7db   :  { %v16355_v46 = vcombine.low %v1988_v15, %v1992_v48 }
 0x7dc   :  { %9140 = vmatpush1.bf16.msra.mxu1 %v16299_v35  ;;  %v16356_v35 = vcombine.high %v1988_v15, %v1992_v48  ;;  %v22806_v15 = vand.u32 4294901760, %v19332_v2 }
 0x7dd   :  { %9304 = vmatpush1.bf16.msra.mxu0 %v16301_v57  ;;  %9141 = vmatprep.subr.bf16.mxu1 %v16308_v39  ;;  %v16358_v57 = vcombine.high %v1989_v22, %v1993_v23  ;;  %v1996_v39 = vld [vmem:[#allocation4 + $0x2250] sm:$0xff] }
 0x7de   :  { %9305 = vmatprep.subr.bf16.mxu0 %v16310_v9  ;;  %v2000_v9 = vld [vmem:[#allocation4 + $0x2270] sm:$0xff] }
 0x7e0   :  { %9142 = vmatpush1.bf16.msra.mxu1 %v16307_v29  ;;  %v16364_v29 = vcombine.high %v1996_v39, %v2000_v9 }
 0x7e1   :  { %9306 = vmatpush1.bf16.msra.mxu0 %v16309_v40  ;;  %9143 = vmatprep.subr.bf16.mxu1 %v16316_v51  ;;  %v16366_v40 = vcombine.high %v1997_v13, %v2001_v8  ;;  %v16363_v51 = vcombine.low %v1996_v39, %v2000_v9  ;;  %v9629_v9 = vsub.f32 %v19332_v2, %v22806_v15 }
 0x7e2   :  { %9307 = vmatprep.subr.bf16.mxu0 %v16318_v4  ;;  %v16365_v4 = vcombine.low %v1997_v13, %v2001_v8  ;;  %v19371_v13 = vld [vmem:[%s22799_s3 + $0xa8] sm:$0xff] }
 0x7e4   :  { %9144 = vmatpush1.bf16.msra.mxu1 %v16315_v7  ;;  %v9551_v7 = vand.u32 4294901760, %v9388_v28 }
 0x7e5   :  { %9308 = vmatpush1.bf16.msra.mxu0 %v16317_v21  ;;  %9145 = vmatprep.subr.bf16.mxu1 %v16324_v38  ;;  %v9372_v21 = vld [vmem:[%s22799_s3 + $0x8] sm:$0xff]  ;;  %v9500_v38 = vand.u32 4294901760, %v9371_v42 }
 0x7e6   :  { %9309 = vmatprep.subr.bf16.mxu0 %v16326_v25  ;;  %v19296_v25 = vld [vmem:[%s22799_s3 + $0x98] sm:$0xff]  ;;  %v9503_v32 = vand.u32 4294901760, %v9372_v21 }
 0x7e7   :  { %v9557_v56 = vand.u32 4294901760, %v19296_v25 }
 0x7e8   :  { %9146 = vmatpush1.bf16.msra.mxu1 %v16323_v49  ;;  %v19308_v49 = vld [vmem:[%s22799_s3 + $0x18] sm:$0xff]  ;;  %v19317_v24 = vsub.f32 %v9372_v21, %v9503_v32  ;;  %v19392_v21 = vld [vmem:[%s22799_s3 + $0xb0] sm:$0xff] }
 0x7e9   :  { %9310 = vmatpush1.bf16.msra.mxu0 %v16325_v43  ;;  %9147 = vmatprep.subr.bf16.mxu1 %v16332_v52  ;;  %v19310_v43 = vsub.f32 %v9387_v27, %v9548_v53  ;;  %v19312_v52 = vsub.f32 %v9388_v28, %v9551_v7  ;;  %v19323_v36 = vsub.f32 %v19296_v25, %v9557_v56  ;;  %v9630_v27 = vand.u32 4294901760, %v9629_v9 }
 0x7ea   :  { %9311 = vmatprep.subr.bf16.mxu0 %v16334_v60  ;;  %v19314_v60 = vsub.f32 %v9371_v42, %v9500_v38  ;;  %v22810_v3 = vand.u32 4294901760, %v19317_v24  ;;  %v19386_v28 = vpack.c.bf16 %v9551_v7, %v9548_v53  ;;  %v19406_v7 = vpack.c.bf16 %v9503_v32, %v9500_v38 }
 0x7eb   :  { %v22807_v16 = vand.u32 4294901760, %v19323_v36  ;;  %v22826_v38 = vand.u32 4294901760, %v19392_v21 }
 0x7ec   :  { %9148 = vmatpush1.bf16.msra.mxu1 %v16331_v26  ;;  %v9509_v26 = vand.u32 4294901760, %v19308_v49  ;;  %v9622_v48 = vsub.f32 %v19317_v24, %v22810_v3 }
 0x7ed   :  { %9312 = vmatpush1.bf16.msra.mxu0 %v16333_v59  ;;  %9149 = vmatprep.subr.bf16.mxu1 %v16340_v41  ;;  %v22815_v59 = vand.u32 4294901760, %v19310_v43  ;;  %v22813_v41 = vand.u32 4294901760, %v19312_v52  ;;  %v9748_v23 = vsub.f32 %v19323_v36, %v22807_v16 }
 0x7ee   :  { %9313 = vmatprep.subr.bf16.mxu0 %v16342_v6  ;;  %v22812_v6 = vand.u32 4294901760, %v19314_v60  ;;  %v9623_v8 = vand.u32 4294901760, %v9622_v48 }
 0x7f0   :  { %9150 = vmatpush1.bf16.msra.mxu1 %v16339_v33  ;;  %v19338_v33 = vsub.f32 %v19308_v49, %v9509_v26 }
 0x7f1   :  { %9314 = vmatpush1.bf16.msra.mxu0 %v16341_v10  ;;  %9151 = vmatprep.subr.bf16.mxu1 %v16348_v17  ;;  %v9727_v10 = vsub.f32 %v19310_v43, %v22815_v59  ;;  %v9734_v17 = vsub.f32 %v19312_v52, %v22813_v41 }
 0x7f2   :  { %9315 = vmatprep.subr.bf16.mxu0 %v16350_v14  ;;  %v9615_v14 = vsub.f32 %v19314_v60, %v22812_v6 }
 0x7f4   :  { %9152 = vmatpush1.bf16.msra.mxu1 %v16347_v34  ;;  %v22804_v34 = vand.u32 4294901760, %v19338_v33  ;;  %v9616_v39 = vand.u32 4294901760, %v9615_v14 }
 0x7f5   :  { %9316 = vmatpush1.bf16.msra.mxu0 %v16349_v18  ;;  %9153 = vmatprep.subr.bf16.mxu1 %v16356_v35  ;;  %v19363_v18 = vld [vmem:[%s22799_s3 + $0xa0] sm:$0xff]  ;;  %v9728_v35 = vand.u32 4294901760, %v9727_v10  ;;  %v22832_v10 = vand.u32 4294901760, %v19371_v13 }
 0x7f6   :  { %9317 = vmatprep.subr.bf16.mxu0 %v16358_v57  ;;  %v9735_v57 = vand.u32 4294901760, %v9734_v17  ;;  %v22833_v42 = vand.u32 4294901760, %v19363_v18  ;;  %v19398_v17 = vld [vmem:[%s22799_s3 + $0xb8] sm:$0xff] }
 0x7f8   :  { %9154 = vmatpush1.bf16.msra.mxu1 %v16355_v46  ;;  %v19404_v53 = vsub.f32 %v19363_v18, %v22833_v42 }
 0x7f9   :  { %9318 = vmatpush1.bf16.msra.mxu0 %v16357_v12  ;;  %9155 = vmatprep.subr.bf16.mxu1 %v16364_v29  ;;  %v9749_v12 = vand.u32 4294901760, %v9748_v23  ;;  %v9636_v29 = vsub.f32 %v19338_v33, %v22804_v34 }
 0x7fa   :  { %9319 = vmatprep.subr.bf16.mxu0 %v16366_v40  ;;  %v19379_v40 = vld [vmem:[%s22799_s3 + $0x20] sm:$0xff]  ;;  %23100 = vst [vmem:[#allocation9_spill] sm:$0xff] %v19404_v53  ;;  %v22803_v32 = vand.u32 4294901760, %v19404_v53 }
 0x7fb   :  { %v9637_v49 = vand.u32 4294901760, %v9636_v29  ;;  %v22828_v14 = vand.u32 4294901760, %v19379_v40 }
 0x7fc   :  { %9156 = vmatpush1.bf16.msra.mxu1 %v16363_v51  ;;  %v19384_v51 = vld [vmem:[%s22799_s3 + $0x28] sm:$0xff] }
 0x7fd   :  { %9320 = vmatpush1.bf16.msra.mxu0 %v16365_v4  ;;  %v17239_v4 = vpack.c.bf16 %v9735_v57, %v9728_v35  ;;  %17208 = vmatprep.subr.bf16.mxu1 %v19386_v28  ;;  %v22827_v48 = vand.u32 4294901760, %v19384_v51  ;;  %v17245_v23 = vpack.c.bf16 %v9637_v49, %v9630_v27  ;;  %v19418_v35 = vsub.f32 %v19371_v13, %v22832_v10 }
 0x7ff   :  { %9158 = vmatmul.mubr.bf16.vlgmr.msra.gmra.mrb[24].mxu1 %v19248_v50  ;;  %17240 = vmatprep.subr.bf16.mxu0 %v17239_v4  ;;  %23101 = vst [vmem:[#allocation10_spill] sm:$0xff] %v19418_v35  ;;  %v19433_v9 = vsub.f32 %v19384_v51, %v22827_v48  ;;  %v9755_v4 = vsub.f32 %v19404_v53, %v22803_v32 }
 0x800   :  { %9322 = vmatmul.mubr.bf16.vlgmr.msra.gmra.mrb[20].mxu0 %v19248_v50  ;;  %v19291_v50 = vld [vmem:[%s22799_s3 + $0x90] sm:$0xff]  ;;  %17210 = vmatpush3.bf16.msra.mxu1 %v19406_v7 }
 0x801   :  { %v9554_v0 = vand.u32 4294901760, %v19291_v50  ;;  %23103 = vst [vmem:[#allocation12_spill] sm:$0xff] %v19433_v9  ;;  %v9756_v32 = vand.u32 4294901760, %v9755_v4 }
 0x803   :  { %v19320_v54 = vsub.f32 %v19291_v50, %v9554_v0  ;;  %v17241_v50 = vpack.c.bf16 %v9623_v8, %v9616_v39  ;;  %v19420_v57 = vpack.c.bf16 %v9557_v56, %v9554_v0  ;;  %v19428_v39 = vsub.f32 %v19379_v40, %v22828_v14  ;;  %v19439_v56 = vld [vmem:[%s22799_s3 + $0x38] sm:$0xff] }
 0x804   :  { %v22817_v0 = vand.u32 4294901760, %v19398_v17  ;;  %v22805_v8 = vand.u32 4294901760, %v19418_v35 }
 0x805   :  { %v22808_v5 = vand.u32 4294901760, %v19320_v54  ;;  %17242 = vmatpush3.bf16.msra.mxu0 %v17241_v50  ;;  %23102 = vst [vmem:[#allocation11_spill] sm:$0xff] %v19428_v39  ;;  %17212 = vmatprep.subr.bf16.mxu1 %v19420_v57  ;;  %v22809_v27 = vand.u32 4294901760, %v19428_v39  ;;  %v22811_v50 = vand.u32 4294901760, %v19433_v9 }
 0x806   :  { %v9762_v45 = vsub.f32 %v19418_v35, %v22805_v8 }
 0x807   :  { %v9741_v22 = vsub.f32 %v19320_v54, %v22808_v5  ;;  %v9643_v34 = vsub.f32 %v19428_v39, %v22809_v27 }
 0x808   :  { %v9763_v15 = vand.u32 4294901760, %v9762_v45 }
 0x809   :  { %v9742_v46 = vand.u32 4294901760, %v9741_v22  ;;  %v19413_v22 = vld [vmem:[%s22799_s3 + $0x30] sm:$0xff]  ;;  %v9644_v27 = vand.u32 4294901760, %v9643_v34 }
 0x80a   :  { %v22816_v29 = vand.u32 4294901760, %v19413_v22  ;;  %v17247_v6 = vpack.c.bf16 %v9763_v15, %v9756_v32  ;;  %v2011_v32 = vld [vmem:[#allocation2 + $0x2] ss:$8 sm:$0xf0] }
 0x80b   :  { %v17243_v25 = vpack.c.bf16 %v9749_v12, %v9742_v46  ;;  %v19446_v46 = vsub.f32 %v19392_v21, %v22826_v38  ;;  %v19450_v12 = vpack.c.bf16 %v9509_v26, %v9506_v30  ;;  %v22818_v26 = vand.u32 4294901760, %v19439_v56 }
 0x80c   :  { %v19471_v49 = vsub.f32 %v19413_v22, %v22816_v29 }
 0x80d   :  { %17244 = vmatprep.subr.bf16.mxu0 %v17243_v25  ;;  %23104 = vst [vmem:[#allocation13_spill] sm:$0xff] %v19446_v46  ;;  %v19461_v25 = vsub.f32 %v19398_v17, %v22817_v0  ;;  %v22814_v30 = vand.u32 4294901760, %v19446_v46  ;;  %17214 = vmatpush3.bf16.msra.mxu1 %v19450_v12  ;;  %v19488_v4 = vsub.f32 %v19439_v56, %v22818_v26 }
 0x80e   :  { %17246 = vmatpush3.bf16.msra.mxu0 %v17245_v23  ;;  %23106 = vst [vmem:[#allocation15_spill] sm:$0xff] %v19471_v49  ;;  %v9650_v23 = vsub.f32 %v19433_v9, %v22811_v50  ;;  %v22820_v5 = vand.u32 4294901760, %v19471_v49 }
 0x80f   :  { %23105 = vst [vmem:[#allocation14_spill] sm:$0xff] %v19461_v25  ;;  %v22819_v8 = vand.u32 4294901760, %v19461_v25  ;;  %v9769_v16 = vsub.f32 %v19446_v46, %v22814_v30  ;;  %23107 = vst [vmem:[#allocation16_spill] sm:$0xff] %v19488_v4  ;;  %v22821_v30 = vand.u32 4294901760, %v19488_v4  ;;  %17248 = vmatprep.subr.bf16.mxu0 %v17247_v6 }
 0x810   :  { %v9651_v3 = vand.u32 4294901760, %v9650_v23  ;;  %v9657_v45 = vsub.f32 %v19471_v49, %v22820_v5 }
 0x811   :  { %v9776_v50 = vsub.f32 %v19461_v25, %v22819_v8  ;;  %v9770_v41 = vand.u32 4294901760, %v9769_v16  ;;  %v9664_v34 = vsub.f32 %v19488_v4, %v22821_v30  ;;  %v2010_v16 = vld [vmem:[#allocation2 + $0x2] ss:$8 sm:$0xf] }
 0x812   :  { %v17249_v59 = vpack.c.bf16 %v9651_v3, %v9644_v27  ;;  %v9658_v0 = vand.u32 4294901760, %v9657_v45  ;;  %v2012_v8 = vor.u32 %v2011_v32, %v2010_v16 }
 0x813   :  { %v9777_v29 = vand.u32 4294901760, %v9776_v50  ;;  %v9665_v26 = vand.u32 4294901760, %v9664_v34 }
 0x814   :  { %17250 = vmatpush3.bf16.msra.mxu0 %v17249_v59  ;;  %v6077_v5 = vrot.slane %v2012_v8, %v18743_v58  ;;  %v6085_v3 = vrot.slane %v2012_v8, %v18749_v62  ;;  %v6081_v6 = vrot.slane %v2012_v8, %v18746_v61  ;;  %v6089_v27 = vrot.slane %v2012_v8, %v18752_v63 }
 0x815   :  { %v17251_v23 = vpack.c.bf16 %v9777_v29, %v9770_v41  ;;  %v17253_v15 = vpack.c.bf16 %v9665_v26, %v9658_v0  ;;  %v6093_v50 = vrot.slane %v2012_v8, %v19068_v11  ;;  %v6101_v59 = vrot.slane %v2012_v8, %v19107_v37 }
 0x816   :  { %v6097_v41 = vrot.slane %v2012_v8, %v19050_v31  ;;  %v19508_v0 = vadd.f32 %v19266_v55, %v6077_v5  ;;  %v19511_v29 = vadd.f32 %v19268_v20, %v6085_v3  ;;  %v6105_v58 = vrot.slane %v2012_v8, %v19072_v19 }
 0x817   :  { %17252 = vmatprep.subr.bf16.mxu0 %v17251_v23  ;;  %v19515_v62 = vadd.f32 %v19270_v44, %v6081_v6  ;;  %v19518_v63 = vadd.f32 %v19272_v1, %v6089_v27 }
 0x818   :  { %17254 = vmatpush3.bf16.msra.mxu0 %v17253_v15  ;;  %23108 = vst [vmem:[#allocation17_spill] sm:$0xff] %v19511_v29  ;;  %v9330_v19 = vsel %vm875_vm4, %v19508_v0, -inf  ;;  %v9332_v44 = vsel %vm875_vm4, %v19511_v29, -inf }
 0x819   :  { %23109 = vst [vmem:[#allocation18_spill] sm:$0xff] %v19518_v63  ;;  %v9331_v23 = vsel %vm875_vm4, %v19515_v62, -inf  ;;  %v9333_v6 = vsel %vm875_vm4, %v19518_v63, -inf  ;;  %v9401_v63 = vld [vmem:[%s22799_s3 + $0xf0] sm:$0xff] }
 0x8d2   :  { %v9159_v61 = vpop.f32.mrb[24].mxu1 }
 0x8d3   :  { %v19520_v11 = vadd.f32 %v9159_v61, %v6093_v50  ;;  %v9323_v37 = vpop.f32.mrb[20].mxu0  ;;  %v9161_v26 = vpop.f32.mrb[25].mxu1 }
 0x8d4   :  { %v19522_v31 = vadd.f32 %v9323_v37, %v6101_v59  ;;  %v19524_v55 = vadd.f32 %v9161_v26, %v6097_v41  ;;  %v9325_v5 = vpop.f32.mrb[21].mxu0  ;;  %v9163_v20 = vpop.f32.mrb[26].mxu1  ;;  %v19547_v26 = vld [vmem:[%s22799_s3 + $0xc0] sm:$0xff] }
 0x8d5   :  { %23110 = vst [vmem:[#allocation19_spill] sm:$0xff] %v19520_v11  ;;  %v9334_v1 = vsel %vm875_vm4, %v19520_v11, -inf  ;;  %v19532_v8 = vadd.f32 %v9325_v5, %v6105_v58  ;;  %v9327_v45 = vpop.f32.mrb[22].mxu0  ;;  %v9164_v34 = vpop.f32.mrb[27].mxu1  ;;  %v19552_v5 = vld [vmem:[%s22799_s3 + $0xc8] sm:$0xff]  ;;  %v22825_v20 = vand.u32 4294901760, %v19547_v26 }
 0x8d6   :  { %23111 = vst [vmem:[#allocation20_spill] sm:$0xff] %v19522_v31  ;;  %23112 = vst [vmem:[#allocation21_spill] sm:$0xff] %v19524_v55  ;;  %v9335_v15 = vmax.f32 %v9330_v19, %v9334_v1  ;;  %v9338_v16 = vsel %vm875_vm4, %v19522_v31, -inf  ;;  %v9336_v32 = vsel %vm875_vm4, %v19524_v55, -inf  ;;  %v9328_v3 = vpop.f32.mrb[23].mxu0  ;;  %v22824_v19 = vand.u32 4294901760, %v19552_v5 }
 0x8d7   :  { %23113 = vst [vmem:[#allocation22_spill] sm:$0xff] %v19532_v8  ;;  %v9339_v27 = vmax.f32 %v9332_v44, %v9338_v16  ;;  %v9337_v50 = vmax.f32 %v9331_v23, %v9336_v32  ;;  %v9340_v59 = vsel %vm875_vm4, %v19532_v8, -inf  ;;  %v19559_v44 = vld [vmem:[%s22799_s3 + $0x40] sm:$0xff]  ;;  %v19564_v1 = vld [vmem:[%s22799_s3 + $0x48] sm:$0xff]  ;;  %v19571_v23 = vsub.f32 %v19547_v26, %v22825_v20  ;;  %v19591_v3 = vld [vmem:[%s22799_s3 + $0xd0] sm:$0xff] }
 0x8d8   :  { %v9341_v41 = vmax.f32 %v9333_v6, %v9340_v59  ;;  %v22823_v45 = vand.u32 4294901760, %v19559_v44  ;;  %v22822_v34 = vand.u32 4294901760, %v19564_v1  ;;  %v19596_v6 = vld [vmem:[%s22799_s3 + $0xd8] sm:$0xff]  ;;  %v22831_v59 = vand.u32 4294901760, %v19591_v3 }
 0x8d9   :  { %v9342_v58 = vmax.f32 %v9335_v15, %v9337_v50  ;;  %v19576_v15 = vsub.f32 %v19552_v5, %v22824_v19  ;;  %v23116_v11 = vand.u32 4294901760, %v19379_v40  ;;  %v23117_v55 = vand.u32 4294901760, %v19384_v51 }
 0x8da   :  { %v9343_v61 = vmax.f32 %v9339_v27, %v9341_v41  ;;  %v19581_v16 = vsub.f32 %v19559_v44, %v22823_v45  ;;  %v19586_v32 = vsub.f32 %v19564_v1, %v22822_v34  ;;  %v22829_v27 = vand.u32 4294901760, %v19571_v23 }
 0x8db   :  { %v22830_v50 = vand.u32 4294901760, %v19576_v15  ;;  %v9581_v41 = vand.u32 4294901760, %v19596_v6  ;;  %v19625_v38 = vsub.f32 %v19591_v3, %v22831_v59  ;;  %v19676_v29 = vpack.c.bf16 %v23117_v55, %v23116_v11  ;;  %v19695_v11 = vld [vmem:[%s22799_s3 + $0x68] sm:$0xff] }
 0x8dc   :  { %v9344_v37 = vmax.f32 %v9342_v58, %v9343_v61  ;;  %v19605_v58 = vld [vmem:[%s22799_s3 + $0x50] sm:$0xff]  ;;  %v19610_v61 = vld [vmem:[%s22799_s3 + $0x58] sm:$0xff]  ;;  %v22837_v30 = vand.u32 4294901760, %v19586_v32  ;;  %v9783_v19 = vsub.f32 %v19571_v23, %v22829_v27 }
 0x8dd   :  { %v22839_v34 = vand.u32 4294901760, %v19605_v58  ;;  %v22840_v45 = vand.u32 4294901760, %v19610_v61  ;;  %v9790_v20 = vsub.f32 %v19576_v15, %v22830_v50  ;;  %v19628_v48 = vsub.f32 %v19596_v6, %v9581_v41 }
 0x8de   :  { %9345 = vmax.xlane.f32.xlu1 %v9344_v37  ;;  %v22834_v37 = vand.u32 4294901760, %v19581_v16  ;;  %v9678_v27 = vsub.f32 %v19586_v32, %v22837_v30  ;;  %v9784_v6 = vand.u32 4294901760, %v9783_v19  ;;  %v22845_v42 = vand.u32 4294901760, %v19625_v38  ;;  %v19658_v19 = vld [vmem:[%s22799_s3 + $0xe8] sm:$0xff] }
 0x8df   :  { %v19639_v50 = vsub.f32 %v19605_v58, %v22839_v34  ;;  %v19644_v59 = vsub.f32 %v19610_v61, %v22840_v45  ;;  %v9791_v10 = vand.u32 4294901760, %v9790_v20  ;;  %v19653_v34 = vld [vmem:[%s22799_s3 + $0xe0] sm:$0xff]  ;;  %v23114_v20 = vand.u32 4294901760, %v19363_v18 }
 0x8e0   :  { %v9671_v14 = vsub.f32 %v19581_v16, %v22834_v37  ;;  %v22844_v37 = vand.u32 4294901760, %v19628_v48  ;;  %v9679_v31 = vand.u32 4294901760, %v9678_v27  ;;  %v23115_v45 = vand.u32 4294901760, %v19371_v13 }
 0x8e1   :  { %v17255_v27 = vpack.c.bf16 %v9791_v10, %v9784_v6  ;;  %v9797_v8 = vsub.f32 %v19625_v38, %v22845_v42  ;;  %v23118_v13 = vand.u32 4294901760, %v19639_v50  ;;  %v23119_v10 = vand.u32 4294901760, %v19644_v59 }
 0x8e2   :  { %v9672_v47 = vand.u32 4294901760, %v9671_v14  ;;  %v19664_v14 = vpack.c.bf16 %v23115_v45, %v23114_v20  ;;  %v9804_v30 = vsub.f32 %v19628_v48, %v22844_v37  ;;  %v9584_v40 = vand.u32 4294901760, %v19653_v34 }
 0x8e3   :  { %v9685_v45 = vsub.f32 %v19639_v50, %v23118_v13  ;;  %v9692_v6 = vsub.f32 %v19644_v59, %v23119_v10  ;;  %17256 = vmatprep.subr.bf16.mxu0 %v17255_v27  ;;  %v9798_v20 = vand.u32 4294901760, %v9797_v8  ;;  %v9587_v51 = vand.u32 4294901760, %v19658_v19 }
 0x8e4   :  { %v17257_v18 = vpack.c.bf16 %v9679_v31, %v9672_v47  ;;  %17216 = vmatprep.subr.bf16.mxu1 %v19664_v14  ;;  %v9805_v37 = vand.u32 4294901760, %v9804_v30  ;;  %v19690_v47 = vld [vmem:[%s22799_s3 + $0x60] sm:$0xff]  ;;  %v23120_v31 = vand.u32 4294901760, %v19392_v21  ;;  %v23121_v30 = vand.u32 4294901760, %v19398_v17 }
 0x8e5   :  { %17218 = vmatpush3.bf16.msra.mxu1 %v19676_v29  ;;  %v23123_v8 = vand.u32 4294901760, %v19413_v22  ;;  %v23124_v27 = vand.u32 4294901760, %v19439_v56  ;;  %v9686_v10 = vand.u32 4294901760, %v9685_v45  ;;  %v9693_v42 = vand.u32 4294901760, %v9692_v6  ;;  %v9402_v56 = vld [vmem:[%s22799_s3 + $0xf8] sm:$0xff] }
 0x8e6   :  { %17258 = vmatpush3.bf16.msra.mxu0 %v17257_v18  ;;  %v19702_v55 = vpack.c.bf16 %v23121_v30, %v23120_v31  ;;  %v17259_v4 = vpack.c.bf16 %v9805_v37, %v9798_v20  ;;  %v23126_v18 = vand.u32 4294901760, %v19547_v26  ;;  %v23127_v21 = vand.u32 4294901760, %v19552_v5 }
 0x8e7   :  { %v19708_v13 = vpack.c.bf16 %v23124_v27, %v23123_v8  ;;  %v19720_v31 = vsub.f32 %v19653_v34, %v9584_v40  ;;  %v19723_v22 = vsub.f32 %v19658_v19, %v9587_v51  ;;  %v17261_v45 = vpack.c.bf16 %v9693_v42, %v9686_v10  ;;  %v9385_v19 = vld [vmem:[%s22799_s3 + $0x70] sm:$0xff]  ;;  %v9386_v8 = vld [vmem:[%s22799_s3 + $0x78] sm:$0xff] }
 0x8e8   :  { %23122 = vst [vmem:[#allocation23_spill] sm:$0xff] %v19702_v55  ;;  %v19717_v17 = vpack.c.bf16 %v23127_v21, %v23126_v18  ;;  %17220 = vmatprep.subr.bf16.mxu1 %v19702_v55  ;;  %v23129_v37 = vand.u32 4294901760, %v19559_v44  ;;  %v23130_v26 = vand.u32 4294901760, %v19564_v1  ;;  %v9536_v6 = vand.u32 4294901760, %v19690_v47  ;;  %17260 = vmatprep.subr.bf16.mxu0 %v17259_v4 }
 0x8e9   :  { %23125 = vst [vmem:[#allocation24_spill] sm:$0xff] %v19708_v13  ;;  %v9539_v34 = vand.u32 4294901760, %v19695_v11  ;;  %v22852_v20 = vand.u32 4294901760, %v19720_v31  ;;  %v22851_v30 = vand.u32 4294901760, %v19723_v22  ;;  %v23132_v42 = vand.u32 4294901760, %v19591_v3  ;;  %17222 = vmatpush3.bf16.msra.mxu1 %v19708_v13 }
 0x8ea   :  { %23128 = vst [vmem:[#allocation25_spill] sm:$0xff] %v19717_v17  ;;  %v19733_v5 = vpack.c.bf16 %v23130_v26, %v23129_v37  ;;  %v9590_v1 = vand.u32 4294901760, %v9401_v63  ;;  %17262 = vmatpush3.bf16.msra.mxu0 %v17261_v45  ;;  %v19751_v27 = vsub.f32 %v19690_v47, %v9536_v6  ;;  %v9593_v10 = vand.u32 4294901760, %v9402_v56  ;;  %17224 = vmatprep.subr.bf16.mxu1 %v19717_v17 }
 0x8eb   :  { %v19744_v44 = vpack.c.bf16 %v9581_v41, %v23132_v42  ;;  %v19754_v4 = vsub.f32 %v19695_v11, %v9539_v34  ;;  %v23134_v18 = vand.u32 4294901760, %v19605_v58  ;;  %v23135_v3 = vand.u32 4294901760, %v19610_v61 }
 0x8ec   :  { %23131 = vst [vmem:[#allocation26_spill] sm:$0xff] %v19733_v5  ;;  %v9811_v21 = vsub.f32 %v19720_v31, %v22852_v20  ;;  %v9818_v47 = vsub.f32 %v19723_v22, %v22851_v30  ;;  %v19769_v45 = vsub.f32 %v9401_v63, %v9590_v1  ;;  %v9542_v11 = vand.u32 4294901760, %v9385_v19 }
 0x8ed   :  { %23133 = vst [vmem:[#allocation27_spill] sm:$0xff] %v19744_v44  ;;  %v19760_v41 = vpack.c.bf16 %v23135_v3, %v23134_v18  ;;  %v22855_v37 = vand.u32 4294901760, %v19751_v27  ;;  %v22858_v58 = vand.u32 4294901760, %v19754_v4  ;;  %v19773_v61 = vsub.f32 %v9402_v56, %v9593_v10  ;;  %17226 = vmatpush3.bf16.msra.mxu1 %v19733_v5 }
 0x8ee   :  { %v9545_v26 = vand.u32 4294901760, %v9386_v8  ;;  %v9812_v42 = vand.u32 4294901760, %v9811_v21  ;;  %v9819_v18 = vand.u32 4294901760, %v9818_v47  ;;  %v22863_v3 = vand.u32 4294901760, %v19769_v45  ;;  %17228 = vmatprep.subr.bf16.mxu1 %v19744_v44 }
 0x8ef   :  { %v19776_v49 = vsub.f32 %v9385_v19, %v9542_v11  ;;  %v9699_v63 = vsub.f32 %v19751_v27, %v22855_v37  ;;  %v9706_v30 = vsub.f32 %v19754_v4, %v22858_v58  ;;  %v22864_v56 = vand.u32 4294901760, %v19773_v61 }
 0x8f0   :  { %v19786_v20 = vsub.f32 %v9386_v8, %v9545_v26  ;;  %v17263_v21 = vpack.c.bf16 %v9819_v18, %v9812_v42  ;;  %v9825_v19 = vsub.f32 %v19769_v45, %v22863_v3  ;;  %v19793_v5 = vpack.c.bf16 %v9587_v51, %v9584_v40 }
 0x8f1   :  { %v9712_v47 = vand.u32 4294901760, %v19776_v49  ;;  %v9700_v37 = vand.u32 4294901760, %v9699_v63  ;;  %v9707_v25 = vand.u32 4294901760, %v9706_v30  ;;  %v9832_v58 = vsub.f32 %v19773_v61, %v22864_v56  ;;  %17230 = vmatpush3.bf16.msra.mxu1 %v19760_v41 }
 0x8f2   :  { %v9719_v8 = vand.u32 4294901760, %v19786_v20  ;;  %17264 = vmatprep.subr.bf16.mxu0 %v17263_v21  ;;  %v9826_v42 = vand.u32 4294901760, %v9825_v19  ;;  %v19802_v40 = vpack.c.bf16 %v9539_v34, %v9536_v6  ;;  %17232 = vmatprep.subr.bf16.mxu1 %v19793_v5  ;;  %v19805_v30 = vpack.c.bf16 %v9593_v10, %v9590_v1  ;;  %v19930_v1 = vld [vmem:[%s22799_s3 + $0x1d0] sm:$0xff] }
 0x8f3   :  { %v9713_v18 = vsub.f32 %v19776_v49, %v9712_v47  ;;  %v17265_v44 = vpack.c.bf16 %v9707_v25, %v9700_v37  ;;  %v9833_v46 = vand.u32 4294901760, %v9832_v58  ;;  %v19808_v25 = vpack.c.bf16 %v9545_v26, %v9542_v11  ;;  %v19869_v58 = vld [vmem:[%s22799_s3 + $0x1b8] sm:$0xff]  ;;  %23149 = vst [vmem:[#allocation41_spill] sm:$0xff] %v19930_v1 }
 0x8f4   :  { %v9720_v3 = vsub.f32 %v19786_v20, %v9719_v8  ;;  %v17271_v6 = vpack.c.bf16 %v19312_v52, %v19310_v43  ;;  %v19831_v26 = vpack.c.bf16 %v9719_v8, %v9712_v47  ;;  %23141 = vst [vmem:[#allocation33_spill] sm:$0xff] %v19869_v58  ;;  %v17273_v11 = vpack.c.bf16 %v19317_v24, %v19314_v60 }
 0x8f5   :  { %v9714_v51 = vand.u32 4294901760, %v9713_v18  ;;  %17266 = vmatpush3.bf16.msra.mxu0 %v17265_v44  ;;  %v17267_v63 = vpack.c.bf16 %v9833_v46, %v9826_v42  ;;  %17234 = vmatpush3.bf16.msra.mxu1 %v19802_v40  ;;  %v22870_v10 = vand.u32 4294901760, %v19869_v58  ;;  %v17277_v34 = vpack.c.bf16 %v19338_v33, %v19332_v2  ;;  %v19897_v46 = vld [vmem:[%s22799_s3 + $0x1c0] sm:$0xff]  ;;  %v19914_v44 = vld [vmem:[%s22799_s3 + $0x148] sm:$0xff] }
 0x8f6   :  { %v9721_v56 = vand.u32 4294901760, %v9720_v3  ;;  %17236 = vmatprep.subr.bf16.mxu1 %v19805_v30  ;;  %23136 = vst [vmem:[#allocation28_spill] sm:$0xff] %v19831_v26  ;;  %23144 = vst [vmem:[#allocation36_spill] sm:$0xff] %v19897_v46 }
 0x8f7   :  { %17268 = vmatprep.subr.bf16.mxu0 %v17267_v63  ;;  %23147 = vst [vmem:[#allocation39_spill] sm:$0xff] %v19914_v44 }
 0x8f8   :  { %v17269_v21 = vpack.c.bf16 %v9721_v56, %v9714_v51 }
 0x8f9   :  { %17238 = vmatpush3.bf16.msra.mxu1 %v19808_v25 }
 0x8fa   :  { %17270 = vmatpush3.bf16.msra.mxu0 %v17269_v21  ;;  %17272 = vmatprep.subr.bf16.mxu1 %v17271_v6 }
 0x8fb   :  { %17304 = vmatprep.subr.bf16.mxu0 %v19386_v28 }
 0x96b   :  { %v19833_v3 = vpop.xlane.xlu1 %9345 }
 0x96c   :  { %v19837_v56 = vsub.f32 %v19508_v0, %v19833_v3  ;;  %v19841_v19 = vsub.f32 %v19515_v62, %v19833_v3 }
 0x96e   :  { %23137 = vst [vmem:[#allocation29_spill] sm:$0xff] %v19837_v56  ;;  %23138 = vst [vmem:[#allocation30_spill] sm:$0xff] %v19841_v19  ;;  %v9355_v42 = vmul.f32 1.442695, %v19837_v56  ;;  %v9357_v18 = vmul.f32 1.442695, %v19841_v19 }
 0x970   :  { %18465 = vpow2.f32 %v9355_v42 }
 0x971   :  { %18467 = vpow2.f32 %v9357_v18 }
 0x97a   :  { %v18466_v51 = vpop.eup %18465 }
 0x97b   :  { %v18468_v63 = vpop.eup %18467  ;;  %v19845_v47 = vand.u32 4294901760, %v18466_v51 }
 0x97c   :  { %v19847_v8 = vand.u32 4294901760, %v18468_v63 }
 0x97d   :  { %23139 = vst [vmem:[#allocation31_spill] sm:$0xff] %v19845_v47  ;;  %v19850_v21 = vsub.f32 %v18466_v51, %v19845_v47 }
 0x97e   :  { %9836 = vmatprep.mubr.f32.mxu0 %v19847_v8  ;;  %v9596_v0 = vsub.f32 %v18468_v63, %v19847_v8  ;;  %v19864_v63 = vld [vmem:[%s22799_s3 + $0x1b0] sm:$0xff] }
 0x97f   :  { %9838 = vmatmul.mubr.f32.vlgmr.msra.gmra.mrb[24].mxu0 %v19845_v47  ;;  %v22865_v62 = vand.u32 4294901760, %v19850_v21  ;;  %23140 = vst [vmem:[#allocation32_spill] sm:$0xff] %v19864_v63 }
 0x980   :  { %17306 = vmatpush3.bf16.msra.mxu0 %v19406_v7  ;;  %v9597_v6 = vand.u32 4294901760, %v9596_v0 }
 0x981   :  { %17308 = vmatprep.subr.bf16.mxu0 %v19420_v57  ;;  %v9604_v42 = vsub.f32 %v19850_v21, %v22865_v62  ;;  %v17275_v62 = vpack.c.bf16 %v19323_v36, %v19320_v54 }
 0x982   :  { %10080 = vmatprep.mubr.f32.mxu0 %v9597_v6  ;;  %v9598_v18 = vsub.f32 %v9596_v0, %v9597_v6  ;;  %v19877_v6 = vld [vmem:[%s22799_s3 + $0x130] sm:$0xff] }
 0x983   :  { %v9605_v51 = vand.u32 4294901760, %v9604_v42  ;;  %23142 = vst [vmem:[#allocation34_spill] sm:$0xff] %v19877_v6  ;;  %v19882_v42 = vld [vmem:[%s22799_s3 + $0x138] sm:$0xff]  ;;  %v23150_v19 = vand.u32 4294901760, %v19877_v6 }
 0x984   :  { %17310 = vmatpush3.bf16.msra.mxu0 %v19450_v12  ;;  %v9599_v37 = vand.u32 4294901760, %v9598_v18  ;;  %23143 = vst [vmem:[#allocation35_spill] sm:$0xff] %v19882_v42  ;;  %v22868_v18 = vand.u32 4294901760, %v19864_v63  ;;  %v23151_v26 = vand.u32 4294901760, %v19882_v42 }
 0x985   :  { %17312 = vmatprep.subr.bf16.mxu0 %v19664_v14  ;;  %v19935_v56 = vsub.f32 %v19877_v6, %v23150_v19  ;;  %v17281_v19 = vpack.c.bf16 %v19433_v9, %v19428_v39  ;;  %v23158_v6 = vld [vmem:[#allocation15_spill] sm:$0xff]  ;;  %v23160_v39 = vand.u32 4294901760, %v19897_v46 }
 0x986   :  { %9600 = vmatprep.mubr.f32.mxu1 %v9599_v37  ;;  %v19902_v37 = vld [vmem:[%s22799_s3 + $0x1c8] sm:$0xff] }
 0x987   :  { %9606 = vmatmul.mubr.f32.vlgmr.msra.gmra.mrb[28].mxu1 %v9605_v51  ;;  %23145 = vst [vmem:[#allocation37_spill] sm:$0xff] %v19902_v37  ;;  %v19909_v51 = vld [vmem:[%s22799_s3 + $0x140] sm:$0xff] }
 0x988   :  { %17274 = vmatpush3.bf16.msra.mxu1 %v17273_v11  ;;  %17314 = vmatpush3.bf16.msra.mxu0 %v19676_v29  ;;  %v17279_v11 = vpack.c.bf16 %v19418_v35, %v19404_v53  ;;  %23146 = vst [vmem:[#allocation38_spill] sm:$0xff] %v19909_v51  ;;  %v23162_v35 = vand.u32 4294901760, %v19902_v37  ;;  %v23165_v9 = vand.u32 4294901760, %v19909_v51 }
 0x989   :  { %9973 = vmatprep.mubr.f32.mxu1 %v9596_v0  ;;  %17276 = vmatprep.subr.bf16.mxu1 %v17275_v62  ;;  %v19920_v0 = vsub.f32 %v19864_v63, %v22868_v18  ;;  %v19925_v62 = vsub.f32 %v19869_v58, %v22870_v10  ;;  %v19940_v18 = vsub.f32 %v19882_v42, %v23151_v26  ;;  %v19947_v58 = vld [vmem:[%s22799_s3 + $0x1d8] sm:$0xff]  ;;  %v23154_v63 = vld [vmem:[#allocation13_spill] sm:$0xff]  ;;  %v23155_v10 = vld [vmem:[#allocation14_spill] sm:$0xff] }
 0x98a   :  { %17316 = vmatprep.subr.bf16.mxu0 %v19702_v55  ;;  %23153 = vst [vmem:[#allocation43_spill] sm:$0xff] %v19947_v58  ;;  %v17283_v42 = vpack.c.bf16 %v23155_v10, %v23154_v63  ;;  %v23159_v26 = vld [vmem:[#allocation16_spill] sm:$0xff]  ;;  %v19978_v55 = vsub.f32 %v19897_v46, %v23160_v39  ;;  %v19983_v53 = vsub.f32 %v19902_v37, %v23162_v35  ;;  %v23167_v63 = vand.u32 4294901760, %v19914_v44 }
 0x98b   :  { %23148 = vst [vmem:[#allocation40_spill] sm:$0xff] %v19920_v0  ;;  %23152 = vst [vmem:[#allocation42_spill] sm:$0xff] %v19940_v18  ;;  %v19989_v10 = vsub.f32 %v19909_v51, %v23165_v9  ;;  %v20001_v35 = vld [vmem:[%s22799_s3 + $0x1e0] sm:$0xff]  ;;  %v23170_v9 = vld [vmem:[#allocation27_spill] sm:$0xff]  ;;  %v23172_v46 = vand.u32 4294901760, %v19920_v0  ;;  %v23173_v39 = vand.u32 4294901760, %v19925_v62 }
 0x98c   :  { %17278 = vmatpush3.bf16.msra.mxu1 %v17277_v34  ;;  %17318 = vmatpush3.bf16.msra.mxu0 %v19708_v13  ;;  %v19961_v34 = vld [vmem:[%s22799_s3 + $0x150] sm:$0xff]  ;;  %v19966_v13 = vld [vmem:[%s22799_s3 + $0x158] sm:$0xff]  ;;  %23161 = vst [vmem:[#allocation15_spill] sm:$0xff] %v19978_v55  ;;  %23163 = vst [vmem:[#allocation46_spill] sm:$0xff] %v19983_v53  ;;  %v19994_v47 = vsub.f32 %v19914_v44, %v23167_v63  ;;  %v23171_v63 = vand.u32 4294901760, %v19930_v1  ;;  %v23175_v37 = vand.u32 4294901760, %v19947_v58 }
 0x98d   :  { %17280 = vmatprep.subr.bf16.mxu1 %v17279_v11  ;;  %17320 = vmatprep.subr.bf16.mxu0 %v19717_v17  ;;  %23156 = vst [vmem:[#allocation44_spill] sm:$0xff] %v19961_v34  ;;  %23157 = vst [vmem:[#allocation45_spill] sm:$0xff] %v19966_v13  ;;  %v17285_v11 = vpack.c.bf16 %v23159_v26, %v23158_v6  ;;  %v23164_v17 = vld [vmem:[#allocation26_spill] sm:$0xff]  ;;  %v20018_v51 = vpack.c.bf16 %v23173_v39, %v23172_v46  ;;  %v20038_v39 = vld [vmem:[%s22799_s3 + $0x160] sm:$0xff]  ;;  %v23182_v0 = vand.u32 4294901760, %v19961_v34 }
 0x98e   :  { %23166 = vst [vmem:[#allocation47_spill] sm:$0xff] %v19989_v10  ;;  %23168 = vst [vmem:[#allocation48_spill] sm:$0xff] %v20001_v35  ;;  %v20012_v44 = vsub.f32 %v19930_v1, %v23171_v63  ;;  %v23183_v1 = vand.u32 4294901760, %v19966_v13 }
 0x98f   :  { %23174 = vst [vmem:[#allocation50_spill] sm:$0xff] %v20018_v51  ;;  %23180 = vst [vmem:[#allocation53_spill] sm:$0xff] %v20038_v39  ;;  %v20051_v46 = vsub.f32 %v19961_v34, %v23182_v0  ;;  %v20090_v0 = vld [vmem:[%s22799_s3 + $0x178] sm:$0xff]  ;;  %v23195_v34 = vand.u32 4294901760, %v20001_v35 }
 0x990   :  { %17282 = vmatpush3.bf16.msra.mxu1 %v17281_v19  ;;  %17322 = vmatpush3.bf16.msra.mxu0 %v23164_v17  ;;  %v20006_v19 = vld [vmem:[%s22799_s3 + $0x1e8] sm:$0xff]  ;;  %v20023_v17 = vsub.f32 %v19947_v58, %v23175_v37  ;;  %v20056_v63 = vsub.f32 %v19966_v13, %v23183_v1  ;;  %v23187_v1 = vand.u32 4294901760, %v19978_v55  ;;  %23191 = vst [vmem:[#allocation59_spill] sm:$0xff] %v20090_v0  ;;  %v23199_v55 = vand.u32 4294901760, %v20012_v44 }
 0x991   :  { %23169 = vst [vmem:[#allocation49_spill] sm:$0xff] %v20006_v19  ;;  %17284 = vmatprep.subr.bf16.mxu1 %v17283_v42  ;;  %17324 = vmatprep.subr.bf16.mxu0 %v23170_v9  ;;  %v23177_v42 = vand.u32 4294901760, %v19935_v56  ;;  %v23178_v9 = vand.u32 4294901760, %v19940_v18  ;;  %v20043_v37 = vld [vmem:[%s22799_s3 + $0x168] sm:$0xff]  ;;  %v20101_v58 = vsub.f32 %v20001_v35, %v23195_v34  ;;  %v23196_v13 = vand.u32 4294901760, %v20006_v19 }
 0x992   :  { %23176 = vst [vmem:[#allocation51_spill] sm:$0xff] %v20023_v17  ;;  %23181 = vst [vmem:[#allocation54_spill] sm:$0xff] %v20043_v37  ;;  %v23206_v18 = vand.u32 4294901760, %v20056_v63 }
 0x993   :  { %v20029_v26 = vpack.c.bf16 %v23178_v9, %v23177_v42  ;;  %v20066_v9 = vld [vmem:[%s22799_s3 + $0x1f8] sm:$0xff]  ;;  %v23186_v42 = vpack.c.bf16 %v19576_v15, %v19571_v23 }
 0x994   :  { %17286 = vmatpush3.bf16.msra.mxu1 %v17285_v11  ;;  %17326 = vmatpush3.bf16.msra.mxu0 %v19760_v41  ;;  %v20061_v11 = vld [vmem:[%s22799_s3 + $0x1f0] sm:$0xff]  ;;  %23185 = vst [vmem:[#allocation56_spill] sm:$0xff] %v20066_v9 }
 0x995   :  { %23179 = vst [vmem:[#allocation52_spill] sm:$0xff] %v20029_v26  ;;  %23184 = vst [vmem:[#allocation55_spill] sm:$0xff] %v20061_v11  ;;  %17288 = vmatprep.subr.bf16.mxu1 %v23186_v42  ;;  %17328 = vmatprep.subr.bf16.mxu0 %v19793_v5  ;;  %v23188_v26 = vand.u32 4294901760, %v19983_v53  ;;  %v20085_v42 = vld [vmem:[%s22799_s3 + $0x170] sm:$0xff]  ;;  %v23192_v53 = vand.u32 4294901760, %v19989_v10  ;;  %v23197_v10 = vpack.c.bf16 %v19586_v32, %v19581_v16 }
 0x996   :  { %23190 = vst [vmem:[#allocation58_spill] sm:$0xff] %v20085_v42 }
 0x997   :  { %v20077_v51 = vpack.c.bf16 %v23188_v26, %v23187_v1  ;;  %v23193_v26 = vand.u32 4294901760, %v19994_v47 }
 0x998   :  { %17290 = vmatpush3.bf16.msra.mxu1 %v23197_v10  ;;  %17330 = vmatpush3.bf16.msra.mxu0 %v19802_v40  ;;  %v23200_v10 = vand.u32 4294901760, %v20023_v17  ;;  %v22908_v17 = vand.u32 4294901760, %v20101_v58 }
 0x999   :  { %23189 = vst [vmem:[#allocation57_spill] sm:$0xff] %v20077_v51  ;;  %v20096_v1 = vpack.c.bf16 %v23193_v26, %v23192_v53  ;;  %v20106_v51 = vsub.f32 %v20006_v19, %v23196_v13  ;;  %v23198_v26 = vpack.c.bf16 %v19628_v48, %v19625_v38  ;;  %17332 = vmatprep.subr.bf16.mxu0 %v19805_v30  ;;  %v23202_v53 = vand.u32 4294901760, %v20038_v39 }
 0x99a   :  { %v23203_v19 = vand.u32 4294901760, %v20043_v37  ;;  %v23205_v13 = vand.u32 4294901760, %v20051_v46 }
 0x99b   :  { %23194 = vst [vmem:[#allocation60_spill] sm:$0xff] %v20096_v1  ;;  %17292 = vmatprep.subr.bf16.mxu1 %v23198_v26  ;;  %v20126_v1 = vpack.c.bf16 %v23200_v10, %v23199_v55  ;;  %v20131_v34 = vsub.f32 %v20038_v39, %v23202_v53  ;;  %v23208_v10 = vand.u32 4294901760, %v20061_v11  ;;  %v23255_v39 = vld [vmem:[#allocation24_spill] sm:$0xff] }
 0x99c   :  { %v20136_v26 = vsub.f32 %v20043_v37, %v23203_v19  ;;  %v20142_v35 = vpack.c.bf16 %v23206_v18, %v23205_v13  ;;  %v23212_v37 = vpack.c.bf16 %v19644_v59, %v19639_v50  ;;  %17334 = vmatpush3.bf16.msra.mxu0 %v19808_v25  ;;  %v23213_v18 = vpack.c.bf16 %v19723_v22, %v19720_v31 }
 0x99d   :  { %23201 = vst [vmem:[#allocation61_spill] sm:$0xff] %v20126_v1  ;;  %v20149_v53 = vsub.f32 %v20061_v11, %v23208_v10  ;;  %v23210_v1 = vand.u32 4294901760, %v20066_v9  ;;  %17368 = vmatprep.subr.bf16.mxu0 %v19386_v28  ;;  %v23214_v13 = vand.u32 4294901760, %v20085_v42  ;;  %v23224_v28 = vand.u32 4294901760, %v20131_v34 }
 0x99e   :  { %23204 = vst [vmem:[#allocation62_spill] sm:$0xff] %v20136_v26  ;;  %23207 = vst [vmem:[#allocation63_spill] sm:$0xff] %v20142_v35  ;;  %17294 = vmatpush3.bf16.msra.mxu1 %v23212_v37  ;;  %v23218_v37 = vand.u32 4294901760, %v20106_v51 }
 0x99f   :  { %23209 = vst [vmem:[#allocation64_spill] sm:$0xff] %v20149_v53  ;;  %v20154_v19 = vsub.f32 %v20066_v9, %v23210_v1  ;;  %17296 = vmatprep.subr.bf16.mxu1 %v23213_v18  ;;  %v20167_v10 = vsub.f32 %v20085_v42, %v23214_v13  ;;  %v23216_v1 = vand.u32 4294901760, %v20090_v0  ;;  %v23220_v9 = vand.u32 4294901760, %v19850_v21  ;;  %v23227_v13 = vld [vmem:[#allocation18_spill] sm:$0xff] }
 0x9a0   :  { %v20178_v35 = vpack.c.bf16 %v23218_v37, %v22908_v17  ;;  %v23222_v37 = vand.u32 4294901760, %v19310_v43  ;;  %v23223_v17 = vand.u32 4294901760, %v19312_v52  ;;  %v20202_v42 = vsub.f32 %v23227_v13, %v19833_v3  ;;  %v20225_v13 = vld [vmem:[%s22799_s3 + $0x188] sm:$0xff] }
 0x9a1   :  { %23211 = vst [vmem:[#allocation65_spill] sm:$0xff] %v20154_v19  ;;  %23215 = vst [vmem:[#allocation66_spill] sm:$0xff] %v20167_v10  ;;  %v20172_v55 = vsub.f32 %v20090_v0, %v23216_v1  ;;  %10084 = vmatmul.mubr.f32.vlgmr.msra.gmra.mrb[26].mxu0 %v23220_v9  ;;  %v23221_v1 = vpack.c.bf16 %v19754_v4, %v19751_v27  ;;  %v22910_v43 = vand.u32 4294901760, %v20167_v10  ;;  %v23264_v0 = vand.u32 4294901760, %v19571_v23  ;;  %v23274_v23 = vld [vmem:[#allocation27_spill] sm:$0xff] }
 0x9a2   :  { %23219 = vst [vmem:[#allocation68_spill] sm:$0xff] %v20178_v35  ;;  %17370 = vmatpush3.bf16.msra.mxu0 %v19406_v7  ;;  %v17335_v18 = vpack.c.bf16 %v23223_v17, %v23222_v37  ;;  %v23225_v35 = vand.u32 4294901760, %v20136_v26  ;;  %23228 = vst [vmem:[#allocation18_spill] sm:$0xff] %v20202_v42  ;;  %10354 = vmatprep.mubr.f32.mxu0 %v19847_v8  ;;  %v23229_v7 = vpack.c.bf16 %v19773_v61, %v19769_v45 }
 0x9a3   :  { %23217 = vst [vmem:[#allocation67_spill] sm:$0xff] %v20172_v55  ;;  %17298 = vmatpush3.bf16.msra.mxu1 %v23221_v1  ;;  %v22909_v52 = vand.u32 4294901760, %v20172_v55  ;;  %v23230_v17 = vand.u32 4294901760, %v20149_v53  ;;  %v23231_v1 = vand.u32 4294901760, %v20154_v19  ;;  %17372 = vmatprep.subr.bf16.mxu0 %v19420_v57  ;;  %v23235_v57 = vand.u32 4294901760, %v19314_v60 }
 0x9a4   :  { %v20198_v9 = vpack.c.bf16 %v23225_v35, %v23224_v28  ;;  %17300 = vmatprep.subr.bf16.mxu1 %v23229_v7  ;;  %v20220_v28 = vld [vmem:[%s22799_s3 + $0x180] sm:$0xff]  ;;  %v23234_v7 = vpack.c.bf16 %v19786_v20, %v19776_v49  ;;  %v23237_v49 = vand.u32 4294901760, %v19320_v54  ;;  %v23238_v20 = vand.u32 4294901760, %v19323_v36  ;;  %v20264_v54 = vld [vmem:[%s22799_s3 + $0x190] sm:$0xff]  ;;  %v20269_v36 = vld [vmem:[%s22799_s3 + $0x198] sm:$0xff] }
 0x9a5   :  { %v20214_v35 = vpack.c.bf16 %v23231_v1, %v23230_v17  ;;  %v20231_v37 = vpack.c.bf16 %v22909_v52, %v22910_v43  ;;  %v23236_v17 = vand.u32 4294901760, %v19317_v24  ;;  %v22912_v60 = vand.u32 4294901760, %v20220_v28 }
 0x9a6   :  { %23226 = vst [vmem:[#allocation69_spill] sm:$0xff] %v20198_v9  ;;  %17374 = vmatpush3.bf16.msra.mxu0 %v19450_v12  ;;  %v9361_v9 = vmul.f32 1.442695, %v20202_v42  ;;  %v17339_v12 = vpack.c.bf16 %v23238_v20, %v23237_v49  ;;  %v22911_v24 = vand.u32 4294901760, %v20225_v13  ;;  %v23243_v20 = vld [vmem:[#allocation10_spill] sm:$0xff]  ;;  %v23276_v55 = vand.u32 4294901760, %v19581_v16 }
 0x9a7   :  { %23232 = vst [vmem:[#allocation70_spill] sm:$0xff] %v20214_v35  ;;  %23233 = vst [vmem:[#allocation71_spill] sm:$0xff] %v20231_v37  ;;  %17302 = vmatpush3.bf16.msra.mxu1 %v23234_v7  ;;  %v17337_v1 = vpack.c.bf16 %v23236_v17, %v23235_v57  ;;  %v20244_v35 = vld [vmem:[%s22799_s3 + $0x100] sm:$0xff]  ;;  %17376 = vmatprep.subr.bf16.mxu0 %v19664_v14  ;;  %v20257_v7 = vld [vmem:[%s22799_s3 + $0x108] sm:$0xff]  ;;  %v23239_v14 = vand.u32 4294901760, %v19332_v2  ;;  %v23240_v57 = vand.u32 4294901760, %v19338_v33 }
 0x9a8   :  { %17336 = vmatprep.subr.bf16.mxu1 %v17335_v18  ;;  %v22917_v18 = vand.u32 4294901760, %v20244_v35  ;;  %18469 = vpow2.f32 %v9361_v9  ;;  %v23241_v17 = vld [vmem:[#allocation9_spill] sm:$0xff]  ;;  %v23244_v52 = vand.u32 4294901760, %v23243_v20  ;;  %v20290_v2 = vld [vmem:[%s22799_s3 + $0x110] sm:$0xff]  ;;  %v20295_v33 = vld [vmem:[%s22799_s3 + $0x118] sm:$0xff]  ;;  %v20301_v9 = vsub.f32 %v20225_v13, %v22911_v24 }
 0x9a9   :  { %v23242_v49 = vand.u32 4294901760, %v23241_v17  ;;  %v23278_v19 = vand.u32 4294901760, %v19625_v38 }
 0x9aa   :  { %9976 = vmatmul.mubr.f32.vlgmr.msra.gmra.mrb[30].mxu1 %v19850_v21  ;;  %v17341_v21 = vpack.c.bf16 %v23240_v57, %v23239_v14  ;;  %17378 = vmatpush3.bf16.msra.mxu0 %v19676_v29  ;;  %v23246_v29 = vld [vmem:[#allocation23_spill] sm:$0xff]  ;;  %v20308_v14 = vld [vmem:[%s22799_s3 + $0x1a0] sm:$0xff]  ;;  %v20313_v57 = vld [vmem:[%s22799_s3 + $0x1a8] sm:$0xff]  ;;  %v20318_v17 = vsub.f32 %v20244_v35, %v22917_v18 }
 0x9ab   :  { %17338 = vmatpush3.bf16.msra.mxu1 %v17337_v1  ;;  %10250 = vmatprep.mubr.f32.mxu1 %v19847_v8  ;;  %v17343_v43 = vpack.c.bf16 %v23244_v52, %v23242_v49  ;;  %v20284_v1 = vsub.f32 %v20220_v28, %v22912_v60  ;;  %v23247_v49 = vld [vmem:[#allocation11_spill] sm:$0xff]  ;;  %v23253_v8 = vld [vmem:[#allocation14_spill] sm:$0xff] }
 0x9ac   :  { %17340 = vmatprep.subr.bf16.mxu1 %v17339_v12  ;;  %17380 = vmatprep.subr.bf16.mxu0 %v23246_v29  ;;  %v23248_v20 = vand.u32 4294901760, %v23247_v49  ;;  %v23249_v29 = vld [vmem:[#allocation12_spill] sm:$0xff]  ;;  %v23251_v12 = vld [vmem:[#allocation13_spill] sm:$0xff]  ;;  %v23254_v42 = vand.u32 4294901760, %v23253_v8 }
 0x9ad   :  { %23245 = vst [vmem:[#allocation9_spill] sm:$0xff] %v20284_v1  ;;  %v23250_v24 = vand.u32 4294901760, %v23249_v29  ;;  %v23252_v52 = vand.u32 4294901760, %v23251_v12  ;;  %v23260_v29 = vand.u32 4294901760, %v20269_v36  ;;  %v23261_v12 = vand.u32 4294901760, %v23158_v6 }
 0x9ae   :  { %17382 = vmatpush3.bf16.msra.mxu0 %v23255_v39  ;;  %v20347_v39 = vld [vmem:[%s22799_s3 + $0x128] sm:$0xff] }
 0x9af   :  { %17342 = vmatpush3.bf16.msra.mxu1 %v17341_v21  ;;  %v17345_v60 = vpack.c.bf16 %v23250_v24, %v23248_v20  ;;  %v17347_v37 = vpack.c.bf16 %v23254_v42, %v23252_v52  ;;  %v23256_v21 = vand.u32 4294901760, %v20257_v7  ;;  %v20342_v42 = vld [vmem:[%s22799_s3 + $0x120] sm:$0xff]  ;;  %v23258_v52 = vand.u32 4294901760, %v20264_v54 }
 0x9b0   :  { %17344 = vmatprep.subr.bf16.mxu1 %v17343_v43  ;;  %v23257_v43 = vld [vmem:[#allocation25_spill] sm:$0xff]  ;;  %v23262_v24 = vld [vmem:[#allocation16_spill] sm:$0xff] }
 0x9b1   :  { %v20335_v49 = vsub.f32 %v20257_v7, %v23256_v21  ;;  %17384 = vmatprep.subr.bf16.mxu0 %v23257_v43  ;;  %v20354_v20 = vsub.f32 %v20264_v54, %v23258_v52  ;;  %v20359_v21 = vsub.f32 %v20269_v36, %v23260_v29  ;;  %v23263_v18 = vand.u32 4294901760, %v23262_v24  ;;  %v23268_v24 = vld [vmem:[#allocation26_spill] sm:$0xff] }
 0x9b2   :  { %v23265_v43 = vand.u32 4294901760, %v19576_v15  ;;  %v23266_v52 = vand.u32 4294901760, %v20290_v2  ;;  %v23267_v29 = vand.u32 4294901760, %v20295_v33  ;;  %17386 = vmatpush3.bf16.msra.mxu0 %v23268_v24  ;;  %v23269_v15 = vand.u32 4294901760, %v20284_v1 }
 0x9b3   :  { %23259 = vst [vmem:[#allocation10_spill] sm:$0xff] %v20354_v20  ;;  %v17349_v11 = vpack.c.bf16 %v23263_v18, %v23261_v12  ;;  %17346 = vmatpush3.bf16.msra.mxu1 %v17345_v60  ;;  %v23270_v12 = vand.u32 4294901760, %v20308_v14  ;;  %17388 = vmatprep.subr.bf16.mxu0 %v23274_v23  ;;  %v18470_v18 = vpop.eup %18469  ;;  %v23280_v23 = vand.u32 4294901760, %v20318_v17 }
 0x9b4   :  { %v17351_v8 = vpack.c.bf16 %v23265_v43, %v23264_v0  ;;  %v20373_v10 = vsub.f32 %v20290_v2, %v23266_v52  ;;  %v20378_v6 = vsub.f32 %v20295_v33, %v23267_v29  ;;  %17348 = vmatprep.subr.bf16.mxu1 %v17347_v37  ;;  %v10589_v0 = vsub.f32 %v20284_v1, %v23269_v15 }
 0x9b5   :  { %v20390_v43 = vsub.f32 %v20308_v14, %v23270_v12  ;;  %v23272_v52 = vand.u32 4294901760, %v20313_v57  ;;  %v23275_v37 = vand.u32 4294901760, %v20301_v9  ;;  %v23277_v12 = vand.u32 4294901760, %v19586_v32 }
 0x9b6   :  { %v10477_v26 = vsub.f32 %v20318_v17, %v23280_v23  ;;  %v23281_v15 = vand.u32 4294901760, %v20342_v42  ;;  %v23282_v32 = vand.u32 4294901760, %v20347_v39  ;;  %17390 = vmatpush3.bf16.msra.mxu0 %v19760_v41  ;;  %v23285_v23 = vand.u32 4294901760, %v20354_v20 }
 0x9b7   :  { %23271 = vst [vmem:[#allocation23_spill] sm:$0xff] %v20390_v43  ;;  %v20395_v29 = vsub.f32 %v20313_v57, %v23272_v52  ;;  %v10596_v24 = vsub.f32 %v20301_v9, %v23275_v37  ;;  %v17353_v1 = vpack.c.bf16 %v23277_v12, %v23276_v55  ;;  %v23279_v52 = vand.u32 4294901760, %v19628_v48  ;;  %17350 = vmatpush3.bf16.msra.mxu1 %v17349_v11 }
 0x9b8   :  { %v22932_v37 = vand.u32 4294901760, %v20373_v10  ;;  %v20419_v16 = vsub.f32 %v20342_v42, %v23281_v15  ;;  %v20424_v38 = vsub.f32 %v20347_v39, %v23282_v32  ;;  %17352 = vmatprep.subr.bf16.mxu1 %v17351_v8  ;;  %v10590_v48 = vand.u32 4294901760, %v10589_v0  ;;  %17392 = vmatprep.subr.bf16.mxu0 %v19793_v5 }
 0x9b9   :  { %23273 = vst [vmem:[#allocation11_spill] sm:$0xff] %v20395_v29  ;;  %v17355_v53 = vpack.c.bf16 %v23279_v52, %v23278_v19  ;;  %v23283_v11 = vand.u32 4294901760, %v20335_v49  ;;  %v10597_v15 = vand.u32 4294901760, %v10596_v24  ;;  %v20433_v52 = vand.u32 4294901760, %v18470_v18 }
 0x9ba   :  { %v10603_v32 = vsub.f32 %v20354_v20, %v23285_v23  ;;  %v23286_v41 = vand.u32 4294901760, %v20359_v21  ;;  %v23287_v0 = vand.u32 4294901760, %v19639_v50  ;;  %v23289_v12 = vand.u32 4294901760, %v19720_v31  ;;  %17394 = vmatpush3.bf16.msra.mxu0 %v19802_v40 }
 0x9bb   :  { %v10484_v55 = vsub.f32 %v20335_v49, %v23283_v11  ;;  %23284 = vst [vmem:[#allocation12_spill] sm:$0xff] %v20433_v52  ;;  %v23288_v11 = vand.u32 4294901760, %v19644_v59  ;;  %v23290_v5 = vand.u32 4294901760, %v19723_v22  ;;  %17354 = vmatpush3.bf16.msra.mxu1 %v17353_v1  ;;  %v10491_v60 = vsub.f32 %v20373_v10, %v22932_v37  ;;  %17396 = vmatprep.subr.bf16.mxu0 %v19805_v30 }
 0x9bc   :  { %v10610_v8 = vsub.f32 %v20359_v21, %v23286_v41  ;;  %v23291_v23 = vand.u32 4294901760, %v20378_v6  ;;  %v22934_v41 = vand.u32 4294901760, %v20419_v16  ;;  %v22933_v50 = vand.u32 4294901760, %v20424_v38  ;;  %17356 = vmatprep.subr.bf16.mxu1 %v17355_v53 }
 0x9bd   :  { %v17357_v19 = vpack.c.bf16 %v23288_v11, %v23287_v0  ;;  %v17359_v24 = vpack.c.bf16 %v23290_v5, %v23289_v12  ;;  %v10478_v59 = vand.u32 4294901760, %v10477_v26  ;;  %v10485_v31 = vand.u32 4294901760, %v10484_v55 }
 0x9be   :  { %v10498_v20 = vsub.f32 %v20378_v6, %v23291_v23  ;;  %v23292_v22 = vand.u32 4294901760, %v20390_v43  ;;  %v23293_v12 = vand.u32 4294901760, %v20395_v29  ;;  %v17431_v11 = vpack.c.bf16 %v10597_v15, %v10590_v48  ;;  %17398 = vmatpush3.bf16.msra.mxu0 %v19808_v25  ;;  %v23296_v15 = vld [vmem:[#allocation40_spill] sm:$0xff] }
 0x9bf   :  { %v10604_v5 = vand.u32 4294901760, %v10603_v32  ;;  %v10611_v23 = vand.u32 4294901760, %v10610_v8  ;;  %v20466_v37 = vsub.f32 %v18470_v18, %v20433_v52  ;;  %v23294_v40 = vand.u32 4294901760, %v19751_v27  ;;  %17358 = vmatpush3.bf16.msra.mxu1 %v17357_v19 }
 0x9c0   :  { %v10617_v1 = vsub.f32 %v20390_v43, %v23292_v22  ;;  %v10624_v0 = vsub.f32 %v20395_v29, %v23293_v12  ;;  %v23295_v26 = vand.u32 4294901760, %v19754_v4  ;;  %v10492_v55 = vand.u32 4294901760, %v10491_v60  ;;  %17360 = vmatprep.subr.bf16.mxu1 %v17359_v24  ;;  %17432 = vmatprep.subr.bf16.mxu0 %v17431_v11 }
 0x9c1   :  { %v10499_v22 = vand.u32 4294901760, %v10498_v20  ;;  %v10505_v12 = vsub.f32 %v20419_v16, %v22934_v41  ;;  %v10512_v30 = vsub.f32 %v20424_v38, %v22933_v50  ;;  %v17433_v18 = vpack.c.bf16 %v10485_v31, %v10478_v59 }
 0x9c2   :  { %v17361_v53 = vpack.c.bf16 %v23295_v26, %v23294_v40  ;;  %v10618_v48 = vand.u32 4294901760, %v10617_v1  ;;  %v10625_v27 = vand.u32 4294901760, %v10624_v0  ;;  %v23297_v4 = vand.u32 4294901760, %v23296_v15  ;;  %v23303_v1 = vld [vmem:[#allocation17_spill] sm:$0xff] }
 0x9c3   :  { %v23298_v20 = vand.u32 4294901760, %v19769_v45  ;;  %v23299_v60 = vand.u32 4294901760, %v19773_v61  ;;  %v17435_v8 = vpack.c.bf16 %v10611_v23, %v10604_v5  ;;  %v22935_v40 = vand.u32 4294901760, %v20466_v37  ;;  %v23305_v45 = vld [vmem:[#allocation31_spill] sm:$0xff] }
 0x9c4   :  { %v10631_v19 = vsub.f32 %v23296_v15, %v23297_v4  ;;  %v23300_v26 = vand.u32 4294901760, %v19925_v62  ;;  %v23301_v24 = vand.u32 4294901760, %v20220_v28  ;;  %v23302_v59 = vand.u32 4294901760, %v20225_v13  ;;  %10356 = vmatmul.mubr.f32.vlgmr.msra.gmra.mrb[28].mxu0 %v23305_v45  ;;  %17362 = vmatpush3.bf16.msra.mxu1 %v17361_v53 }
 0x9c5   :  { %v17363_v32 = vpack.c.bf16 %v23299_v60, %v23298_v20  ;;  %v20498_v0 = vsub.f32 %v23303_v1, %v19833_v3  ;;  %v17437_v61 = vpack.c.bf16 %v10499_v22, %v10492_v55  ;;  %v10506_v11 = vand.u32 4294901760, %v10505_v12  ;;  %17434 = vmatpush3.bf16.msra.mxu0 %v17433_v18  ;;  %10698 = vmatprep.mubr.f32.mxu0 %v20433_v52  ;;  %v23307_v20 = vld [vmem:[#allocation42_spill] sm:$0xff]  ;;  %v23309_v22 = vld [vmem:[#allocation15_spill] sm:$0xff] }
 0x9c6   :  { %v10638_v25 = vsub.f32 %v19925_v62, %v23300_v26  ;;  %v20494_v31 = vpack.c.bf16 %v23302_v59, %v23301_v24  ;;  %v10513_v5 = vand.u32 4294901760, %v10512_v30  ;;  %v17439_v23 = vpack.c.bf16 %v10625_v27, %v10618_v48  ;;  %17436 = vmatprep.subr.bf16.mxu0 %v17435_v8  ;;  %v23311_v18 = vld [vmem:[#allocation46_spill] sm:$0xff] }
 0x9c7   :  { %23304 = vst [vmem:[#allocation13_spill] sm:$0xff] %v20498_v0  ;;  %v10632_v4 = vand.u32 4294901760, %v10631_v19  ;;  %v23306_v28 = vand.u32 4294901760, %v19935_v56  ;;  %v23308_v60 = vand.u32 4294901760, %v23307_v20  ;;  %17364 = vmatprep.subr.bf16.mxu1 %v17363_v32  ;;  %v10460_v53 = vsub.f32 %v20466_v37, %v22935_v40  ;;  %v23315_v32 = vld [vmem:[#allocation47_spill] sm:$0xff] }
 0x9c8   :  { %v10639_v55 = vand.u32 4294901760, %v10638_v25  ;;  %v23310_v12 = vand.u32 4294901760, %v23309_v22  ;;  %v23312_v48 = vand.u32 4294901760, %v23311_v18  ;;  %v23313_v19 = vand.u32 4294901760, %v20244_v35 }
 0x9c9   :  { %v10519_v13 = vsub.f32 %v19935_v56, %v23306_v28  ;;  %v10526_v26 = vsub.f32 %v23307_v20, %v23308_v60  ;;  %v23314_v24 = vand.u32 4294901760, %v20257_v7  ;;  %v23316_v8 = vand.u32 4294901760, %v23315_v32  ;;  %v23317_v28 = vld [vmem:[#allocation28_spill] sm:$0xff]  ;;  %17438 = vmatpush3.bf16.msra.mxu0 %v17437_v61 }
 0x9ca   :  { %v10645_v30 = vsub.f32 %v23309_v22, %v23310_v12  ;;  %v10652_v27 = vsub.f32 %v23311_v18, %v23312_v48  ;;  %v9359_v25 = vmul.f32 1.442695, %v20498_v0  ;;  %17366 = vmatpush3.bf16.msra.mxu1 %v23317_v28  ;;  %v17441_v60 = vpack.c.bf16 %v10513_v5, %v10506_v11  ;;  %v23322_v11 = vld [vmem:[#allocation51_spill] sm:$0xff]  ;;  %17440 = vmatprep.subr.bf16.mxu0 %v17439_v23 }
 0x9cb   :  { %v20521_v59 = vpack.c.bf16 %v23314_v24, %v23313_v19  ;;  %v10533_v1 = vsub.f32 %v23315_v32, %v23316_v8  ;;  %v23318_v12 = vand.u32 4294901760, %v20264_v54  ;;  %v23319_v50 = vand.u32 4294901760, %v20269_v36  ;;  %17400 = vmatprep.subr.bf16.mxu1 %v20494_v31  ;;  %v23356_v0 = vld [vmem:[#allocation67_spill] sm:$0xff] }
 0x9cc   :  { %v23320_v35 = vand.u32 4294901760, %v19994_v47  ;;  %v10520_v19 = vand.u32 4294901760, %v10519_v13  ;;  %v10527_v24 = vand.u32 4294901760, %v10526_v26  ;;  %v23321_v8 = vand.u32 4294901760, %v20012_v44 }
 0x9cd   :  { %v20532_v48 = vpack.c.bf16 %v23319_v50, %v23318_v12  ;;  %v23323_v5 = vand.u32 4294901760, %v23322_v11  ;;  %v10461_v36 = vand.u32 4294901760, %v10460_v53  ;;  %v17443_v50 = vpack.c.bf16 %v10639_v55, %v10632_v4  ;;  %10252 = vmatmul.mubr.f32.vlgmr.msra.gmra.mrb[32].mxu1 %v23305_v45  ;;  %17442 = vmatpush3.bf16.msra.mxu0 %v17441_v60 }
 0x9ce   :  { %v10540_v7 = vsub.f32 %v19994_v47, %v23320_v35  ;;  %v10659_v28 = vsub.f32 %v20012_v44, %v23321_v8  ;;  %v10646_v12 = vand.u32 4294901760, %v10645_v30  ;;  %v10653_v41 = vand.u32 4294901760, %v10652_v27  ;;  %17402 = vmatpush3.bf16.msra.mxu1 %v20521_v59 }
 0x9cf   :  { %v10666_v54 = vsub.f32 %v23322_v11, %v23323_v5  ;;  %v23324_v61 = vand.u32 4294901760, %v20290_v2  ;;  %v23325_v13 = vand.u32 4294901760, %v20295_v33  ;;  %v10534_v35 = vand.u32 4294901760, %v10533_v1  ;;  %10462 = vmatprep.mubr.f32.mxu1 %v10461_v36  ;;  %17404 = vmatprep.subr.bf16.mxu1 %v20532_v48 }
 0x9d0   :  { %18471 = vpow2.f32 %v9359_v25  ;;  %v10541_v8 = vand.u32 4294901760, %v10540_v7  ;;  %v23326_v23 = vand.u32 4294901760, %v20051_v46  ;;  %v23327_v53 = vand.u32 4294901760, %v20056_v63  ;;  %17444 = vmatprep.subr.bf16.mxu0 %v17443_v50 }
 0x9d1   :  { %v20549_v26 = vpack.c.bf16 %v23325_v13, %v23324_v61  ;;  %v17445_v2 = vpack.c.bf16 %v10527_v24, %v10520_v19  ;;  %v23328_v33 = vand.u32 4294901760, %v20308_v14  ;;  %v23329_v55 = vand.u32 4294901760, %v20313_v57 }
 0x9d2   :  { %v10547_v4 = vsub.f32 %v20051_v46, %v23326_v23  ;;  %v10554_v45 = vsub.f32 %v20056_v63, %v23327_v53  ;;  %v10660_v27 = vand.u32 4294901760, %v10659_v28  ;;  %v10667_v1 = vand.u32 4294901760, %v10666_v54  ;;  %v23334_v28 = vld [vmem:[#allocation32_spill] sm:$0xff]  ;;  %v23340_v53 = vld [vmem:[#allocation62_spill] sm:$0xff] }
 0x9d3   :  { %v20563_v30 = vpack.c.bf16 %v23329_v55, %v23328_v33  ;;  %v17447_v25 = vpack.c.bf16 %v10653_v41, %v10646_v12  ;;  %v23330_v7 = vand.u32 4294901760, %v20101_v58  ;;  %v23331_v36 = vand.u32 4294901760, %v20106_v51  ;;  %17406 = vmatpush3.bf16.msra.mxu1 %v20549_v26  ;;  %v23336_v41 = vld [vmem:[#allocation33_spill] sm:$0xff]  ;;  %17446 = vmatpush3.bf16.msra.mxu0 %v17445_v2 }
 0x9d4   :  { %v23332_v19 = vand.u32 4294901760, %v20342_v42  ;;  %v23333_v14 = vand.u32 4294901760, %v20347_v39  ;;  %v17449_v57 = vpack.c.bf16 %v10541_v8, %v10534_v35  ;;  %v23335_v54 = vand.u32 4294901760, %v23334_v28 }
 0x9d5   :  { %v10673_v5 = vsub.f32 %v20101_v58, %v23330_v7  ;;  %v10680_v60 = vsub.f32 %v20106_v51, %v23331_v36  ;;  %v23337_v50 = vand.u32 4294901760, %v23336_v41  ;;  %v10548_v61 = vand.u32 4294901760, %v10547_v4  ;;  %17408 = vmatprep.subr.bf16.mxu1 %v20563_v30  ;;  %17448 = vmatprep.subr.bf16.mxu0 %v17447_v25  ;;  %v23342_v7 = vld [vmem:[#allocation64_spill] sm:$0xff] }
 0x9d6   :  { %v20575_v24 = vpack.c.bf16 %v23333_v14, %v23332_v19  ;;  %v10555_v13 = vand.u32 4294901760, %v10554_v45  ;;  %v17451_v23 = vpack.c.bf16 %v10667_v1, %v10660_v27  ;;  %v23339_v42 = vand.u32 4294901760, %v20131_v34  ;;  %v23344_v45 = vld [vmem:[#allocation65_spill] sm:$0xff]  ;;  %v23346_v27 = vld [vmem:[#allocation34_spill] sm:$0xff]  ;;  %v23348_v14 = vld [vmem:[#allocation35_spill] sm:$0xff] }
 0x9d7   :  { %v20582_v12 = vpack.c.bf16 %v23337_v50, %v23335_v54  ;;  %v23341_v33 = vand.u32 4294901760, %v23340_v53  ;;  %v10674_v8 = vand.u32 4294901760, %v10673_v5  ;;  %v10681_v55 = vand.u32 4294901760, %v10680_v60  ;;  %v23350_v25 = vld [vmem:[#allocation36_spill] sm:$0xff]  ;;  %v23352_v60 = vld [vmem:[#allocation37_spill] sm:$0xff]  ;;  %17450 = vmatpush3.bf16.msra.mxu0 %v17449_v57  ;;  %v23358_v57 = vld [vmem:[#allocation38_spill] sm:$0xff] }
 0x9d8   :  { %v10561_v39 = vsub.f32 %v20131_v34, %v23339_v42  ;;  %v23343_v36 = vand.u32 4294901760, %v23342_v7  ;;  %v23345_v2 = vand.u32 4294901760, %v23344_v45  ;;  %17410 = vmatpush3.bf16.msra.mxu1 %v20575_v24  ;;  %v23347_v1 = vand.u32 4294901760, %v23346_v27  ;;  %17452 = vmatprep.subr.bf16.mxu0 %v17451_v23 }
 0x9d9   :  { %23338 = vst [vmem:[#allocation14_spill] sm:$0xff] %v20582_v12  ;;  %v10568_v35 = vsub.f32 %v23340_v53, %v23341_v33  ;;  %v23349_v28 = vand.u32 4294901760, %v23348_v14  ;;  %v17453_v41 = vpack.c.bf16 %v10555_v13, %v10548_v61  ;;  %v23351_v5 = vand.u32 4294901760, %v23350_v25  ;;  %17412 = vmatprep.subr.bf16.mxu1 %v20582_v12 }
 0x9da   :  { %v10687_v4 = vsub.f32 %v23342_v7, %v23343_v36  ;;  %v10694_v19 = vsub.f32 %v23344_v45, %v23345_v2  ;;  %v23353_v50 = vand.u32 4294901760, %v23352_v60  ;;  %v10562_v33 = vand.u32 4294901760, %v10561_v39  ;;  %v23354_v2 = vld [vmem:[#allocation66_spill] sm:$0xff]  ;;  %v18472_v61 = vpop.eup %18471  ;;  %v23360_v60 = vld [vmem:[#allocation39_spill] sm:$0xff] }
 0x9db   :  { %v20602_v54 = vpack.c.bf16 %v23349_v28, %v23347_v1  ;;  %v10569_v36 = vand.u32 4294901760, %v10568_v35  ;;  %v23355_v40 = vand.u32 4294901760, %v23354_v2  ;;  %v23357_v14 = vand.u32 4294901760, %v23356_v0  ;;  %17454 = vmatpush3.bf16.msra.mxu0 %v17453_v41  ;;  %v23371_v41 = vld [vmem:[#allocation48_spill] sm:$0xff] }
 0x9dc   :  { %v20608_v42 = vpack.c.bf16 %v23353_v50, %v23351_v5  ;;  %v17455_v13 = vpack.c.bf16 %v10681_v55, %v10674_v8  ;;  %v10688_v28 = vand.u32 4294901760, %v10687_v4  ;;  %v10695_v25 = vand.u32 4294901760, %v10694_v19  ;;  %v23362_v50 = vld [vmem:[#allocation41_spill] sm:$0xff] }
 0x9dd   :  { %v10575_v27 = vsub.f32 %v23354_v2, %v23355_v40  ;;  %v10582_v1 = vsub.f32 %v23356_v0, %v23357_v14  ;;  %17414 = vmatpush3.bf16.msra.mxu1 %v20602_v54  ;;  %v23359_v5 = vand.u32 4294901760, %v23358_v57  ;;  %v23361_v39 = vand.u32 4294901760, %v23360_v60  ;;  %v23364_v40 = vld [vmem:[#allocation43_spill] sm:$0xff]  ;;  %v23367_v14 = vld [vmem:[#allocation44_spill] sm:$0xff] }
 0x9de   :  { %v23363_v52 = vand.u32 4294901760, %v23362_v50  ;;  %v23365_v2 = vand.u32 4294901760, %v23364_v40  ;;  %17416 = vmatprep.subr.bf16.mxu1 %v20608_v42  ;;  %v17457_v23 = vpack.c.bf16 %v10569_v36, %v10562_v33  ;;  %v20631_v4 = vand.u32 4294901760, %v18472_v61  ;;  %17456 = vmatprep.subr.bf16.mxu0 %v17455_v13  ;;  %v23373_v36 = vld [vmem:[#allocation49_spill] sm:$0xff] }
 0x9df   :  { %v20622_v35 = vpack.c.bf16 %v23361_v39, %v23359_v5  ;;  %v10576_v8 = vand.u32 4294901760, %v10575_v27  ;;  %v10583_v55 = vand.u32 4294901760, %v10582_v1  ;;  %v17459_v19 = vpack.c.bf16 %v10695_v25, %v10688_v28  ;;  %v23369_v5 = vld [vmem:[#allocation45_spill] sm:$0xff]  ;;  %v23377_v25 = vld [vmem:[#allocation54_spill] sm:$0xff] }
 0x9e0   :  { %v20628_v45 = vpack.c.bf16 %v23365_v2, %v23363_v52  ;;  %23366 = vst [vmem:[#allocation24_spill] sm:$0xff] %v20631_v4  ;;  %v23368_v57 = vand.u32 4294901760, %v23367_v14  ;;  %v23370_v60 = vand.u32 4294901760, %v23369_v5  ;;  %17458 = vmatpush3.bf16.msra.mxu0 %v17457_v23  ;;  %v23372_v33 = vand.u32 4294901760, %v23371_v41  ;;  %v23375_v13 = vld [vmem:[#allocation53_spill] sm:$0xff] }
 0x9e1   :  { %17418 = vmatpush3.bf16.msra.mxu1 %v20622_v35  ;;  %v17461_v52 = vpack.c.bf16 %v10583_v55, %v10576_v8  ;;  %v23374_v2 = vand.u32 4294901760, %v23373_v36  ;;  %v20648_v1 = vsub.f32 %v18472_v61, %v20631_v4  ;;  %17460 = vmatprep.subr.bf16.mxu0 %v17459_v19  ;;  %v23376_v28 = vand.u32 4294901760, %v23375_v13  ;;  %v23379_v8 = vld [vmem:[#allocation55_spill] sm:$0xff]  ;;  %v23381_v61 = vld [vmem:[#allocation56_spill] sm:$0xff] }
 0x9e2   :  { %v20638_v39 = vpack.c.bf16 %v23370_v60, %v23368_v57  ;;  %17420 = vmatprep.subr.bf16.mxu1 %v20628_v45  ;;  %v23378_v50 = vand.u32 4294901760, %v23377_v25  ;;  %v23380_v55 = vand.u32 4294901760, %v23379_v8  ;;  %v23382_v14 = vand.u32 4294901760, %v23381_v61  ;;  %v23383_v57 = vld [vmem:[#allocation58_spill] sm:$0xff]  ;;  %v23385_v60 = vld [vmem:[#allocation59_spill] sm:$0xff]  ;;  %v20690_v25 = vld [vmem:[%s22799_s3 + $0x228] sm:$0xff] }
 0x9e3   :  { %v20645_v27 = vpack.c.bf16 %v23374_v2, %v23372_v33  ;;  %v22943_v23 = vand.u32 4294901760, %v20648_v1  ;;  %v23384_v5 = vand.u32 4294901760, %v23383_v57  ;;  %v23387_v33 = vand.u32 4294901760, %v20466_v37  ;;  %v23388_v2 = vld [vmem:[#allocation9_spill] sm:$0xff]  ;;  %23390 = vst [vmem:[#allocation16_spill] sm:$0xff] %v20690_v25 }
 0x9e4   :  { %v20655_v40 = vpack.c.bf16 %v23378_v50, %v23376_v28  ;;  %17462 = vmatpush3.bf16.msra.mxu0 %v17461_v52  ;;  %v20664_v19 = vpack.c.bf16 %v23382_v14, %v23380_v55  ;;  %v23386_v52 = vand.u32 4294901760, %v23385_v60  ;;  %v17463_v13 = vpack.c.bf16 %v20301_v9, %v23388_v2  ;;  %v20685_v28 = vld [vmem:[%s22799_s3 + $0x220] sm:$0xff]  ;;  %v23391_v14 = vld [vmem:[#allocation10_spill] sm:$0xff]  ;;  %v20711_v60 = vld [vmem:[%s22799_s3 + $0x238] sm:$0xff] }
 0x9e5   :  { %17422 = vmatpush3.bf16.msra.mxu1 %v20638_v39  ;;  %17496 = vmatprep.subr.bf16.mxu0 %v20494_v31  ;;  %v10466_v36 = vsub.f32 %v20648_v1, %v22943_v23  ;;  %23389 = vst [vmem:[#allocation25_spill] sm:$0xff] %v20685_v28  ;;  %v17465_v50 = vpack.c.bf16 %v20335_v49, %v20318_v17  ;;  %v22942_v8 = vand.u32 4294901760, %v20685_v28  ;;  %v22941_v55 = vand.u32 4294901760, %v20690_v25 }
 0x9e6   :  { %17424 = vmatprep.subr.bf16.mxu1 %v20645_v27  ;;  %v20672_v41 = vpack.c.bf16 %v23386_v52, %v23384_v5  ;;  %v17467_v57 = vpack.c.bf16 %v20359_v21, %v23391_v14  ;;  %v20706_v5 = vld [vmem:[%s22799_s3 + $0x230] sm:$0xff]  ;;  %23393 = vst [vmem:[#allocation27_spill] sm:$0xff] %v20711_v60  ;;  %v20716_v52 = vld [vmem:[%s22799_s3 + $0x2c0] sm:$0xff]  ;;  %v22952_v23 = vand.u32 4294901760, %v20711_v60 }
 0x9e7   :  { %10700 = vmatmul.mubr.f32.vlgmr.msra.gmra.mrb[30].mxu0 %v20631_v4  ;;  %v10467_v61 = vand.u32 4294901760, %v10466_v36  ;;  %23392 = vst [vmem:[#allocation26_spill] sm:$0xff] %v20706_v5  ;;  %23394 = vst [vmem:[#allocation40_spill] sm:$0xff] %v20716_v52  ;;  %v20724_v36 = vsub.f32 %v20685_v28, %v22942_v8  ;;  %v22951_v8 = vand.u32 4294901760, %v20706_v5  ;;  %v17473_v4 = vpack.c.bf16 %v20424_v38, %v20419_v16 }
 0x9e8   :  { %17498 = vmatpush3.bf16.msra.mxu0 %v20521_v59  ;;  %10942 = vmatprep.mubr.f32.mxu0 %v23387_v33  ;;  %v17469_v33 = vpack.c.bf16 %v20378_v6, %v20373_v10 }
 0x9e9   :  { %17426 = vmatpush3.bf16.msra.mxu1 %v20655_v40  ;;  %17500 = vmatprep.subr.bf16.mxu0 %v20532_v48 }
 0x9ea   :  { %17428 = vmatprep.subr.bf16.mxu1 %v20664_v19 }
 0x9ec   :  { %17502 = vmatpush3.bf16.msra.mxu0 %v20549_v26 }
 0x9ed   :  { %17430 = vmatpush3.bf16.msra.mxu1 %v20672_v41  ;;  %17504 = vmatprep.subr.bf16.mxu0 %v20563_v30 }
 0x9ee   :  { %17464 = vmatprep.subr.bf16.mxu1 %v17463_v13  ;;  %v20729_v13 = vsub.f32 %v20690_v25, %v22941_v55  ;;  %v20747_v55 = vld [vmem:[%s22799_s3 + $0x248] sm:$0xff]  ;;  %v17475_v25 = vpack.c.bf16 %v19925_v62, %v23296_v15 }
 0x9ef   :  { %23397 = vst [vmem:[#allocation42_spill] sm:$0xff] %v20747_v55 }
 0x9f0   :  { %10468 = vmatmul.mubr.f32.vlgmr.msra.gmra.mrb[34].mxu1 %v10467_v61  ;;  %v20734_v61 = vld [vmem:[%s22799_s3 + $0x2c8] sm:$0xff]  ;;  %17506 = vmatpush3.bf16.msra.mxu0 %v20575_v24 }
 0x9f1   :  { %17466 = vmatpush3.bf16.msra.mxu1 %v17465_v50  ;;  %10835 = vmatprep.mubr.f32.mxu1 %v20466_v37  ;;  %23395 = vst [vmem:[#allocation17_spill] sm:$0xff] %v20734_v61  ;;  %v20739_v37 = vld [vmem:[%s22799_s3 + $0x240] sm:$0xff]  ;;  %v17471_v50 = vpack.c.bf16 %v20395_v29, %v20390_v43  ;;  %v22956_v29 = vand.u32 4294901760, %v20724_v36  ;;  %v22955_v43 = vand.u32 4294901760, %v20729_v13  ;;  %v23400_v15 = vand.u32 4294901760, %v20734_v61 }
 0x9f2   :  { %23396 = vst [vmem:[#allocation31_spill] sm:$0xff] %v20739_v37  ;;  %17468 = vmatprep.subr.bf16.mxu1 %v17467_v57  ;;  %17508 = vmatprep.subr.bf16.mxu0 %v20582_v12  ;;  %v20772_v57 = vsub.f32 %v20711_v60, %v22952_v23  ;;  %v23398_v12 = vand.u32 4294901760, %v20716_v52 }
 0x9f3   :  { %v20783_v62 = vpack.c.bf16 %v22955_v43, %v22956_v29  ;;  %v20805_v43 = vld [vmem:[%s22799_s3 + $0x250] sm:$0xff]  ;;  %v20865_v29 = vld [vmem:[%s22799_s3 + $0x2f8] sm:$0xff] }
 0x9f4   :  { %17510 = vmatpush3.bf16.msra.mxu0 %v20602_v54  ;;  %v20777_v28 = vsub.f32 %v20716_v52, %v23398_v12  ;;  %v17477_v12 = vpack.c.bf16 %v23307_v20, %v19935_v56  ;;  %v23402_v52 = vand.u32 4294901760, %v20747_v55  ;;  %v17479_v56 = vpack.c.bf16 %v23311_v18, %v23309_v22  ;;  %v20818_v20 = vld [vmem:[%s22799_s3 + $0x2e0] sm:$0xff]  ;;  %23409 = vst [vmem:[#allocation62_spill] sm:$0xff] %v20865_v29  ;;  %v20884_v18 = vld [vmem:[%s22799_s3 + $0x278] sm:$0xff] }
 0x9f5   :  { %17470 = vmatpush3.bf16.msra.mxu1 %v17469_v33  ;;  %17512 = vmatprep.subr.bf16.mxu0 %v20608_v42  ;;  %v20767_v33 = vsub.f32 %v20706_v5, %v22951_v8  ;;  %23399 = vst [vmem:[#allocation15_spill] sm:$0xff] %v20783_v62  ;;  %v23401_v8 = vand.u32 4294901760, %v20739_v37  ;;  %v17483_v62 = vpack.c.bf16 %v23322_v11, %v20012_v44  ;;  %23413 = vst [vmem:[#allocation35_spill] sm:$0xff] %v20884_v18 }
 0x9f6   :  { %17472 = vmatprep.subr.bf16.mxu1 %v17471_v50  ;;  %v20788_v50 = vsub.f32 %v20734_v61, %v23400_v15  ;;  %v20800_v60 = vsub.f32 %v20747_v55, %v23402_v52  ;;  %v20810_v15 = vld [vmem:[%s22799_s3 + $0x258] sm:$0xff]  ;;  %v22959_v52 = vand.u32 4294901760, %v20772_v57  ;;  %v22961_v22 = vand.u32 4294901760, %v20777_v28 }
 0x9f7   :  { %v20793_v23 = vsub.f32 %v20739_v37, %v23401_v8  ;;  %v17481_v8 = vpack.c.bf16 %v19994_v47, %v23315_v32  ;;  %v20838_v37 = vld [vmem:[%s22799_s3 + $0x260] sm:$0xff]  ;;  %v20843_v47 = vld [vmem:[%s22799_s3 + $0x268] sm:$0xff]  ;;  %v17485_v44 = vpack.c.bf16 %v20056_v63, %v20051_v46  ;;  %v23417_v11 = vand.u32 4294901760, %v20805_v43 }
 0x9f8   :  { %23403 = vst [vmem:[#allocation46_spill] sm:$0xff] %v20800_v60  ;;  %17514 = vmatpush3.bf16.msra.mxu0 %v20622_v35  ;;  %23405 = vst [vmem:[#allocation28_spill] sm:$0xff] %v20838_v37  ;;  %v23419_v5 = vand.u32 4294901760, %v20818_v20  ;;  %v23422_v46 = vand.u32 4294901760, %v20843_v47 }
 0x9f9   :  { %17474 = vmatpush3.bf16.msra.mxu1 %v17473_v4  ;;  %v20823_v4 = vld [vmem:[%s22799_s3 + $0x2e8] sm:$0xff]  ;;  %17516 = vmatprep.subr.bf16.mxu0 %v20628_v45  ;;  %23406 = vst [vmem:[#allocation51_spill] sm:$0xff] %v20843_v47  ;;  %v23414_v32 = vand.u32 4294901760, %v20793_v23 }
 0x9fa   :  { %17476 = vmatprep.subr.bf16.mxu1 %v17475_v25  ;;  %23404 = vst [vmem:[#allocation47_spill] sm:$0xff] %v20823_v4  ;;  %v22960_v25 = vand.u32 4294901760, %v20767_v33 }
 0x9fc   :  { %v20852_v55 = vpack.c.bf16 %v22959_v52, %v22960_v25  ;;  %17518 = vmatpush3.bf16.msra.mxu0 %v20638_v39  ;;  %v23410_v52 = vand.u32 4294901760, %v20788_v50 }
 0x9fd   :  { %17478 = vmatpush3.bf16.msra.mxu1 %v17477_v12  ;;  %v20860_v12 = vld [vmem:[%s22799_s3 + $0x2f0] sm:$0xff]  ;;  %17520 = vmatprep.subr.bf16.mxu0 %v20645_v27 }
 0x9fe   :  { %23407 = vst [vmem:[#allocation32_spill] sm:$0xff] %v20852_v55  ;;  %17480 = vmatprep.subr.bf16.mxu1 %v17479_v56  ;;  %23408 = vst [vmem:[#allocation33_spill] sm:$0xff] %v20860_v12  ;;  %v20871_v25 = vpack.c.bf16 %v23410_v52, %v22961_v22  ;;  %v20879_v56 = vld [vmem:[%s22799_s3 + $0x270] sm:$0xff]  ;;  %v23415_v52 = vand.u32 4294901760, %v20800_v60  ;;  %v23418_v55 = vand.u32 4294901760, %v20810_v15  ;;  %v20907_v60 = vsub.f32 %v20818_v20, %v23419_v5 }
 0x9ff   :  { %23412 = vst [vmem:[#allocation34_spill] sm:$0xff] %v20879_v56 }
 0xa00   :  { %23411 = vst [vmem:[#allocation64_spill] sm:$0xff] %v20871_v25  ;;  %v20890_v22 = vpack.c.bf16 %v23415_v52, %v23414_v32  ;;  %v20897_v25 = vsub.f32 %v20805_v43, %v23417_v11  ;;  %v20902_v61 = vsub.f32 %v20810_v15, %v23418_v55  ;;  %v23420_v32 = vand.u32 4294901760, %v20823_v4  ;;  %17522 = vmatpush3.bf16.msra.mxu0 %v20655_v40 }
 0xa01   :  { %17482 = vmatpush3.bf16.msra.mxu1 %v17481_v8  ;;  %v17487_v55 = vpack.c.bf16 %v20106_v51, %v20101_v58  ;;  %17524 = vmatprep.subr.bf16.mxu0 %v20664_v19  ;;  %v23421_v52 = vand.u32 4294901760, %v20838_v37  ;;  %v20930_v11 = vsub.f32 %v20843_v47, %v23422_v46  ;;  %v17489_v58 = vpack.c.bf16 %v23340_v53, %v20131_v34  ;;  %v23427_v34 = vld [vmem:[#allocation65_spill] sm:$0xff] }
 0xa02   :  { %23416 = vst [vmem:[#allocation36_spill] sm:$0xff] %v20890_v22  ;;  %v20912_v63 = vsub.f32 %v20823_v4, %v23420_v32  ;;  %17484 = vmatprep.subr.bf16.mxu1 %v17483_v62  ;;  %v23423_v62 = vld [vmem:[#allocation21_spill] sm:$0xff]  ;;  %v22970_v51 = vand.u32 4294901760, %v20897_v25  ;;  %v17491_v53 = vpack.c.bf16 %v23427_v34, %v23342_v7  ;;  %v23430_v7 = vand.u32 4294901760, %v20902_v61 }
 0xa03   :  { %v20925_v32 = vsub.f32 %v20838_v37, %v23421_v52  ;;  %v20934_v22 = vsub.f32 %v23423_v62, %v19833_v3  ;;  %v23425_v37 = vand.u32 4294901760, %v20860_v12  ;;  %v23426_v62 = vand.u32 4294901760, %v20865_v29 }
 0xa04   :  { %17526 = vmatpush3.bf16.msra.mxu0 %v20672_v41  ;;  %v23429_v52 = vand.u32 4294901760, %v20884_v18  ;;  %v23432_v34 = vand.u32 4294901760, %v20907_v60 }
 0xa05   :  { %23424 = vst [vmem:[#allocation37_spill] sm:$0xff] %v20934_v22  ;;  %17486 = vmatpush3.bf16.msra.mxu1 %v17485_v44  ;;  %v20945_v46 = vsub.f32 %v20860_v12, %v23425_v37  ;;  %v20950_v47 = vsub.f32 %v20865_v29, %v23426_v62  ;;  %v23428_v44 = vand.u32 4294901760, %v20879_v56  ;;  %17560 = vmatprep.subr.bf16.mxu0 %v20494_v31  ;;  %v23436_v31 = vld [vmem:[#allocation66_spill] sm:$0xff] }
 0xa06   :  { %17488 = vmatprep.subr.bf16.mxu1 %v17487_v55  ;;  %v20963_v37 = vsub.f32 %v20884_v18, %v23429_v52  ;;  %v20972_v55 = vpack.c.bf16 %v23430_v7, %v22970_v51  ;;  %v23435_v52 = vand.u32 4294901760, %v20648_v1  ;;  %v17493_v62 = vpack.c.bf16 %v23356_v0, %v23436_v31 }
 0xa07   :  { %v20958_v8 = vsub.f32 %v20879_v56, %v23428_v44  ;;  %v23433_v44 = vand.u32 4294901760, %v20912_v63  ;;  %v22971_v5 = vand.u32 4294901760, %v20945_v46  ;;  %v23437_v7 = vand.u32 4294901760, %v20925_v32 }
 0xa08   :  { %23431 = vst [vmem:[#allocation67_spill] sm:$0xff] %v20972_v55  ;;  %10946 = vmatmul.mubr.f32.vlgmr.msra.gmra.mrb[32].mxu0 %v23435_v52  ;;  %v23438_v51 = vand.u32 4294901760, %v20930_v11  ;;  %v22973_v31 = vand.u32 4294901760, %v20963_v37  ;;  %v9365_v18 = vmul.f32 1.442695, %v20934_v22 }
 0xa09   :  { %v20978_v56 = vpack.c.bf16 %v23433_v44, %v23432_v34  ;;  %17490 = vmatpush3.bf16.msra.mxu1 %v17489_v58  ;;  %17562 = vmatpush3.bf16.msra.mxu0 %v20521_v59  ;;  %v23440_v34 = vld [vmem:[#allocation12_spill] sm:$0xff]  ;;  %v23441_v44 = vand.u32 4294901760, %v23388_v2  ;;  %v23442_v58 = vand.u32 4294901760, %v20301_v9  ;;  %v22974_v0 = vand.u32 4294901760, %v20958_v8  ;;  %v21010_v2 = vld [vmem:[%s22799_s3 + $0x288] sm:$0xff] }
 0xa0a   :  { %v20990_v55 = vpack.c.bf16 %v23438_v51, %v23437_v7  ;;  %11216 = vmatprep.mubr.f32.mxu0 %v23440_v34  ;;  %17492 = vmatprep.subr.bf16.mxu1 %v17491_v53  ;;  %v21005_v59 = vld [vmem:[%s22799_s3 + $0x280] sm:$0xff]  ;;  %v23443_v9 = vand.u32 4294901760, %v20950_v47  ;;  %v23446_v53 = vand.u32 4294901760, %v20318_v17  ;;  %v23447_v7 = vand.u32 4294901760, %v20335_v49  ;;  %v21044_v17 = vld [vmem:[%s22799_s3 + $0x208] sm:$0xff]  ;;  %v21050_v49 = vld [vmem:[%s22799_s3 + $0x290] sm:$0xff] }
 0xa0b   :  { %23434 = vst [vmem:[#allocation38_spill] sm:$0xff] %v20978_v56  ;;  %v17527_v52 = vpack.c.bf16 %v23442_v58, %v23441_v44  ;;  %17564 = vmatprep.subr.bf16.mxu0 %v20532_v48  ;;  %v21022_v48 = vpack.c.bf16 %v22973_v31, %v22974_v0  ;;  %v23448_v58 = vand.u32 4294901760, %v23391_v14  ;;  %v22976_v22 = vand.u32 4294901760, %v21005_v59 }
 0xa0c   :  { %23439 = vst [vmem:[#allocation39_spill] sm:$0xff] %v20990_v55  ;;  %v21016_v51 = vpack.c.bf16 %v23443_v9, %v22971_v5  ;;  %v17529_v44 = vpack.c.bf16 %v23447_v7, %v23446_v53  ;;  %v23449_v9 = vand.u32 4294901760, %v20359_v21  ;;  %18473 = vpow2.f32 %v9365_v18  ;;  %v21055_v21 = vld [vmem:[%s22799_s3 + $0x298] sm:$0xff]  ;;  %v21066_v18 = vld [vmem:[%s22799_s3 + $0x210] sm:$0xff] }
 0xa0d   :  { %23445 = vst [vmem:[#allocation43_spill] sm:$0xff] %v21022_v48  ;;  %17494 = vmatpush3.bf16.msra.mxu1 %v17493_v62  ;;  %17566 = vmatpush3.bf16.msra.mxu0 %v20549_v26  ;;  %v21038_v62 = vld [vmem:[%s22799_s3 + $0x200] sm:$0xff]  ;;  %v23450_v26 = vand.u32 4294901760, %v20373_v10  ;;  %v23454_v53 = vld [vmem:[#allocation11_spill] sm:$0xff]  ;;  %v23460_v31 = vand.u32 4294901760, %v20424_v38 }
 0xa0e   :  { %23444 = vst [vmem:[#allocation41_spill] sm:$0xff] %v21016_v51  ;;  %17528 = vmatprep.subr.bf16.mxu1 %v17527_v52  ;;  %v17531_v5 = vpack.c.bf16 %v23449_v9, %v23448_v58  ;;  %v22975_v51 = vand.u32 4294901760, %v21010_v2  ;;  %17568 = vmatprep.subr.bf16.mxu0 %v20563_v30  ;;  %v23451_v30 = vand.u32 4294901760, %v20378_v6  ;;  %v21071_v52 = vld [vmem:[%s22799_s3 + $0x218] sm:$0xff]  ;;  %v23455_v6 = vand.u32 4294901760, %v23454_v53 }
 0xa0f   :  { %v22980_v9 = vand.u32 4294901760, %v21044_v17 }
 0xa10   :  { %10838 = vmatmul.mubr.f32.vlgmr.msra.gmra.mrb[36].mxu1 %v20648_v1  ;;  %v17533_v14 = vpack.c.bf16 %v23451_v30, %v23450_v26  ;;  %v22981_v1 = vand.u32 4294901760, %v21038_v62  ;;  %v21086_v58 = vsub.f32 %v21010_v2, %v22975_v51  ;;  %v23458_v26 = vld [vmem:[#allocation14_spill] sm:$0xff]  ;;  %v22978_v30 = vand.u32 4294901760, %v21050_v49 }
 0xa11   :  { %17530 = vmatpush3.bf16.msra.mxu1 %v17529_v44  ;;  %11112 = vmatprep.mubr.f32.mxu1 %v23440_v34  ;;  %v23452_v34 = vld [vmem:[#allocation23_spill] sm:$0xff]  ;;  %v21081_v44 = vsub.f32 %v21005_v59, %v22976_v22 }
 0xa12   :  { %17570 = vmatpush3.bf16.msra.mxu0 %v20575_v24  ;;  %17532 = vmatprep.subr.bf16.mxu1 %v17531_v5  ;;  %v23453_v10 = vand.u32 4294901760, %v23452_v34  ;;  %23457 = vst [vmem:[#allocation45_spill] sm:$0xff] %v21086_v58  ;;  %v21092_v24 = vld [vmem:[%s22799_s3 + $0x2a0] sm:$0xff]  ;;  %v21097_v5 = vld [vmem:[%s22799_s3 + $0x2a8] sm:$0xff]  ;;  %v22977_v34 = vand.u32 4294901760, %v21055_v21  ;;  %v21111_v51 = vsub.f32 %v21038_v62, %v22981_v1  ;;  %v21127_v38 = vsub.f32 %v21050_v49, %v22978_v30  ;;  %v23470_v1 = vld [vmem:[#allocation50_spill] sm:$0xff] }
 0xa13   :  { %23456 = vst [vmem:[#allocation44_spill] sm:$0xff] %v21081_v44  ;;  %17572 = vmatprep.subr.bf16.mxu0 %v23458_v26  ;;  %v22982_v26 = vand.u32 4294901760, %v21092_v24  ;;  %v22983_v22 = vand.u32 4294901760, %v21097_v5  ;;  %v22984_v53 = vand.u32 4294901760, %v21081_v44 }
 0xa14   :  { %v17535_v7 = vpack.c.bf16 %v23455_v6, %v23453_v10  ;;  %v22979_v10 = vand.u32 4294901760, %v21066_v18  ;;  %v23459_v6 = vand.u32 4294901760, %v20419_v16  ;;  %23461 = vst [vmem:[#allocation48_spill] sm:$0xff] %v21111_v51  ;;  %v21121_v16 = vsub.f32 %v21044_v17, %v22980_v9  ;;  %23463 = vst [vmem:[#allocation53_spill] sm:$0xff] %v21127_v38 }
 0xa15   :  { %17534 = vmatpush3.bf16.msra.mxu1 %v17533_v14  ;;  %v22987_v14 = vand.u32 4294901760, %v21086_v58  ;;  %v21158_v9 = vsub.f32 %v21092_v24, %v22982_v26 }
 0xa16   :  { %v17537_v0 = vpack.c.bf16 %v23460_v31, %v23459_v6  ;;  %17574 = vmatpush3.bf16.msra.mxu0 %v20602_v54  ;;  %17536 = vmatprep.subr.bf16.mxu1 %v17535_v7  ;;  %23462 = vst [vmem:[#allocation49_spill] sm:$0xff] %v21121_v16  ;;  %v21132_v54 = vsub.f32 %v21055_v21, %v22977_v34  ;;  %v23466_v7 = vand.u32 4294901760, %v21071_v52  ;;  %v21152_v34 = vld [vmem:[%s22799_s3 + $0x2b8] sm:$0xff]  ;;  %v18474_v30 = vpop.eup %18473 }
 0xa17   :  { %17576 = vmatprep.subr.bf16.mxu0 %v20608_v42  ;;  %v21137_v31 = vsub.f32 %v21066_v18, %v22979_v10  ;;  %v21147_v42 = vld [vmem:[%s22799_s3 + $0x2b0] sm:$0xff]  ;;  %23468 = vst [vmem:[#allocation58_spill] sm:$0xff] %v21158_v9  ;;  %v11458_v10 = vsub.f32 %v21086_v58, %v22987_v14  ;;  %v21179_v55 = vand.u32 4294901760, %v18474_v30  ;;  %v23473_v14 = vand.u32 4294901760, %v21111_v51 }
 0xa18   :  { %23464 = vst [vmem:[#allocation54_spill] sm:$0xff] %v21132_v54  ;;  %v21142_v6 = vsub.f32 %v21071_v52, %v23466_v7  ;;  %v21163_v7 = vsub.f32 %v21097_v5, %v22983_v22  ;;  %v23477_v48 = vand.u32 4294901760, %v21132_v54 }
 0xa19   :  { %23465 = vst [vmem:[#allocation55_spill] sm:$0xff] %v21137_v31  ;;  %17538 = vmatpush3.bf16.msra.mxu1 %v17537_v0  ;;  %v11451_v0 = vsub.f32 %v21081_v44, %v22984_v53  ;;  %23471 = vst [vmem:[#allocation9_spill] sm:$0xff] %v21179_v55  ;;  %v23472_v44 = vld [vmem:[#allocation52_spill] sm:$0xff]  ;;  %v11459_v26 = vand.u32 4294901760, %v11458_v10  ;;  %v23475_v53 = vand.u32 4294901760, %v21121_v16  ;;  %v23479_v10 = vand.u32 4294901760, %v21152_v34 }
 0xa1a   :  { %23467 = vst [vmem:[#allocation56_spill] sm:$0xff] %v21142_v6  ;;  %23469 = vst [vmem:[#allocation59_spill] sm:$0xff] %v21163_v7  ;;  %17578 = vmatpush3.bf16.msra.mxu0 %v20622_v35  ;;  %17540 = vmatprep.subr.bf16.mxu1 %v23470_v1  ;;  %v23474_v35 = vld [vmem:[#allocation57_spill] sm:$0xff]  ;;  %v11472_v22 = vsub.f32 %v21132_v54, %v23477_v48  ;;  %v23481_v48 = vand.u32 4294901760, %v21137_v31  ;;  %v23485_v29 = vand.u32 4294901760, %v21163_v7 }
 0xa1b   :  { %17580 = vmatprep.subr.bf16.mxu0 %v20628_v45  ;;  %v11339_v45 = vsub.f32 %v21111_v51, %v23473_v14  ;;  %v11452_v1 = vand.u32 4294901760, %v11451_v0  ;;  %v11346_v56 = vsub.f32 %v21121_v16, %v23475_v53  ;;  %v21209_v0 = vsub.f32 %v21152_v34, %v23479_v10  ;;  %v21219_v53 = vld [vmem:[%s22799_s3 + $0x2d8] sm:$0xff] }
 0xa1c   :  { %v21228_v10 = vsub.f32 %v18474_v30, %v21179_v55  ;;  %v23484_v51 = vand.u32 4294901760, %v21158_v9  ;;  %v11486_v12 = vsub.f32 %v21163_v7, %v23485_v29  ;;  %v23487_v7 = vld [vmem:[#allocation63_spill] sm:$0xff] }
 0xa1d   :  { %17542 = vmatpush3.bf16.msra.mxu1 %v23472_v44  ;;  %v23476_v44 = vand.u32 4294901760, %v21127_v38  ;;  %23480 = vst [vmem:[#allocation10_spill] sm:$0xff] %v21209_v0  ;;  %v11340_v16 = vand.u32 4294901760, %v11339_v45  ;;  %v11473_v45 = vand.u32 4294901760, %v11472_v22 }
 0xa1e   :  { %17582 = vmatpush3.bf16.msra.mxu0 %v20638_v39  ;;  %17544 = vmatprep.subr.bf16.mxu1 %v23474_v35  ;;  %v23478_v39 = vand.u32 4294901760, %v21147_v42  ;;  %v11479_v58 = vsub.f32 %v21158_v9, %v23484_v51  ;;  %v23010_v9 = vand.u32 4294901760, %v21209_v0 }
 0xa1f   :  { %17584 = vmatprep.subr.bf16.mxu0 %v20645_v27  ;;  %v11465_v14 = vsub.f32 %v21127_v38, %v23476_v44  ;;  %v21214_v27 = vld [vmem:[%s22799_s3 + $0x2d0] sm:$0xff]  ;;  %v11353_v44 = vsub.f32 %v21137_v31, %v23481_v48  ;;  %v23483_v38 = vld [vmem:[#allocation60_spill] sm:$0xff]  ;;  %v23486_v48 = vld [vmem:[#allocation61_spill] sm:$0xff]  ;;  %v17623_v31 = vpack.c.bf16 %v11459_v26, %v11452_v1  ;;  %v23488_v1 = vand.u32 4294901760, %v20724_v36 }
 0xa20   :  { %v21204_v35 = vsub.f32 %v21147_v42, %v23478_v39  ;;  %v23482_v39 = vand.u32 4294901760, %v21142_v6  ;;  %v23012_v30 = vand.u32 4294901760, %v21214_v27  ;;  %v11480_v26 = vand.u32 4294901760, %v11479_v58 }
 0xa21   :  { %17546 = vmatpush3.bf16.msra.mxu1 %v23483_v38  ;;  %v11466_v38 = vand.u32 4294901760, %v11465_v14  ;;  %v11354_v4 = vand.u32 4294901760, %v11353_v44  ;;  %v23490_v14 = vld [vmem:[#allocation68_spill] sm:$0xff] }
 0xa22   :  { %v11360_v54 = vsub.f32 %v21142_v6, %v23482_v39  ;;  %17586 = vmatpush3.bf16.msra.mxu0 %v20655_v40  ;;  %17548 = vmatprep.subr.bf16.mxu1 %v23486_v48  ;;  %v11347_v39 = vand.u32 4294901760, %v11346_v56  ;;  %v23011_v6 = vand.u32 4294901760, %v21219_v53  ;;  %v23009_v51 = vand.u32 4294901760, %v21204_v35 }
 0xa23   :  { %17588 = vmatprep.subr.bf16.mxu0 %v20664_v19  ;;  %v23013_v40 = vand.u32 4294901760, %v21228_v10  ;;  %v11487_v56 = vand.u32 4294901760, %v11486_v12  ;;  %v11367_v48 = vsub.f32 %v20724_v36, %v23488_v1  ;;  %v23489_v19 = vand.u32 4294901760, %v20729_v13 }
 0xa24   :  { %v11361_v29 = vand.u32 4294901760, %v11360_v54  ;;  %v17625_v44 = vpack.c.bf16 %v11347_v39, %v11340_v16  ;;  %v21257_v54 = vsub.f32 %v21214_v27, %v23012_v30  ;;  %v21262_v12 = vsub.f32 %v21219_v53, %v23011_v6  ;;  %v23493_v16 = vld [vmem:[#allocation19_spill] sm:$0xff] }
 0xa25   :  { %17550 = vmatpush3.bf16.msra.mxu1 %v23487_v7  ;;  %v11374_v22 = vsub.f32 %v20729_v13, %v23489_v19  ;;  %v17627_v58 = vpack.c.bf16 %v11473_v45, %v11466_v38  ;;  %v11493_v7 = vsub.f32 %v21204_v35, %v23009_v51  ;;  %v21272_v39 = vsub.f32 %v23493_v16, %v19833_v3  ;;  %v23497_v38 = vld [vmem:[#allocation24_spill] sm:$0xff]  ;;  %v23498_v45 = vld [vmem:[#allocation69_spill] sm:$0xff] }
 0xa26   :  { %17590 = vmatpush3.bf16.msra.mxu0 %v20672_v41  ;;  %17552 = vmatprep.subr.bf16.mxu1 %v23490_v14  ;;  %23491 = vst [vmem:[#allocation21_spill] sm:$0xff] %v21257_v54  ;;  %23492 = vst [vmem:[#allocation65_spill] sm:$0xff] %v21262_v12  ;;  %v11500_v41 = vsub.f32 %v21209_v0, %v23010_v9  ;;  %v23495_v1 = vand.u32 4294901760, %v21005_v59  ;;  %v23496_v19 = vand.u32 4294901760, %v21010_v2  ;;  %v11368_v6 = vand.u32 4294901760, %v11367_v48 }
 0xa27   :  { %17624 = vmatprep.subr.bf16.mxu0 %v17623_v31  ;;  %23494 = vst [vmem:[#allocation66_spill] sm:$0xff] %v21272_v39  ;;  %v11322_v31 = vsub.f32 %v21228_v10, %v23013_v40  ;;  %v17629_v51 = vpack.c.bf16 %v11361_v29, %v11354_v4  ;;  %v17631_v9 = vpack.c.bf16 %v11487_v56, %v11480_v26  ;;  %v11375_v30 = vand.u32 4294901760, %v11374_v22 }
 0xa28   :  { %v21278_v14 = vpack.c.bf16 %v23496_v19, %v23495_v1  ;;  %v23499_v59 = vand.u32 4294901760, %v20767_v33  ;;  %v23500_v16 = vand.u32 4294901760, %v20772_v57  ;;  %v11494_v4 = vand.u32 4294901760, %v11493_v7 }
 0xa29   :  { %11218 = vmatmul.mubr.f32.vlgmr.msra.gmra.mrb[34].mxu0 %v23497_v38  ;;  %17554 = vmatpush3.bf16.msra.mxu1 %v23498_v45  ;;  %v23501_v45 = vld [vmem:[#allocation70_spill] sm:$0xff]  ;;  %v11501_v29 = vand.u32 4294901760, %v11500_v41  ;;  %v23502_v26 = vand.u32 4294901760, %v20777_v28  ;;  %v23503_v48 = vand.u32 4294901760, %v20788_v50  ;;  %v23507_v7 = vand.u32 4294901760, %v21050_v49 }
 0xa2a   :  { %17626 = vmatpush3.bf16.msra.mxu0 %v17625_v44  ;;  %11560 = vmatprep.mubr.f32.mxu0 %v21179_v55  ;;  %v11381_v2 = vsub.f32 %v20767_v33, %v23499_v59  ;;  %v11388_v1 = vsub.f32 %v20772_v57, %v23500_v16  ;;  %v9363_v44 = vmul.f32 1.442695, %v21272_v39  ;;  %v23504_v59 = vand.u32 4294901760, %v21038_v62  ;;  %v23510_v39 = vld [vmem:[#allocation46_spill] sm:$0xff] }
 0xa2b   :  { %17556 = vmatprep.subr.bf16.mxu1 %v23501_v45  ;;  %17628 = vmatprep.subr.bf16.mxu0 %v17627_v58  ;;  %v11507_v56 = vsub.f32 %v20777_v28, %v23502_v26  ;;  %v11514_v22 = vsub.f32 %v20788_v50, %v23503_v48  ;;  %v23505_v16 = vand.u32 4294901760, %v21044_v17  ;;  %v23506_v45 = vld [vmem:[#allocation71_spill] sm:$0xff]  ;;  %v17633_v58 = vpack.c.bf16 %v11375_v30, %v11368_v6 }
 0xa2c   :  { %v23508_v41 = vand.u32 4294901760, %v21055_v21  ;;  %v23509_v19 = vand.u32 4294901760, %v20793_v23  ;;  %v23511_v55 = vand.u32 4294901760, %v23510_v39  ;;  %v11382_v17 = vand.u32 4294901760, %v11381_v2 }
 0xa2d   :  { %v21306_v40 = vpack.c.bf16 %v23505_v16, %v23504_v59  ;;  %17558 = vmatpush3.bf16.msra.mxu1 %v23506_v45  ;;  %v11389_v59 = vand.u32 4294901760, %v11388_v1  ;;  %v23512_v6 = vand.u32 4294901760, %v21257_v54  ;;  %v23513_v21 = vand.u32 4294901760, %v21262_v12 }
 0xa2e   :  { %v21313_v26 = vpack.c.bf16 %v23508_v41, %v23507_v7  ;;  %v11395_v48 = vsub.f32 %v20793_v23, %v23509_v19  ;;  %v11402_v62 = vsub.f32 %v23510_v39, %v23511_v55  ;;  %17630 = vmatpush3.bf16.msra.mxu0 %v17629_v51  ;;  %17592 = vmatprep.subr.bf16.mxu1 %v21278_v14  ;;  %v11323_v16 = vand.u32 4294901760, %v11322_v31 }
 0xa2f   :  { %v11521_v49 = vsub.f32 %v21257_v54, %v23512_v6  ;;  %v11528_v30 = vsub.f32 %v21262_v12, %v23513_v21  ;;  %17632 = vmatprep.subr.bf16.mxu0 %v17631_v9  ;;  %v17635_v19 = vpack.c.bf16 %v11501_v29, %v11494_v4  ;;  %v11508_v45 = vand.u32 4294901760, %v11507_v56 }
 0xa30   :  { %v11515_v7 = vand.u32 4294901760, %v11514_v22  ;;  %18475 = vpow2.f32 %v9363_v44  ;;  %11114 = vmatmul.mubr.f32.vlgmr.msra.gmra.mrb[38].mxu1 %v23497_v38  ;;  %v23514_v55 = vand.u32 4294901760, %v21066_v18  ;;  %v23515_v51 = vand.u32 4294901760, %v21071_v52 }
 0xa31   :  { %17594 = vmatpush3.bf16.msra.mxu1 %v21306_v40  ;;  %11324 = vmatprep.mubr.f32.mxu1 %v11323_v16  ;;  %v11396_v1 = vand.u32 4294901760, %v11395_v48  ;;  %v11403_v41 = vand.u32 4294901760, %v11402_v62  ;;  %v23516_v9 = vand.u32 4294901760, %v20897_v25  ;;  %v23517_v4 = vand.u32 4294901760, %v20902_v61  ;;  %v23522_v16 = vld [vmem:[#allocation25_spill] sm:$0xff] }
 0xa32   :  { %v21333_v2 = vpack.c.bf16 %v23515_v51, %v23514_v55  ;;  %17634 = vmatpush3.bf16.msra.mxu0 %v17633_v58  ;;  %17596 = vmatprep.subr.bf16.mxu1 %v21313_v26  ;;  %v17637_v18 = vpack.c.bf16 %v11389_v59, %v11382_v17  ;;  %v23518_v52 = vand.u32 4294901760, %v21092_v24  ;;  %v23519_v38 = vand.u32 4294901760, %v21097_v5  ;;  %v23524_v59 = vld [vmem:[#allocation16_spill] sm:$0xff] }
 0xa33   :  { %v11409_v31 = vsub.f32 %v20897_v25, %v23516_v9  ;;  %v11416_v29 = vsub.f32 %v20902_v61, %v23517_v4  ;;  %v11522_v22 = vand.u32 4294901760, %v11521_v49  ;;  %v11529_v44 = vand.u32 4294901760, %v11528_v30  ;;  %17636 = vmatprep.subr.bf16.mxu0 %v17635_v19 }
 0xa34   :  { %v21347_v56 = vpack.c.bf16 %v23519_v38, %v23518_v52  ;;  %v17639_v48 = vpack.c.bf16 %v11515_v7, %v11508_v45  ;;  %v23520_v62 = vand.u32 4294901760, %v20907_v60  ;;  %v23521_v21 = vand.u32 4294901760, %v20912_v63  ;;  %v23533_v38 = vld [vmem:[#allocation26_spill] sm:$0xff] }
 0xa35   :  { %v23523_v17 = vand.u32 4294901760, %v23522_v16  ;;  %v23525_v24 = vand.u32 4294901760, %v23524_v59  ;;  %17598 = vmatpush3.bf16.msra.mxu1 %v21333_v2  ;;  %v17641_v5 = vpack.c.bf16 %v11403_v41, %v11396_v1  ;;  %v23527_v49 = vand.u32 4294901760, %v21147_v42 }
 0xa36   :  { %v11535_v6 = vsub.f32 %v20907_v60, %v23520_v62  ;;  %v11542_v58 = vsub.f32 %v20912_v63, %v23521_v21  ;;  %v23528_v30 = vand.u32 4294901760, %v21152_v34  ;;  %v11410_v45 = vand.u32 4294901760, %v11409_v31  ;;  %17638 = vmatpush3.bf16.msra.mxu0 %v17637_v18  ;;  %17600 = vmatprep.subr.bf16.mxu1 %v21347_v56 }
 0xa37   :  { %v21359_v55 = vpack.c.bf16 %v23525_v24, %v23523_v17  ;;  %v11417_v7 = vand.u32 4294901760, %v11416_v29  ;;  %v17643_v51 = vpack.c.bf16 %v11529_v44, %v11522_v22  ;;  %v23529_v9 = vand.u32 4294901760, %v20925_v32  ;;  %17640 = vmatprep.subr.bf16.mxu0 %v17639_v48  ;;  %v23535_v44 = vld [vmem:[#allocation27_spill] sm:$0xff]  ;;  %v23537_v48 = vld [vmem:[#allocation40_spill] sm:$0xff] }
 0xa38   :  { %v21366_v19 = vpack.c.bf16 %v23528_v30, %v23527_v49  ;;  %v23530_v52 = vand.u32 4294901760, %v20930_v11  ;;  %v11536_v42 = vand.u32 4294901760, %v11535_v6  ;;  %v11543_v41 = vand.u32 4294901760, %v11542_v58  ;;  %v23539_v58 = vld [vmem:[#allocation17_spill] sm:$0xff] }
 0xa39   :  { %23526 = vst [vmem:[#allocation12_spill] sm:$0xff] %v21359_v55  ;;  %v11423_v4 = vsub.f32 %v20925_v32, %v23529_v9  ;;  %v23531_v34 = vand.u32 4294901760, %v20945_v46  ;;  %v23532_v29 = vand.u32 4294901760, %v20950_v47  ;;  %17602 = vmatpush3.bf16.msra.mxu1 %v21359_v55  ;;  %v23534_v22 = vand.u32 4294901760, %v23533_v38 }
 0xa3a   :  { %v11430_v1 = vsub.f32 %v20930_v11, %v23530_v52  ;;  %v23536_v62 = vand.u32 4294901760, %v23535_v44  ;;  %v17645_v16 = vpack.c.bf16 %v11417_v7, %v11410_v45  ;;  %v23538_v6 = vand.u32 4294901760, %v23537_v48  ;;  %v18476_v24 = vpop.eup %18475  ;;  %17642 = vmatpush3.bf16.msra.mxu0 %v17641_v5  ;;  %17604 = vmatprep.subr.bf16.mxu1 %v21366_v19  ;;  %v23546_v44 = vld [vmem:[#allocation42_spill] sm:$0xff] }
 0xa3b   :  { %v11549_v31 = vsub.f32 %v20945_v46, %v23531_v34  ;;  %v11556_v18 = vsub.f32 %v20950_v47, %v23532_v29  ;;  %v23540_v17 = vand.u32 4294901760, %v23539_v58  ;;  %v11424_v49 = vand.u32 4294901760, %v11423_v4  ;;  %17644 = vmatprep.subr.bf16.mxu0 %v17643_v51 }
 0xa3c   :  { %v21386_v21 = vpack.c.bf16 %v23536_v62, %v23534_v22  ;;  %v11431_v30 = vand.u32 4294901760, %v11430_v1  ;;  %v23542_v9 = vand.u32 4294901760, %v20958_v8  ;;  %v23543_v34 = vand.u32 4294901760, %v20963_v37  ;;  %v23544_v22 = vld [vmem:[#allocation31_spill] sm:$0xff] }
 0xa3d   :  { %v21392_v59 = vpack.c.bf16 %v23540_v17, %v23538_v6  ;;  %v17647_v7 = vpack.c.bf16 %v11543_v41, %v11536_v42  ;;  %v11550_v29 = vand.u32 4294901760, %v11549_v31  ;;  %v11557_v38 = vand.u32 4294901760, %v11556_v18 }
 0xa3e   :  { %v11437_v52 = vsub.f32 %v20958_v8, %v23542_v9  ;;  %v11444_v45 = vsub.f32 %v20963_v37, %v23543_v34  ;;  %17606 = vmatpush3.bf16.msra.mxu1 %v21386_v21  ;;  %v23545_v5 = vand.u32 4294901760, %v23544_v22  ;;  %v23547_v62 = vand.u32 4294901760, %v23546_v44  ;;  %17646 = vmatpush3.bf16.msra.mxu0 %v17645_v16  ;;  %v23560_v34 = vld [vmem:[#allocation51_spill] sm:$0xff]  ;;  %v23566_v44 = vld [vmem:[#allocation34_spill] sm:$0xff] }
 0xa3f   :  { %23541 = vst [vmem:[#allocation23_spill] sm:$0xff] %v21392_v59  ;;  %v21408_v1 = vand.u32 4294901760, %v18476_v24  ;;  %17608 = vmatprep.subr.bf16.mxu1 %v21392_v59  ;;  %v17649_v48 = vpack.c.bf16 %v11431_v30, %v11424_v49  ;;  %v23550_v6 = vand.u32 4294901760, %v21214_v27  ;;  %v23551_v51 = vand.u32 4294901760, %v21219_v53  ;;  %17648 = vmatprep.subr.bf16.mxu0 %v17647_v7  ;;  %v23556_v49 = vld [vmem:[#allocation47_spill] sm:$0xff] }
 0xa40   :  { %v21406_v4 = vpack.c.bf16 %v23547_v62, %v23545_v5  ;;  %v11438_v41 = vand.u32 4294901760, %v11437_v52  ;;  %v11445_v31 = vand.u32 4294901760, %v11444_v45  ;;  %v17651_v18 = vpack.c.bf16 %v11557_v38, %v11550_v29  ;;  %v23562_v29 = vld [vmem:[#allocation33_spill] sm:$0xff] }
 0xa41   :  { %23549 = vst [vmem:[#allocation14_spill] sm:$0xff] %v21408_v1  ;;  %v21415_v42 = vpack.c.bf16 %v23551_v51, %v23550_v6  ;;  %v23553_v58 = vand.u32 4294901760, %v20805_v43  ;;  %v23554_v17 = vand.u32 4294901760, %v20810_v15  ;;  %v23555_v53 = vand.u32 4294901760, %v20818_v20  ;;  %v23558_v43 = vld [vmem:[#allocation28_spill] sm:$0xff] }
 0xa42   :  { %23548 = vst [vmem:[#allocation11_spill] sm:$0xff] %v21406_v4  ;;  %17610 = vmatpush3.bf16.msra.mxu1 %v21406_v4  ;;  %17650 = vmatpush3.bf16.msra.mxu0 %v17649_v48  ;;  %v17653_v27 = vpack.c.bf16 %v11445_v31, %v11438_v41  ;;  %v23557_v30 = vand.u32 4294901760, %v23556_v49  ;;  %v21432_v52 = vsub.f32 %v18476_v24, %v21408_v1  ;;  %v23559_v15 = vand.u32 4294901760, %v23558_v43  ;;  %v23564_v24 = vld [vmem:[#allocation62_spill] sm:$0xff]  ;;  %v23568_v48 = vld [vmem:[#allocation35_spill] sm:$0xff]  ;;  %v23575_v49 = vld [vmem:[#allocation48_spill] sm:$0xff] }
 0xa43   :  { %23552 = vst [vmem:[#allocation50_spill] sm:$0xff] %v21415_v42  ;;  %v21422_v16 = vpack.c.bf16 %v23554_v17, %v23553_v58  ;;  %17612 = vmatprep.subr.bf16.mxu1 %v21415_v42  ;;  %17652 = vmatprep.subr.bf16.mxu0 %v17651_v18  ;;  %v23561_v45 = vand.u32 4294901760, %v23560_v34  ;;  %v23563_v38 = vand.u32 4294901760, %v23562_v29  ;;  %v23565_v22 = vand.u32 4294901760, %v23564_v24  ;;  %v23571_v18 = vld [vmem:[#allocation44_spill] sm:$0xff]  ;;  %v23572_v58 = vld [vmem:[#allocation45_spill] sm:$0xff] }
 0xa44   :  { %v21429_v9 = vpack.c.bf16 %v23557_v30, %v23555_v53  ;;  %v23018_v20 = vand.u32 4294901760, %v21432_v52  ;;  %v23567_v62 = vand.u32 4294901760, %v23566_v44  ;;  %v23569_v6 = vand.u32 4294901760, %v23568_v48  ;;  %v21474_v53 = vld [vmem:[%s22799_s3 + $0x328] sm:$0xff]  ;;  %v23582_v48 = vld [vmem:[#allocation56_spill] sm:$0xff] }
 0xa45   :  { %v21439_v7 = vpack.c.bf16 %v23561_v45, %v23559_v15  ;;  %v21448_v5 = vpack.c.bf16 %v23565_v22, %v23563_v38  ;;  %v23570_v41 = vand.u32 4294901760, %v21228_v10  ;;  %v17655_v17 = vpack.c.bf16 %v23572_v58, %v23571_v18  ;;  %23574 = vst [vmem:[#allocation57_spill] sm:$0xff] %v21474_v53  ;;  %v23576_v30 = vld [vmem:[#allocation49_spill] sm:$0xff]  ;;  %v23578_v38 = vld [vmem:[#allocation54_spill] sm:$0xff]  ;;  %v21490_v22 = vld [vmem:[%s22799_s3 + $0x3c0] sm:$0xff] }
 0xa46   :  { %17614 = vmatpush3.bf16.msra.mxu1 %v21422_v16  ;;  %17654 = vmatpush3.bf16.msra.mxu0 %v17653_v27  ;;  %v21456_v51 = vpack.c.bf16 %v23569_v6, %v23567_v62  ;;  %v11328_v31 = vsub.f32 %v21432_v52, %v23018_v20  ;;  %v21469_v27 = vld [vmem:[%s22799_s3 + $0x320] sm:$0xff]  ;;  %v17657_v43 = vpack.c.bf16 %v23576_v30, %v23575_v49  ;;  %v23019_v34 = vand.u32 4294901760, %v21474_v53  ;;  %v23577_v29 = vld [vmem:[#allocation53_spill] sm:$0xff]  ;;  %v23581_v62 = vld [vmem:[#allocation55_spill] sm:$0xff] }
 0xa47   :  { %17616 = vmatprep.subr.bf16.mxu1 %v21429_v9  ;;  %17688 = vmatprep.subr.bf16.mxu0 %v21278_v14  ;;  %23573 = vst [vmem:[#allocation52_spill] sm:$0xff] %v21469_v27  ;;  %v23017_v15 = vand.u32 4294901760, %v21469_v27  ;;  %v17659_v24 = vpack.c.bf16 %v23578_v38, %v23577_v29  ;;  %23579 = vst [vmem:[#allocation60_spill] sm:$0xff] %v21490_v22  ;;  %v21495_v44 = vld [vmem:[%s22799_s3 + $0x3c8] sm:$0xff]  ;;  %v17661_v6 = vpack.c.bf16 %v23582_v48, %v23581_v62 }
 0xa48   :  { %v11329_v45 = vand.u32 4294901760, %v11328_v31  ;;  %23580 = vst [vmem:[#allocation61_spill] sm:$0xff] %v21495_v44  ;;  %v21508_v31 = vsub.f32 %v21474_v53, %v23019_v34  ;;  %v17667_v20 = vpack.c.bf16 %v21209_v0, %v21204_v35  ;;  %v23589_v34 = vand.u32 4294901760, %v21490_v22  ;;  %v21636_v0 = vld [vmem:[%s22799_s3 + $0x370] sm:$0xff] }
 0xa49   :  { %11562 = vmatmul.mubr.f32.vlgmr.msra.gmra.mrb[36].mxu0 %v21408_v1  ;;  %v17665_v1 = vpack.c.bf16 %v20729_v13, %v20724_v36  ;;  %23604 = vst [vmem:[#allocation42_spill] sm:$0xff] %v21636_v0 }
 0xa4a   :  { %17618 = vmatpush3.bf16.msra.mxu1 %v21439_v7  ;;  %17690 = vmatpush3.bf16.msra.mxu0 %v21306_v40  ;;  %23584 = vst [vmem:[#allocation68_spill] sm:$0xff] %v21508_v31  ;;  %v21538_v53 = vsub.f32 %v21490_v22, %v23589_v34 }
 0xa4b   :  { %11804 = vmatprep.mubr.f32.mxu0 %v23570_v41  ;;  %17620 = vmatprep.subr.bf16.mxu1 %v21448_v5  ;;  %v21503_v41 = vsub.f32 %v21469_v27, %v23017_v15 }
 0xa4c   :  { %17692 = vmatprep.subr.bf16.mxu0 %v21313_v26 }
 0xa4d   :  { %23583 = vst [vmem:[#allocation63_spill] sm:$0xff] %v21503_v41 }
 0xa4e   :  { %17622 = vmatpush3.bf16.msra.mxu1 %v21456_v51  ;;  %17694 = vmatpush3.bf16.msra.mxu0 %v21333_v2 }
 0xa4f   :  { %17656 = vmatprep.subr.bf16.mxu1 %v17655_v17  ;;  %17696 = vmatprep.subr.bf16.mxu0 %v21347_v56  ;;  %v21513_v17 = vld [vmem:[%s22799_s3 + $0x340] sm:$0xff] }
 0xa50   :  { %23585 = vst [vmem:[#allocation19_spill] sm:$0xff] %v21513_v17 }
 0xa51   :  { %11330 = vmatmul.mubr.f32.vlgmr.msra.gmra.mrb[40].mxu1 %v11329_v45  ;;  %v23588_v45 = vld [vmem:[#allocation59_spill] sm:$0xff] }
 0xa52   :  { %17658 = vmatpush3.bf16.msra.mxu1 %v17657_v43  ;;  %11697 = vmatprep.mubr.f32.mxu1 %v21228_v10  ;;  %v21518_v10 = vld [vmem:[%s22799_s3 + $0x348] sm:$0xff]  ;;  %v23587_v43 = vld [vmem:[#allocation58_spill] sm:$0xff] }
 0xa53   :  { %23586 = vst [vmem:[#allocation24_spill] sm:$0xff] %v21518_v10  ;;  %17698 = vmatpush3.bf16.msra.mxu0 %v21359_v55  ;;  %17660 = vmatprep.subr.bf16.mxu1 %v17659_v24  ;;  %v17663_v15 = vpack.c.bf16 %v23588_v45, %v23587_v43  ;;  %v23027_v55 = vand.u32 4294901760, %v21503_v41  ;;  %v23026_v24 = vand.u32 4294901760, %v21508_v31  ;;  %v23593_v34 = vand.u32 4294901760, %v21518_v10  ;;  %v21624_v31 = vld [vmem:[%s22799_s3 + $0x3f8] sm:$0xff] }
 0xa54   :  { %17700 = vmatprep.subr.bf16.mxu0 %v21366_v19  ;;  %23603 = vst [vmem:[#allocation31_spill] sm:$0xff] %v21624_v31 }
 0xa55   :  { %v21550_v13 = vpack.c.bf16 %v23026_v24, %v23027_v55  ;;  %v21560_v22 = vsub.f32 %v21518_v10, %v23593_v34  ;;  %v21570_v24 = vld [vmem:[%s22799_s3 + $0x3d8] sm:$0xff]  ;;  %v21577_v55 = vld [vmem:[%s22799_s3 + $0x350] sm:$0xff]  ;;  %v21598_v10 = vld [vmem:[%s22799_s3 + $0x3e8] sm:$0xff] }
 0xa56   :  { %17662 = vmatpush3.bf16.msra.mxu1 %v17661_v6  ;;  %v23590_v6 = vand.u32 4294901760, %v21495_v44  ;;  %23595 = vst [vmem:[#allocation71_spill] sm:$0xff] %v21570_v24  ;;  %23596 = vst [vmem:[#allocation46_spill] sm:$0xff] %v21577_v55  ;;  %v21582_v34 = vld [vmem:[%s22799_s3 + $0x358] sm:$0xff] }
 0xa57   :  { %17702 = vmatpush3.bf16.msra.mxu0 %v21386_v21  ;;  %17664 = vmatprep.subr.bf16.mxu1 %v17663_v15  ;;  %23591 = vst [vmem:[#allocation69_spill] sm:$0xff] %v21550_v13  ;;  %v23592_v15 = vand.u32 4294901760, %v21513_v17  ;;  %23597 = vst [vmem:[#allocation25_spill] sm:$0xff] %v21582_v34  ;;  %v21587_v13 = vld [vmem:[%s22799_s3 + $0x3e0] sm:$0xff] }
 0xa58   :  { %17704 = vmatprep.subr.bf16.mxu0 %v21392_v59  ;;  %v21544_v36 = vsub.f32 %v21495_v44, %v23590_v6  ;;  %v21565_v6 = vld [vmem:[%s22799_s3 + $0x3d0] sm:$0xff]  ;;  %23598 = vst [vmem:[#allocation16_spill] sm:$0xff] %v21587_v13  ;;  %23599 = vst [vmem:[#allocation26_spill] sm:$0xff] %v21598_v10  ;;  %v23606_v59 = vand.u32 4294901760, %v21538_v53 }
 0xa59   :  { %v21555_v27 = vsub.f32 %v21513_v17, %v23592_v15  ;;  %23594 = vst [vmem:[#allocation70_spill] sm:$0xff] %v21565_v6  ;;  %v17669_v15 = vpack.c.bf16 %v20772_v57, %v20767_v33  ;;  %v17671_v57 = vpack.c.bf16 %v20788_v50, %v20777_v28  ;;  %v17673_v33 = vpack.c.bf16 %v23510_v39, %v20793_v23  ;;  %v21603_v17 = vld [vmem:[%s22799_s3 + $0x360] sm:$0xff]  ;;  %v16434_v28 = vpop.f32.mrb[24].mxu0  ;;  %v21619_v44 = vld [vmem:[%s22799_s3 + $0x3f0] sm:$0xff] }
 0xa5a   :  { %17666 = vmatpush3.bf16.msra.mxu1 %v17665_v1  ;;  %23600 = vst [vmem:[#allocation27_spill] sm:$0xff] %v21603_v17  ;;  %v17675_v23 = vpack.c.bf16 %v21262_v12, %v21257_v54  ;;  %23602 = vst [vmem:[#allocation17_spill] sm:$0xff] %v21619_v44  ;;  %v16435_v41 = vpop.f32.mrb[25].mxu0  ;;  %v21641_v12 = vld [vmem:[%s22799_s3 + $0x378] sm:$0xff]  ;;  %v17677_v39 = vpack.c.bf16 %v20902_v61, %v20897_v25  ;;  %v23613_v61 = vand.u32 4294901760, %v21577_v55  ;;  %v23617_v25 = vand.u32 4294901760, %v21603_v17 }
 0xa5b   :  { %17706 = vmatpush3.bf16.msra.mxu0 %v21406_v4  ;;  %17668 = vmatprep.subr.bf16.mxu1 %v17667_v20  ;;  %v21608_v20 = vld [vmem:[%s22799_s3 + $0x368] sm:$0xff]  ;;  %v16436_v1 = vadd.f32 %v16435_v41, %v16434_v28  ;;  %23605 = vst [vmem:[#allocation47_spill] sm:$0xff] %v21641_v12  ;;  %v23607_v4 = vand.u32 4294901760, %v21544_v36  ;;  %v23609_v41 = vand.u32 4294901760, %v21565_v6  ;;  %v23610_v28 = vand.u32 4294901760, %v21560_v22 }
 0xa5c   :  { %23601 = vst [vmem:[#allocation40_spill] sm:$0xff] %v21608_v20  ;;  %17708 = vmatprep.subr.bf16.mxu0 %v21415_v42  ;;  %v23041_v42 = vand.u32 4294901760, %v21555_v27 }
 0xa5d   :  { %v21651_v54 = vpack.c.bf16 %v23607_v4, %v23606_v59  ;;  %v23612_v59 = vand.u32 4294901760, %v21570_v24 }
 0xa5e   :  { %17670 = vmatpush3.bf16.msra.mxu1 %v17669_v15  ;;  %v21661_v15 = vsub.f32 %v21565_v6, %v23609_v41  ;;  %v21667_v50 = vpack.c.bf16 %v23610_v28, %v23041_v42  ;;  %v23614_v41 = vand.u32 4294901760, %v21582_v34  ;;  %v23615_v42 = vand.u32 4294901760, %v21587_v13 }
 0xa5f   :  { %17710 = vmatpush3.bf16.msra.mxu0 %v21422_v16  ;;  %17672 = vmatprep.subr.bf16.mxu1 %v17671_v57  ;;  %23608 = vst [vmem:[#allocation28_spill] sm:$0xff] %v21651_v54  ;;  %v17679_v57 = vpack.c.bf16 %v20912_v63, %v20907_v60  ;;  %v21672_v4 = vsub.f32 %v21570_v24, %v23612_v59  ;;  %v23677_v24 = vld [vmem:[#allocation65_spill] sm:$0xff] }
 0xa60   :  { %17712 = vmatprep.subr.bf16.mxu0 %v21429_v9  ;;  %23611 = vst [vmem:[#allocation51_spill] sm:$0xff] %v21667_v50  ;;  %v21677_v60 = vsub.f32 %v21577_v55, %v23613_v61  ;;  %v21684_v28 = vsub.f32 %v21582_v34, %v23614_v41  ;;  %v21689_v59 = vsub.f32 %v21587_v13, %v23615_v42  ;;  %v23616_v50 = vand.u32 4294901760, %v21598_v10 }
 0xa61   :  { %v21699_v63 = vsub.f32 %v21603_v17, %v23617_v25  ;;  %v23619_v42 = vand.u32 4294901760, %v21619_v44  ;;  %v23621_v25 = vld [vmem:[#allocation22_spill] sm:$0xff]  ;;  %v23624_v34 = vand.u32 4294901760, %v21641_v12  ;;  %v23678_v6 = vand.u32 4294901760, %v23677_v24 }
 0xa62   :  { %17674 = vmatpush3.bf16.msra.mxu1 %v17673_v33  ;;  %v21694_v61 = vsub.f32 %v21598_v10, %v23616_v50  ;;  %v23618_v33 = vand.u32 4294901760, %v21608_v20  ;;  %v23620_v50 = vand.u32 4294901760, %v21624_v31  ;;  %v21719_v17 = vsub.f32 %v23621_v25, %v19833_v3 }
 0xa63   :  { %17714 = vmatpush3.bf16.msra.mxu0 %v21439_v7  ;;  %17676 = vmatprep.subr.bf16.mxu1 %v17675_v23  ;;  %v21710_v54 = vsub.f32 %v21619_v44, %v23619_v42  ;;  %v16399_v23 = vpop.f32.mrb[28].mxu1  ;;  %v21737_v55 = vsub.f32 %v21641_v12, %v23624_v34 }
 0xa64   :  { %v21705_v41 = vsub.f32 %v21608_v20, %v23618_v33  ;;  %v21715_v10 = vsub.f32 %v21624_v31, %v23620_v50  ;;  %23622 = vst [vmem:[#allocation33_spill] sm:$0xff] %v21719_v17  ;;  %17716 = vmatprep.subr.bf16.mxu0 %v21448_v5  ;;  %v17681_v33 = vpack.c.bf16 %v20930_v11, %v20925_v32  ;;  %v16400_v44 = vpop.f32.mrb[29].mxu1  ;;  %v23623_v31 = vand.u32 4294901760, %v21636_v0 }
 0xa65   :  { %v17683_v20 = vpack.c.bf16 %v20950_v47, %v20945_v46  ;;  %23625 = vst [vmem:[#allocation62_spill] sm:$0xff] %v21737_v55  ;;  %v16401_v11 = vadd.f32 %v16400_v44, %v16399_v23  ;;  %v23052_v47 = vand.u32 4294901760, %v21684_v28  ;;  %v23051_v32 = vand.u32 4294901760, %v21689_v59 }
 0xa66   :  { %v21732_v25 = vsub.f32 %v21636_v0, %v23623_v31  ;;  %17678 = vmatpush3.bf16.msra.mxu1 %v17677_v39  ;;  %v23050_v46 = vand.u32 4294901760, %v21694_v61  ;;  %v23053_v31 = vand.u32 4294901760, %v21705_v41  ;;  %v23054_v13 = vand.u32 4294901760, %v21710_v54 }
 0xa67   :  { %17718 = vmatpush3.bf16.msra.mxu0 %v21456_v51  ;;  %17680 = vmatprep.subr.bf16.mxu1 %v17679_v57  ;;  %v21747_v42 = vadd.f32 %v16436_v1, %v16401_v11  ;;  %v23626_v44 = vand.u32 4294901760, %v21661_v15  ;;  %v23627_v39 = vand.u32 4294901760, %v21672_v4  ;;  %v23629_v57 = vand.u32 4294901760, %v21677_v60 }
 0xa68   :  { %17752 = vmatprep.subr.bf16.mxu0 %v21278_v14  ;;  %v21766_v1 = vpack.c.bf16 %v23050_v46, %v23051_v32  ;;  %v23055_v14 = vand.u32 4294901760, %v21732_v25  ;;  %v9369_v34 = vmul.f32 1.442695, %v21719_v17  ;;  %v23633_v46 = vand.u32 4294901760, %v21699_v63 }
 0xa69   :  { %v21754_v23 = vpack.c.bf16 %v23627_v39, %v23626_v44  ;;  %v21760_v50 = vpack.c.bf16 %v23052_v47, %v23629_v57  ;;  %v23632_v44 = vand.u32 4294901760, %v21432_v52  ;;  %v17685_v39 = vpack.c.bf16 %v20963_v37, %v20958_v8  ;;  %v21778_v57 = vld [vmem:[%s22799_s3 + $0x380] sm:$0xff]  ;;  %v23637_v8 = vld [vmem:[#allocation9_spill] sm:$0xff] }
 0xa6a   :  { %23631 = vst [vmem:[#allocation44_spill] sm:$0xff] %v21766_v1  ;;  %17682 = vmatpush3.bf16.msra.mxu1 %v17681_v33  ;;  %v21784_v32 = vpack.c.bf16 %v23053_v31, %v23633_v46  ;;  %v23635_v47 = vand.u32 4294901760, %v21715_v10  ;;  %v23638_v37 = vand.u32 4294901760, %v23571_v18  ;;  %v23639_v33 = vand.u32 4294901760, %v23572_v58  ;;  %v21801_v46 = vld [vmem:[%s22799_s3 + $0x388] sm:$0xff] }
 0xa6b   :  { %23628 = vst [vmem:[#allocation34_spill] sm:$0xff] %v21754_v23  ;;  %23630 = vst [vmem:[#allocation35_spill] sm:$0xff] %v21760_v50  ;;  %11808 = vmatmul.mubr.f32.vlgmr.msra.gmra.mrb[38].mxu0 %v23632_v44  ;;  %v23640_v31 = vand.u32 4294901760, %v21737_v55  ;;  %17684 = vmatprep.subr.bf16.mxu1 %v17683_v20  ;;  %18477 = vpow2.f32 %v9369_v34  ;;  %v23642_v18 = vand.u32 4294901760, %v23575_v49  ;;  %v23643_v58 = vand.u32 4294901760, %v23576_v30 }
 0xa6c   :  { %23634 = vst [vmem:[#allocation45_spill] sm:$0xff] %v21784_v32  ;;  %v21790_v44 = vpack.c.bf16 %v23635_v47, %v23054_v13  ;;  %17754 = vmatpush3.bf16.msra.mxu0 %v21306_v40  ;;  %12078 = vmatprep.mubr.f32.mxu0 %v23637_v8  ;;  %v17719_v11 = vpack.c.bf16 %v23639_v33, %v23638_v37  ;;  %v23058_v40 = vand.u32 4294901760, %v21778_v57  ;;  %v23057_v33 = vand.u32 4294901760, %v21801_v46  ;;  %v21819_v13 = vld [vmem:[%s22799_s3 + $0x300] sm:$0xff] }
 0xa6d   :  { %v21807_v47 = vpack.c.bf16 %v23640_v31, %v23055_v14  ;;  %17756 = vmatprep.subr.bf16.mxu0 %v21313_v26  ;;  %v17721_v37 = vpack.c.bf16 %v23643_v58, %v23642_v18  ;;  %v21824_v26 = vld [vmem:[%s22799_s3 + $0x308] sm:$0xff]  ;;  %v23644_v49 = vand.u32 4294901760, %v23577_v29  ;;  %v23645_v30 = vand.u32 4294901760, %v23578_v38  ;;  %v21835_v31 = vld [vmem:[%s22799_s3 + $0x390] sm:$0xff]  ;;  %v23650_v58 = vld [vmem:[#allocation12_spill] sm:$0xff] }
 0xa6e   :  { %23636 = vst [vmem:[#allocation48_spill] sm:$0xff] %v21790_v44  ;;  %17686 = vmatpush3.bf16.msra.mxu1 %v17685_v39  ;;  %v21841_v34 = vsub.f32 %v21778_v57, %v23058_v40  ;;  %v23059_v29 = vand.u32 4294901760, %v21824_v26  ;;  %v23647_v38 = vand.u32 4294901760, %v23581_v62  ;;  %v21858_v39 = vsub.f32 %v21801_v46, %v23057_v33  ;;  %v21863_v18 = vld [vmem:[%s22799_s3 + $0x310] sm:$0xff] }
 0xa6f   :  { %23641 = vst [vmem:[#allocation49_spill] sm:$0xff] %v21807_v47  ;;  %17720 = vmatprep.subr.bf16.mxu1 %v17719_v11  ;;  %v17723_v20 = vpack.c.bf16 %v23645_v30, %v23644_v49  ;;  %v23652_v62 = vand.u32 4294901760, %v23588_v45  ;;  %v21874_v49 = vld [vmem:[%s22799_s3 + $0x318] sm:$0xff]  ;;  %v21879_v30 = vld [vmem:[%s22799_s3 + $0x3a0] sm:$0xff]  ;;  %v23655_v14 = vand.u32 4294901760, %v21204_v35 }
 0xa70   :  { %17758 = vmatpush3.bf16.msra.mxu0 %v21333_v2  ;;  %23646 = vst [vmem:[#allocation53_spill] sm:$0xff] %v21841_v34  ;;  %v23056_v2 = vand.u32 4294901760, %v21819_v13  ;;  %23649 = vst [vmem:[#allocation54_spill] sm:$0xff] %v21858_v39  ;;  %v23061_v45 = vand.u32 4294901760, %v21841_v34 }
 0xa71   :  { %17760 = vmatprep.subr.bf16.mxu0 %v21347_v56  ;;  %11700 = vmatmul.mubr.f32.vlgmr.msra.gmra.mrb[42].mxu1 %v21432_v52  ;;  %v21848_v56 = vld [vmem:[%s22799_s3 + $0x398] sm:$0xff]  ;;  %v23648_v52 = vand.u32 4294901760, %v23582_v48  ;;  %v23062_v48 = vand.u32 4294901760, %v21835_v31 }
 0xa72   :  { %17722 = vmatpush3.bf16.msra.mxu1 %v17721_v37  ;;  %11974 = vmatprep.mubr.f32.mxu1 %v23637_v8  ;;  %v23651_v8 = vand.u32 4294901760, %v23587_v43  ;;  %v21886_v43 = vld [vmem:[%s22799_s3 + $0x3a8] sm:$0xff]  ;;  %v12313_v35 = vsub.f32 %v21841_v34, %v23061_v45  ;;  %v23663_v45 = vld [vmem:[#allocation15_spill] sm:$0xff] }
 0xa73   :  { %v17725_v11 = vpack.c.bf16 %v23648_v52, %v23647_v38  ;;  %17724 = vmatprep.subr.bf16.mxu1 %v17723_v20  ;;  %v23060_v20 = vand.u32 4294901760, %v21848_v56  ;;  %v21892_v38 = vsub.f32 %v21819_v13, %v23056_v2  ;;  %v21897_v52 = vsub.f32 %v21824_v26, %v23059_v29  ;;  %v23656_v2 = vld [vmem:[#allocation10_spill] sm:$0xff] }
 0xa74   :  { %17762 = vmatpush3.bf16.msra.mxu0 %v23650_v58  ;;  %v17727_v37 = vpack.c.bf16 %v23652_v62, %v23651_v8  ;;  %v23064_v8 = vand.u32 4294901760, %v21874_v49  ;;  %v23065_v62 = vand.u32 4294901760, %v21879_v30  ;;  %v23657_v33 = vand.u32 4294901760, %v23656_v2  ;;  %v16504_v44 = vpop.f32.mrb[26].mxu0 }
 0xa75   :  { %17764 = vmatprep.subr.bf16.mxu0 %v21366_v19  ;;  %23653 = vst [vmem:[#allocation55_spill] sm:$0xff] %v21892_v38  ;;  %23654 = vst [vmem:[#allocation56_spill] sm:$0xff] %v21897_v52  ;;  %v21911_v29 = vsub.f32 %v21835_v31, %v23062_v48  ;;  %v18478_v58 = vpop.eup %18477  ;;  %v23659_v19 = vld [vmem:[#allocation23_spill] sm:$0xff]  ;;  %v23661_v2 = vand.u32 4294901760, %v21863_v18  ;;  %v23664_v48 = vand.u32 4294901760, %v21858_v39  ;;  %v23668_v47 = vand.u32 4294901760, %v21886_v43 }
 0xa76   :  { %17726 = vmatpush3.bf16.msra.mxu1 %v17725_v11  ;;  %v17731_v40 = vpack.c.bf16 %v23657_v33, %v23655_v14  ;;  %v21952_v14 = vsub.f32 %v21879_v30, %v23065_v62  ;;  %v23667_v11 = vld [vmem:[#allocation11_spill] sm:$0xff]  ;;  %v21955_v17 = vand.u32 4294901760, %v18478_v58  ;;  %v23672_v62 = vand.u32 4294901760, %v21897_v52 }
 0xa77   :  { %17728 = vmatprep.subr.bf16.mxu1 %v17727_v37  ;;  %23658 = vst [vmem:[#allocation58_spill] sm:$0xff] %v21911_v29  ;;  %v21928_v37 = vsub.f32 %v21863_v18, %v23661_v2  ;;  %v12320_v33 = vsub.f32 %v21858_v39, %v23664_v48  ;;  %v21947_v2 = vsub.f32 %v21874_v49, %v23064_v8  ;;  %v23670_v8 = vld [vmem:[#allocation50_spill] sm:$0xff]  ;;  %v23673_v39 = vld [vmem:[#allocation32_spill] sm:$0xff] }
 0xa78   :  { %17766 = vmatpush3.bf16.msra.mxu0 %v21386_v21  ;;  %v21918_v21 = vsub.f32 %v21848_v56, %v23060_v20  ;;  %v21938_v20 = vld [vmem:[%s22799_s3 + $0x3b8] sm:$0xff]  ;;  %23666 = vst [vmem:[#allocation12_spill] sm:$0xff] %v21952_v14  ;;  %v21961_v48 = vsub.f32 %v21886_v43, %v23668_v47  ;;  %v16505_v47 = vpop.f32.mrb[27].mxu0  ;;  %v12208_v1 = vsub.f32 %v21897_v52, %v23672_v62 }
 0xa79   :  { %17768 = vmatprep.subr.bf16.mxu0 %v23659_v19  ;;  %23662 = vst [vmem:[#allocation22_spill] sm:$0xff] %v21928_v37  ;;  %v21933_v19 = vld [vmem:[%s22799_s3 + $0x3b0] sm:$0xff]  ;;  %23665 = vst [vmem:[#allocation9_spill] sm:$0xff] %v21947_v2  ;;  %v21984_v23 = vadd.f32 %v16505_v47, %v16504_v44  ;;  %v12321_v34 = vand.u32 4294901760, %v12320_v33  ;;  %v23078_v12 = vand.u32 4294901760, %v21947_v2  ;;  %v23679_v33 = vand.u32 4294901760, %v21911_v29 }
 0xa7a   :  { %23660 = vst [vmem:[#allocation59_spill] sm:$0xff] %v21918_v21  ;;  %17730 = vmatpush3.bf16.msra.mxu1 %v23663_v45  ;;  %23669 = vst [vmem:[#allocation10_spill] sm:$0xff] %v21961_v48  ;;  %v12314_v45 = vand.u32 4294901760, %v12313_v35  ;;  %v23674_v35 = vld [vmem:[#allocation64_spill] sm:$0xff]  ;;  %v23683_v44 = vand.u32 4294901760, %v21928_v37  ;;  %v22019_v50 = vsub.f32 %v18478_v58, %v21955_v17 }
 0xa7b   :  { %17732 = vmatprep.subr.bf16.mxu1 %v17731_v40  ;;  %v21970_v40 = vld [vmem:[%s22799_s3 + $0x330] sm:$0xff]  ;;  %v12327_v47 = vsub.f32 %v21911_v29, %v23679_v33 }
 0xa7c   :  { %17770 = vmatpush3.bf16.msra.mxu0 %v23667_v11  ;;  %v21975_v11 = vld [vmem:[%s22799_s3 + $0x338] sm:$0xff]  ;;  %v12215_v33 = vsub.f32 %v21928_v37, %v23683_v44  ;;  %v17815_v0 = vpack.c.bf16 %v12321_v34, %v12314_v45  ;;  %v23687_v58 = vand.u32 4294901760, %v21970_v40 }
 0xa7d   :  { %17772 = vmatprep.subr.bf16.mxu0 %v23670_v8  ;;  %v23671_v8 = vand.u32 4294901760, %v21892_v38  ;;  %v23688_v34 = vand.u32 4294901760, %v21975_v11  ;;  %v23689_v37 = vld [vmem:[#allocation67_spill] sm:$0xff] }
 0xa7e   :  { %17734 = vmatpush3.bf16.msra.mxu1 %v23673_v39  ;;  %v22035_v44 = vsub.f32 %v21970_v40, %v23687_v58  ;;  %v12183_v58 = vand.u32 4294901760, %v22019_v50 }
 0xa7f   :  { %v12201_v32 = vsub.f32 %v21892_v38, %v23671_v8  ;;  %17736 = vmatprep.subr.bf16.mxu1 %v23674_v35  ;;  %v23675_v8 = vld [vmem:[#allocation21_spill] sm:$0xff]  ;;  %v22040_v45 = vsub.f32 %v21975_v11, %v23688_v34  ;;  %v23690_v34 = vld [vmem:[#allocation63_spill] sm:$0xff] }
 0xa80   :  { %17774 = vmatpush3.bf16.msra.mxu0 %v21422_v16  ;;  %v23676_v38 = vand.u32 4294901760, %v23675_v8  ;;  %v23680_v16 = vand.u32 4294901760, %v21918_v21  ;;  %v23681_v8 = vand.u32 4294901760, %v21933_v19  ;;  %v23691_v52 = vand.u32 4294901760, %v23690_v34 }
 0xa81   :  { %17776 = vmatprep.subr.bf16.mxu0 %v21429_v9  ;;  %v12202_v39 = vand.u32 4294901760, %v12201_v32  ;;  %v12209_v9 = vand.u32 4294901760, %v12208_v1  ;;  %v23686_v32 = vand.u32 4294901760, %v21961_v48 }
 0xa82   :  { %v17739_v62 = vpack.c.bf16 %v23678_v6, %v23676_v38  ;;  %v12334_v35 = vsub.f32 %v21918_v21, %v23680_v16  ;;  %v22008_v24 = vsub.f32 %v21933_v19, %v23681_v8  ;;  %v23682_v6 = vand.u32 4294901760, %v21938_v20  ;;  %v23684_v16 = vld [vmem:[#allocation36_spill] sm:$0xff] }
 0xa83   :  { %17738 = vmatpush3.bf16.msra.mxu1 %v23684_v16  ;;  %v12222_v8 = vsub.f32 %v21947_v2, %v23078_v12  ;;  %v23685_v21 = vand.u32 4294901760, %v21952_v14  ;;  %v12348_v1 = vsub.f32 %v21961_v48, %v23686_v32  ;;  %v16469_v16 = vpop.f32.mrb[30].mxu1  ;;  %v17817_v48 = vpack.c.bf16 %v12209_v9, %v12202_v39  ;;  %v23694_v12 = vld [vmem:[#allocation38_spill] sm:$0xff] }
 0xa84   :  { %v22013_v38 = vsub.f32 %v21938_v20, %v23682_v6  ;;  %17778 = vmatpush3.bf16.msra.mxu0 %v21439_v7  ;;  %17740 = vmatprep.subr.bf16.mxu1 %v17739_v62  ;;  %v12335_v7 = vand.u32 4294901760, %v12334_v35  ;;  %v12354_v62 = vand.u32 4294901760, %v22008_v24  ;;  %v16470_v32 = vpop.f32.mrb[31].mxu1  ;;  %v12229_v55 = vsub.f32 %v23690_v34, %v23691_v52 }
 0xa85   :  { %v12341_v6 = vsub.f32 %v21952_v14, %v23685_v21  ;;  %17780 = vmatprep.subr.bf16.mxu0 %v21448_v5  ;;  %v12328_v21 = vand.u32 4294901760, %v12327_v47  ;;  %v12216_v14 = vand.u32 4294901760, %v12215_v33  ;;  %v16471_v2 = vadd.f32 %v16470_v32, %v16469_v16  ;;  %v23692_v5 = vld [vmem:[#allocation68_spill] sm:$0xff] }
 0xa86   :  { %v12223_v29 = vand.u32 4294901760, %v12222_v8  ;;  %v23693_v47 = vand.u32 4294901760, %v23692_v5  ;;  %v12349_v9 = vand.u32 4294901760, %v12348_v1  ;;  %v23093_v33 = vand.u32 4294901760, %v22035_v44 }
 0xa87   :  { %17742 = vmatpush3.bf16.msra.mxu1 %v23689_v37  ;;  %v12342_v39 = vand.u32 4294901760, %v12341_v6  ;;  %v9978_v37 = vadd.f32 %v16471_v2, %v21747_v42  ;;  %v17819_v8 = vpack.c.bf16 %v12335_v7, %v12328_v21  ;;  %v12355_v52 = vsub.f32 %v22008_v24, %v12354_v62  ;;  %v23700_v42 = vld [vmem:[#allocation14_spill] sm:$0xff]  ;;  %v23701_v2 = vld [vmem:[#allocation39_spill] sm:$0xff] }
 0xa88   :  { %v12236_v35 = vsub.f32 %v23692_v5, %v23693_v47  ;;  %17782 = vmatpush3.bf16.msra.mxu0 %v21456_v51  ;;  %17744 = vmatprep.subr.bf16.mxu1 %v23694_v12  ;;  %v23695_v32 = vand.u32 4294901760, %v22013_v38  ;;  %v23696_v12 = vld [vmem:[#allocation20_spill] sm:$0xff]  ;;  %v23698_v1 = vand.u32 4294901760, %v21778_v57  ;;  %v23699_v47 = vand.u32 4294901760, %v21801_v46 }
 0xa89   :  { %17816 = vmatprep.subr.bf16.mxu0 %v17815_v0  ;;  %v22066_v6 = vsub.f32 %v23696_v12, %v19833_v3  ;;  %v12184_v0 = vsub.f32 %v22019_v50, %v12183_v58  ;;  %v17821_v21 = vpack.c.bf16 %v12223_v29, %v12216_v14  ;;  %v12230_v7 = vand.u32 4294901760, %v12229_v55 }
 0xa8a   :  { %v12362_v51 = vsub.f32 %v22013_v38, %v23695_v32  ;;  %v22072_v16 = vpack.c.bf16 %v23699_v47, %v23698_v1  ;;  %v12237_v32 = vand.u32 4294901760, %v12236_v35  ;;  %v22080_v3 = vadd.f32 %v21984_v23, %v9978_v37  ;;  %v23703_v47 = vld [vmem:[#allocation41_spill] sm:$0xff] }
 0xa8b   :  { %23697 = vst [vmem:[#allocation23_spill] sm:$0xff] %v22066_v6  ;;  %12080 = vmatmul.mubr.f32.vlgmr.msra.gmra.mrb[40].mxu0 %v23700_v42  ;;  %17746 = vmatpush3.bf16.msra.mxu1 %v23701_v2  ;;  %v17823_v57 = vpack.c.bf16 %v12349_v9, %v12342_v39  ;;  %v12243_v46 = vsub.f32 %v22035_v44, %v23093_v33  ;;  %v23702_v12 = vand.u32 4294901760, %v22040_v45  ;;  %v12356_v55 = vand.u32 4294901760, %v12355_v52 }
 0xa8c   :  { %17818 = vmatpush3.bf16.msra.mxu0 %v17817_v48  ;;  %12422 = vmatprep.mubr.f32.mxu0 %v21955_v17  ;;  %v12363_v29 = vand.u32 4294901760, %v12362_v51  ;;  %v23704_v23 = vand.u32 4294901760, %v21538_v53  ;;  %v23705_v48 = vand.u32 4294901760, %v21544_v36  ;;  %v9367_v39 = vmul.f32 1.442695, %v22066_v6 }
 0xa8d   :  { %v12250_v1 = vsub.f32 %v22040_v45, %v23702_v12  ;;  %17748 = vmatprep.subr.bf16.mxu1 %v23703_v47  ;;  %17820 = vmatprep.subr.bf16.mxu0 %v17819_v8  ;;  %v23706_v9 = vand.u32 4294901760, %v21819_v13  ;;  %v23707_v37 = vand.u32 4294901760, %v21824_v26  ;;  %v23708_v12 = vld [vmem:[#allocation43_spill] sm:$0xff]  ;;  %v17825_v8 = vpack.c.bf16 %v12237_v32, %v12230_v7 }
 0xa8e   :  { %v12369_v14 = vsub.f32 %v21538_v53, %v23704_v23  ;;  %v12376_v35 = vsub.f32 %v21544_v36, %v23705_v48  ;;  %v23709_v52 = vand.u32 4294901760, %v21835_v31  ;;  %v23710_v51 = vand.u32 4294901760, %v21848_v56 }
 0xa8f   :  { %v22101_v2 = vpack.c.bf16 %v23707_v37, %v23706_v9  ;;  %17750 = vmatpush3.bf16.msra.mxu1 %v23708_v12  ;;  %v23711_v23 = vand.u32 4294901760, %v21555_v27  ;;  %v23712_v33 = vand.u32 4294901760, %v21560_v22  ;;  %v12244_v26 = vand.u32 4294901760, %v12243_v46 }
 0xa90   :  { %v22108_v47 = vpack.c.bf16 %v23710_v51, %v23709_v52  ;;  %17822 = vmatpush3.bf16.msra.mxu0 %v17821_v21  ;;  %17784 = vmatprep.subr.bf16.mxu1 %v22072_v16  ;;  %v12251_v9 = vand.u32 4294901760, %v12250_v1  ;;  %v23713_v7 = vand.u32 4294901760, %v21661_v15  ;;  %v23714_v56 = vand.u32 4294901760, %v21672_v4 }
 0xa91   :  { %v12257_v48 = vsub.f32 %v21555_v27, %v23711_v23  ;;  %v12264_v13 = vsub.f32 %v21560_v22, %v23712_v33  ;;  %17824 = vmatprep.subr.bf16.mxu0 %v17823_v57  ;;  %v12185_v37 = vand.u32 4294901760, %v12184_v0  ;;  %v17827_v12 = vpack.c.bf16 %v12363_v29, %v12356_v55 }
 0xa92   :  { %v12383_v31 = vsub.f32 %v21661_v15, %v23713_v7  ;;  %v12390_v32 = vsub.f32 %v21672_v4, %v23714_v56  ;;  %v12370_v52 = vand.u32 4294901760, %v12369_v14  ;;  %v12377_v51 = vand.u32 4294901760, %v12376_v35  ;;  %11976 = vmatmul.mubr.f32.vlgmr.msra.gmra.mrb[44].mxu1 %v23700_v42 }
 0xa93   :  { %18479 = vpow2.f32 %v9367_v39  ;;  %v23715_v33 = vand.u32 4294901760, %v21863_v18  ;;  %v23716_v21 = vand.u32 4294901760, %v21874_v49  ;;  %17786 = vmatpush3.bf16.msra.mxu1 %v22101_v2  ;;  %12186 = vmatprep.mubr.f32.mxu1 %v12185_v37  ;;  %v12258_v1 = vand.u32 4294901760, %v12257_v48  ;;  %v23723_v37 = vld [vmem:[#allocation52_spill] sm:$0xff] }
 0xa94   :  { %v12265_v23 = vand.u32 4294901760, %v12264_v13  ;;  %v23717_v57 = vand.u32 4294901760, %v21677_v60  ;;  %v23718_v55 = vand.u32 4294901760, %v21684_v28  ;;  %17826 = vmatpush3.bf16.msra.mxu0 %v17825_v8  ;;  %17788 = vmatprep.subr.bf16.mxu1 %v22108_v47  ;;  %v17829_v18 = vpack.c.bf16 %v12251_v9, %v12244_v26  ;;  %v23725_v9 = vld [vmem:[#allocation57_spill] sm:$0xff] }
 0xa95   :  { %v22128_v46 = vpack.c.bf16 %v23716_v21, %v23715_v33  ;;  %v23719_v49 = vand.u32 4294901760, %v21879_v30  ;;  %v23720_v42 = vand.u32 4294901760, %v21886_v43  ;;  %v12384_v35 = vand.u32 4294901760, %v12383_v31  ;;  %17828 = vmatprep.subr.bf16.mxu0 %v17827_v12 }
 0xa96   :  { %v12271_v0 = vsub.f32 %v21677_v60, %v23717_v57  ;;  %v12278_v29 = vsub.f32 %v21684_v28, %v23718_v55  ;;  %v12391_v39 = vand.u32 4294901760, %v12390_v32  ;;  %v17831_v48 = vpack.c.bf16 %v12377_v51, %v12370_v52 }
 0xa97   :  { %v22142_v14 = vpack.c.bf16 %v23720_v42, %v23719_v49  ;;  %v23721_v13 = vand.u32 4294901760, %v21689_v59  ;;  %v23722_v56 = vand.u32 4294901760, %v21694_v61  ;;  %v23724_v26 = vand.u32 4294901760, %v23723_v37  ;;  %17790 = vmatpush3.bf16.msra.mxu1 %v22128_v46 }
 0xa98   :  { %v23726_v30 = vand.u32 4294901760, %v23725_v9  ;;  %v17833_v43 = vpack.c.bf16 %v12265_v23, %v12258_v1  ;;  %v23727_v31 = vand.u32 4294901760, %v21933_v19  ;;  %v23728_v32 = vand.u32 4294901760, %v21938_v20  ;;  %17830 = vmatpush3.bf16.msra.mxu0 %v17829_v18 }
 0xa99   :  { %v12397_v7 = vsub.f32 %v21689_v59, %v23721_v13  ;;  %v12404_v8 = vsub.f32 %v21694_v61, %v23722_v56  ;;  %v12272_v52 = vand.u32 4294901760, %v12271_v0  ;;  %v12279_v51 = vand.u32 4294901760, %v12278_v29  ;;  %17792 = vmatprep.subr.bf16.mxu1 %v22142_v14  ;;  %17832 = vmatprep.subr.bf16.mxu0 %v17831_v48  ;;  %v23735_v48 = vld [vmem:[#allocation60_spill] sm:$0xff]  ;;  %v23737_v56 = vld [vmem:[#allocation61_spill] sm:$0xff] }
 0xa9a   :  { %v22154_v33 = vpack.c.bf16 %v23726_v30, %v23724_v26  ;;  %v22161_v12 = vpack.c.bf16 %v23728_v32, %v23727_v31  ;;  %v17835_v21 = vpack.c.bf16 %v12391_v39, %v12384_v35  ;;  %v23729_v57 = vand.u32 4294901760, %v21699_v63 }
 0xa9b   :  { %v23730_v49 = vand.u32 4294901760, %v21705_v41  ;;  %v12398_v19 = vand.u32 4294901760, %v12397_v7  ;;  %v12405_v23 = vand.u32 4294901760, %v12404_v8  ;;  %v23731_v20 = vand.u32 4294901760, %v21710_v54 }
 0xa9c   :  { %v12285_v55 = vsub.f32 %v21699_v63, %v23729_v57  ;;  %v23732_v29 = vand.u32 4294901760, %v21715_v10  ;;  %17794 = vmatpush3.bf16.msra.mxu1 %v22154_v33  ;;  %v23733_v42 = vand.u32 4294901760, %v21970_v40  ;;  %v23734_v35 = vand.u32 4294901760, %v21975_v11  ;;  %17834 = vmatpush3.bf16.msra.mxu0 %v17833_v43  ;;  %v23740_v11 = vld [vmem:[#allocation62_spill] sm:$0xff]  ;;  %v23742_v43 = vld [vmem:[#allocation19_spill] sm:$0xff] }
 0xa9d   :  { %v12292_v1 = vsub.f32 %v21705_v41, %v23730_v49  ;;  %v12411_v0 = vsub.f32 %v21710_v54, %v23731_v20  ;;  %v17837_v13 = vpack.c.bf16 %v12279_v51, %v12272_v52  ;;  %v23736_v7 = vand.u32 4294901760, %v23735_v48  ;;  %v18480_v26 = vpop.eup %18479  ;;  %17796 = vmatprep.subr.bf16.mxu1 %v22161_v12  ;;  %17836 = vmatprep.subr.bf16.mxu0 %v17835_v21  ;;  %v16574_v20 = vpop.f32.mrb[28].mxu0  ;;  %v23746_v48 = vld [vmem:[#allocation70_spill] sm:$0xff] }
 0xa9e   :  { %v12418_v18 = vsub.f32 %v21715_v10, %v23732_v29  ;;  %v22181_v39 = vpack.c.bf16 %v23734_v35, %v23733_v42  ;;  %v23738_v8 = vand.u32 4294901760, %v23737_v56  ;;  %v12286_v9 = vand.u32 4294901760, %v12285_v55  ;;  %v16575_v29 = vpop.f32.mrb[29].mxu0  ;;  %v23744_v55 = vld [vmem:[#allocation24_spill] sm:$0xff]  ;;  %v23748_v56 = vld [vmem:[#allocation71_spill] sm:$0xff] }
 0xa9f   :  { %v12293_v30 = vand.u32 4294901760, %v12292_v1  ;;  %v23739_v31 = vand.u32 4294901760, %v21732_v25  ;;  %v23741_v32 = vand.u32 4294901760, %v23740_v11  ;;  %v17839_v51 = vpack.c.bf16 %v12405_v23, %v12398_v19 }
 0xaa0   :  { %v22187_v37 = vpack.c.bf16 %v23738_v8, %v23736_v7  ;;  %v12412_v57 = vand.u32 4294901760, %v12411_v0  ;;  %v12419_v49 = vand.u32 4294901760, %v12418_v18  ;;  %17798 = vmatpush3.bf16.msra.mxu1 %v22181_v39  ;;  %v23743_v42 = vand.u32 4294901760, %v23742_v43  ;;  %17838 = vmatpush3.bf16.msra.mxu0 %v17837_v13  ;;  %v23750_v43 = vld [vmem:[#allocation46_spill] sm:$0xff]  ;;  %v23754_v13 = vld [vmem:[#allocation16_spill] sm:$0xff] }
 0xaa1   :  { %v12299_v40 = vsub.f32 %v21732_v25, %v23739_v31  ;;  %v12306_v52 = vsub.f32 %v23740_v11, %v23741_v32  ;;  %v23745_v1 = vand.u32 4294901760, %v23744_v55  ;;  %v23747_v7 = vand.u32 4294901760, %v23746_v48  ;;  %17840 = vmatprep.subr.bf16.mxu0 %v17839_v51  ;;  %v23752_v55 = vld [vmem:[#allocation25_spill] sm:$0xff] }
 0xaa2   :  { %v23749_v8 = vand.u32 4294901760, %v23748_v56  ;;  %v22209_v21 = vand.u32 4294901760, %v18480_v26  ;;  %v16576_v19 = vadd.f32 %v16575_v29, %v16574_v20  ;;  %17800 = vmatprep.subr.bf16.mxu1 %v22187_v37  ;;  %v17841_v23 = vpack.c.bf16 %v12293_v30, %v12286_v9 }
 0xaa3   :  { %v22201_v35 = vpack.c.bf16 %v23745_v1, %v23743_v42  ;;  %v12300_v0 = vand.u32 4294901760, %v12299_v40  ;;  %v12307_v18 = vand.u32 4294901760, %v12306_v52  ;;  %v17843_v32 = vpack.c.bf16 %v12419_v49, %v12412_v57  ;;  %v16539_v52 = vpop.f32.mrb[32].mxu1  ;;  %v23758_v49 = vld [vmem:[#allocation27_spill] sm:$0xff] }
 0xaa4   :  { %v22207_v31 = vpack.c.bf16 %v23749_v8, %v23747_v7  ;;  %v23751_v42 = vand.u32 4294901760, %v23750_v43  ;;  %v23753_v1 = vand.u32 4294901760, %v23752_v55  ;;  %17842 = vmatpush3.bf16.msra.mxu0 %v17841_v23  ;;  %v23755_v29 = vand.u32 4294901760, %v23754_v13  ;;  %v23756_v7 = vld [vmem:[#allocation26_spill] sm:$0xff]  ;;  %v16540_v51 = vpop.f32.mrb[33].mxu1  ;;  %v23760_v8 = vld [vmem:[#allocation40_spill] sm:$0xff] }
 0xaa5   :  { %17802 = vmatpush3.bf16.msra.mxu1 %v22201_v35  ;;  %v17845_v20 = vpack.c.bf16 %v12307_v18, %v12300_v0  ;;  %v23757_v9 = vand.u32 4294901760, %v23756_v7  ;;  %v22227_v40 = vsub.f32 %v18480_v26, %v22209_v21  ;;  %17844 = vmatprep.subr.bf16.mxu0 %v17843_v32  ;;  %v16541_v57 = vadd.f32 %v16540_v51, %v16539_v52  ;;  %v23762_v32 = vld [vmem:[#allocation17_spill] sm:$0xff]  ;;  %v23766_v13 = vld [vmem:[#allocation42_spill] sm:$0xff] }
 0xaa6   :  { %v22217_v48 = vpack.c.bf16 %v23753_v1, %v23751_v42  ;;  %17804 = vmatprep.subr.bf16.mxu1 %v22207_v31  ;;  %v23759_v56 = vand.u32 4294901760, %v23758_v49  ;;  %v23761_v23 = vand.u32 4294901760, %v23760_v8  ;;  %v23763_v43 = vand.u32 4294901760, %v23762_v32  ;;  %v23764_v42 = vld [vmem:[#allocation31_spill] sm:$0xff]  ;;  %v23770_v51 = vld [vmem:[#allocation53_spill] sm:$0xff] }
 0xaa7   :  { %v22224_v30 = vpack.c.bf16 %v23757_v9, %v23755_v29  ;;  %v12189_v18 = vand.u32 4294901760, %v22227_v40  ;;  %v10254_v26 = vadd.f32 %v16541_v57, %v22080_v3  ;;  %v23765_v55 = vand.u32 4294901760, %v23764_v42  ;;  %v23768_v29 = vld [vmem:[#allocation47_spill] sm:$0xff]  ;;  %v23771_v57 = vld [vmem:[#allocation54_spill] sm:$0xff]  ;;  %v23777_v42 = vld [vmem:[#allocation9_spill] sm:$0xff] }
 0xaa8   :  { %v22234_v0 = vpack.c.bf16 %v23761_v23, %v23759_v56  ;;  %17846 = vmatpush3.bf16.msra.mxu0 %v17845_v20  ;;  %v23767_v20 = vand.u32 4294901760, %v23766_v13  ;;  %v23769_v7 = vand.u32 4294901760, %v23768_v29  ;;  %v17847_v49 = vpack.c.bf16 %v23771_v57, %v23770_v51  ;;  %v23772_v56 = vld [vmem:[#allocation55_spill] sm:$0xff]  ;;  %v23778_v13 = vld [vmem:[#allocation12_spill] sm:$0xff] }
 0xaa9   :  { %17806 = vmatpush3.bf16.msra.mxu1 %v22217_v48  ;;  %17880 = vmatprep.subr.bf16.mxu0 %v22072_v16  ;;  %v22244_v1 = vpack.c.bf16 %v23765_v55, %v23763_v43  ;;  %v10358_v52 = vadd.f32 %v16576_v19, %v10254_v26  ;;  %v12190_v3 = vsub.f32 %v22227_v40, %v12189_v18  ;;  %v23773_v19 = vld [vmem:[#allocation56_spill] sm:$0xff]  ;;  %v23775_v26 = vld [vmem:[#allocation59_spill] sm:$0xff]  ;;  %v23776_v43 = vld [vmem:[#allocation22_spill] sm:$0xff] }
 0xaaa   :  { %17808 = vmatprep.subr.bf16.mxu1 %v22224_v30  ;;  %v22252_v9 = vpack.c.bf16 %v23769_v7, %v23767_v20  ;;  %v17849_v8 = vpack.c.bf16 %v23773_v19, %v23772_v56  ;;  %v17853_v55 = vpack.c.bf16 %v23777_v42, %v23776_v43  ;;  %v23779_v20 = vld [vmem:[#allocation10_spill] sm:$0xff]  ;;  %v17857_v7 = vpack.c.bf16 %v23692_v5, %v23690_v34 }
 0xaab   :  { %12424 = vmatmul.mubr.f32.vlgmr.msra.gmra.mrb[42].mxu0 %v22209_v21  ;;  %v12191_v23 = vand.u32 4294901760, %v12190_v3  ;;  %v17855_v29 = vpack.c.bf16 %v23779_v20, %v23778_v13  ;;  %v17861_v3 = vpack.c.bf16 %v22040_v45, %v22035_v44 }
 0xaac   :  { %17882 = vmatpush3.bf16.msra.mxu0 %v22101_v2  ;;  %12666 = vmatprep.mubr.f32.mxu0 %v12183_v58  ;;  %v23774_v58 = vld [vmem:[#allocation58_spill] sm:$0xff] }
 0xaad   :  { %17810 = vmatpush3.bf16.msra.mxu1 %v22234_v0  ;;  %17884 = vmatprep.subr.bf16.mxu0 %v22108_v47  ;;  %v17851_v32 = vpack.c.bf16 %v23775_v26, %v23774_v58 }
 0xaae   :  { %17812 = vmatprep.subr.bf16.mxu1 %v22244_v1 }
 0xab0   :  { %17886 = vmatpush3.bf16.msra.mxu0 %v22128_v46 }
 0xab1   :  { %17814 = vmatpush3.bf16.msra.mxu1 %v22252_v9  ;;  %17888 = vmatprep.subr.bf16.mxu0 %v22142_v14 }
 0xab2   :  { %17848 = vmatprep.subr.bf16.mxu1 %v17847_v49  ;;  %v17863_v49 = vpack.c.bf16 %v21544_v36, %v21538_v53  ;;  %v17869_v53 = vpack.c.bf16 %v21684_v28, %v21677_v60  ;;  %v17871_v36 = vpack.c.bf16 %v21694_v61, %v21689_v59  ;;  %v17875_v60 = vpack.c.bf16 %v21715_v10, %v21710_v54 }
 0xab3   :  { %v17877_v28 = vpack.c.bf16 %v23740_v11, %v21732_v25  ;;  %v23781_v61 = vand.u32 4294901760, %v23771_v57  ;;  %v23782_v54 = vand.u32 4294901760, %v23772_v56  ;;  %v23783_v10 = vand.u32 4294901760, %v23773_v19 }
 0xab4   :  { %12192 = vmatmul.mubr.f32.vlgmr.msra.gmra.mrb[46].mxu1 %v12191_v23  ;;  %17890 = vmatpush3.bf16.msra.mxu0 %v22154_v33  ;;  %v23784_v25 = vand.u32 4294901760, %v23774_v58  ;;  %v23793_v56 = vand.u32 4294901760, %v22040_v45 }
 0xab5   :  { %17850 = vmatpush3.bf16.msra.mxu1 %v17849_v8  ;;  %12559 = vmatprep.mubr.f32.mxu1 %v22019_v50  ;;  %v17859_v50 = vpack.c.bf16 %v22013_v38, %v22008_v24  ;;  %v17865_v8 = vpack.c.bf16 %v21560_v22, %v21555_v27 }
 0xab6   :  { %17852 = vmatprep.subr.bf16.mxu1 %v17851_v32  ;;  %17892 = vmatprep.subr.bf16.mxu0 %v22161_v12  ;;  %v17867_v32 = vpack.c.bf16 %v21672_v4, %v21661_v15  ;;  %v17873_v15 = vpack.c.bf16 %v21705_v41, %v21699_v63  ;;  %v23780_v63 = vand.u32 4294901760, %v23770_v51  ;;  %v23789_v51 = vand.u32 4294901760, %v23779_v20 }
 0xab8   :  { %17894 = vmatpush3.bf16.msra.mxu0 %v22181_v39  ;;  %v17911_v41 = vpack.c.bf16 %v23781_v61, %v23780_v63  ;;  %v2015_v61 = vld [vmem:[#allocation2 + $0x50] sm:$0xff] }
 0xab9   :  { %17854 = vmatpush3.bf16.msra.mxu1 %v17853_v55  ;;  %17896 = vmatprep.subr.bf16.mxu0 %v22187_v37 }
 0xaba   :  { %17856 = vmatprep.subr.bf16.mxu1 %v17855_v29  ;;  %v16644_v34 = vpop.f32.mrb[30].mxu0 }
 0xabb   :  { %v16645_v5 = vpop.f32.mrb[31].mxu0 }
 0xabc   :  { %17898 = vmatpush3.bf16.msra.mxu0 %v22201_v35  ;;  %v16646_v23 = vadd.f32 %v16645_v5, %v16644_v34 }
 0xabd   :  { %17858 = vmatpush3.bf16.msra.mxu1 %v17857_v7  ;;  %17900 = vmatprep.subr.bf16.mxu0 %v22207_v31 }
 0xabe   :  { %17860 = vmatprep.subr.bf16.mxu1 %v17859_v50 }
 0xac0   :  { %17902 = vmatpush3.bf16.msra.mxu0 %v22217_v48 }
 0xac1   :  { %17862 = vmatpush3.bf16.msra.mxu1 %v17861_v3  ;;  %17904 = vmatprep.subr.bf16.mxu0 %v22224_v30 }
 0xac2   :  { %17864 = vmatprep.subr.bf16.mxu1 %v17863_v49 }
 0xac3   :  { %v16609_v27 = vpop.f32.mrb[34].mxu1 }
 0xac4   :  { %17906 = vmatpush3.bf16.msra.mxu0 %v22234_v0  ;;  %v16610_v22 = vpop.f32.mrb[35].mxu1 }
 0xac5   :  { %17866 = vmatpush3.bf16.msra.mxu1 %v17865_v8  ;;  %17908 = vmatprep.subr.bf16.mxu0 %v22244_v1  ;;  %v16611_v55 = vadd.f32 %v16610_v22, %v16609_v27 }
 0xac6   :  { %17868 = vmatprep.subr.bf16.mxu1 %v17867_v32 }
 0xac7   :  { %v10470_v4 = vadd.f32 %v16611_v55, %v10358_v52 }
 0xac8   :  { %17910 = vmatpush3.bf16.msra.mxu0 %v22252_v9 }
 0xac9   :  { %17870 = vmatpush3.bf16.msra.mxu1 %v17869_v53  ;;  %17944 = vmatprep.subr.bf16.mxu0 %v22072_v16  ;;  %v10702_v59 = vadd.f32 %v16646_v23, %v10470_v4  ;;  %v17913_v16 = vpack.c.bf16 %v23783_v10, %v23782_v54  ;;  %v13495_v10 = vand.u32 4294901760, %v2015_v61 }
 0xaca   :  { %17872 = vmatprep.subr.bf16.mxu1 %v17871_v36 }
 0xacb   :  { %12670 = vmatmul.mubr.f32.vlgmr.msra.gmra.mrb[44].mxu0 %v12189_v18  ;;  %v23787_v18 = vand.u32 4294901760, %v23777_v42 }
 0xacc   :  { %17946 = vmatpush3.bf16.msra.mxu0 %v22101_v2  ;;  %12940 = vmatprep.mubr.f32.mxu0 %v21955_v17  ;;  %v23785_v2 = vand.u32 4294901760, %v23775_v26 }
 0xacd   :  { %17874 = vmatpush3.bf16.msra.mxu1 %v17873_v15  ;;  %17948 = vmatprep.subr.bf16.mxu0 %v22108_v47  ;;  %v23786_v47 = vand.u32 4294901760, %v23776_v43  ;;  %v23801_v43 = vld [vmem:[#allocation49_spill] sm:$0xff] }
 0xace   :  { %17876 = vmatprep.subr.bf16.mxu1 %v17875_v60  ;;  %v17915_v11 = vpack.c.bf16 %v23785_v2, %v23784_v25  ;;  %v2016_v60 = vld [vmem:[#allocation2 + $0x58] sm:$0xff] }
 0xacf   :  { %v17917_v52 = vpack.c.bf16 %v23787_v18, %v23786_v47  ;;  %v2032_v18 = vld [vmem:[#allocation2 + $0xd8] sm:$0xff] }
 0xad0   :  { %17950 = vmatpush3.bf16.msra.mxu0 %v22128_v46  ;;  %v23788_v46 = vand.u32 4294901760, %v23778_v13 }
 0xad1   :  { %17878 = vmatpush3.bf16.msra.mxu1 %v17877_v28  ;;  %17952 = vmatprep.subr.bf16.mxu0 %v22142_v14  ;;  %v2024_v28 = vld [vmem:[#allocation2 + $0x98] sm:$0xff] }
 0xad2   :  { %17912 = vmatprep.subr.bf16.mxu1 %v17911_v41  ;;  %v17919_v57 = vpack.c.bf16 %v23789_v51, %v23788_v46  ;;  %v13497_v63 = vand.u32 4294901760, %v2024_v28  ;;  %v2023_v41 = vld [vmem:[#allocation2 + $0x90] sm:$0xff]  ;;  %v13501_v51 = vand.u32 4294901760, %v2032_v18 }
 0xad4   :  { %12562 = vmatmul.mubr.f32.vlgmr.msra.gmra.mrb[48].mxu1 %v22227_v40  ;;  %17954 = vmatpush3.bf16.msra.mxu0 %v22154_v33  ;;  %v23791_v33 = vld [vmem:[#allocation69_spill] sm:$0xff]  ;;  %v23792_v40 = vand.u32 4294901760, %v22035_v44  ;;  %v23796_v44 = vld [vmem:[#allocation34_spill] sm:$0xff]  ;;  %v22373_v2 = vsub.f32 %v2024_v28, %v13497_v63 }
 0xad5   :  { %17914 = vmatpush3.bf16.msra.mxu1 %v17913_v16  ;;  %12836 = vmatprep.mubr.f32.mxu1 %v21955_v17  ;;  %v23790_v17 = vand.u32 4294901760, %v22013_v38  ;;  %v23794_v38 = vld [vmem:[#allocation28_spill] sm:$0xff]  ;;  %v13499_v16 = vand.u32 4294901760, %v2023_v41 }
 0xad6   :  { %17916 = vmatprep.subr.bf16.mxu1 %v17915_v11  ;;  %17956 = vmatprep.subr.bf16.mxu0 %v22161_v12  ;;  %v17925_v19 = vpack.c.bf16 %v23793_v56, %v23792_v40  ;;  %v22375_v11 = vsub.f32 %v2015_v61, %v13495_v10 }
 0xad7   :  { %v17923_v14 = vpack.c.bf16 %v23790_v17, %v12354_v62  ;;  %v23795_v62 = vld [vmem:[#allocation51_spill] sm:$0xff]  ;;  %v22377_v47 = vsub.f32 %v2023_v41, %v13499_v16  ;;  %v2031_v17 = vld [vmem:[#allocation2 + $0xd0] sm:$0xff] }
 0xad8   :  { %17958 = vmatpush3.bf16.msra.mxu0 %v22181_v39  ;;  %v13503_v40 = vand.u32 4294901760, %v2031_v17 }
 0xad9   :  { %17918 = vmatpush3.bf16.msra.mxu1 %v17917_v52  ;;  %17960 = vmatprep.subr.bf16.mxu0 %v22187_v37  ;;  %v2040_v52 = vld [vmem:[#allocation2 + $0x118] sm:$0xff] }
 0xada   :  { %17920 = vmatprep.subr.bf16.mxu1 %v17919_v57  ;;  %v13505_v57 = vand.u32 4294901760, %v2040_v52 }
 0xadb   :  { %v16714_v12 = vpop.f32.mrb[32].mxu0 }
 0xadc   :  { %17962 = vmatpush3.bf16.msra.mxu0 %v22201_v35  ;;  %v16715_v39 = vpop.f32.mrb[33].mxu0 }
 0xadd   :  { %17922 = vmatpush3.bf16.msra.mxu1 %v23791_v33  ;;  %17964 = vmatprep.subr.bf16.mxu0 %v22207_v31  ;;  %v16716_v24 = vadd.f32 %v16715_v39, %v16714_v12  ;;  %v23797_v31 = vld [vmem:[#allocation35_spill] sm:$0xff]  ;;  %v18041_v33 = vpack.c.bf16 %v22377_v47, %v22375_v11  ;;  %v22385_v12 = vsub.f32 %v2040_v52, %v13505_v57  ;;  %v2014_v39 = vld [vmem:[#allocation2 + $0x48] sm:$0xff] }
 0xade   :  { %17924 = vmatprep.subr.bf16.mxu1 %v17923_v14  ;;  %v2039_v14 = vld [vmem:[#allocation2 + $0x110] sm:$0xff] }
 0xadf   :  { %v13507_v56 = vand.u32 4294901760, %v2039_v14 }
 0xae0   :  { %17966 = vmatpush3.bf16.msra.mxu0 %v22217_v48  ;;  %v23798_v48 = vld [vmem:[#allocation44_spill] sm:$0xff] }
 0xae1   :  { %17926 = vmatpush3.bf16.msra.mxu1 %v17925_v19  ;;  %17968 = vmatprep.subr.bf16.mxu0 %v22224_v30  ;;  %v23799_v30 = vld [vmem:[#allocation45_spill] sm:$0xff]  ;;  %v22383_v19 = vsub.f32 %v2032_v18, %v13501_v51 }
 0xae2   :  { %17928 = vmatprep.subr.bf16.mxu1 %v23794_v38  ;;  %v2013_v38 = vld [vmem:[#allocation2 + $0x40] sm:$0xff] }
 0xae3   :  { %v16679_v45 = vpop.f32.mrb[36].mxu1 }
 0xae4   :  { %17970 = vmatpush3.bf16.msra.mxu0 %v22234_v0  ;;  %v16680_v37 = vpop.f32.mrb[37].mxu1  ;;  %v23800_v0 = vld [vmem:[#allocation48_spill] sm:$0xff] }
 0xae5   :  { %17930 = vmatpush3.bf16.msra.mxu1 %v23795_v62  ;;  %17972 = vmatprep.subr.bf16.mxu0 %v22244_v1  ;;  %v16681_v35 = vadd.f32 %v16680_v37, %v16679_v45  ;;  %v22391_v45 = vsub.f32 %v2039_v14, %v13507_v56  ;;  %v12950_v37 = vand.u32 4294901760, %v2014_v39 }
 0xae6   :  { %17932 = vmatprep.subr.bf16.mxu1 %v23796_v44  ;;  %v22389_v44 = vsub.f32 %v2031_v17, %v13503_v40  ;;  %v13597_v17 = vand.u32 4294901760, %v22377_v47 }
 0xae7   :  { %v10840_v58 = vadd.f32 %v16681_v35, %v10702_v59  ;;  %v13493_v59 = vand.u32 4294901760, %v2016_v60 }
 0xae8   :  { %17974 = vmatpush3.bf16.msra.mxu0 %v22252_v9 }
 0xae9   :  { %17934 = vmatpush3.bf16.msra.mxu1 %v23797_v31  ;;  %v10948_v26 = vadd.f32 %v16716_v24, %v10840_v58  ;;  %v22371_v25 = vsub.f32 %v2016_v60, %v13493_v59  ;;  %v2022_v24 = vld [vmem:[#allocation2 + $0x88] sm:$0xff]  ;;  %v22387_v62 = vpack.c.bf16 %v13497_v63, %v13493_v59  ;;  %v2021_v31 = vld [vmem:[#allocation2 + $0x80] sm:$0xff]  ;;  %v18043_v58 = vpack.c.bf16 %v22385_v12, %v22383_v19 }
 0xaea   :  { %17936 = vmatprep.subr.bf16.mxu1 %v23798_v48  ;;  %v12954_v35 = vand.u32 4294901760, %v2022_v24  ;;  %v23094_v48 = vmov 0.0  }
 0xaeb   :  { %12942 = vmatmul.mubr.f32.vlgmr.msra.gmra.mrb[46].mxu0 %v22209_v21  ;;  %v18039_v46 = vpack.c.bf16 %v22373_v2, %v22371_v25  ;;  %v13579_v41 = vand.u32 4294901760, %v22371_v25 }
 0xaec   :  { %13769 = vmatprep.mubr.f32.mxu0 %v23094_v48 }
 0xaed   :  { %17938 = vmatpush3.bf16.msra.mxu1 %v23799_v30  ;;  %18040 = vmatprep.subr.bf16.mxu0 %v18039_v46  ;;  %v12952_v30 = vand.u32 4294901760, %v2013_v38  ;;  %v13585_v46 = vand.u32 4294901760, %v22375_v11 }
 0xaee   :  { %17940 = vmatprep.subr.bf16.mxu1 %v23800_v0  ;;  %18042 = vmatpush1.bf16.msra.mxu0 %v18041_v33  ;;  %v22396_v0 = vpack.c.bf16 %v13499_v16, %v13495_v10  ;;  %v13591_v10 = vand.u32 4294901760, %v22373_v2 }
 0xaef   :  { %18044 = vmatprep.subr.bf16.mxu0 %v18043_v58 }
 0xaf1   :  { %17942 = vmatpush3.bf16.msra.mxu1 %v23801_v43  ;;  %v18045_v43 = vpack.c.bf16 %v22391_v45, %v22389_v44 }
 0xaf3   :  { %18046 = vmatpush1.bf16.msra.mxu0 %v18045_v43  ;;  %v13615_v43 = vand.u32 4294901760, %v22385_v12 }
 0xaf4   :  { %12838 = vmatmul.mubr.f32.vlgmr.msra.gmra.mrb[50].mxu1 %v22209_v21  ;;  %18048 = vmatprep.subr.bf16.mxu0 %v22387_v62 }
 0xaf5   :  { %13022 = vmatprep.mubr.f32.mxu1 %v23094_v48 }
 0xafc   :  { %v16784_v1 = vpop.f32.mrb[34].mxu0 }
 0xafd   :  { %v16785_v42 = vpop.f32.mrb[35].mxu0 }
 0xafe   :  { %v16786_v13 = vadd.f32 %v16785_v42, %v16784_v1  ;;  %v22401_v1 = vpack.c.bf16 %v12954_v35, %v12950_v37  ;;  %v22403_v42 = vsub.f32 %v2014_v39, %v12950_v37 }
 0xb00   :  { %17976 = vmatprep.subr.bf16.mxu1 %v22401_v1 }
 0xb03   :  { %v16749_v20 = vpop.f32.mrb[38].mxu1 }
 0xb04   :  { %v16750_v29 = vpop.f32.mrb[39].mxu1 }
 0xb05   :  { %v16751_v9 = vadd.f32 %v16750_v29, %v16749_v20  ;;  %v2030_v20 = vld [vmem:[#allocation2 + $0xc8] sm:$0xff] }
 0xb06   :  { %v2038_v29 = vld [vmem:[#allocation2 + $0x108] sm:$0xff] }
 0xb07   :  { %v11116_v7 = vadd.f32 %v16751_v9, %v10948_v26  ;;  %v12956_v26 = vand.u32 4294901760, %v2021_v31  ;;  %v2029_v9 = vld [vmem:[#allocation2 + $0xc0] sm:$0xff] }
 0xb09   :  { %v11220_v50 = vadd.f32 %v16786_v13, %v11116_v7  ;;  %v22405_v13 = vsub.f32 %v2022_v24, %v12954_v35  ;;  %v22407_v7 = vpack.c.bf16 %v12956_v26, %v12952_v30 }
 0xb0b   :  { %17978 = vmatpush1.bf16.msra.mxu1 %v22407_v7 }
 0xb1c   :  { %v16854_v3 = vpop.f32.mrb[36].mxu0 }
 0xb1d   :  { %v16855_v49 = vpop.f32.mrb[37].mxu0 }
 0xb1e   :  { %v16856_v34 = vadd.f32 %v16855_v49, %v16854_v3  ;;  %v22411_v3 = vsub.f32 %v2021_v31, %v12956_v26  ;;  %v12958_v49 = vand.u32 4294901760, %v2030_v20  ;;  %v13603_v26 = vand.u32 4294901760, %v22383_v19 }
 0xb20   :  { %v13054_v61 = vand.u32 4294901760, %v22411_v3 }
 0xb24   :  { %v16819_v5 = vpop.f32.mrb[40].mxu1 }
 0xb25   :  { %v16820_v8 = vpop.f32.mrb[41].mxu1 }
 0xb26   :  { %v16821_v23 = vadd.f32 %v16820_v8, %v16819_v5  ;;  %v12962_v5 = vand.u32 4294901760, %v2038_v29  ;;  %v12960_v8 = vand.u32 4294901760, %v2029_v9 }
 0xb28   :  { %v11332_v32 = vadd.f32 %v16821_v23, %v11220_v50  ;;  %v22409_v50 = vsub.f32 %v2013_v38, %v12952_v30  ;;  %v22451_v38 = vpack.c.bf16 %v13597_v17, %v13585_v46 }
 0xb2a   :  { %v11564_v53 = vadd.f32 %v16856_v34, %v11332_v32  ;;  %v2037_v34 = vld [vmem:[#allocation2 + $0x100] sm:$0xff]  ;;  %v22414_v32 = vpack.c.bf16 %v13505_v57, %v13501_v51  ;;  %v13042_v63 = vand.u32 4294901760, %v22409_v50  ;;  %v13055_v51 = vsub.f32 %v22411_v3, %v13054_v61 }
 0xb2b   :  { %v12964_v23 = vand.u32 4294901760, %v2037_v34  ;;  %v22445_v57 = vpack.c.bf16 %v13591_v10, %v13579_v41 }
 0xb2c   :  { %v13043_v52 = vsub.f32 %v22409_v50, %v13042_v63  ;;  %v13056_v24 = vand.u32 4294901760, %v13055_v51 }
 0xb2d   :  { %v22432_v60 = vsub.f32 %v2037_v34, %v12964_v23  ;;  %v13609_v34 = vand.u32 4294901760, %v22389_v44 }
 0xb2f   :  { %v13078_v35 = vand.u32 4294901760, %v22432_v60 }
 0xb3e   :  { %v16924_v36 = vpop.f32.mrb[38].mxu0 }
 0xb3f   :  { %v16925_v27 = vpop.f32.mrb[39].mxu0 }
 0xb40   :  { %v16926_v22 = vadd.f32 %v16925_v27, %v16924_v36  ;;  %v22420_v36 = vpack.c.bf16 %v13507_v56, %v13503_v40  ;;  %v13036_v27 = vand.u32 4294901760, %v22403_v42  ;;  %v13044_v40 = vand.u32 4294901760, %v13043_v52 }
 0xb42   :  { %v13037_v28 = vsub.f32 %v22403_v42, %v13036_v27 }
 0xb44   :  { %v16889_v21 = vpop.f32.mrb[42].mxu1  ;;  %v13038_v16 = vand.u32 4294901760, %v13037_v28  ;;  %v22463_v28 = vpack.c.bf16 %v13615_v43, %v13603_v26 }
 0xb45   :  { %v16890_v55 = vpop.f32.mrb[43].mxu1 }
 0xb46   :  { %v16891_v15 = vadd.f32 %v16890_v55, %v16889_v21  ;;  %v22424_v21 = vpack.c.bf16 %v12962_v5, %v12958_v49  ;;  %v22426_v55 = vsub.f32 %v2038_v29, %v12962_v5  ;;  %v22459_v29 = vpack.c.bf16 %v13056_v24, %v13044_v40 }
 0xb48   :  { %v11702_v4 = vadd.f32 %v16891_v15, %v11564_v53  ;;  %v22418_v53 = vsub.f32 %v2030_v20, %v12958_v49  ;;  %v22428_v15 = vpack.c.bf16 %v12964_v23, %v12960_v8  ;;  %17980 = vmatprep.subr.bf16.mxu1 %v22424_v21  ;;  %v13072_v56 = vand.u32 4294901760, %v22426_v55 }
 0xb49   :  { %v13079_v49 = vsub.f32 %v22432_v60, %v13078_v35 }
 0xb4a   :  { %v22369_v54 = vadd.f32 %v16926_v22, %v11702_v4  ;;  %v13048_v22 = vand.u32 4294901760, %v22405_v13  ;;  %23802 = vst [vmem:[#allocation15_spill] sm:$0xff] %v22428_v15  ;;  %v22430_v4 = vsub.f32 %v2029_v9, %v12960_v8  ;;  %17982 = vmatpush1.bf16.msra.mxu1 %v22428_v15  ;;  %v13060_v14 = vand.u32 4294901760, %v22418_v53 }
 0xb4b   :  { %v13073_v58 = vsub.f32 %v22426_v55, %v13072_v56  ;;  %v13580_v15 = vsub.f32 %v22371_v25, %v13579_v41  ;;  %v13610_v25 = vsub.f32 %v22389_v44, %v13609_v34 }
 0xb4c   :  { %v13049_v59 = vsub.f32 %v22405_v13, %v13048_v22  ;;  %v13066_v39 = vand.u32 4294901760, %v22430_v4  ;;  %v13061_v37 = vsub.f32 %v22418_v53, %v13060_v14 }
 0xb4d   :  { %v13074_v8 = vand.u32 4294901760, %v13073_v58 }
 0xb4e   :  { %v13050_v18 = vand.u32 4294901760, %v13049_v59  ;;  %v13067_v30 = vsub.f32 %v22430_v4, %v13066_v39  ;;  %v13062_v9 = vand.u32 4294901760, %v13061_v37  ;;  %v13080_v59 = vand.u32 4294901760, %v13079_v49 }
 0xb50   :  { %v17983_v33 = vpack.c.bf16 %v13050_v18, %v13038_v16  ;;  %v13068_v23 = vand.u32 4294901760, %v13067_v30  ;;  %v13621_v16 = vand.u32 4294901760, %v22391_v45  ;;  %v22470_v51 = vpack.c.bf16 %v13074_v8, %v13062_v9 }
 0xb51   :  { %v22481_v18 = vpack.c.bf16 %v13048_v22, %v13036_v27  ;;  %v22483_v9 = vpack.c.bf16 %v13054_v61, %v13042_v63  ;;  %v22485_v8 = vpack.c.bf16 %v13072_v56, %v13060_v14  ;;  %v13598_v27 = vsub.f32 %v22377_v47, %v13597_v17 }
 0xb52   :  { %17984 = vmatprep.subr.bf16.mxu1 %v17983_v33  ;;  %v22472_v33 = vpack.c.bf16 %v13080_v59, %v13068_v23  ;;  %v22474_v40 = vpack.c.bf16 %v13621_v16, %v13609_v34  ;;  %v22487_v23 = vpack.c.bf16 %v13078_v35, %v13066_v39  ;;  %v13581_v63 = vand.u32 4294901760, %v13580_v15 }
 0xb53   :  { %v13599_v56 = vand.u32 4294901760, %v13598_v27  ;;  %v13604_v35 = vsub.f32 %v22383_v19, %v13603_v26 }
 0xb5e   :  { %v16994_v31 = vpop.f32.mrb[40].mxu0 }
 0xb5f   :  { %v16995_v20 = vpop.f32.mrb[41].mxu0 }
 0xb60   :  { %v16996_v5 = vadd.f32 %v16995_v20, %v16994_v31 }
 0xb65   :  { %v16959_v31 = vpop.f32.mrb[44].mxu1 }
 0xb66   :  { %v16960_v58 = vpop.f32.mrb[45].mxu1 }
 0xb67   :  { %v16961_v30 = vadd.f32 %v16960_v58, %v16959_v31  ;;  %v13592_v31 = vsub.f32 %v22373_v2, %v13591_v10  ;;  %v13605_v2 = vand.u32 4294901760, %v13604_v35 }
 0xb69   :  { %v11978_v20 = vadd.f32 %v16961_v30, %v22369_v54  ;;  %v13586_v54 = vsub.f32 %v22375_v11, %v13585_v46  ;;  %v13593_v61 = vand.u32 4294901760, %v13592_v31  ;;  %v13622_v11 = vsub.f32 %v22391_v45, %v13621_v16 }
 0xb6b   :  { %v12082_v49 = vadd.f32 %v16996_v5, %v11978_v20  ;;  %v13587_v14 = vand.u32 4294901760, %v13586_v54  ;;  %v22494_v5 = vpack.c.bf16 %v13593_v61, %v13581_v63  ;;  %v13623_v15 = vand.u32 4294901760, %v13622_v11  ;;  %v2020_v61 = vld [vmem:[#allocation2 + $0x78] sm:$0xff] }
 0xb6c   :  { %v2044_v11 = vld [vmem:[#allocation2 + $0x138] sm:$0xff] }
 0xb7e   :  { %v17064_v59 = vpop.f32.mrb[42].mxu0 }
 0xb7f   :  { %v17065_v52 = vpop.f32.mrb[43].mxu0 }
 0xb80   :  { %v17066_v24 = vadd.f32 %v17065_v52, %v17064_v59  ;;  %v22496_v52 = vpack.c.bf16 %v13599_v56, %v13587_v14  ;;  %v2028_v14 = vld [vmem:[#allocation2 + $0xb8] sm:$0xff] }
 0xb81   :  { %v14583_v35 = vand.u32 4294901760, %v2028_v14 }
 0xb87   :  { %v17029_v48 = vpop.f32.mrb[46].mxu1 }
 0xb88   :  { %v17030_v6 = vpop.f32.mrb[47].mxu1 }
 0xb89   :  { %v17031_v37 = vadd.f32 %v17030_v6, %v17029_v48  ;;  %v13616_v6 = vsub.f32 %v22385_v12, %v13615_v43  ;;  %v13611_v48 = vand.u32 4294901760, %v13610_v25  ;;  %v2027_v25 = vld [vmem:[#allocation2 + $0xb0] sm:$0xff] }
 0xb8b   :  { %v12194_v22 = vadd.f32 %v17031_v37, %v12082_v49  ;;  %v13617_v47 = vand.u32 4294901760, %v13616_v6  ;;  %v22503_v10 = vpack.c.bf16 %v13623_v15, %v13611_v48  ;;  %v2019_v6 = vld [vmem:[#allocation2 + $0x70] sm:$0xff]  ;;  %v22534_v15 = vsub.f32 %v2028_v14, %v14583_v35 }
 0xb8d   :  { %v12426_v39 = vadd.f32 %v17066_v24, %v12194_v22  ;;  %v22501_v41 = vpack.c.bf16 %v13617_v47, %v13605_v2  ;;  %v23803_v22 = vmov 0.0   ;;  %v2036_v2 = vld [vmem:[#allocation2 + $0xf8] sm:$0xff]  ;;  %v14581_v47 = vand.u32 4294901760, %v2019_v6 }
 0xb9e   :  { %v17134_v46 = vpop.f32.mrb[44].mxu0 }
 0xb9f   :  { %v17135_v19 = vpop.f32.mrb[45].mxu0 }
 0xba0   :  { %v17136_v17 = vadd.f32 %v17135_v19, %v17134_v46  ;;  %v14591_v46 = vand.u32 4294901760, %v2044_v11  ;;  %v2035_v19 = vld [vmem:[#allocation2 + $0xf0] sm:$0xff] }
 0xba7   :  { %v17099_v26 = vpop.f32.mrb[48].mxu1 }
 0xba8   :  { %v17100_v24 = vpop.f32.mrb[49].mxu1 }
 0xba9   :  { %v17101_v37 = vadd.f32 %v17100_v24, %v17099_v26 }
 0xbab   :  { %v12564_v58 = vadd.f32 %v17101_v37, %v12426_v39  ;;  %v14579_v39 = vand.u32 4294901760, %v2020_v61 }
 0xbad   :  { %v12672_v12 = vadd.f32 %v17136_v17, %v12564_v58  ;;  %v22532_v48 = vsub.f32 %v2020_v61, %v14579_v39  ;;  %v2043_v17 = vld [vmem:[#allocation2 + $0x130] sm:$0xff]  ;;  %v22549_v58 = vsub.f32 %v2044_v11, %v14591_v46 }
 0xbae   :  { %v14593_v24 = vand.u32 4294901760, %v2043_v17 }
 0xbbe   :  { %v17204_v43 = vpop.f32.mrb[46].mxu0 }
 0xbbf   :  { %v17205_v44 = vpop.f32.mrb[47].mxu0 }
 0xbc0   :  { %v17206_v34 = vadd.f32 %v17205_v44, %v17204_v43  ;;  %v22567_v44 = vsub.f32 %v2043_v17, %v14593_v24 }
 0xbc7   :  { %v17169_v30 = vpop.f32.mrb[50].mxu1 }
 0xbc8   :  { %v17170_v45 = vpop.f32.mrb[51].mxu1 }
 0xbc9   :  { %v17171_v16 = vadd.f32 %v17170_v45, %v17169_v30  ;;  %v14701_v30 = vand.u32 4294901760, %v22549_v58  ;;  %v23807_v45 = vpack.c.bf16 %v22432_v60, %v22430_v4  ;;  %v14707_v4 = vand.u32 4294901760, %v22567_v44 }
 0xbcb   :  { %v12840_v20 = vadd.f32 %v17171_v16, %v12672_v12  ;;  %v22561_v12 = vpack.c.bf16 %v14583_v35, %v14579_v39  ;;  %v14702_v39 = vsub.f32 %v22549_v58, %v14701_v30  ;;  %v14708_v11 = vsub.f32 %v22567_v44, %v14707_v4 }
 0xbcd   :  { %v12944_v49 = vadd.f32 %v17206_v34, %v12840_v20 }
 0xbcf   :  { %v12948_v59 = vsel %vm2488_vm6, %v12944_v49, 0 }
 0xbd0   :  { %v22506_v31 = vand.u32 4294901760, %v12948_v59 }
 0xbd2   :  { %v22509_v54 = vsub.f32 %v12948_v59, %v22506_v31 }
 0xbd4   :  { %13772 = vmatmul.mubr.f32.vlgmr.msra.gmra.mrb[48].mxu0 %v22509_v54  ;;  %v22513_v27 = vand.u32 4294901760, %v22509_v54 }
 0xbd5   :  { %18050 = vmatpush1.bf16.msra.mxu0 %v22396_v0  ;;  %13850 = vmatprep.mubr.f32.mxu0 %v23803_v22 }
 0xbd6   :  { %18052 = vmatprep.subr.bf16.mxu0 %v22414_v32  ;;  %v13026_v63 = vsub.f32 %v22509_v54, %v22513_v27 }
 0xbd8   :  { %v22520_v56 = vand.u32 4294901760, %v13026_v63 }
 0xbd9   :  { %18054 = vmatpush1.bf16.msra.mxu0 %v22420_v36 }
 0xbda   :  { %13028 = vmatmul.mubr.f32.vlgmr.msra.gmra.mrb[52].mxu1 %v22520_v56  ;;  %18056 = vmatprep.subr.bf16.mxu0 %v22445_v57  ;;  %v14585_v57 = vand.u32 4294901760, %v2027_v25 }
 0xbdb   :  { %17986 = vmatpush1.bf16.msra.mxu1 %v22459_v29  ;;  %13138 = vmatprep.mubr.f32.mxu1 %v23803_v22  ;;  %v14587_v29 = vand.u32 4294901760, %v2036_v2 }
 0xbdc   :  { %13854 = vmatmul.mubr.f32.vlgmr.msra.gmra.mrb[48].mxu0 %v22513_v27  ;;  %17988 = vmatprep.subr.bf16.mxu1 %v22470_v51  ;;  %v23804_v51 = vpack.c.bf16 %v22405_v13, %v22403_v42  ;;  %v22543_v26 = vsub.f32 %v2027_v25, %v14585_v57  ;;  %v14677_v42 = vand.u32 4294901760, %v22534_v15  ;;  %v23805_v13 = vpack.c.bf16 %v22411_v3, %v22409_v50 }
 0xbdd   :  { %18058 = vmatpush1.bf16.msra.mxu0 %v22451_v38  ;;  %13948 = vmatprep.mubr.f32.mxu0 %v23803_v22  ;;  %v22541_v38 = vsub.f32 %v2019_v6, %v14581_v47  ;;  %v22547_v37 = vsub.f32 %v2036_v2, %v14587_v29  ;;  %v22584_v16 = vpack.c.bf16 %v14585_v57, %v14581_v47 }
 0xbde   :  { %18060 = vmatprep.subr.bf16.mxu0 %v22463_v28  ;;  %v14589_v28 = vand.u32 4294901760, %v2035_v19  ;;  %v14683_v3 = vand.u32 4294901760, %v22543_v26  ;;  %v22586_v20 = vpack.c.bf16 %v14591_v46, %v14587_v29  ;;  %v14703_v29 = vand.u32 4294901760, %v14702_v39  ;;  %v23808_v46 = vld [vmem:[#allocation15_spill] sm:$0xff]  ;;  %v2033_v39 = vld [vmem:[#allocation2 + $0xe0] sm:$0xff] }
 0xbdf   :  { %17990 = vmatpush1.bf16.msra.mxu1 %v22472_v33  ;;  %v14665_v33 = vand.u32 4294901760, %v22532_v48  ;;  %v14671_v50 = vand.u32 4294901760, %v22541_v38  ;;  %v14689_v34 = vand.u32 4294901760, %v22547_v37 }
 0xbe0   :  { %17992 = vmatprep.subr.bf16.mxu1 %v23804_v51  ;;  %v22565_v43 = vsub.f32 %v2035_v19, %v14589_v28  ;;  %v14684_v59 = vsub.f32 %v22543_v26, %v14683_v3  ;;  %v22609_v35 = vpack.c.bf16 %v14593_v24, %v14589_v28  ;;  %v14709_v51 = vand.u32 4294901760, %v14708_v11 }
 0xbe1   :  { %18062 = vmatpush1.bf16.msra.mxu0 %v22474_v40  ;;  %v23806_v40 = vpack.c.bf16 %v22426_v55, %v22418_v53  ;;  %v14666_v53 = vsub.f32 %v22532_v48, %v14665_v33  ;;  %v14678_v55 = vsub.f32 %v22534_v15, %v14677_v42  ;;  %v14672_v49 = vsub.f32 %v22541_v38, %v14671_v50 }
 0xbe2   :  { %13140 = vmatmul.mubr.f32.vlgmr.msra.gmra.mrb[52].mxu1 %v22506_v31  ;;  %18064 = vmatprep.subr.bf16.mxu0 %v22387_v62  ;;  %v14695_v63 = vand.u32 4294901760, %v22565_v43  ;;  %v14690_v14 = vsub.f32 %v22547_v37, %v14689_v34  ;;  %v14685_v25 = vand.u32 4294901760, %v14684_v59 }
 0xbe3   :  { %17994 = vmatpush1.bf16.msra.mxu1 %v23805_v13  ;;  %13226 = vmatprep.mubr.f32.mxu1 %v23803_v22  ;;  %v14667_v60 = vand.u32 4294901760, %v14666_v53  ;;  %v14679_v61 = vand.u32 4294901760, %v14678_v55  ;;  %v14673_v6 = vand.u32 4294901760, %v14672_v49  ;;  %v2026_v13 = vld [vmem:[#allocation2 + $0xa8] sm:$0xff]  ;;  %v2017_v53 = vld [vmem:[#allocation2 + $0x60] sm:$0xff] }
 0xbe4   :  { %13950 = vmatmul.mubr.f32.vlgmr.msra.gmra.mrb[48].mxu0 %v22506_v31  ;;  %17996 = vmatprep.subr.bf16.mxu1 %v23806_v40  ;;  %v14696_v2 = vsub.f32 %v22565_v43, %v14695_v63  ;;  %v14691_v57 = vand.u32 4294901760, %v14690_v14  ;;  %v14040_v40 = vand.u32 4294901760, %v2026_v13  ;;  %v2025_v55 = vld [vmem:[#allocation2 + $0xa0] sm:$0xff]  ;;  %v14038_v49 = vand.u32 4294901760, %v2017_v53 }
 0xbe5   :  { %18066 = vmatpush1.bf16.msra.mxu0 %v22396_v0  ;;  %14028 = vmatprep.mubr.f32.mxu0 %v23803_v22  ;;  %v18127_v47 = vpack.c.bf16 %v14679_v61, %v14667_v60  ;;  %v18129_v19 = vpack.c.bf16 %v14685_v25, %v14673_v6  ;;  %v14042_v59 = vand.u32 4294901760, %v2025_v55  ;;  %v2041_v6 = vld [vmem:[#allocation2 + $0x120] sm:$0xff] }
 0xbe6   :  { %18068 = vmatprep.subr.bf16.mxu0 %v22414_v32  ;;  %v14697_v17 = vand.u32 4294901760, %v14696_v2  ;;  %v18131_v28 = vpack.c.bf16 %v14703_v29, %v14691_v57  ;;  %v22655_v60 = vsub.f32 %v2026_v13, %v14040_v40  ;;  %v14046_v2 = vand.u32 4294901760, %v2033_v39 }
 0xbe7   :  { %17998 = vmatpush1.bf16.msra.mxu1 %v23807_v45  ;;  %v2034_v45 = vld [vmem:[#allocation2 + $0xe8] sm:$0xff]  ;;  %v22667_v25 = vsub.f32 %v2025_v55, %v14042_v59  ;;  %v14050_v11 = vand.u32 4294901760, %v2041_v6 }
 0xbe8   :  { %18000 = vmatprep.subr.bf16.mxu1 %v22401_v1  ;;  %v18133_v24 = vpack.c.bf16 %v14709_v51, %v14697_v17  ;;  %v14044_v61 = vand.u32 4294901760, %v2034_v45 }
 0xbe9   :  { %18070 = vmatpush1.bf16.msra.mxu0 %v22420_v36  ;;  %v18077_v17 = vpack.c.bf16 %v14050_v11, %v14046_v2 }
 0xbea   :  { %13229 = vmatmul.mubr.f32.vlgmr.msra.gmra.mrb[52].mxu1 %v22509_v54  ;;  %18120 = vmatprep.subr.bf16.mxu0 %v22561_v12 }
 0xbeb   :  { %18002 = vmatpush1.bf16.msra.mxu1 %v22407_v7  ;;  %13307 = vmatprep.mubr.f32.mxu1 %v23803_v22 }
 0xbec   :  { %14030 = vmatmul.mubr.f32.vlgmr.msra.gmra.mrb[48].mxu0 %v22506_v31  ;;  %18004 = vmatprep.subr.bf16.mxu1 %v22424_v21 }
 0xbed   :  { %18122 = vmatpush1.bf16.msra.mxu0 %v22584_v16  ;;  %14651 = vmatprep.mubr.f32.mxu0 %v23803_v22 }
 0xbee   :  { %18124 = vmatprep.subr.bf16.mxu0 %v22586_v20 }
 0xbef   :  { %18006 = vmatpush1.bf16.msra.mxu1 %v23808_v46 }
 0xbf0   :  { %18008 = vmatprep.subr.bf16.mxu1 %v22481_v18  ;;  %v18135_v18 = vpack.c.bf16 %v22534_v15, %v22532_v48  ;;  %v14134_v48 = vand.u32 4294901760, %v22655_v60 }
 0xbf1   :  { %18126 = vmatpush1.bf16.msra.mxu0 %v22609_v35 }
 0xbf2   :  { %13311 = vmatmul.mubr.f32.vlgmr.msra.gmra.mrb[52].mxu1 %v22513_v27  ;;  %18128 = vmatprep.subr.bf16.mxu0 %v18127_v47  ;;  %v22670_v47 = vsub.f32 %v2034_v45, %v14044_v61 }
 0xbf3   :  { %18010 = vmatpush1.bf16.msra.mxu1 %v22483_v9  ;;  %13405 = vmatprep.mubr.f32.mxu1 %v23803_v22  ;;  %v18137_v9 = vpack.c.bf16 %v22543_v26, %v22541_v38  ;;  %v22692_v38 = vsub.f32 %v2041_v6, %v14050_v11 }
 0xbf4   :  { %14657 = vmatmul.mubr.f32.vlgmr.msra.gmra.mrb[50].mxu0 %v22520_v56  ;;  %18012 = vmatprep.subr.bf16.mxu1 %v22485_v8  ;;  %v18139_v8 = vpack.c.bf16 %v22549_v58, %v22547_v37  ;;  %v14146_v58 = vand.u32 4294901760, %v22670_v47 }
 0xbf5   :  { %18130 = vmatpush1.bf16.msra.mxu0 %v18129_v19  ;;  %14767 = vmatprep.mubr.f32.mxu0 %v23803_v22 }
 0xbf6   :  { %18132 = vmatprep.subr.bf16.mxu0 %v18131_v28 }
 0xbf7   :  { %18014 = vmatpush1.bf16.msra.mxu1 %v22487_v23  ;;  %v2018_v23 = vld [vmem:[#allocation2 + $0x68] sm:$0xff] }
 0xbf8   :  { %18016 = vmatprep.subr.bf16.mxu1 %v22401_v1  ;;  %v18141_v1 = vpack.c.bf16 %v22567_v44, %v22565_v43 }
 0xbf9   :  { %18134 = vmatpush1.bf16.msra.mxu0 %v18133_v24 }
 0xbfa   :  { %13407 = vmatmul.mubr.f32.vlgmr.msra.gmra.mrb[52].mxu1 %v22506_v31  ;;  %18136 = vmatprep.subr.bf16.mxu0 %v18135_v18 }
 0xbfb   :  { %18018 = vmatpush1.bf16.msra.mxu1 %v22407_v7  ;;  %13485 = vmatprep.mubr.f32.mxu1 %v23803_v22  ;;  %v14036_v7 = vand.u32 4294901760, %v2018_v23 }
 0xbfc   :  { %14769 = vmatmul.mubr.f32.vlgmr.msra.gmra.mrb[50].mxu0 %v22506_v31  ;;  %18020 = vmatprep.subr.bf16.mxu1 %v22424_v21  ;;  %v2042_v21 = vld [vmem:[#allocation2 + $0x128] sm:$0xff] }
 0xbfd   :  { %18138 = vmatpush1.bf16.msra.mxu0 %v18137_v9  ;;  %14855 = vmatprep.mubr.f32.mxu0 %v23803_v22  ;;  %v14048_v14 = vand.u32 4294901760, %v2042_v21  ;;  %v22686_v15 = vpack.c.bf16 %v14040_v40, %v14036_v7 }
 0xbfe   :  { %18140 = vmatprep.subr.bf16.mxu0 %v18139_v8 }
 0xbff   :  { %18022 = vmatpush1.bf16.msra.mxu1 %v23808_v46  ;;  %v22672_v57 = vsub.f32 %v2042_v21, %v14048_v14 }
 0xc00   :  { %18024 = vmatprep.subr.bf16.mxu1 %v22387_v62  ;;  %v22653_v62 = vsub.f32 %v2018_v23, %v14036_v7 }
 0xc01   :  { %18142 = vmatpush1.bf16.msra.mxu0 %v18141_v1 }
 0xc02   :  { %13487 = vmatmul.mubr.f32.vlgmr.msra.gmra.mrb[52].mxu1 %v22506_v31  ;;  %18144 = vmatprep.subr.bf16.mxu0 %v22561_v12  ;;  %v14122_v29 = vand.u32 4294901760, %v22653_v62 }
 0xc03   :  { %18026 = vmatpush1.bf16.msra.mxu1 %v22396_v0  ;;  %13565 = vmatprep.mubr.f32.mxu1 %v23803_v22  ;;  %v18151_v0 = vpack.c.bf16 %v14677_v42, %v14665_v33  ;;  %v22690_v33 = vsub.f32 %v2033_v39, %v14046_v2  ;;  %v14140_v42 = vand.u32 4294901760, %v22667_v25  ;;  %v23809_v39 = vld [vmem:[#allocation29_spill] sm:$0xff] }
 0xc04   :  { %14858 = vmatmul.mubr.f32.vlgmr.msra.gmra.mrb[50].mxu0 %v22509_v54  ;;  %18028 = vmatprep.subr.bf16.mxu1 %v22414_v32  ;;  %v22665_v32 = vsub.f32 %v2017_v53, %v14038_v49  ;;  %v14123_v37 = vsub.f32 %v22653_v62, %v14122_v29  ;;  %v18103_v53 = vpack.c.bf16 %v14134_v48, %v14122_v29 }
 0xc05   :  { %18146 = vmatpush1.bf16.msra.mxu0 %v22584_v16  ;;  %14936 = vmatprep.mubr.f32.mxu0 %v23803_v22  ;;  %v14141_v43 = vsub.f32 %v22667_v25, %v14140_v42  ;;  %v14152_v44 = vand.u32 4294901760, %v22690_v33 }
 0xc06   :  { %18148 = vmatprep.subr.bf16.mxu0 %v22586_v20  ;;  %v14128_v26 = vand.u32 4294901760, %v22665_v32 }
 0xc07   :  { %18030 = vmatpush1.bf16.msra.mxu1 %v22420_v36  ;;  %v18153_v36 = vpack.c.bf16 %v14683_v3, %v14671_v50  ;;  %v14158_v50 = vand.u32 4294901760, %v22672_v57  ;;  %v18157_v3 = vpack.c.bf16 %v14707_v4, %v14695_v63  ;;  %v14164_v63 = vand.u32 4294901760, %v22692_v38 }
 0xc08   :  { %18032 = vmatprep.subr.bf16.mxu1 %v22494_v5  ;;  %v18155_v5 = vpack.c.bf16 %v14701_v30, %v14689_v34  ;;  %v22713_v34 = vpack.c.bf16 %v14048_v14, %v14044_v61  ;;  %v14129_v30 = vsub.f32 %v22665_v32, %v14128_v26  ;;  %v14124_v4 = vand.u32 4294901760, %v14123_v37  ;;  %v23812_v37 = vld [vmem:[#allocation8_spill] sm:$0xff] }
 0xc09   :  { %18150 = vmatpush1.bf16.msra.mxu0 %v22609_v35  ;;  %v14159_v19 = vsub.f32 %v22672_v57, %v14158_v50  ;;  %v14142_v28 = vand.u32 4294901760, %v14141_v43  ;;  %v14153_v24 = vsub.f32 %v22690_v33, %v14152_v44  ;;  %v14165_v18 = vsub.f32 %v22692_v38, %v14164_v63 }
 0xc0a   :  { %13571 = vmatmul.mubr.f32.vlgmr.msra.gmra.mrb[54].mxu1 %v22520_v56  ;;  %18152 = vmatprep.subr.bf16.mxu0 %v18151_v0  ;;  %v14130_v51 = vand.u32 4294901760, %v14129_v30  ;;  %v18105_v55 = vpack.c.bf16 %v14140_v42, %v14128_v26  ;;  %v18109_v45 = vpack.c.bf16 %v14164_v63, %v14152_v44  ;;  %v23810_v0 = vld [vmem:[#allocation30_spill] sm:$0xff]  ;;  %v23811_v26 = vld [vmem:[#allocation13_spill] sm:$0xff] }
 0xc0b   :  { %18034 = vmatpush1.bf16.msra.mxu1 %v22496_v52  ;;  %13681 = vmatprep.mubr.f32.mxu1 %v23803_v22  ;;  %v14135_v52 = vsub.f32 %v22655_v60, %v14134_v48  ;;  %v14160_v1 = vand.u32 4294901760, %v14159_v19  ;;  %v14154_v23 = vand.u32 4294901760, %v14153_v24  ;;  %v14166_v13 = vand.u32 4294901760, %v14165_v18  ;;  %v23815_v19 = vld [vmem:[#allocation33_spill] sm:$0xff] }
 0xc0c   :  { %14940 = vmatmul.mubr.f32.vlgmr.msra.gmra.mrb[50].mxu0 %v22513_v27  ;;  %18036 = vmatprep.subr.bf16.mxu1 %v22501_v41  ;;  %v22711_v41 = vpack.c.bf16 %v14042_v59, %v14038_v49 }
 0xc0d   :  { %18154 = vmatpush1.bf16.msra.mxu0 %v18153_v36  ;;  %15034 = vmatprep.mubr.f32.mxu0 %v23803_v22  ;;  %v14136_v46 = vand.u32 4294901760, %v14135_v52  ;;  %v18085_v40 = vpack.c.bf16 %v14166_v13, %v14154_v23  ;;  %v23817_v13 = vld [vmem:[#allocation37_spill] sm:$0xff] }
 0xc0e   :  { %18156 = vmatprep.subr.bf16.mxu0 %v18155_v5 }
 0xc0f   :  { %18038 = vmatpush1.bf16.msra.mxu1 %v22503_v10  ;;  %v14147_v10 = vsub.f32 %v22670_v47, %v14146_v58  ;;  %v18079_v9 = vpack.c.bf16 %v14136_v46, %v14124_v4  ;;  %v23814_v46 = vld [vmem:[#allocation23_spill] sm:$0xff] }
 0xc10   :  { %18072 = vmatprep.subr.bf16.mxu1 %v22686_v15 }
 0xc11   :  { %18158 = vmatpush1.bf16.msra.mxu0 %v18157_v3  ;;  %v14148_v8 = vand.u32 4294901760, %v14147_v10 }
 0xc12   :  { %13683 = vmatmul.mubr.f32.vlgmr.msra.gmra.mrb[54].mxu1 %v22506_v31  ;;  %18160 = vmatprep.subr.bf16.mxu0 %v22561_v12  ;;  %v18081_v12 = vpack.c.bf16 %v14142_v28, %v14130_v51 }
 0xc13   :  { %18074 = vmatpush1.bf16.msra.mxu1 %v22711_v41  ;;  %14108 = vmatprep.mubr.f32.mxu1 %v23803_v22  ;;  %v18083_v7 = vpack.c.bf16 %v14160_v1, %v14148_v8 }
 0xc14   :  { %15036 = vmatmul.mubr.f32.vlgmr.msra.gmra.mrb[50].mxu0 %v22506_v31  ;;  %18076 = vmatprep.subr.bf16.mxu1 %v22713_v34 }
 0xc15   :  { %18162 = vmatpush1.bf16.msra.mxu0 %v22584_v16  ;;  %15114 = vmatprep.mubr.f32.mxu0 %v23803_v22  ;;  %v18087_v16 = vpack.c.bf16 %v22655_v60, %v22653_v62 }
 0xc16   :  { %18164 = vmatprep.subr.bf16.mxu0 %v22586_v20  ;;  %v18089_v20 = vpack.c.bf16 %v22667_v25, %v22665_v32 }
 0xc17   :  { %18078 = vmatpush1.bf16.msra.mxu1 %v18077_v17 }
 0xc18   :  { %18080 = vmatprep.subr.bf16.mxu1 %v18079_v9 }
 0xc19   :  { %18166 = vmatpush1.bf16.msra.mxu0 %v22609_v35  ;;  %v18091_v35 = vpack.c.bf16 %v22672_v57, %v22670_v47 }
 0xc1a   :  { %14114 = vmatmul.mubr.f32.vlgmr.msra.gmra.mrb[56].mxu1 %v22520_v56  ;;  %v18093_v56 = vpack.c.bf16 %v22692_v38, %v22690_v33 }
 0xc1b   :  { %18082 = vmatpush1.bf16.msra.mxu1 %v18081_v12  ;;  %14224 = vmatprep.mubr.f32.mxu1 %v23803_v22  ;;  %v23816_v12 = vld [vmem:[#allocation66_spill] sm:$0xff] }
 0xc1c   :  { %15116 = vmatmul.mubr.f32.vlgmr.msra.gmra.mrb[50].mxu0 %v22506_v31  ;;  %18084 = vmatprep.subr.bf16.mxu1 %v18083_v7 }
 0xc1f   :  { %18086 = vmatpush1.bf16.msra.mxu1 %v18085_v40 }
 0xc20   :  { %18088 = vmatprep.subr.bf16.mxu1 %v18087_v16 }
 0xc22   :  { %14226 = vmatmul.mubr.f32.vlgmr.msra.gmra.mrb[56].mxu1 %v22506_v31 }
 0xc23   :  { %18090 = vmatpush1.bf16.msra.mxu1 %v18089_v20  ;;  %14312 = vmatprep.mubr.f32.mxu1 %v23803_v22 }
 0xc24   :  { %18092 = vmatprep.subr.bf16.mxu1 %v18091_v35 }
 0xc27   :  { %18094 = vmatpush1.bf16.msra.mxu1 %v18093_v56 }
 0xc28   :  { %18096 = vmatprep.subr.bf16.mxu1 %v22686_v15 }
 0xc2a   :  { %14315 = vmatmul.mubr.f32.vlgmr.msra.gmra.mrb[56].mxu1 %v22509_v54  ;;  %v18107_v54 = vpack.c.bf16 %v14158_v50, %v14146_v58  ;;  %v23813_v58 = vld [vmem:[#allocation18_spill] sm:$0xff] }
 0xc2b   :  { %18098 = vmatpush1.bf16.msra.mxu1 %v22711_v41  ;;  %14393 = vmatprep.mubr.f32.mxu1 %v23803_v22 }
 0xc2c   :  { %18100 = vmatprep.subr.bf16.mxu1 %v22713_v34 }
 0xc2f   :  { %18102 = vmatpush1.bf16.msra.mxu1 %v18077_v17 }
 0xc30   :  { %18104 = vmatprep.subr.bf16.mxu1 %v18103_v53 }
 0xc32   :  { %14397 = vmatmul.mubr.f32.vlgmr.msra.gmra.mrb[56].mxu1 %v22513_v27 }
 0xc33   :  { %18106 = vmatpush1.bf16.msra.mxu1 %v18105_v55  ;;  %14491 = vmatprep.mubr.f32.mxu1 %v23803_v22 }
 0xc34   :  { %18108 = vmatprep.subr.bf16.mxu1 %v18107_v54 }
 0xc37   :  { %18110 = vmatpush1.bf16.msra.mxu1 %v18109_v45 }
 0xc38   :  { %18112 = vmatprep.subr.bf16.mxu1 %v22686_v15 }
 0xc3a   :  { %14493 = vmatmul.mubr.f32.vlgmr.msra.gmra.mrb[56].mxu1 %v22506_v31 }
 0xc3b   :  { %18114 = vmatpush1.bf16.msra.mxu1 %v22711_v41  ;;  %14571 = vmatprep.mubr.f32.mxu1 %v23803_v22 }
 0xc3c   :  { %18116 = vmatprep.subr.bf16.mxu1 %v22713_v34 }
 0xc3f   :  { %18118 = vmatpush1.bf16.msra.mxu1 %v18077_v17 }
 0xc42   :  { %14573 = vmatmul.mubr.f32.vlgmr.msra.gmra.mrb[56].mxu1 %v22506_v31  ;;  %v18559_v31 = vmov 1983009808  }
 0xc43   :  { %v15157_v57 = vunpack.c.l.s4 %v18559_v31 }
 0xc45   :  { %v15158_v5 = vunpack.c.0.s8 %v15157_v57 }
 0xc47   :  { %v15161_v52 = vsub.s32 %v15158_v5, %v23812_v37 }
 0xcbf   :  { %v14031_v27 = vpop.f32.mrb[48].mxu0 }
 0xcc0   :  { %v14033_v21 = vpop.f32.mrb[49].mxu0 }
 0xcd5   :  { %v13488_v49 = vpop.f32.mrb[52].mxu1 }
 0xcd6   :  { %18481 = vlog2.f32 %v13488_v49  ;;  %v13490_v59 = vpop.f32.mrb[53].mxu1 }
 0xcd7   :  { %18483 = vlog2.f32 %v13490_v59 }
 0xce0   :  { %v18482_v62 = vpop.eup %18481 }
 0xce1   :  { %v18484_v60 = vpop.eup %18483  ;;  %v15123_v61 = vmul.f32 0.6931472, %v18482_v62 }
 0xce2   :  { %v15125_v14 = vmul.f32 0.6931472, %v18484_v60 }
 0xce3   :  { %v15138_v6 = vsub.f32 %v23809_v39, %v15123_v61 }
 0xce4   :  { %v15139_v32 = vsub.f32 %v23810_v0, %v15125_v14 }
 0xce5   :  { %v13684_v22 = vpop.f32.mrb[54].mxu1 }
 0xce6   :  { %v15154_v25 = vcombine.low %v15138_v6, %v15139_v32  ;;  %v18183_v2 = vadd.f32 %v14031_v27, %v13684_v22  ;;  %v13686_v11 = vpop.f32.mrb[55].mxu1 }
 0xce7   :  { %v18184_v47 = vadd.f32 %v14033_v21, %v13686_v11 }
 0xce8   :  { %18485 = vlog2.f32 %v18183_v2  ;;  %v15162_v34 = vrot.slane %v15154_v25, %v15161_v52 }
 0xce9   :  { %18487 = vlog2.f32 %v18184_v47 }
 0xcef   :  { %v15117_v29 = vpop.f32.mrb[50].mxu0 }
 0xcf0   :  { %18489 = vlog2.f32 %v15117_v29  ;;  %v15119_v48 = vpop.f32.mrb[51].mxu0 }
 0xcf1   :  { %18491 = vlog2.f32 %v15119_v48 }
 0xcf2   :  { %v18486_v36 = vpop.eup %18485 }
 0xcf3   :  { %v18488_v15 = vpop.eup %18487  ;;  %v15127_v33 = vmul.f32 0.6931472, %v18486_v36 }
 0xcf4   :  { %v15129_v38 = vmul.f32 0.6931472, %v18488_v15 }
 0xcf5   :  { %v15140_v42 = vsub.f32 %v23811_v26, %v15127_v33 }
 0xcf6   :  { %v15141_v50 = vsub.f32 %v23813_v58, %v15129_v38 }
 0xcf8   :  { %v15155_v3 = vcombine.low %v15140_v42, %v15141_v50 }
 0xcfa   :  { %v18490_v41 = vpop.eup %18489  ;;  %v15169_v30 = vrot.slane %v15155_v3, %v15161_v52 }
 0xcfb   :  { %v18492_v43 = vpop.eup %18491  ;;  %v15135_v44 = vmul.f32 0.6931472, %v18490_v41 }
 0xcfc   :  { %v15170_v63 = vcombine.low %v15162_v34, %v15169_v30  ;;  %v15137_v4 = vmul.f32 0.6931472, %v18492_v43 }
 0xcfd   :  { %v15144_v10 = vsub.f32 %v23814_v46, %v15135_v44 }
 0xcfe   :  { %15190 = vst [vmem:[%s22802_s6] sm:$0xff] %v15170_v63  ;;  %v15145_v17 = vsub.f32 %v23815_v19, %v15137_v4 }
 0xd00   :  { %v15172_v51 = vcombine.low %v15144_v10, %v15145_v17 }
 0xd02   :  { %v15186_v16 = vrot.slane %v15172_v51, %v15161_v52 }
 0xd15   :  { %v14574_v28 = vpop.f32.mrb[56].mxu1 }
 0xd16   :  { %18493 = vlog2.f32 %v14574_v28  ;;  %v14576_v24 = vpop.f32.mrb[57].mxu1 }
 0xd17   :  { %18495 = vlog2.f32 %v14576_v24 }
 0xd20   :  { %v18494_v18 = vpop.eup %18493 }
 0xd21   :  { %v18496_v9 = vpop.eup %18495  ;;  %v15131_v8 = vmul.f32 0.6931472, %v18494_v18 }
 0xd22   :  { %v15133_v1 = vmul.f32 0.6931472, %v18496_v9 }
 0xd23   :  { %v15142_v23 = vsub.f32 %v23816_v12, %v15131_v8 }
 0xd24   :  { %v15143_v7 = vsub.f32 %v23817_v13, %v15133_v1 }
 0xd26   :  { %v15171_v40 = vcombine.low %v15142_v23, %v15143_v7 }
 0xd28   :  { %v15179_v20 = vrot.slane %v15171_v40, %v15161_v52 }
 0xd2a   :  { %v15187_v35 = vcombine.low %v15179_v20, %v15186_v16 }
 0xd2c   :  { %15191 = vst [vmem:[%s22802_s6 + $0x8] sm:$0xff] %v15187_v35 }
 0xd2d   :  { %15196 = vsyncpa [#allocation3], 1 }
 0xd2e   :  { %15197 = vsyncpa [#allocation5], 1 }

</bundles_post_ra>
